<compile_context>
chip_gen: v7x
topology: tpu7x:2x2x1
jax: 0.10.0
libtpu: 0.0.40
codegen_flags: <defaults>
</compile_context>

<pallas_src>
import numpy as np
import jax
import jax.numpy as jnp
from jax.experimental import pallas as pl
from jax.experimental.pallas import tpu as pltpu


# ----------------------------- kernel math ---------------------------------
def _gru_cell_math(x, h, wx, kru, ko, b):
    """x: (Bp, F) f32, h: (Bp, SC) f32, wx: (F, 3*SC) bf16, kru: (SC, 2*SC) bf16,
    ko: (SC, SC) bf16, b: (1, 3*SC) f32.  Gate order is [reset | update | output].
    Returns (new_h, update_gate) in f32."""
    SC = h.shape[-1]
    # Fused Linear(x) for all three gates and fused Conv(h) for reset+update,
    # bf16 inputs on the MXU, f32 accumulation.
    xg = jnp.dot(x.astype(jnp.bfloat16), wx, preferred_element_type=jnp.float32)
    hg = jnp.dot(h.astype(jnp.bfloat16), kru, preferred_element_type=jnp.float32)

    reset_gate = jax.nn.sigmoid(xg[:, 0:SC] + hg[:, 0:SC] + b[:, 0:SC])
    update_gate = jax.nn.sigmoid(xg[:, SC:2 * SC] + hg[:, SC:2 * SC] + b[:, SC:2 * SC])

    rs = reset_gate * h
    og = jnp.dot(rs.astype(jnp.bfloat16), ko, preferred_element_type=jnp.float32)
    cand = jnp.tanh(xg[:, 2 * SC:3 * SC] + og + b[:, 2 * SC:3 * SC])

    new_h = (1.0 - update_gate) * h + update_gate * cand
    return new_h, update_gate


def convgru3d_cell_kernel(x_ref, h_ref, wx_ref, kru_ref, ko_ref, b_ref,
                          out_ref, upd_ref):
    new_h, upd = _gru_cell_math(x_ref[...], h_ref[...],
                                wx_ref[...], kru_ref[...], ko_ref[...], b_ref[...])
    out_ref[...] = new_h
    upd_ref[...] = upd


def convgru3d_seq_kernel(x_ref, h0_ref, wx_ref, kru_ref, ko_ref, b_ref,
                         hout_ref, upd_ref, hstate):
    # grid axis 0 = time; weights have constant index_maps so they are fetched
    # once and stay resident in VMEM; h carried across steps in VMEM scratch.
    @pl.when(pl.program_id(0) == 0)
    def _():
        hstate[...] = h0_ref[...]

    new_h, upd = _gru_cell_math(x_ref[0], hstate[...],
                                wx_ref[...], kru_ref[...], ko_ref[...], b_ref[...])
    hstate[...] = new_h
    hout_ref[0] = new_h
    upd_ref[0] = upd


# ------------------------ one-time weight packing ---------------------------
def fc_to_kernel_layout(w_fc, b_fc, C, G):
    """PyTorch Linear weight (C*G^3, F) / bias (C*G^3,) whose flat output index
    unravels as (c, d, h, w)  ->  kernel column index ((d*G+h)*G+w)*C + c.
    Returns (F, S*C) weight and (S*C,) bias (f32)."""
    S = G ** 3
    F = w_fc.shape[1]
    w = jnp.asarray(w_fc).reshape(C, G, G, G, F).transpose(1, 2, 3, 0, 4).reshape(S * C, F)
    b = jnp.asarray(b_fc).reshape(C, G, G, G).transpose(1, 2, 3, 0).reshape(S * C)
    return w.T, b


def conv_to_dense(w_conv, b_conv, G):
    """Conv3d weight (Cout, Cin, k, k, k), 'same' zero padding -> dense matrix
    K (S*Cin, S*Cout) s.t. conv(h) == h_flat @ K, plus tiled bias.
    Host loops: init-time only (cached), never on the forward path."""
    Cout, Cin, k, _, _ = w_conv.shape
    p = k // 2
    S = G ** 3
    wc = np.asarray(w_conv)
    K = np.zeros((S * Cin, S * Cout), np.float32)
    for do in range(G):
        for ho in range(G):
            for wo in range(G):
                so = (do * G + ho) * G + wo
                for kd in range(k):
                    for kh in range(k):
                        for kw in range(k):
                            di, hi, wi = do + kd - p, ho + kh - p, wo + kw - p
                            if 0 <= di < G and 0 <= hi < G and 0 <= wi < G:
                                si = (di * G + hi) * G + wi
                                K[si * Cin:(si + 1) * Cin,
                                  so * Cout:(so + 1) * Cout] = wc[:, :, kd, kh, kw].T
    b = np.tile(np.asarray(b_conv), S)
    return jnp.asarray(K), jnp.asarray(b)


def pack_convgru3d_params(params, G, C, weight_dtype=jnp.bfloat16):
    """Build the fused, MXU-ready weight slabs once.  Reuse for every call."""
    SC = G ** 3 * C
    per = {}
    for name in ("reset", "update", "output"):
        w_fc, b_fc, w_c, b_c = params[name]
        wf, bf = fc_to_kernel_layout(w_fc, b_fc, C, G)
        km, bc = conv_to_dense(w_c, b_c, G)
        per[name] = (wf, bf + bc, km)
    order = ("reset", "update", "output")
    wx = jnp.concatenate([per[n][0] for n in order], axis=1).astype(weight_dtype)   # (F, 3*SC)
    b = jnp.concatenate([per[n][1] for n in order]).reshape(1, 3 * SC).astype(jnp.float32)
    k_ru = jnp.concatenate([per["reset"][2], per["update"][2]], axis=1).astype(weight_dtype)  # (SC, 2*SC)
    k_o = per["output"][2].astype(weight_dtype)                                               # (SC, SC)
    return {"wx": wx, "k_ru": k_ru, "k_o": k_o, "b": b}


# ------------------------------ layout helpers ------------------------------
def flatten_h(h, G, C):
    # (B, C, D, H, W) -> (B, S*C)  channels-last voxel-major
    B = h.shape[0]
    return h.transpose(0, 2, 3, 4, 1).reshape(B, G ** 3 * C)


def unflatten_h(h_flat, G, C):
    B = h_flat.shape[0]
    return h_flat.reshape(B, G, G, G, C).transpose(0, 4, 1, 2, 3)


def _pad_rows(a, rows):
    if a.shape[0] == rows:
        return a
    pad = [(0, rows - a.shape[0])] + [(0, 0)] * (a.ndim - 1)
    return jnp.pad(a, pad)


_VMEM_LIMIT = 48 * 1024 * 1024   # fits v7x's 64 MiB physical VMEM


# ------------------------------ single step ---------------------------------
def convgru3d_pallas(x, h, packed, G, C):
    """x: (B, fan_in), h: (B, C, G, G, G) -> (gru_out, update_gate), NCDHW."""
    B = x.shape[0]
    SC = G ** 3 * C
    Bp = max(8, ((B + 7) // 8) * 8)

    x_p = _pad_rows(x.astype(jnp.float32), Bp)
    h_flat = _pad_rows(flatten_h(h.astype(jnp.float32), G, C), Bp)

    vmem = pl.BlockSpec(memory_space=pltpu.MemorySpace.VMEM)
    out_flat, upd_flat = pl.pallas_call(
        convgru3d_cell_kernel,
        out_shape=(jax.ShapeDtypeStruct((Bp, SC), jnp.float32),
                   jax.ShapeDtypeStruct((Bp, SC), jnp.float32)),
        in_specs=[vmem] * 6,
        out_specs=(vmem, vmem),
        compiler_params=pltpu.CompilerParams(vmem_limit_bytes=_VMEM_LIMIT),
    )(x_p, h_flat, packed["wx"], packed["k_ru"], packed["k_o"], packed["b"])

    return unflatten_h(out_flat[:B], G, C), unflatten_h(upd_flat[:B], G, C)


# --------------------------- fused time sequence ----------------------------
def convgru3d_sequence_pallas(x_seq, h0, packed, G, C):
    """x_seq: (T, B, fan_in), h0: (B, C, G, G, G) ->
       (h_seq (T,B,C,G,G,G), update_seq (T,B,C,G,G,G)).
    One pallas_call; weights stay VMEM-resident across the T recurrent steps."""
    T, B, F = x_seq.shape
    SC = G ** 3 * C
    Bp = max(8, ((B + 7) // 8) * 8)

    xs = jnp.pad(x_seq.astype(jnp.float32), ((0, 0), (0, Bp - B), (0, 0)))
    h0f = _pad_rows(flatten_h(h0.astype(jnp.float32), G, C), Bp)

    grid_spec = pltpu.PrefetchScalarGridSpec(
        num_scalar_prefetch=0,
        grid=(T,),
        in_specs=[
            pl.BlockSpec((1, Bp, F), lambda t: (t, 0, 0)),          # x_t
            pl.BlockSpec((Bp, SC), lambda t: (0, 0)),               # h0 (once)
            pl.BlockSpec(packed["wx"].shape, lambda t: (0, 0)),     # resident
            pl.BlockSpec(packed["k_ru"].shape, lambda t: (0, 0)),   # resident
            pl.BlockSpec(packed["k_o"].shape, lambda t: (0, 0)),    # resident
            pl.BlockSpec(packed["b"].shape, lambda t: (0, 0)),      # resident
        ],
        out_specs=[
            pl.BlockSpec((1, Bp, SC), lambda t: (t, 0, 0)),
            pl.BlockSpec((1, Bp, SC), lambda t: (t, 0, 0)),
        ],
        scratch_shapes=[pltpu.VMEM((Bp, SC), jnp.float32)],          # carried h
    )

    h_seq, upd_seq = pl.pallas_call(
        convgru3d_seq_kernel,
        out_shape=(jax.ShapeDtypeStruct((T, Bp, SC), jnp.float32),
                   jax.ShapeDtypeStruct((T, Bp, SC), jnp.float32)),
        grid_spec=grid_spec,
        compiler_params=pltpu.CompilerParams(
            dimension_semantics=("arbitrary",),   # time axis is a recurrence
            vmem_limit_bytes=_VMEM_LIMIT),
    )(xs, h0f, packed["wx"], packed["k_ru"], packed["k_o"], packed["b"])

    def unflat_seq(a):
        return a[:, :B].reshape(T, B, G, G, G, C).transpose(0, 1, 5, 2, 3, 4)

    return unflat_seq(h_seq), unflat_seq(upd_seq)


# ------------------------- pure-JAX reference (NCDHW, f32) ------------------
def gru_gate_ref(x, hh, w_fc, b_fc, w_c, b_c, C, G):
    B = x.shape[0]
    lin = (x @ w_fc.T + b_fc).reshape(B, C, G, G, G)
    conv = jax.lax.conv_general_dilated(
        hh, w_c, window_strides=(1, 1, 1), padding="SAME",
        dimension_numbers=("NCDHW", "OIDHW", "NCDHW"))
    return lin + conv + b_c[None, :, None, None, None]


def convgru3d_ref(x, h, params, G, C):
    t_r = gru_gate_ref(x, h, *params["reset"], C, G)
    t_u = gru_gate_ref(x, h, *params["update"], C, G)
    reset_gate = jax.nn.sigmoid(t_r)
    update_gate = jax.nn.sigmoid(t_u)
    rs = reset_gate * h
    t_o = jnp.tanh(gru_gate_ref(x, rs, *params["output"], C, G))
    return (1.0 - update_gate) * h + update_gate * t_o, update_gate


# ----------------------------------- main -----------------------------------
if __name__ == "__main__":
    B, FAN_IN, HIDDEN, GRID, KSIZE, T = 2, 128, 16, 4, 3, 4

    key = jax.random.PRNGKey(0)
    keys = jax.random.split(key, 16)
    ki = iter(keys)

    def init_gate():
        w_fc = jax.random.normal(next(ki), (HIDDEN * GRID ** 3, FAN_IN), jnp.float32) * 0.05
        b_fc = jax.random.normal(next(ki), (HIDDEN * GRID ** 3,), jnp.float32) * 0.05
        w_c = jax.random.normal(next(ki), (HIDDEN, HIDDEN, KSIZE, KSIZE, KSIZE), jnp.float32) * 0.05
        b_c = jax.random.normal(next(ki), (HIDDEN,), jnp.float32) * 0.05
        return (w_fc, b_fc, w_c, b_c)

    params = {"reset": init_gate(), "update": init_gate(), "output": init_gate()}

    # Packed / fused weights built ONCE, reused for every forward call.
    packed = pack_convgru3d_params(params, GRID, HIDDEN)

    x = jax.random.normal(next(ki), (B, FAN_IN), jnp.float32)
    h = jax.random.normal(next(ki), (B, HIDDEN, GRID, GRID, GRID), jnp.float32)

    # ---- single-step cell vs. f32 reference (bf16-weight tolerance) ----
    gru_out, update_gate = convgru3d_pallas(x, h, packed, GRID, HIDDEN)
    gru_out = jax.block_until_ready(gru_out)
    update_gate = jax.block_until_ready(update_gate)

    ref_out, ref_upd = convgru3d_ref(x, h, params, GRID, HIDDEN)
    assert gru_out.shape == (B, HIDDEN, GRID, GRID, GRID)
    assert update_gate.shape == (B, HIDDEN, GRID, GRID, GRID)
    assert jnp.allclose(gru_out, ref_out, atol=2e-2, rtol=2e-2)
    assert jnp.allclose(update_gate, ref_upd, atol=2e-2, rtol=2e-2)

    # ---- fused T-step sequence vs. repeated single-step Pallas cell ----
    x_seq = jax.random.normal(next(ki), (T, B, FAN_IN), jnp.float32)
    h_seq, upd_seq = convgru3d_sequence_pallas(x_seq, h, packed, GRID, HIDDEN)
    h_seq = jax.block_until_ready(h_seq)
    upd_seq = jax.block_until_ready(upd_seq)
    assert h_seq.shape == (T, B, HIDDEN, GRID, GRID, GRID)

    h_cur = h
    for t in range(T):
        h_cur, u_t = convgru3d_pallas(x_seq[t], h_cur, packed, GRID, HIDDEN)
        assert jnp.allclose(h_seq[t], h_cur, atol=1e-4, rtol=1e-4)
        assert jnp.allclose(upd_seq[t], u_t, atol=1e-4, rtol=1e-4)

    print("KERNEL_OK")
</pallas_src>

<mosaic_0001>
module attributes {stable_mosaic.version = 11 : i64} {
  func.func @convgru3d_cell_kernel(%arg0: memref<8x128xf32, #tpu.memory_space<vmem>>, %arg1: memref<8x1024xf32, #tpu.memory_space<vmem>>, %arg2: memref<128x3072xbf16, #tpu.memory_space<vmem>>, %arg3: memref<1024x2048xbf16, #tpu.memory_space<vmem>>, %arg4: memref<1024x1024xbf16, #tpu.memory_space<vmem>>, %arg5: memref<1x3072xf32, #tpu.memory_space<vmem>>, %arg6: memref<8x1024xf32, #tpu.memory_space<vmem>>, %arg7: memref<8x1024xf32, #tpu.memory_space<vmem>>) attributes {dimension_semantics = [], scalar_prefetch = 0 : i64, scratch_operands = 0 : i64, tpu.core_type = #tpu.core_type<tc>} {
    %c0 = arith.constant 0 : index
    %c0_0 = arith.constant 0 : index
    %0 = vector.load %arg0[%c0, %c0_0] : memref<8x128xf32, #tpu.memory_space<vmem>>, vector<8x128xf32>
    %c0_1 = arith.constant 0 : index
    %c0_2 = arith.constant 0 : index
    %1 = vector.load %arg1[%c0_1, %c0_2] : memref<8x1024xf32, #tpu.memory_space<vmem>>, vector<8x1024xf32>
    %c0_3 = arith.constant 0 : index
    %c0_4 = arith.constant 0 : index
    %2 = vector.load %arg2[%c0_3, %c0_4] : memref<128x3072xbf16, #tpu.memory_space<vmem>>, vector<128x3072xbf16>
    %c0_5 = arith.constant 0 : index
    %c0_6 = arith.constant 0 : index
    %3 = vector.load %arg3[%c0_5, %c0_6] : memref<1024x2048xbf16, #tpu.memory_space<vmem>>, vector<1024x2048xbf16>
    %c0_7 = arith.constant 0 : index
    %c0_8 = arith.constant 0 : index
    %4 = vector.load %arg4[%c0_7, %c0_8] : memref<1024x1024xbf16, #tpu.memory_space<vmem>>, vector<1024x1024xbf16>
    %c0_9 = arith.constant 0 : index
    %c0_10 = arith.constant 0 : index
    %5 = vector.load %arg5[%c0_9, %c0_10] : memref<1x3072xf32, #tpu.memory_space<vmem>>, vector<1x3072xf32>
    %6 = arith.truncf %0 : vector<8x128xf32> to vector<8x128xbf16>
    %cst = arith.constant dense<0.000000e+00> : vector<8x3072xf32>
    %7 = tpu.matmul %6, %2, %cst {dimension_numbers = #tpu.dot_dimension_numbers<[1], [0], [0], [1], [0, 0, 1, 1], [], []>} : vector<8x128xbf16>, vector<128x3072xbf16>, vector<8x3072xf32> -> vector<8x3072xf32>
    %8 = arith.truncf %1 : vector<8x1024xf32> to vector<8x1024xbf16>
    %cst_11 = arith.constant dense<0.000000e+00> : vector<8x2048xf32>
    %9 = tpu.matmul %8, %3, %cst_11 {dimension_numbers = #tpu.dot_dimension_numbers<[1], [0], [0], [1], [0, 0, 1, 1], [], []>} : vector<8x1024xbf16>, vector<1024x2048xbf16>, vector<8x2048xf32> -> vector<8x2048xf32>
    %10 = vector.extract_strided_slice %7 {offsets = [0, 0], sizes = [8, 1024], strides = [1, 1]} : vector<8x3072xf32> to vector<8x1024xf32>
    %11 = vector.extract_strided_slice %9 {offsets = [0, 0], sizes = [8, 1024], strides = [1, 1]} : vector<8x2048xf32> to vector<8x1024xf32>
    %12 = arith.addf %10, %11 : vector<8x1024xf32>
    %13 = vector.extract_strided_slice %5 {offsets = [0, 0], sizes = [1, 1024], strides = [1, 1]} : vector<1x3072xf32> to vector<1x1024xf32>
    %14 = vector.broadcast %13 : vector<1x1024xf32> to vector<8x1024xf32>
    %15 = arith.addf %12, %14 : vector<8x1024xf32>
    %16 = arith.negf %15 : vector<8x1024xf32>
    %17 = math.exp %16 : vector<8x1024xf32>
    %cst_12 = arith.constant 1.000000e+00 : f32
    %18 = vector.broadcast %cst_12 : f32 to vector<8x1024xf32>
    %19 = arith.addf %18, %17 : vector<8x1024xf32>
    %20 = arith.divf %18, %19 : vector<8x1024xf32>
    %21 = vector.extract_strided_slice %7 {offsets = [0, 1024], sizes = [8, 1024], strides = [1, 1]} : vector<8x3072xf32> to vector<8x1024xf32>
    %22 = vector.extract_strided_slice %9 {offsets = [0, 1024], sizes = [8, 1024], strides = [1, 1]} : vector<8x2048xf32> to vector<8x1024xf32>
    %23 = arith.addf %21, %22 : vector<8x1024xf32>
    %24 = vector.extract_strided_slice %5 {offsets = [0, 1024], sizes = [1, 1024], strides = [1, 1]} : vector<1x3072xf32> to vector<1x1024xf32>
    %25 = vector.broadcast %24 : vector<1x1024xf32> to vector<8x1024xf32>
    %26 = arith.addf %23, %25 : vector<8x1024xf32>
    %27 = arith.negf %26 : vector<8x1024xf32>
    %28 = math.exp %27 : vector<8x1024xf32>
    %cst_13 = arith.constant 1.000000e+00 : f32
    %29 = vector.broadcast %cst_13 : f32 to vector<8x1024xf32>
    %30 = arith.addf %29, %28 : vector<8x1024xf32>
    %31 = arith.divf %29, %30 : vector<8x1024xf32>
    %32 = arith.mulf %20, %1 : vector<8x1024xf32>
    %33 = arith.truncf %32 : vector<8x1024xf32> to vector<8x1024xbf16>
    %cst_14 = arith.constant dense<0.000000e+00> : vector<8x1024xf32>
    %34 = tpu.matmul %33, %4, %cst_14 {dimension_numbers = #tpu.dot_dimension_numbers<[1], [0], [0], [1], [0, 0, 1, 1], [], []>} : vector<8x1024xbf16>, vector<1024x1024xbf16>, vector<8x1024xf32> -> vector<8x1024xf32>
    %35 = vector.extract_strided_slice %7 {offsets = [0, 2048], sizes = [8, 1024], strides = [1, 1]} : vector<8x3072xf32> to vector<8x1024xf32>
    %36 = arith.addf %35, %34 : vector<8x1024xf32>
    %37 = vector.extract_strided_slice %5 {offsets = [0, 2048], sizes = [1, 1024], strides = [1, 1]} : vector<1x3072xf32> to vector<1x1024xf32>
    %38 = vector.broadcast %37 : vector<1x1024xf32> to vector<8x1024xf32>
    %39 = arith.addf %36, %38 : vector<8x1024xf32>
    %40 = math.tanh %39 : vector<8x1024xf32>
    %cst_15 = arith.constant 1.000000e+00 : f32
    %41 = vector.broadcast %cst_15 : f32 to vector<8x1024xf32>
    %42 = arith.subf %41, %31 : vector<8x1024xf32>
    %43 = arith.mulf %42, %1 : vector<8x1024xf32>
    %44 = arith.mulf %31, %40 : vector<8x1024xf32>
    %45 = arith.addf %43, %44 : vector<8x1024xf32>
    %c0_16 = arith.constant 0 : index
    %c0_17 = arith.constant 0 : index
    %46 = vector.load %arg6[%c0_16, %c0_17] : memref<8x1024xf32, #tpu.memory_space<vmem>>, vector<8x1024xf32>
    tpu.vector_store %arg6[%c0_16, %c0_17], %45 {strides = array<i32>} : memref<8x1024xf32, #tpu.memory_space<vmem>>, vector<8x1024xf32>,
    %c0_18 = arith.constant 0 : index
    %c0_19 = arith.constant 0 : index
    %47 = vector.load %arg7[%c0_18, %c0_19] : memref<8x1024xf32, #tpu.memory_space<vmem>>, vector<8x1024xf32>
    tpu.vector_store %arg7[%c0_18, %c0_19], %31 {strides = array<i32>} : memref<8x1024xf32, #tpu.memory_space<vmem>>, vector<8x1024xf32>,
    return
  }
}

</mosaic_0001>

<bundles_post_ra>
// kernel: tpu_custom_call.1
= control target key start
LH: loop header
LB: loop body
LE: loop exit
PB: predicated region body
PF: predicated region fallthrough
CT: control target
= control target key end

     0   :  { %13 = vsyncpa [#allocation3], 0  ;;  %s15944_s0 = inlined_call_operand.hbm [shape: f32[8,128], index: 0, kind: input, shape index: {}]   ;;  %s15945_s1 = inlined_call_operand.hbm [shape: f32[8,1024], index: 1, kind: input, shape index: {}]   ;;  %s15946_s2 = inlined_call_operand.hbm [shape: bf16[128,3072], index: 2, kind: input, shape index: {}]   ;;  %s15947_s3 = inlined_call_operand.hbm [shape: bf16[1024,2048], index: 3, kind: input, shape index: {}]   ;;  %s15948_s4 = inlined_call_operand.hbm [shape: bf16[1024,1024], index: 4, kind: input, shape index: {}]   ;;  %s15949_s5 = inlined_call_operand.hbm [shape: f32[1,3072], index: 5, kind: input, shape index: {}]   ;;  %s15950_s6 = inlined_call_operand.hbm [shape: f32[8,1024], index: 6, kind: output, shape index: {0}]   ;;  %s15951_s7 = inlined_call_operand.hbm [shape: f32[8,1024], index: 7, kind: output, shape index: {1}]  }
   0x1   :  { %14 = vsyncpa [#allocation6], 0 }
   0x2   :  { %15 = vsyncpa [#allocation9], 0 }
   0x3   :  { %16 = vsyncpa [#allocation12], 0 }
   0x4   :  { %17 = vsyncpa [#allocation4], 0 }
   0x5   :  { %18 = vsyncpa [#allocation15], 0  ;;  %s15376_s24 = smov [#allocation5]   ;;  %s15377_s26 = smov [#allocation8]  }
   0x6   :  { %s35_s25 = sshll.u32 %s15376_s24, 4  ;;  %s56_s27 = sshll.u32 %s15377_s26, 4  ;;  %s36_s25 = int_to_ptr.vmem [resolvable:$true] %s35_s25  ;;  %s15431_s27 = int_to_ptr.vmem [resolvable:$true] %s56_s27 }
   0x7   :  { %s15188_s30 = scalar_lea.hbm %s15945_s1, 1024 }
   0x8   :  { %p15189_p0 = scmp.ne.s32.totalorder %s15945_s1, %s15188_s30  ;;  %p15192_p1 = scmp.lt.u32.totalorder %s15188_s30, %s15945_s1 }
   0xa   :  { %p15194_p2 = pnand %p15192_p1, %p15189_p0 }
   0xc   :  { %15197 = shalt.err (!%p15194_p2)
}
   0xd   :  { %s15198_s12 = scalar_lea.vmem %s36_s25, 1024  ;;  %p15203_p4 = scmp.lt.s32.totalorder %s36_s25, %s36_s25 }
   0xe   :  { %p15199_p3 = scmp.ne.s32.totalorder %s36_s25, %s15198_s12  ;;  %p15204_p5 = scmp.lt.s32.totalorder %s15198_s12, %s15198_s12 }
  0x10   :  { %p15205_p6 = por %p15204_p5, %p15203_p4 }
  0x12   :  { %p15206_p7 = pnand %p15205_p6, %p15199_p3 }
  0x14   :  { %15209 = shalt.err (!%p15206_p7)
}
  0x15   :  { %38 = dma.hbm_to_vmem [thread:$0]  %s15945_s1, 1024, %s36_s25, [#allocation6]  }
  0x16   :  { %s15210_s17 = scalar_lea.hbm %s15947_s3, 131072 }
  0x17   :  { %p15211_p8 = scmp.ne.s32.totalorder %s15947_s3, %s15210_s17  ;;  %p15214_p9 = scmp.lt.u32.totalorder %s15210_s17, %s15947_s3 }
  0x19   :  { %p15216_p10 = pnand %p15214_p9, %p15211_p8 }
  0x1b   :  { %15219 = shalt.err (!%p15216_p10)
}
  0x1c   :  { %s15220_s22 = scalar_lea.vmem %s15431_s27, 131072  ;;  %p15225_p12 = scmp.lt.s32.totalorder %s15431_s27, %s15431_s27 }
  0x1d   :  { %p15221_p11 = scmp.ne.s32.totalorder %s15431_s27, %s15220_s22  ;;  %p15226_p13 = scmp.lt.s32.totalorder %s15220_s22, %s15220_s22 }
  0x1f   :  { %p15227_p0 = por %p15226_p13, %p15225_p12 }
  0x21   :  { %p15228_p1 = pnand %p15227_p0, %p15221_p11 }
  0x23   :  { %15231 = shalt.err (!%p15228_p1)
}
  0x24   :  { %s15378_s1 = smov 1024   ;;  %s15379_s23 = smov 64  }
  0x25   :  { %62 = dma.hbm_to_vmem [thread:$0]  %s15947_s3, 131072, %s15431_s27, [#allocation9], %s15378_s1, %s15378_s1, %s15379_s23  }
  0x26   :  { %s15380_s26 = smov [#allocation2]   ;;  %s15381_s29 = smov [#allocation7]  }
  0x27   :  { %s25_s28 = sshll.u32 %s15380_s26, 4  ;;  %s44_s30 = sshll.u32 %s15381_s29, 4  ;;  %s26_s28 = int_to_ptr.vmem [resolvable:$true] %s25_s28  ;;  %s15462_s30 = int_to_ptr.vmem [resolvable:$true] %s44_s30 }
  0x28   :  { %s15232_s10 = scalar_lea.hbm %s15944_s0, 128 }
  0x29   :  { %p15233_p2 = scmp.ne.s32.totalorder %s15944_s0, %s15232_s10  ;;  %p15236_p3 = scmp.lt.u32.totalorder %s15232_s10, %s15944_s0 }
  0x2b   :  { %p15238_p4 = pnand %p15236_p3, %p15233_p2 }
  0x2d   :  { %15241 = shalt.err (!%p15238_p4)
}
  0x2e   :  { %s15242_s3 = scalar_lea.vmem %s26_s28, 128  ;;  %p15247_p6 = scmp.lt.s32.totalorder %s26_s28, %s26_s28 }
  0x2f   :  { %p15243_p5 = scmp.ne.s32.totalorder %s26_s28, %s15242_s3  ;;  %p15248_p7 = scmp.lt.s32.totalorder %s15242_s3, %s15242_s3 }
  0x31   :  { %p15249_p8 = por %p15248_p7, %p15247_p6 }
  0x33   :  { %p15250_p9 = pnand %p15249_p8, %p15243_p5 }
  0x35   :  { %15253 = shalt.err (!%p15250_p9)
}
  0x36   :  { %28 = dma.hbm_to_vmem [thread:$0]  %s15944_s0, 128, %s26_s28, [#allocation3]  }
  0x37   :  { %s15254_s18 = scalar_lea.hbm %s15946_s2, 24576 }
  0x38   :  { %p15255_p10 = scmp.ne.s32.totalorder %s15946_s2, %s15254_s18  ;;  %p15258_p11 = scmp.lt.u32.totalorder %s15254_s18, %s15946_s2 }
  0x3a   :  { %p15260_p12 = pnand %p15258_p11, %p15255_p10 }
  0x3c   :  { %15263 = shalt.err (!%p15260_p12)
}
  0x3d   :  { %s15264_s1 = scalar_lea.vmem %s15462_s30, 24576  ;;  %p15269_p0 = scmp.lt.s32.totalorder %s15462_s30, %s15462_s30 }
  0x3e   :  { %p15265_p13 = scmp.ne.s32.totalorder %s15462_s30, %s15264_s1  ;;  %p15270_p1 = scmp.lt.s32.totalorder %s15264_s1, %s15264_s1 }
  0x40   :  { %p15271_p2 = por %p15270_p1, %p15269_p0 }
  0x42   :  { %p15272_p3 = pnand %p15271_p2, %p15265_p13 }
  0x44   :  { %15275 = shalt.err (!%p15272_p3)
}
  0x45   :  { %s15382_s0 = smov 1536   ;;  %s15383_s23 = smov 96  }
  0x46   :  { %50 = dma.hbm_to_vmem [thread:$0]  %s15946_s2, 24576, %s15462_s30, [#allocation6], %s15382_s0, %s15382_s0, %s15383_s23  }
  0x47   :  { %s15384_s26 = smov [#allocation10]   ;;  %s15276_s9 = scalar_lea.hbm %s15948_s4, 65536 }
  0x48   :  { %s68_s28 = sshll.u32 %s15384_s26, 4  ;;  %p15277_p4 = scmp.ne.s32.totalorder %s15948_s4, %s15276_s9  ;;  %s69_s28 = int_to_ptr.vmem [resolvable:$true] %s68_s28 }
  0x49   :  { %p15280_p5 = scmp.lt.u32.totalorder %s15276_s9, %s15948_s4 }
  0x4b   :  { %p15282_p6 = pnand %p15280_p5, %p15277_p4 }
  0x4d   :  { %15285 = shalt.err (!%p15282_p6)
}
  0x4e   :  { %s15286_s14 = scalar_lea.vmem %s69_s28, 65536  ;;  %p15291_p8 = scmp.lt.s32.totalorder %s69_s28, %s69_s28 }
  0x4f   :  { %p15287_p7 = scmp.ne.s32.totalorder %s69_s28, %s15286_s14  ;;  %p15292_p9 = scmp.lt.s32.totalorder %s15286_s14, %s15286_s14 }
  0x51   :  { %p15293_p10 = por %p15292_p9, %p15291_p8 }
  0x53   :  { %p15294_p11 = pnand %p15293_p10, %p15287_p7 }
  0x55   :  { %15297 = shalt.err (!%p15294_p11)
}
  0x56   :  { %s15385_s2 = smov 512   ;;  %s15386_s30 = smov 32  }
  0x57   :  { %74 = dma.hbm_to_vmem [thread:$0]  %s15948_s4, 65536, %s69_s28, [#allocation9], %s15385_s2, %s15385_s2, %s15386_s30  }
  0x58   :  { %s15387_s15 = smov [#allocation11]   ;;  %s15298_s19 = scalar_lea.hbm %s15949_s5, 384 }
  0x59   :  { %s81_s16 = sshll.u32 %s15387_s15, 4  ;;  %p15299_p12 = scmp.ne.s32.totalorder %s15949_s5, %s15298_s19  ;;  %s82_s16 = int_to_ptr.vmem [resolvable:$true] %s81_s16 }
  0x5a   :  { %p15302_p13 = scmp.lt.u32.totalorder %s15298_s19, %s15949_s5 }
  0x5c   :  { %p15304_p0 = pnand %p15302_p13, %p15299_p12 }
  0x5e   :  { %15307 = shalt.err (!%p15304_p0)
}
  0x5f   :  { %s15308_s0 = scalar_lea.vmem %s82_s16, 384  ;;  %p15313_p2 = scmp.lt.s32.totalorder %s82_s16, %s82_s16 }
  0x60   :  { %p15309_p1 = scmp.ne.s32.totalorder %s82_s16, %s15308_s0  ;;  %p15314_p3 = scmp.lt.s32.totalorder %s15308_s0, %s15308_s0 }
  0x62   :  { %p15315_p4 = por %p15314_p3, %p15313_p2 }
  0x64   :  { %p15316_p5 = pnand %p15315_p4, %p15309_p1 }
  0x66   :  { %15319 = shalt.err (!%p15316_p5)
}
  0x67   :  { %84 = dma.hbm_to_vmem [thread:$0]  %s15949_s5, 384, %s82_s16, [#allocation12]  }
  0x68   :  { %15364 = dma.done.wait [#allocation3], 128  }
  0x69   :  { %15365 = vsyncadd [#allocation3], 4294967168 }
  0x6a   :  { %15366 = dma.done.wait [#allocation6], 25600  }
  0x6b   :  { %15367 = vsyncadd [#allocation6], 4294941696 }
  0x6c   :  { %15368 = dma.done.wait [#allocation9], 196608  }
  0x6d   :  { %15369 = vsyncadd [#allocation9], 4294770688 }
  0x6e   :  { %15370 = dma.done.wait [#allocation12], 384  }
  0x6f   :  { %15371 = vsyncadd [#allocation12], 4294966912  ;;  %v15388_v0 = vmov 0   ;;  %v113_v1 = vld [vmem:[#allocation7] sm:$0xff]  ;;  %v114_v3 = vld [vmem:[#allocation7 + $0x8] sm:$0xff]  ;;  %s15389_s5 = smov [#allocation14]  }
  0x70   :  { %2837 = vmatprep.mubr.bf16.mxu0 %v15388_v0  ;;  %2878 = vmatprep.mubr.bf16.mxu1 %v15388_v0  ;;  %v125_v2 = vld [vmem:[#allocation7 + $0x60] sm:$0xff]  ;;  %v126_v5 = vld [vmem:[#allocation7 + $0x68] sm:$0xff]  ;;  %v115_v63 = vld [vmem:[#allocation7 + $0x10] sm:$0xff]  ;;  %s13308_s24 = sshll.u32 %s15389_s5, 4  ;;  %s13309_s24 = int_to_ptr.vmem [resolvable:$true] %s13308_s24 }
  0x71   :  { %v13325_v4 = vcombine.high %v113_v1, %v125_v2  ;;  %v13324_v6 = vcombine.low %v113_v1, %v125_v2  ;;  %v137_v7 = vld [vmem:[#allocation7 + $0xc0] sm:$0xff]  ;;  %v13327_v9 = vcombine.high %v114_v3, %v126_v5  ;;  %v13326_v10 = vcombine.low %v114_v3, %v126_v5  ;;  %v138_v12 = vld [vmem:[#allocation7 + $0xc8] sm:$0xff]  ;;  %v127_v1 = vld [vmem:[#allocation7 + $0x70] sm:$0xff]  ;;  %s15320_s25 = scalar_lea.vmem %s13309_s24, 1024  ;;  %p15325_p7 = scmp.lt.s32.totalorder %s13309_s24, %s13309_s24 }
  0x72   :  { %v149_v8 = vld [vmem:[#allocation7 + $0x120] sm:$0xff]  ;;  %v150_v13 = vld [vmem:[#allocation7 + $0x128] sm:$0xff]  ;;  %v116_v2 = vld [vmem:[#allocation7 + $0x18] sm:$0xff]  ;;  %p15321_p6 = scmp.ne.s32.totalorder %s13309_s24, %s15320_s25  ;;  %p15326_p8 = scmp.lt.s32.totalorder %s15320_s25, %s15320_s25 }
  0x73   :  { %v13349_v11 = vcombine.high %v137_v7, %v149_v8  ;;  %v161_v14 = vld [vmem:[#allocation7 + $0x180] sm:$0xff]  ;;  %2805 = vmatprep.subr.bf16.mxu0 %v13325_v4  ;;  %v13351_v15 = vcombine.high %v138_v12, %v150_v13  ;;  %v162_v17 = vld [vmem:[#allocation7 + $0x188] sm:$0xff]  ;;  %2846 = vmatprep.subr.bf16.mxu1 %v13327_v9  ;;  %v13348_v19 = vcombine.low %v137_v7, %v149_v8  ;;  %v128_v3 = vld [vmem:[#allocation7 + $0x78] sm:$0xff] }
  0x74   :  { %v173_v16 = vld [vmem:[#allocation7 + $0x1e0] sm:$0xff]  ;;  %v174_v18 = vld [vmem:[#allocation7 + $0x1e8] sm:$0xff]  ;;  %2806 = vmatpush1.bf16.msra.mxu0 %v13324_v6  ;;  %2847 = vmatpush1.bf16.msra.mxu1 %v13326_v10  ;;  %v13350_v20 = vcombine.low %v138_v12, %v150_v13  ;;  %v104_v5 = vld [vmem:[#allocation2] sm:$0xff]  ;;  %v13329_v7 = vcombine.high %v115_v63, %v127_v1  ;;  %v13331_v8 = vcombine.high %v116_v2, %v128_v3  ;;  %p15327_p9 = por %p15326_p8, %p15325_p7 }
  0x75   :  { %2807 = vmatprep.subr.bf16.mxu0 %v13349_v11  ;;  %v13373_v21 = vcombine.high %v161_v14, %v173_v16  ;;  %2848 = vmatprep.subr.bf16.mxu1 %v13351_v15  ;;  %v13375_v22 = vcombine.high %v162_v17, %v174_v18  ;;  %v185_v23 = vld [vmem:[#allocation7 + $0x240] sm:$0xff]  ;;  %v186_v25 = vld [vmem:[#allocation7 + $0x248] sm:$0xff]  ;;  %v13372_v27 = vcombine.low %v161_v14, %v173_v16  ;;  %v139_v9 = vld [vmem:[#allocation7 + $0xd0] sm:$0xff] }
  0x76   :  { %v197_v24 = vld [vmem:[#allocation7 + $0x2a0] sm:$0xff]  ;;  %v198_v26 = vld [vmem:[#allocation7 + $0x2a8] sm:$0xff]  ;;  %v13374_v28 = vcombine.low %v162_v17, %v174_v18  ;;  %v151_v10 = vld [vmem:[#allocation7 + $0x130] sm:$0xff]  ;;  %v15519_v11 = vpack.c.bf16 %v104_v5, %v104_v5  ;;  %v13328_v14 = vcombine.low %v115_v63, %v127_v1  ;;  %v13330_v15 = vcombine.low %v116_v2, %v128_v3  ;;  %p15328_p10 = pnand %p15327_p9, %p15321_p6 }
  0x77   :  { %v13397_v29 = vcombine.high %v185_v23, %v197_v24  ;;  %v13399_v30 = vcombine.high %v186_v25, %v198_v26  ;;  %v209_v31 = vld [vmem:[#allocation7 + $0x300] sm:$0xff]  ;;  %v210_v33 = vld [vmem:[#allocation7 + $0x308] sm:$0xff]  ;;  %v13396_v35 = vcombine.low %v185_v23, %v197_v24  ;;  %v13398_v36 = vcombine.low %v186_v25, %v198_v26  ;;  %v140_v12 = vld [vmem:[#allocation7 + $0xd8] sm:$0xff] }
  0x78   :  { %2808 = vmatpush1.bf16.msra.mxu0 %v13348_v19  ;;  %2849 = vmatpush1.bf16.msra.mxu1 %v13350_v20  ;;  %v221_v32 = vld [vmem:[#allocation7 + $0x360] sm:$0xff]  ;;  %v222_v34 = vld [vmem:[#allocation7 + $0x368] sm:$0xff]  ;;  %v152_v13 = vld [vmem:[#allocation7 + $0x138] sm:$0xff]  ;;  %v13353_v16 = vcombine.high %v139_v9, %v151_v10 }
  0x79   :  { %2809 = vmatprep.subr.bf16.mxu0 %v13373_v21  ;;  %2850 = vmatprep.subr.bf16.mxu1 %v13375_v22  ;;  %v13421_v37 = vcombine.high %v209_v31, %v221_v32  ;;  %v13423_v38 = vcombine.high %v210_v33, %v222_v34  ;;  %v233_v39 = vld [vmem:[#allocation7 + $0x3c0] sm:$0xff]  ;;  %v234_v41 = vld [vmem:[#allocation7 + $0x3c8] sm:$0xff]  ;;  %v13420_v43 = vcombine.low %v209_v31, %v221_v32  ;;  %v163_v18 = vld [vmem:[#allocation7 + $0x190] sm:$0xff] }
  0x7a   :  { %v245_v40 = vld [vmem:[#allocation7 + $0x420] sm:$0xff]  ;;  %v246_v42 = vld [vmem:[#allocation7 + $0x428] sm:$0xff]  ;;  %v13422_v44 = vcombine.low %v210_v33, %v222_v34  ;;  %v13355_v17 = vcombine.high %v140_v12, %v152_v13  ;;  %v175_v19 = vld [vmem:[#allocation7 + $0x1f0] sm:$0xff]  ;;  %v13352_v22 = vcombine.low %v139_v9, %v151_v10  ;;  %v13354_v23 = vcombine.low %v140_v12, %v152_v13 }
  0x7b   :  { %v13445_v45 = vcombine.high %v233_v39, %v245_v40  ;;  %v13447_v46 = vcombine.high %v234_v41, %v246_v42  ;;  %v257_v47 = vld [vmem:[#allocation7 + $0x480] sm:$0xff]  ;;  %v258_v49 = vld [vmem:[#allocation7 + $0x488] sm:$0xff]  ;;  %v13444_v51 = vcombine.low %v233_v39, %v245_v40  ;;  %v13446_v52 = vcombine.low %v234_v41, %v246_v42  ;;  %v164_v20 = vld [vmem:[#allocation7 + $0x198] sm:$0xff] }
  0x7c   :  { %2810 = vmatpush1.bf16.msra.mxu0 %v13372_v27  ;;  %2851 = vmatpush1.bf16.msra.mxu1 %v13374_v28  ;;  %v269_v48 = vld [vmem:[#allocation7 + $0x4e0] sm:$0xff]  ;;  %v270_v50 = vld [vmem:[#allocation7 + $0x4e8] sm:$0xff]  ;;  %v176_v21 = vld [vmem:[#allocation7 + $0x1f8] sm:$0xff]  ;;  %v13377_v24 = vcombine.high %v163_v18, %v175_v19 }
  0x7d   :  { %2811 = vmatprep.subr.bf16.mxu0 %v13397_v29  ;;  %2852 = vmatprep.subr.bf16.mxu1 %v13399_v30  ;;  %v13469_v53 = vcombine.high %v257_v47, %v269_v48  ;;  %v13471_v54 = vcombine.high %v258_v49, %v270_v50  ;;  %v281_v55 = vld [vmem:[#allocation7 + $0x540] sm:$0xff]  ;;  %v282_v57 = vld [vmem:[#allocation7 + $0x548] sm:$0xff]  ;;  %v13468_v59 = vcombine.low %v257_v47, %v269_v48  ;;  %v187_v26 = vld [vmem:[#allocation7 + $0x250] sm:$0xff] }
  0x7e   :  { %v293_v56 = vld [vmem:[#allocation7 + $0x5a0] sm:$0xff]  ;;  %v294_v58 = vld [vmem:[#allocation7 + $0x5a8] sm:$0xff]  ;;  %v13470_v60 = vcombine.low %v258_v49, %v270_v50  ;;  %v13379_v25 = vcombine.high %v164_v20, %v176_v21  ;;  %v199_v27 = vld [vmem:[#allocation7 + $0x2b0] sm:$0xff]  ;;  %v13376_v30 = vcombine.low %v163_v18, %v175_v19  ;;  %v13378_v31 = vcombine.low %v164_v20, %v176_v21 }
  0x7f   :  { %v13493_v61 = vcombine.high %v281_v55, %v293_v56  ;;  %v13495_v62 = vcombine.high %v282_v57, %v294_v58  ;;  %v13492_v4 = vcombine.low %v281_v55, %v293_v56  ;;  %v13494_v6 = vcombine.low %v282_v57, %v294_v58  ;;  %v188_v28 = vld [vmem:[#allocation7 + $0x258] sm:$0xff]  ;;  %v211_v34 = vld [vmem:[#allocation7 + $0x310] sm:$0xff]  ;;  %v117_v3 = vld [vmem:[#allocation7 + $0x20] sm:$0xff] }
  0x80   :  { %2812 = vmatpush1.bf16.msra.mxu0 %v13396_v35  ;;  %2853 = vmatpush1.bf16.msra.mxu1 %v13398_v36  ;;  %v200_v29 = vld [vmem:[#allocation7 + $0x2b8] sm:$0xff]  ;;  %v13401_v32 = vcombine.high %v187_v26, %v199_v27  ;;  %v223_v35 = vld [vmem:[#allocation7 + $0x370] sm:$0xff]  ;;  %v118_v5 = vld [vmem:[#allocation7 + $0x28] sm:$0xff] }
  0x81   :  { %2813 = vmatprep.subr.bf16.mxu0 %v13421_v37  ;;  %2854 = vmatprep.subr.bf16.mxu1 %v13423_v38  ;;  %v13403_v33 = vcombine.high %v188_v28, %v200_v29  ;;  %v212_v36 = vld [vmem:[#allocation7 + $0x318] sm:$0xff]  ;;  %v13400_v38 = vcombine.low %v187_v26, %v199_v27  ;;  %v13402_v39 = vcombine.low %v188_v28, %v200_v29  ;;  %v235_v42 = vld [vmem:[#allocation7 + $0x3d0] sm:$0xff]  ;;  %v141_v12 = vld [vmem:[#allocation7 + $0xe0] sm:$0xff] }
  0x82   :  { %v224_v37 = vld [vmem:[#allocation7 + $0x378] sm:$0xff]  ;;  %v13425_v40 = vcombine.high %v211_v34, %v223_v35  ;;  %v259_v50 = vld [vmem:[#allocation7 + $0x490] sm:$0xff]  ;;  %v153_v13 = vld [vmem:[#allocation7 + $0x140] sm:$0xff] }
  0x83   :  { %v13427_v41 = vcombine.high %v212_v36, %v224_v37  ;;  %v13426_v47 = vcombine.low %v212_v36, %v224_v37  ;;  %v283_v58 = vld [vmem:[#allocation7 + $0x550] sm:$0xff]  ;;  %v13357_v18 = vcombine.high %v141_v12, %v153_v13  ;;  %v165_v20 = vld [vmem:[#allocation7 + $0x1a0] sm:$0xff] }
  0x84   :  { %2814 = vmatpush1.bf16.msra.mxu0 %v13420_v43  ;;  %2855 = vmatpush1.bf16.msra.mxu1 %v13422_v44  ;;  %v247_v43 = vld [vmem:[#allocation7 + $0x430] sm:$0xff]  ;;  %v236_v44 = vld [vmem:[#allocation7 + $0x3d8] sm:$0xff]  ;;  %v177_v21 = vld [vmem:[#allocation7 + $0x200] sm:$0xff] }
  0x85   :  { %2815 = vmatprep.subr.bf16.mxu0 %v13445_v45  ;;  %2856 = vmatprep.subr.bf16.mxu1 %v13447_v46  ;;  %v248_v45 = vld [vmem:[#allocation7 + $0x438] sm:$0xff]  ;;  %v13424_v46 = vcombine.low %v211_v34, %v223_v35  ;;  %v13449_v48 = vcombine.high %v235_v42, %v247_v43  ;;  %v13381_v26 = vcombine.high %v165_v20, %v177_v21  ;;  %v189_v28 = vld [vmem:[#allocation7 + $0x260] sm:$0xff] }
  0x86   :  { %v13451_v49 = vcombine.high %v236_v44, %v248_v45  ;;  %v13450_v55 = vcombine.low %v236_v44, %v248_v45  ;;  %v201_v29 = vld [vmem:[#allocation7 + $0x2c0] sm:$0xff] }
  0x87   :  { %v13405_v34 = vcombine.high %v189_v28, %v201_v29  ;;  %v213_v36 = vld [vmem:[#allocation7 + $0x320] sm:$0xff] }
  0x88   :  { %2816 = vmatpush1.bf16.msra.mxu0 %v13444_v51  ;;  %2857 = vmatpush1.bf16.msra.mxu1 %v13446_v52  ;;  %v271_v51 = vld [vmem:[#allocation7 + $0x4f0] sm:$0xff]  ;;  %v260_v52 = vld [vmem:[#allocation7 + $0x498] sm:$0xff]  ;;  %v225_v37 = vld [vmem:[#allocation7 + $0x380] sm:$0xff] }
  0x89   :  { %2817 = vmatprep.subr.bf16.mxu0 %v13469_v53  ;;  %2858 = vmatprep.subr.bf16.mxu1 %v13471_v54  ;;  %v272_v53 = vld [vmem:[#allocation7 + $0x4f8] sm:$0xff]  ;;  %v13448_v54 = vcombine.low %v235_v42, %v247_v43  ;;  %v13473_v56 = vcombine.high %v259_v50, %v271_v51  ;;  %v13429_v42 = vcombine.high %v213_v36, %v225_v37  ;;  %v237_v44 = vld [vmem:[#allocation7 + $0x3e0] sm:$0xff] }
  0x8a   :  { %v13475_v57 = vcombine.high %v260_v52, %v272_v53  ;;  %v13474_v63 = vcombine.low %v260_v52, %v272_v53  ;;  %v249_v45 = vld [vmem:[#allocation7 + $0x440] sm:$0xff] }
  0x8b   :  { %v261_v52 = vld [vmem:[#allocation7 + $0x4a0] sm:$0xff] }
  0x8c   :  { %2818 = vmatpush1.bf16.msra.mxu0 %v13468_v59  ;;  %2859 = vmatpush1.bf16.msra.mxu1 %v13470_v60  ;;  %v295_v59 = vld [vmem:[#allocation7 + $0x5b0] sm:$0xff]  ;;  %v284_v60 = vld [vmem:[#allocation7 + $0x558] sm:$0xff]  ;;  %v273_v53 = vld [vmem:[#allocation7 + $0x500] sm:$0xff] }
  0x8d   :  { %2819 = vmatprep.subr.bf16.mxu0 %v13493_v61  ;;  %2860 = vmatprep.subr.bf16.mxu1 %v13495_v62  ;;  %v296_v61 = vld [vmem:[#allocation7 + $0x5b8] sm:$0xff]  ;;  %v13472_v62 = vcombine.low %v259_v50, %v271_v51  ;;  %v13497_v1 = vcombine.high %v283_v58, %v295_v59  ;;  %v13453_v50 = vcombine.high %v237_v44, %v249_v45 }
  0x8e   :  { %v13499_v2 = vcombine.high %v284_v60, %v296_v61 }
  0x90   :  { %2820 = vmatpush1.bf16.msra.mxu0 %v13492_v4  ;;  %2861 = vmatpush1.bf16.msra.mxu1 %v13494_v6  ;;  %v129_v4 = vld [vmem:[#allocation7 + $0x80] sm:$0xff]  ;;  %v130_v6 = vld [vmem:[#allocation7 + $0x88] sm:$0xff] }
  0x91   :  { %2887 = vmatprep.subr.bf16.mxu0 %v13329_v7  ;;  %2928 = vmatprep.subr.bf16.mxu1 %v13331_v8  ;;  %v13496_v7 = vcombine.low %v283_v58, %v295_v59  ;;  %v13498_v8 = vcombine.low %v284_v60, %v296_v61  ;;  %v13333_v9 = vcombine.high %v117_v3, %v129_v4  ;;  %v285_v60 = vld [vmem:[#allocation7 + $0x560] sm:$0xff] }
  0x92   :  { %v13335_v10 = vcombine.high %v118_v5, %v130_v6  ;;  %v13477_v58 = vcombine.high %v261_v52, %v273_v53  ;;  %v297_v61 = vld [vmem:[#allocation7 + $0x5c0] sm:$0xff] }
  0x93   :  { %2838 = vmatmul.mubr.bf16.vlgmr.msra.gmra.mrb[0].mxu0 %v15519_v11  ;;  %2879 = vmatmul.mubr.bf16.vlgmr.msra.gmra.mrb[0].mxu1 %v15519_v11 }
  0x94   :  { %2888 = vmatpush1.bf16.msra.mxu0 %v13328_v14  ;;  %2929 = vmatpush1.bf16.msra.mxu1 %v13330_v15  ;;  %v142_v14 = vld [vmem:[#allocation7 + $0xe8] sm:$0xff] }
  0x95   :  { %2889 = vmatprep.subr.bf16.mxu0 %v13353_v16  ;;  %2930 = vmatprep.subr.bf16.mxu1 %v13355_v17  ;;  %v154_v15 = vld [vmem:[#allocation7 + $0x148] sm:$0xff]  ;;  %v13332_v16 = vcombine.low %v117_v3, %v129_v4  ;;  %v13334_v17 = vcombine.low %v118_v5, %v130_v6  ;;  %v13501_v3 = vcombine.high %v285_v60, %v297_v61  ;;  %v119_v5 = vld [vmem:[#allocation7 + $0x30] sm:$0xff] }
  0x96   :  { %2919 = vmatprep.mubr.bf16.mxu0 %v15388_v0  ;;  %2960 = vmatprep.mubr.bf16.mxu1 %v15388_v0  ;;  %v13359_v19 = vcombine.high %v142_v14, %v154_v15  ;;  %v131_v6 = vld [vmem:[#allocation7 + $0x90] sm:$0xff] }
  0x98   :  { %2890 = vmatpush1.bf16.msra.mxu0 %v13352_v22  ;;  %2931 = vmatpush1.bf16.msra.mxu1 %v13354_v23  ;;  %v166_v22 = vld [vmem:[#allocation7 + $0x1a8] sm:$0xff] }
  0x99   :  { %2891 = vmatprep.subr.bf16.mxu0 %v13377_v24  ;;  %2932 = vmatprep.subr.bf16.mxu1 %v13379_v25  ;;  %v178_v23 = vld [vmem:[#allocation7 + $0x208] sm:$0xff]  ;;  %v13356_v24 = vcombine.low %v141_v12, %v153_v13  ;;  %v13358_v25 = vcombine.low %v142_v14, %v154_v15  ;;  %v13337_v12 = vcombine.high %v119_v5, %v131_v6  ;;  %v143_v14 = vld [vmem:[#allocation7 + $0xf0] sm:$0xff] }
  0x9a   :  { %v13383_v27 = vcombine.high %v166_v22, %v178_v23  ;;  %v155_v15 = vld [vmem:[#allocation7 + $0x150] sm:$0xff] }
  0x9c   :  { %2892 = vmatpush1.bf16.msra.mxu0 %v13376_v30  ;;  %2933 = vmatpush1.bf16.msra.mxu1 %v13378_v31  ;;  %v190_v30 = vld [vmem:[#allocation7 + $0x268] sm:$0xff] }
  0x9d   :  { %2893 = vmatprep.subr.bf16.mxu0 %v13401_v32  ;;  %2934 = vmatprep.subr.bf16.mxu1 %v13403_v33  ;;  %v202_v31 = vld [vmem:[#allocation7 + $0x2c8] sm:$0xff]  ;;  %v13380_v32 = vcombine.low %v165_v20, %v177_v21  ;;  %v13382_v33 = vcombine.low %v166_v22, %v178_v23  ;;  %v13361_v20 = vcombine.high %v143_v14, %v155_v15  ;;  %v167_v22 = vld [vmem:[#allocation7 + $0x1b0] sm:$0xff] }
  0x9e   :  { %v13407_v35 = vcombine.high %v190_v30, %v202_v31  ;;  %v179_v23 = vld [vmem:[#allocation7 + $0x210] sm:$0xff] }
  0xa0   :  { %2894 = vmatpush1.bf16.msra.mxu0 %v13400_v38  ;;  %2935 = vmatpush1.bf16.msra.mxu1 %v13402_v39  ;;  %v214_v38 = vld [vmem:[#allocation7 + $0x328] sm:$0xff] }
  0xa1   :  { %2895 = vmatprep.subr.bf16.mxu0 %v13425_v40  ;;  %2936 = vmatprep.subr.bf16.mxu1 %v13427_v41  ;;  %v226_v39 = vld [vmem:[#allocation7 + $0x388] sm:$0xff]  ;;  %v13404_v40 = vcombine.low %v189_v28, %v201_v29  ;;  %v13406_v41 = vcombine.low %v190_v30, %v202_v31  ;;  %v13385_v28 = vcombine.high %v167_v22, %v179_v23  ;;  %v191_v30 = vld [vmem:[#allocation7 + $0x270] sm:$0xff] }
  0xa2   :  { %v13431_v43 = vcombine.high %v214_v38, %v226_v39  ;;  %v203_v31 = vld [vmem:[#allocation7 + $0x2d0] sm:$0xff] }
  0xa4   :  { %2896 = vmatpush1.bf16.msra.mxu0 %v13424_v46  ;;  %2937 = vmatpush1.bf16.msra.mxu1 %v13426_v47  ;;  %v238_v46 = vld [vmem:[#allocation7 + $0x3e8] sm:$0xff] }
  0xa5   :  { %2897 = vmatprep.subr.bf16.mxu0 %v13449_v48  ;;  %2938 = vmatprep.subr.bf16.mxu1 %v13451_v49  ;;  %v250_v47 = vld [vmem:[#allocation7 + $0x448] sm:$0xff]  ;;  %v13428_v48 = vcombine.low %v213_v36, %v225_v37  ;;  %v13430_v49 = vcombine.low %v214_v38, %v226_v39  ;;  %v13409_v36 = vcombine.high %v191_v30, %v203_v31  ;;  %v215_v38 = vld [vmem:[#allocation7 + $0x330] sm:$0xff] }
  0xa6   :  { %v13455_v51 = vcombine.high %v238_v46, %v250_v47  ;;  %v227_v39 = vld [vmem:[#allocation7 + $0x390] sm:$0xff] }
  0xa8   :  { %2898 = vmatpush1.bf16.msra.mxu0 %v13448_v54  ;;  %2939 = vmatpush1.bf16.msra.mxu1 %v13450_v55  ;;  %v262_v54 = vld [vmem:[#allocation7 + $0x4a8] sm:$0xff] }
  0xa9   :  { %2899 = vmatprep.subr.bf16.mxu0 %v13473_v56  ;;  %2940 = vmatprep.subr.bf16.mxu1 %v13475_v57  ;;  %v274_v55 = vld [vmem:[#allocation7 + $0x508] sm:$0xff]  ;;  %v13452_v56 = vcombine.low %v237_v44, %v249_v45  ;;  %v13454_v57 = vcombine.low %v238_v46, %v250_v47  ;;  %v13433_v44 = vcombine.high %v215_v38, %v227_v39  ;;  %v239_v46 = vld [vmem:[#allocation7 + $0x3f0] sm:$0xff] }
  0xaa   :  { %v13479_v59 = vcombine.high %v262_v54, %v274_v55  ;;  %v251_v47 = vld [vmem:[#allocation7 + $0x450] sm:$0xff] }
  0xac   :  { %2900 = vmatpush1.bf16.msra.mxu0 %v13472_v62  ;;  %2941 = vmatpush1.bf16.msra.mxu1 %v13474_v63  ;;  %v286_v62 = vld [vmem:[#allocation7 + $0x568] sm:$0xff] }
  0xad   :  { %2901 = vmatprep.subr.bf16.mxu0 %v13497_v1  ;;  %2942 = vmatprep.subr.bf16.mxu1 %v13499_v2  ;;  %v298_v63 = vld [vmem:[#allocation7 + $0x5c8] sm:$0xff]  ;;  %v13476_v1 = vcombine.low %v261_v52, %v273_v53  ;;  %v13478_v2 = vcombine.low %v262_v54, %v274_v55  ;;  %v13457_v52 = vcombine.high %v239_v46, %v251_v47  ;;  %v263_v54 = vld [vmem:[#allocation7 + $0x4b0] sm:$0xff] }
  0xae   :  { %v13503_v4 = vcombine.high %v286_v62, %v298_v63  ;;  %v275_v55 = vld [vmem:[#allocation7 + $0x510] sm:$0xff] }
  0xb0   :  { %2902 = vmatpush1.bf16.msra.mxu0 %v13496_v7  ;;  %2943 = vmatpush1.bf16.msra.mxu1 %v13498_v8  ;;  %v120_v7 = vld [vmem:[#allocation7 + $0x38] sm:$0xff] }
  0xb1   :  { %2969 = vmatprep.subr.bf16.mxu0 %v13333_v9  ;;  %3010 = vmatprep.subr.bf16.mxu1 %v13335_v10  ;;  %v132_v8 = vld [vmem:[#allocation7 + $0x98] sm:$0xff]  ;;  %v13500_v9 = vcombine.low %v285_v60, %v297_v61  ;;  %v13502_v10 = vcombine.low %v286_v62, %v298_v63  ;;  %v13481_v60 = vcombine.high %v263_v54, %v275_v55  ;;  %v287_v62 = vld [vmem:[#allocation7 + $0x570] sm:$0xff] }
  0xb2   :  { %v13339_v13 = vcombine.high %v120_v7, %v132_v8  ;;  %v299_v63 = vld [vmem:[#allocation7 + $0x5d0] sm:$0xff] }
  0xb3   :  { %2920 = vmatmul.mubr.bf16.vlgmr.msra.gmra.mrb[4].mxu0 %v15519_v11  ;;  %2961 = vmatmul.mubr.bf16.vlgmr.msra.gmra.mrb[4].mxu1 %v15519_v11 }
  0xb4   :  { %2970 = vmatpush1.bf16.msra.mxu0 %v13332_v16  ;;  %3011 = vmatpush1.bf16.msra.mxu1 %v13334_v17  ;;  %v144_v16 = vld [vmem:[#allocation7 + $0xf8] sm:$0xff] }
  0xb5   :  { %2971 = vmatprep.subr.bf16.mxu0 %v13357_v18  ;;  %3012 = vmatprep.subr.bf16.mxu1 %v13359_v19  ;;  %v156_v17 = vld [vmem:[#allocation7 + $0x158] sm:$0xff]  ;;  %v13336_v18 = vcombine.low %v119_v5, %v131_v6  ;;  %v13338_v19 = vcombine.low %v120_v7, %v132_v8  ;;  %v13505_v5 = vcombine.high %v287_v62, %v299_v63  ;;  %v121_v7 = vld [vmem:[#allocation7 + $0x40] sm:$0xff] }
  0xb6   :  { %3001 = vmatprep.mubr.bf16.mxu0 %v15388_v0  ;;  %3042 = vmatprep.mubr.bf16.mxu1 %v15388_v0  ;;  %v13363_v21 = vcombine.high %v144_v16, %v156_v17  ;;  %v133_v8 = vld [vmem:[#allocation7 + $0xa0] sm:$0xff] }
  0xb8   :  { %2972 = vmatpush1.bf16.msra.mxu0 %v13356_v24  ;;  %3013 = vmatpush1.bf16.msra.mxu1 %v13358_v25  ;;  %v168_v24 = vld [vmem:[#allocation7 + $0x1b8] sm:$0xff] }
  0xb9   :  { %2973 = vmatprep.subr.bf16.mxu0 %v13381_v26  ;;  %3014 = vmatprep.subr.bf16.mxu1 %v13383_v27  ;;  %v180_v25 = vld [vmem:[#allocation7 + $0x218] sm:$0xff]  ;;  %v13360_v26 = vcombine.low %v143_v14, %v155_v15  ;;  %v13362_v27 = vcombine.low %v144_v16, %v156_v17  ;;  %v13341_v14 = vcombine.high %v121_v7, %v133_v8  ;;  %v145_v16 = vld [vmem:[#allocation7 + $0x100] sm:$0xff] }
  0xba   :  { %v13387_v29 = vcombine.high %v168_v24, %v180_v25  ;;  %v157_v17 = vld [vmem:[#allocation7 + $0x160] sm:$0xff] }
  0xbc   :  { %2974 = vmatpush1.bf16.msra.mxu0 %v13380_v32  ;;  %3015 = vmatpush1.bf16.msra.mxu1 %v13382_v33  ;;  %v192_v32 = vld [vmem:[#allocation7 + $0x278] sm:$0xff] }
  0xbd   :  { %2975 = vmatprep.subr.bf16.mxu0 %v13405_v34  ;;  %3016 = vmatprep.subr.bf16.mxu1 %v13407_v35  ;;  %v204_v33 = vld [vmem:[#allocation7 + $0x2d8] sm:$0xff]  ;;  %v13384_v34 = vcombine.low %v167_v22, %v179_v23  ;;  %v13386_v35 = vcombine.low %v168_v24, %v180_v25  ;;  %v13365_v22 = vcombine.high %v145_v16, %v157_v17  ;;  %v169_v24 = vld [vmem:[#allocation7 + $0x1c0] sm:$0xff] }
  0xbe   :  { %v13411_v37 = vcombine.high %v192_v32, %v204_v33  ;;  %v181_v25 = vld [vmem:[#allocation7 + $0x220] sm:$0xff] }
  0xc0   :  { %2976 = vmatpush1.bf16.msra.mxu0 %v13404_v40  ;;  %3017 = vmatpush1.bf16.msra.mxu1 %v13406_v41  ;;  %v216_v40 = vld [vmem:[#allocation7 + $0x338] sm:$0xff] }
  0xc1   :  { %2977 = vmatprep.subr.bf16.mxu0 %v13429_v42  ;;  %3018 = vmatprep.subr.bf16.mxu1 %v13431_v43  ;;  %v228_v41 = vld [vmem:[#allocation7 + $0x398] sm:$0xff]  ;;  %v13408_v42 = vcombine.low %v191_v30, %v203_v31  ;;  %v13410_v43 = vcombine.low %v192_v32, %v204_v33  ;;  %v13389_v30 = vcombine.high %v169_v24, %v181_v25  ;;  %v193_v32 = vld [vmem:[#allocation7 + $0x280] sm:$0xff] }
  0xc2   :  { %v13435_v45 = vcombine.high %v216_v40, %v228_v41  ;;  %v205_v33 = vld [vmem:[#allocation7 + $0x2e0] sm:$0xff] }
  0xc4   :  { %2978 = vmatpush1.bf16.msra.mxu0 %v13428_v48  ;;  %3019 = vmatpush1.bf16.msra.mxu1 %v13430_v49  ;;  %v240_v48 = vld [vmem:[#allocation7 + $0x3f8] sm:$0xff] }
  0xc5   :  { %2979 = vmatprep.subr.bf16.mxu0 %v13453_v50  ;;  %3020 = vmatprep.subr.bf16.mxu1 %v13455_v51  ;;  %v252_v49 = vld [vmem:[#allocation7 + $0x458] sm:$0xff]  ;;  %v13432_v50 = vcombine.low %v215_v38, %v227_v39  ;;  %v13434_v51 = vcombine.low %v216_v40, %v228_v41  ;;  %v13413_v38 = vcombine.high %v193_v32, %v205_v33  ;;  %v217_v40 = vld [vmem:[#allocation7 + $0x340] sm:$0xff] }
  0xc6   :  { %v13459_v53 = vcombine.high %v240_v48, %v252_v49  ;;  %v229_v41 = vld [vmem:[#allocation7 + $0x3a0] sm:$0xff] }
  0xc8   :  { %2980 = vmatpush1.bf16.msra.mxu0 %v13452_v56  ;;  %3021 = vmatpush1.bf16.msra.mxu1 %v13454_v57  ;;  %v264_v56 = vld [vmem:[#allocation7 + $0x4b8] sm:$0xff] }
  0xc9   :  { %2981 = vmatprep.subr.bf16.mxu0 %v13477_v58  ;;  %3022 = vmatprep.subr.bf16.mxu1 %v13479_v59  ;;  %v276_v57 = vld [vmem:[#allocation7 + $0x518] sm:$0xff]  ;;  %v13456_v58 = vcombine.low %v239_v46, %v251_v47  ;;  %v13458_v59 = vcombine.low %v240_v48, %v252_v49  ;;  %v13437_v46 = vcombine.high %v217_v40, %v229_v41  ;;  %v241_v48 = vld [vmem:[#allocation7 + $0x400] sm:$0xff] }
  0xca   :  { %v13483_v61 = vcombine.high %v264_v56, %v276_v57  ;;  %v253_v49 = vld [vmem:[#allocation7 + $0x460] sm:$0xff] }
  0xcc   :  { %2982 = vmatpush1.bf16.msra.mxu0 %v13476_v1  ;;  %3023 = vmatpush1.bf16.msra.mxu1 %v13478_v2  ;;  %v288_v1 = vld [vmem:[#allocation7 + $0x578] sm:$0xff] }
  0xcd   :  { %2983 = vmatprep.subr.bf16.mxu0 %v13501_v3  ;;  %3024 = vmatprep.subr.bf16.mxu1 %v13503_v4  ;;  %v300_v2 = vld [vmem:[#allocation7 + $0x5d8] sm:$0xff]  ;;  %v13480_v3 = vcombine.low %v263_v54, %v275_v55  ;;  %v13482_v4 = vcombine.low %v264_v56, %v276_v57  ;;  %v13461_v54 = vcombine.high %v241_v48, %v253_v49  ;;  %v265_v56 = vld [vmem:[#allocation7 + $0x4c0] sm:$0xff] }
  0xce   :  { %v13507_v6 = vcombine.high %v288_v1, %v300_v2  ;;  %v277_v57 = vld [vmem:[#allocation7 + $0x520] sm:$0xff] }
  0xd0   :  { %2984 = vmatpush1.bf16.msra.mxu0 %v13500_v9  ;;  %3025 = vmatpush1.bf16.msra.mxu1 %v13502_v10  ;;  %v122_v9 = vld [vmem:[#allocation7 + $0x48] sm:$0xff] }
  0xd1   :  { %3051 = vmatprep.subr.bf16.mxu0 %v13337_v12  ;;  %3092 = vmatprep.subr.bf16.mxu1 %v13339_v13  ;;  %v134_v10 = vld [vmem:[#allocation7 + $0xa8] sm:$0xff]  ;;  %v13504_v12 = vcombine.low %v287_v62, %v299_v63  ;;  %v13506_v13 = vcombine.low %v288_v1, %v300_v2  ;;  %v13485_v62 = vcombine.high %v265_v56, %v277_v57  ;;  %v289_v1 = vld [vmem:[#allocation7 + $0x580] sm:$0xff] }
  0xd2   :  { %v13343_v15 = vcombine.high %v122_v9, %v134_v10  ;;  %v301_v2 = vld [vmem:[#allocation7 + $0x5e0] sm:$0xff] }
  0xd3   :  { %3002 = vmatmul.mubr.bf16.vlgmr.msra.gmra.mrb[8].mxu0 %v15519_v11  ;;  %3043 = vmatmul.mubr.bf16.vlgmr.msra.gmra.mrb[8].mxu1 %v15519_v11 }
  0xd4   :  { %3052 = vmatpush1.bf16.msra.mxu0 %v13336_v18  ;;  %3093 = vmatpush1.bf16.msra.mxu1 %v13338_v19  ;;  %v146_v18 = vld [vmem:[#allocation7 + $0x108] sm:$0xff] }
  0xd5   :  { %3053 = vmatprep.subr.bf16.mxu0 %v13361_v20  ;;  %3094 = vmatprep.subr.bf16.mxu1 %v13363_v21  ;;  %v158_v19 = vld [vmem:[#allocation7 + $0x168] sm:$0xff]  ;;  %v13340_v20 = vcombine.low %v121_v7, %v133_v8  ;;  %v13342_v21 = vcombine.low %v122_v9, %v134_v10  ;;  %v13509_v7 = vcombine.high %v289_v1, %v301_v2  ;;  %v123_v9 = vld [vmem:[#allocation7 + $0x50] sm:$0xff] }
  0xd6   :  { %3083 = vmatprep.mubr.bf16.mxu0 %v15388_v0  ;;  %3124 = vmatprep.mubr.bf16.mxu1 %v15388_v0  ;;  %v13367_v23 = vcombine.high %v146_v18, %v158_v19  ;;  %v135_v10 = vld [vmem:[#allocation7 + $0xb0] sm:$0xff] }
  0xd8   :  { %3054 = vmatpush1.bf16.msra.mxu0 %v13360_v26  ;;  %3095 = vmatpush1.bf16.msra.mxu1 %v13362_v27  ;;  %v170_v26 = vld [vmem:[#allocation7 + $0x1c8] sm:$0xff] }
  0xd9   :  { %3055 = vmatprep.subr.bf16.mxu0 %v13385_v28  ;;  %3096 = vmatprep.subr.bf16.mxu1 %v13387_v29  ;;  %v182_v27 = vld [vmem:[#allocation7 + $0x228] sm:$0xff]  ;;  %v13364_v28 = vcombine.low %v145_v16, %v157_v17  ;;  %v13366_v29 = vcombine.low %v146_v18, %v158_v19  ;;  %v13345_v16 = vcombine.high %v123_v9, %v135_v10  ;;  %v147_v18 = vld [vmem:[#allocation7 + $0x110] sm:$0xff] }
  0xda   :  { %v13391_v31 = vcombine.high %v170_v26, %v182_v27  ;;  %v159_v19 = vld [vmem:[#allocation7 + $0x170] sm:$0xff] }
  0xdc   :  { %3056 = vmatpush1.bf16.msra.mxu0 %v13384_v34  ;;  %3097 = vmatpush1.bf16.msra.mxu1 %v13386_v35  ;;  %v194_v34 = vld [vmem:[#allocation7 + $0x288] sm:$0xff] }
  0xdd   :  { %3057 = vmatprep.subr.bf16.mxu0 %v13409_v36  ;;  %3098 = vmatprep.subr.bf16.mxu1 %v13411_v37  ;;  %v206_v35 = vld [vmem:[#allocation7 + $0x2e8] sm:$0xff]  ;;  %v13388_v36 = vcombine.low %v169_v24, %v181_v25  ;;  %v13390_v37 = vcombine.low %v170_v26, %v182_v27  ;;  %v13369_v24 = vcombine.high %v147_v18, %v159_v19  ;;  %v171_v26 = vld [vmem:[#allocation7 + $0x1d0] sm:$0xff] }
  0xde   :  { %v13415_v39 = vcombine.high %v194_v34, %v206_v35  ;;  %v183_v27 = vld [vmem:[#allocation7 + $0x230] sm:$0xff] }
  0xe0   :  { %3058 = vmatpush1.bf16.msra.mxu0 %v13408_v42  ;;  %3099 = vmatpush1.bf16.msra.mxu1 %v13410_v43  ;;  %v218_v42 = vld [vmem:[#allocation7 + $0x348] sm:$0xff] }
  0xe1   :  { %3059 = vmatprep.subr.bf16.mxu0 %v13433_v44  ;;  %3100 = vmatprep.subr.bf16.mxu1 %v13435_v45  ;;  %v230_v43 = vld [vmem:[#allocation7 + $0x3a8] sm:$0xff]  ;;  %v13412_v44 = vcombine.low %v193_v32, %v205_v33  ;;  %v13414_v45 = vcombine.low %v194_v34, %v206_v35  ;;  %v13393_v32 = vcombine.high %v171_v26, %v183_v27  ;;  %v195_v34 = vld [vmem:[#allocation7 + $0x290] sm:$0xff] }
  0xe2   :  { %v13439_v47 = vcombine.high %v218_v42, %v230_v43  ;;  %v207_v35 = vld [vmem:[#allocation7 + $0x2f0] sm:$0xff] }
  0xe4   :  { %3060 = vmatpush1.bf16.msra.mxu0 %v13432_v50  ;;  %3101 = vmatpush1.bf16.msra.mxu1 %v13434_v51  ;;  %v242_v50 = vld [vmem:[#allocation7 + $0x408] sm:$0xff] }
  0xe5   :  { %3061 = vmatprep.subr.bf16.mxu0 %v13457_v52  ;;  %3102 = vmatprep.subr.bf16.mxu1 %v13459_v53  ;;  %v254_v51 = vld [vmem:[#allocation7 + $0x468] sm:$0xff]  ;;  %v13436_v52 = vcombine.low %v217_v40, %v229_v41  ;;  %v13438_v53 = vcombine.low %v218_v42, %v230_v43  ;;  %v13417_v40 = vcombine.high %v195_v34, %v207_v35  ;;  %v219_v42 = vld [vmem:[#allocation7 + $0x350] sm:$0xff] }
  0xe6   :  { %v13463_v55 = vcombine.high %v242_v50, %v254_v51  ;;  %v231_v43 = vld [vmem:[#allocation7 + $0x3b0] sm:$0xff] }
  0xe8   :  { %3062 = vmatpush1.bf16.msra.mxu0 %v13456_v58  ;;  %3103 = vmatpush1.bf16.msra.mxu1 %v13458_v59  ;;  %v266_v58 = vld [vmem:[#allocation7 + $0x4c8] sm:$0xff] }
  0xe9   :  { %3063 = vmatprep.subr.bf16.mxu0 %v13481_v60  ;;  %3104 = vmatprep.subr.bf16.mxu1 %v13483_v61  ;;  %v278_v59 = vld [vmem:[#allocation7 + $0x528] sm:$0xff]  ;;  %v13460_v60 = vcombine.low %v241_v48, %v253_v49  ;;  %v13462_v61 = vcombine.low %v242_v50, %v254_v51  ;;  %v13441_v48 = vcombine.high %v219_v42, %v231_v43  ;;  %v243_v49 = vld [vmem:[#allocation7 + $0x410] sm:$0xff]  ;;  %v244_v51 = vld [vmem:[#allocation7 + $0x418] sm:$0xff] }
  0xea   :  { %v13487_v63 = vcombine.high %v266_v58, %v278_v59  ;;  %v255_v50 = vld [vmem:[#allocation7 + $0x470] sm:$0xff] }
  0xec   :  { %3064 = vmatpush1.bf16.msra.mxu0 %v13480_v3  ;;  %3105 = vmatpush1.bf16.msra.mxu1 %v13482_v4  ;;  %v290_v3 = vld [vmem:[#allocation7 + $0x588] sm:$0xff] }
  0xed   :  { %3065 = vmatprep.subr.bf16.mxu0 %v13505_v5  ;;  %3106 = vmatprep.subr.bf16.mxu1 %v13507_v6  ;;  %v302_v4 = vld [vmem:[#allocation7 + $0x5e8] sm:$0xff]  ;;  %v13484_v5 = vcombine.low %v265_v56, %v277_v57  ;;  %v13486_v6 = vcombine.low %v266_v58, %v278_v59  ;;  %v267_v57 = vld [vmem:[#allocation7 + $0x4d0] sm:$0xff]  ;;  %v268_v59 = vld [vmem:[#allocation7 + $0x4d8] sm:$0xff] }
  0xee   :  { %v13511_v8 = vcombine.high %v290_v3, %v302_v4  ;;  %v279_v58 = vld [vmem:[#allocation7 + $0x530] sm:$0xff] }
  0xf0   :  { %3066 = vmatpush1.bf16.msra.mxu0 %v13504_v12  ;;  %3107 = vmatpush1.bf16.msra.mxu1 %v13506_v13  ;;  %v124_v12 = vld [vmem:[#allocation7 + $0x58] sm:$0xff] }
  0xf1   :  { %3133 = vmatprep.subr.bf16.mxu0 %v13341_v14  ;;  %3174 = vmatprep.subr.bf16.mxu1 %v13343_v15  ;;  %v136_v13 = vld [vmem:[#allocation7 + $0xb8] sm:$0xff]  ;;  %v13508_v14 = vcombine.low %v289_v1, %v301_v2  ;;  %v13510_v15 = vcombine.low %v290_v3, %v302_v4  ;;  %v291_v2 = vld [vmem:[#allocation7 + $0x590] sm:$0xff] }
  0xf2   :  { %v13347_v17 = vcombine.high %v124_v12, %v136_v13  ;;  %v303_v3 = vld [vmem:[#allocation7 + $0x5f0] sm:$0xff]  ;;  %v292_v4 = vld [vmem:[#allocation7 + $0x598] sm:$0xff] }
  0xf3   :  { %3084 = vmatmul.mubr.bf16.vlgmr.msra.gmra.mrb[12].mxu0 %v15519_v11  ;;  %3125 = vmatmul.mubr.bf16.vlgmr.msra.gmra.mrb[12].mxu1 %v15519_v11 }
  0xf4   :  { %3134 = vmatpush1.bf16.msra.mxu0 %v13340_v20  ;;  %3175 = vmatpush1.bf16.msra.mxu1 %v13342_v21  ;;  %v148_v20 = vld [vmem:[#allocation7 + $0x118] sm:$0xff] }
  0xf5   :  { %3135 = vmatprep.subr.bf16.mxu0 %v13365_v22  ;;  %3176 = vmatprep.subr.bf16.mxu1 %v13367_v23  ;;  %v160_v21 = vld [vmem:[#allocation7 + $0x178] sm:$0xff]  ;;  %v13344_v22 = vcombine.low %v123_v9, %v135_v10  ;;  %v13346_v23 = vcombine.low %v124_v12, %v136_v13  ;;  %v305_v10 = vld [vmem:[#allocation8] sm:$0xff] }
  0xf6   :  { %3165 = vmatprep.mubr.bf16.mxu0 %v15388_v0  ;;  %3206 = vmatprep.mubr.bf16.mxu1 %v15388_v0  ;;  %v13371_v25 = vcombine.high %v148_v20, %v160_v21  ;;  %v313_v12 = vld [vmem:[#allocation8 + $0x40] sm:$0xff] }
  0xf7   :  { %v561_v13 = vld [vmem:[#allocation8 + $0x800] sm:$0xff] }
  0xf8   :  { %3136 = vmatpush1.bf16.msra.mxu0 %v13364_v28  ;;  %3177 = vmatpush1.bf16.msra.mxu1 %v13366_v29  ;;  %v172_v28 = vld [vmem:[#allocation7 + $0x1d8] sm:$0xff] }
  0xf9   :  { %3137 = vmatprep.subr.bf16.mxu0 %v13389_v30  ;;  %3178 = vmatprep.subr.bf16.mxu1 %v13391_v31  ;;  %v184_v29 = vld [vmem:[#allocation7 + $0x238] sm:$0xff]  ;;  %v13368_v30 = vcombine.low %v147_v18, %v159_v19  ;;  %v13370_v31 = vcombine.low %v148_v20, %v160_v21  ;;  %v321_v19 = vld [vmem:[#allocation8 + $0x80] sm:$0xff] }
  0xfa   :  { %v13395_v33 = vcombine.high %v172_v28, %v184_v29  ;;  %v329_v20 = vld [vmem:[#allocation8 + $0xc0] sm:$0xff] }
  0xfb   :  { %v577_v21 = vld [vmem:[#allocation8 + $0x880] sm:$0xff] }
  0xfc   :  { %3138 = vmatpush1.bf16.msra.mxu0 %v13388_v36  ;;  %3179 = vmatpush1.bf16.msra.mxu1 %v13390_v37  ;;  %v196_v36 = vld [vmem:[#allocation7 + $0x298] sm:$0xff] }
  0xfd   :  { %3139 = vmatprep.subr.bf16.mxu0 %v13413_v38  ;;  %3180 = vmatprep.subr.bf16.mxu1 %v13415_v39  ;;  %v208_v37 = vld [vmem:[#allocation7 + $0x2f8] sm:$0xff]  ;;  %v13392_v38 = vcombine.low %v171_v26, %v183_v27  ;;  %v13394_v39 = vcombine.low %v172_v28, %v184_v29  ;;  %v13533_v27 = vcombine.high %v321_v19, %v329_v20  ;;  %v337_v29 = vld [vmem:[#allocation8 + $0x100] sm:$0xff] }
  0xfe   :  { %v13419_v41 = vcombine.high %v196_v36, %v208_v37 }
 0x100   :  { %3140 = vmatpush1.bf16.msra.mxu0 %v13412_v44  ;;  %3181 = vmatpush1.bf16.msra.mxu1 %v13414_v45  ;;  %v220_v44 = vld [vmem:[#allocation7 + $0x358] sm:$0xff] }
 0x101   :  { %3141 = vmatprep.subr.bf16.mxu0 %v13437_v46  ;;  %3182 = vmatprep.subr.bf16.mxu1 %v13439_v47  ;;  %v232_v45 = vld [vmem:[#allocation7 + $0x3b8] sm:$0xff]  ;;  %v13416_v46 = vcombine.low %v195_v34, %v207_v35  ;;  %v13418_v47 = vcombine.low %v196_v36, %v208_v37  ;;  %v13532_v35 = vcombine.low %v321_v19, %v329_v20 }
 0x104   :  { %3142 = vmatpush1.bf16.msra.mxu0 %v13436_v52  ;;  %3183 = vmatpush1.bf16.msra.mxu1 %v13438_v53  ;;  %v256_v52 = vld [vmem:[#allocation7 + $0x478] sm:$0xff]  ;;  %v13440_v53 = vcombine.low %v219_v42, %v231_v43  ;;  %v617_v42 = vld [vmem:[#allocation8 + $0x9c0] sm:$0xff] }
 0x105   :  { %3143 = vmatprep.subr.bf16.mxu0 %v13461_v54  ;;  %3184 = vmatprep.subr.bf16.mxu1 %v13463_v55  ;;  %v13442_v54 = vcombine.low %v220_v44, %v232_v45  ;;  %v13465_v55 = vcombine.high %v243_v49, %v255_v50  ;;  %v13467_v56 = vcombine.high %v244_v51, %v256_v52 }
 0x108   :  { %3144 = vmatpush1.bf16.msra.mxu0 %v13460_v60  ;;  %3185 = vmatpush1.bf16.msra.mxu1 %v13462_v61  ;;  %v280_v60 = vld [vmem:[#allocation7 + $0x538] sm:$0xff]  ;;  %v13464_v61 = vcombine.low %v243_v49, %v255_v50 }
 0x109   :  { %3145 = vmatprep.subr.bf16.mxu0 %v13485_v62  ;;  %3186 = vmatprep.subr.bf16.mxu1 %v13487_v63  ;;  %v13466_v62 = vcombine.low %v244_v51, %v256_v52  ;;  %v13489_v63 = vcombine.high %v267_v57, %v279_v58  ;;  %v13491_v1 = vcombine.high %v268_v59, %v280_v60 }
 0x10c   :  { %3146 = vmatpush1.bf16.msra.mxu0 %v13484_v5  ;;  %3187 = vmatpush1.bf16.msra.mxu1 %v13486_v6  ;;  %v304_v5 = vld [vmem:[#allocation7 + $0x5f8] sm:$0xff]  ;;  %v13488_v6 = vcombine.low %v267_v57, %v279_v58 }
 0x10d   :  { %3147 = vmatprep.subr.bf16.mxu0 %v13509_v7  ;;  %3188 = vmatprep.subr.bf16.mxu1 %v13511_v8  ;;  %v13490_v7 = vcombine.low %v268_v59, %v280_v60  ;;  %v13513_v8 = vcombine.high %v291_v2, %v303_v3  ;;  %v13515_v9 = vcombine.high %v292_v4, %v304_v5 }
 0x110   :  { %3148 = vmatpush1.bf16.msra.mxu0 %v13508_v14  ;;  %3189 = vmatpush1.bf16.msra.mxu1 %v13510_v15  ;;  %v569_v14 = vld [vmem:[#allocation8 + $0x840] sm:$0xff]  ;;  %v13512_v15 = vcombine.low %v291_v2, %v303_v3 }
 0x111   :  { %3215 = vmatprep.subr.bf16.mxu0 %v13345_v16  ;;  %3256 = vmatprep.subr.bf16.mxu1 %v13347_v17  ;;  %v13514_v16 = vcombine.low %v292_v4, %v304_v5  ;;  %v13517_v17 = vcombine.high %v305_v10, %v313_v12  ;;  %v13773_v18 = vcombine.high %v561_v13, %v569_v14 }
 0x112   :  { %v13772_v26 = vcombine.low %v561_v13, %v569_v14 }
 0x113   :  { %3166 = vmatmul.mubr.bf16.vlgmr.msra.gmra.mrb[16].mxu0 %v15519_v11  ;;  %3207 = vmatmul.mubr.bf16.vlgmr.msra.gmra.mrb[16].mxu1 %v15519_v11 }
 0x114   :  { %3216 = vmatpush1.bf16.msra.mxu0 %v13344_v22  ;;  %3257 = vmatpush1.bf16.msra.mxu1 %v13346_v23  ;;  %v585_v22 = vld [vmem:[#allocation8 + $0x8c0] sm:$0xff]  ;;  %v106_v23 = vld [vmem:[#allocation5 + $0x8] sm:$0xff] }
 0x115   :  { %3217 = vmatprep.subr.bf16.mxu0 %v13369_v24  ;;  %3258 = vmatprep.subr.bf16.mxu1 %v13371_v25  ;;  %v13516_v24 = vcombine.low %v305_v10, %v313_v12  ;;  %v108_v25 = vld [vmem:[#allocation5 + $0x18] sm:$0xff]  ;;  %v13789_v28 = vcombine.high %v577_v21, %v585_v22  ;;  %v13788_v36 = vcombine.low %v577_v21, %v585_v22 }
 0x116   :  { %3247 = vmatprep.mubr.bf16.mxu0 %v15388_v0  ;;  %3288 = vmatprep.mubr.bf16.mxu1 %v15388_v0  ;;  %v13443_v0 = vcombine.high %v220_v44, %v232_v45  ;;  %v15544_v34 = vpack.c.bf16 %v108_v25, %v108_v25  ;;  %v705_v25 = vld [vmem:[#allocation8 + $0xc80] sm:$0xff] }
 0x118   :  { %3218 = vmatpush1.bf16.msra.mxu0 %v13368_v30  ;;  %3259 = vmatpush1.bf16.msra.mxu1 %v13370_v31  ;;  %v345_v30 = vld [vmem:[#allocation8 + $0x140] sm:$0xff]  ;;  %v15541_v31 = vpack.c.bf16 %v106_v23, %v106_v23 }
 0x119   :  { %3219 = vmatprep.subr.bf16.mxu0 %v13393_v32  ;;  %3260 = vmatprep.subr.bf16.mxu1 %v13395_v33  ;;  %v593_v32 = vld [vmem:[#allocation8 + $0x900] sm:$0xff]  ;;  %v13549_v37 = vcombine.high %v337_v29, %v345_v30  ;;  %v13548_v43 = vcombine.low %v337_v29, %v345_v30 }
 0x11a   :  { %v601_v33 = vld [vmem:[#allocation8 + $0x940] sm:$0xff] }
 0x11b   :  { %v449_v23 = vld [vmem:[#allocation8 + $0x480] sm:$0xff] }
 0x11c   :  { %3220 = vmatpush1.bf16.msra.mxu0 %v13392_v38  ;;  %3261 = vmatpush1.bf16.msra.mxu1 %v13394_v39  ;;  %v13805_v38 = vcombine.high %v593_v32, %v601_v33  ;;  %v353_v39 = vld [vmem:[#allocation8 + $0x180] sm:$0xff] }
 0x11d   :  { %3221 = vmatprep.subr.bf16.mxu0 %v13417_v40  ;;  %3262 = vmatprep.subr.bf16.mxu1 %v13419_v41  ;;  %v361_v40 = vld [vmem:[#allocation8 + $0x1c0] sm:$0xff] }
 0x11e   :  { %v609_v41 = vld [vmem:[#allocation8 + $0x980] sm:$0xff]  ;;  %v13565_v44 = vcombine.high %v353_v39, %v361_v40  ;;  %v13564_v49 = vcombine.low %v353_v39, %v361_v40 }
 0x11f   :  { %v13821_v45 = vcombine.high %v609_v41, %v617_v42  ;;  %v13820_v50 = vcombine.low %v609_v41, %v617_v42  ;;  %v481_v41 = vld [vmem:[#allocation8 + $0x580] sm:$0xff] }
 0x120   :  { %3222 = vmatpush1.bf16.msra.mxu0 %v13416_v46  ;;  %3263 = vmatpush1.bf16.msra.mxu1 %v13418_v47  ;;  %v369_v46 = vld [vmem:[#allocation8 + $0x200] sm:$0xff] }
 0x121   :  { %3223 = vmatprep.subr.bf16.mxu0 %v13441_v48  ;;  %3264 = vmatprep.subr.bf16.mxu1 %v13443_v0  ;;  %v377_v47 = vld [vmem:[#allocation8 + $0x240] sm:$0xff] }
 0x122   :  { %v625_v48 = vld [vmem:[#allocation8 + $0xa00] sm:$0xff]  ;;  %v13581_v51 = vcombine.high %v369_v46, %v377_v47  ;;  %v13580_v57 = vcombine.low %v369_v46, %v377_v47 }
 0x123   :  { %v633_v0 = vld [vmem:[#allocation8 + $0xa40] sm:$0xff] }
 0x124   :  { %3224 = vmatpush1.bf16.msra.mxu0 %v13440_v53  ;;  %3265 = vmatpush1.bf16.msra.mxu1 %v13442_v54  ;;  %v13837_v52 = vcombine.high %v625_v48, %v633_v0  ;;  %v385_v53 = vld [vmem:[#allocation8 + $0x280] sm:$0xff]  ;;  %v13836_v58 = vcombine.low %v625_v48, %v633_v0 }
 0x125   :  { %3225 = vmatprep.subr.bf16.mxu0 %v13465_v55  ;;  %3266 = vmatprep.subr.bf16.mxu1 %v13467_v56  ;;  %v393_v54 = vld [vmem:[#allocation8 + $0x2c0] sm:$0xff] }
 0x126   :  { %v641_v55 = vld [vmem:[#allocation8 + $0xa80] sm:$0xff]  ;;  %v13597_v59 = vcombine.high %v385_v53, %v393_v54  ;;  %v13596_v2 = vcombine.low %v385_v53, %v393_v54 }
 0x127   :  { %v649_v56 = vld [vmem:[#allocation8 + $0xac0] sm:$0xff] }
 0x128   :  { %3226 = vmatpush1.bf16.msra.mxu0 %v13464_v61  ;;  %3267 = vmatpush1.bf16.msra.mxu1 %v13466_v62  ;;  %v13853_v60 = vcombine.high %v641_v55, %v649_v56  ;;  %v401_v61 = vld [vmem:[#allocation8 + $0x300] sm:$0xff]  ;;  %v13852_v3 = vcombine.low %v641_v55, %v649_v56 }
 0x129   :  { %3227 = vmatprep.subr.bf16.mxu0 %v13489_v63  ;;  %3268 = vmatprep.subr.bf16.mxu1 %v13491_v1  ;;  %v409_v62 = vld [vmem:[#allocation8 + $0x340] sm:$0xff] }
 0x12a   :  { %v657_v63 = vld [vmem:[#allocation8 + $0xb00] sm:$0xff]  ;;  %v13613_v4 = vcombine.high %v401_v61, %v409_v62  ;;  %v13612_v10 = vcombine.low %v401_v61, %v409_v62 }
 0x12b   :  { %v665_v1 = vld [vmem:[#allocation8 + $0xb40] sm:$0xff] }
 0x12c   :  { %3228 = vmatpush1.bf16.msra.mxu0 %v13488_v6  ;;  %3269 = vmatpush1.bf16.msra.mxu1 %v13490_v7  ;;  %v13869_v5 = vcombine.high %v657_v63, %v665_v1  ;;  %v417_v6 = vld [vmem:[#allocation8 + $0x380] sm:$0xff]  ;;  %v13868_v12 = vcombine.low %v657_v63, %v665_v1 }
 0x12d   :  { %3229 = vmatprep.subr.bf16.mxu0 %v13513_v8  ;;  %3270 = vmatprep.subr.bf16.mxu1 %v13515_v9  ;;  %v425_v7 = vld [vmem:[#allocation8 + $0x3c0] sm:$0xff] }
 0x12e   :  { %v673_v8 = vld [vmem:[#allocation8 + $0xb80] sm:$0xff]  ;;  %v13629_v13 = vcombine.high %v417_v6, %v425_v7  ;;  %v13628_v19 = vcombine.low %v417_v6, %v425_v7 }
 0x12f   :  { %v681_v9 = vld [vmem:[#allocation8 + $0xbc0] sm:$0xff] }
 0x130   :  { %3230 = vmatpush1.bf16.msra.mxu0 %v13512_v15  ;;  %3271 = vmatpush1.bf16.msra.mxu1 %v13514_v16  ;;  %v13885_v14 = vcombine.high %v673_v8, %v681_v9  ;;  %v433_v15 = vld [vmem:[#allocation8 + $0x400] sm:$0xff]  ;;  %v13884_v20 = vcombine.low %v673_v8, %v681_v9 }
 0x131   :  { %8425 = vmatprep.subr.bf16.mxu0 %v13517_v17  ;;  %8466 = vmatprep.subr.bf16.mxu1 %v13773_v18  ;;  %v441_v16 = vld [vmem:[#allocation8 + $0x440] sm:$0xff] }
 0x132   :  { %v689_v17 = vld [vmem:[#allocation8 + $0xc00] sm:$0xff]  ;;  %v13645_v21 = vcombine.high %v433_v15, %v441_v16 }
 0x133   :  { %3248 = vmatmul.mubr.bf16.vlgmr.msra.gmra.mrb[20].mxu0 %v15519_v11  ;;  %3289 = vmatmul.mubr.bf16.vlgmr.msra.gmra.mrb[20].mxu1 %v15519_v11  ;;  %v13804_v11 = vcombine.low %v593_v32, %v601_v33  ;;  %v697_v18 = vld [vmem:[#allocation8 + $0xc40] sm:$0xff] }
 0x134   :  { %8426 = vmatpush1.bf16.msra.mxu0 %v13516_v24  ;;  %8467 = vmatpush1.bf16.msra.mxu1 %v13772_v26  ;;  %v13901_v22 = vcombine.high %v689_v17, %v697_v18  ;;  %v457_v24 = vld [vmem:[#allocation8 + $0x4c0] sm:$0xff] }
 0x135   :  { %8427 = vmatprep.subr.bf16.mxu0 %v13533_v27  ;;  %8468 = vmatprep.subr.bf16.mxu1 %v13789_v28  ;;  %v713_v26 = vld [vmem:[#allocation8 + $0xcc0] sm:$0xff]  ;;  %v13644_v27 = vcombine.low %v433_v15, %v441_v16  ;;  %v13900_v28 = vcombine.low %v689_v17, %v697_v18  ;;  %v13661_v29 = vcombine.high %v449_v23, %v457_v24 }
 0x136   :  { %8457 = vmatprep.mubr.bf16.mxu0 %v15541_v31  ;;  %8498 = vmatprep.mubr.bf16.mxu1 %v15544_v34  ;;  %v13917_v30 = vcombine.high %v705_v25, %v713_v26  ;;  %v465_v32 = vld [vmem:[#allocation8 + $0x500] sm:$0xff] }
 0x137   :  { %v473_v33 = vld [vmem:[#allocation8 + $0x540] sm:$0xff] }
 0x138   :  { %8428 = vmatpush1.bf16.msra.mxu0 %v13532_v35  ;;  %8469 = vmatpush1.bf16.msra.mxu1 %v13788_v36  ;;  %v721_v35 = vld [vmem:[#allocation8 + $0xd00] sm:$0xff]  ;;  %v13677_v39 = vcombine.high %v465_v32, %v473_v33 }
 0x139   :  { %8429 = vmatprep.subr.bf16.mxu0 %v13549_v37  ;;  %8470 = vmatprep.subr.bf16.mxu1 %v13805_v38  ;;  %v729_v36 = vld [vmem:[#allocation8 + $0xd40] sm:$0xff]  ;;  %v13660_v37 = vcombine.low %v449_v23, %v457_v24  ;;  %v13916_v38 = vcombine.low %v705_v25, %v713_v26 }
 0x13a   :  { %v13933_v40 = vcombine.high %v721_v35, %v729_v36  ;;  %v489_v42 = vld [vmem:[#allocation8 + $0x5c0] sm:$0xff] }
 0x13b   :  { %v13693_v46 = vcombine.high %v481_v41, %v489_v42  ;;  %v497_v48 = vld [vmem:[#allocation8 + $0x600] sm:$0xff] }
 0x13c   :  { %8430 = vmatpush1.bf16.msra.mxu0 %v13548_v43  ;;  %8471 = vmatpush1.bf16.msra.mxu1 %v13804_v11  ;;  %v737_v43 = vld [vmem:[#allocation8 + $0xd80] sm:$0xff] }
 0x13d   :  { %8431 = vmatprep.subr.bf16.mxu0 %v13565_v44  ;;  %8472 = vmatprep.subr.bf16.mxu1 %v13821_v45  ;;  %v745_v11 = vld [vmem:[#allocation8 + $0xdc0] sm:$0xff]  ;;  %v13676_v44 = vcombine.low %v465_v32, %v473_v33  ;;  %v13932_v45 = vcombine.low %v721_v35, %v729_v36  ;;  %v107_v33 = vld [vmem:[#allocation5 + $0x10] sm:$0xff] }
 0x13e   :  { %v13949_v47 = vcombine.high %v737_v43, %v745_v11  ;;  %v505_v0 = vld [vmem:[#allocation8 + $0x640] sm:$0xff] }
 0x13f   :  { %v13709_v53 = vcombine.high %v497_v48, %v505_v0  ;;  %v513_v55 = vld [vmem:[#allocation8 + $0x680] sm:$0xff] }
 0x140   :  { %8432 = vmatpush1.bf16.msra.mxu0 %v13564_v49  ;;  %8473 = vmatpush1.bf16.msra.mxu1 %v13820_v50  ;;  %v753_v49 = vld [vmem:[#allocation8 + $0xe00] sm:$0xff] }
 0x141   :  { %8433 = vmatprep.subr.bf16.mxu0 %v13581_v51  ;;  %8474 = vmatprep.subr.bf16.mxu1 %v13837_v52  ;;  %v761_v50 = vld [vmem:[#allocation8 + $0xe40] sm:$0xff]  ;;  %v13692_v51 = vcombine.low %v481_v41, %v489_v42  ;;  %v13948_v52 = vcombine.low %v737_v43, %v745_v11  ;;  %v110_v42 = vld [vmem:[#allocation5 + $0x28] sm:$0xff]  ;;  %v15559_v43 = vpack.c.bf16 %v107_v33, %v107_v33 }
 0x142   :  { %v13965_v54 = vcombine.high %v753_v49, %v761_v50  ;;  %v521_v56 = vld [vmem:[#allocation8 + $0x6c0] sm:$0xff] }
 0x143   :  { %v13725_v61 = vcombine.high %v513_v55, %v521_v56  ;;  %v529_v63 = vld [vmem:[#allocation8 + $0x700] sm:$0xff] }
 0x144   :  { %8434 = vmatpush1.bf16.msra.mxu0 %v13580_v57  ;;  %8475 = vmatpush1.bf16.msra.mxu1 %v13836_v58  ;;  %v769_v57 = vld [vmem:[#allocation8 + $0xe80] sm:$0xff] }
 0x145   :  { %8435 = vmatprep.subr.bf16.mxu0 %v13597_v59  ;;  %8476 = vmatprep.subr.bf16.mxu1 %v13853_v60  ;;  %v777_v58 = vld [vmem:[#allocation8 + $0xec0] sm:$0xff]  ;;  %v13708_v59 = vcombine.low %v497_v48, %v505_v0  ;;  %v13964_v60 = vcombine.low %v753_v49, %v761_v50  ;;  %v15561_v49 = vpack.c.bf16 %v110_v42, %v110_v42 }
 0x146   :  { %v13981_v62 = vcombine.high %v769_v57, %v777_v58  ;;  %v537_v1 = vld [vmem:[#allocation8 + $0x740] sm:$0xff] }
 0x147   :  { %v13741_v6 = vcombine.high %v529_v63, %v537_v1  ;;  %v545_v9 = vld [vmem:[#allocation8 + $0x780] sm:$0xff]  ;;  %v13740_v18 = vcombine.low %v529_v63, %v537_v1 }
 0x148   :  { %8436 = vmatpush1.bf16.msra.mxu0 %v13596_v2  ;;  %8477 = vmatpush1.bf16.msra.mxu1 %v13852_v3  ;;  %v785_v2 = vld [vmem:[#allocation8 + $0xf00] sm:$0xff] }
 0x149   :  { %8437 = vmatprep.subr.bf16.mxu0 %v13613_v4  ;;  %8478 = vmatprep.subr.bf16.mxu1 %v13869_v5  ;;  %v793_v3 = vld [vmem:[#allocation8 + $0xf40] sm:$0xff]  ;;  %v13724_v4 = vcombine.low %v513_v55, %v521_v56  ;;  %v13980_v5 = vcombine.low %v769_v57, %v777_v58 }
 0x14a   :  { %v13997_v8 = vcombine.high %v785_v2, %v793_v3  ;;  %v809_v15 = vld [vmem:[#allocation8 + $0xfc0] sm:$0xff] }
 0x14b   :  { %v817_v25 = vld [vmem:[#allocation8 + $0x1000] sm:$0xff] }
 0x14c   :  { %8438 = vmatpush1.bf16.msra.mxu0 %v13612_v10  ;;  %8479 = vmatpush1.bf16.msra.mxu1 %v13868_v12  ;;  %v553_v10 = vld [vmem:[#allocation8 + $0x7c0] sm:$0xff] }
 0x14d   :  { %8439 = vmatprep.subr.bf16.mxu0 %v13629_v13  ;;  %8480 = vmatprep.subr.bf16.mxu1 %v13885_v14  ;;  %v801_v14 = vld [vmem:[#allocation8 + $0xf80] sm:$0xff] }
 0x14e   :  { %v14013_v24 = vcombine.high %v801_v14, %v809_v15  ;;  %v825_v26 = vld [vmem:[#allocation8 + $0x1040] sm:$0xff]  ;;  %v14012_v32 = vcombine.low %v801_v14, %v809_v15 }
 0x14f   :  { %v14029_v35 = vcombine.high %v817_v25, %v825_v26  ;;  %v1097_v41 = vld [vmem:[#allocation8 + $0x18c0] sm:$0xff]  ;;  %v14028_v11 = vcombine.low %v817_v25, %v825_v26 }
 0x150   :  { %8440 = vmatpush1.bf16.msra.mxu0 %v13628_v19  ;;  %8481 = vmatpush1.bf16.msra.mxu1 %v13884_v20  ;;  %v849_v48 = vld [vmem:[#allocation8 + $0x1100] sm:$0xff] }
 0x151   :  { %8441 = vmatprep.subr.bf16.mxu0 %v13645_v21  ;;  %8482 = vmatprep.subr.bf16.mxu1 %v13901_v22  ;;  %v13996_v21 = vcombine.low %v785_v2, %v793_v3  ;;  %v13757_v22 = vcombine.high %v545_v9, %v553_v10  ;;  %v857_v0 = vld [vmem:[#allocation8 + $0x1140] sm:$0xff] }
 0x152   :  { %v1105_v50 = vld [vmem:[#allocation8 + $0x1900] sm:$0xff]  ;;  %v14061_v55 = vcombine.high %v849_v48, %v857_v0 }
 0x153   :  { %v865_v57 = vld [vmem:[#allocation8 + $0x1180] sm:$0xff] }
 0x154   :  { %8442 = vmatpush1.bf16.msra.mxu0 %v13644_v27  ;;  %8483 = vmatpush1.bf16.msra.mxu1 %v13900_v28  ;;  %v1073_v27 = vld [vmem:[#allocation8 + $0x1800] sm:$0xff] }
 0x155   :  { %8443 = vmatprep.subr.bf16.mxu0 %v13661_v29  ;;  %8484 = vmatprep.subr.bf16.mxu1 %v13917_v30  ;;  %v1081_v28 = vld [vmem:[#allocation8 + $0x1840] sm:$0xff]  ;;  %v13756_v29 = vcombine.low %v545_v9, %v553_v10 }
 0x156   :  { %v105_v30 = vld [vmem:[#allocation5] sm:$0xff]  ;;  %v14285_v36 = vcombine.high %v1073_v27, %v1081_v28 }
 0x157   :  { %v873_v58 = vld [vmem:[#allocation8 + $0x11c0] sm:$0xff] }
 0x158   :  { %8444 = vmatpush1.bf16.msra.mxu0 %v13660_v37  ;;  %8485 = vmatpush1.bf16.msra.mxu1 %v13916_v38  ;;  %v833_v37 = vld [vmem:[#allocation8 + $0x1080] sm:$0xff]  ;;  %v14077_v63 = vcombine.high %v865_v57, %v873_v58 }
 0x159   :  { %8445 = vmatprep.subr.bf16.mxu0 %v13677_v39  ;;  %8486 = vmatprep.subr.bf16.mxu1 %v13933_v40  ;;  %v841_v38 = vld [vmem:[#allocation8 + $0x10c0] sm:$0xff]  ;;  %v15557_v39 = vpack.c.bf16 %v105_v30, %v105_v30 }
 0x15a   :  { %v1089_v40 = vld [vmem:[#allocation8 + $0x1880] sm:$0xff] }
 0x15b   :  { %v881_v2 = vld [vmem:[#allocation8 + $0x1200] sm:$0xff] }
 0x15c   :  { %8446 = vmatpush1.bf16.msra.mxu0 %v13676_v44  ;;  %8487 = vmatpush1.bf16.msra.mxu1 %v13932_v45  ;;  %v112_v44 = vld [vmem:[#allocation5 + $0x38] sm:$0xff]  ;;  %v14284_v45 = vcombine.low %v1073_v27, %v1081_v28  ;;  %v889_v3 = vld [vmem:[#allocation8 + $0x1240] sm:$0xff] }
 0x15d   :  { %8447 = vmatprep.subr.bf16.mxu0 %v13693_v46  ;;  %8488 = vmatprep.subr.bf16.mxu1 %v13949_v47  ;;  %v14045_v46 = vcombine.high %v833_v37, %v841_v38  ;;  %v14301_v47 = vcombine.high %v1089_v40, %v1097_v41  ;;  %v14093_v9 = vcombine.high %v881_v2, %v889_v3  ;;  %v897_v14 = vld [vmem:[#allocation8 + $0x1280] sm:$0xff] }
 0x15e   :  { %v905_v15 = vld [vmem:[#allocation8 + $0x12c0] sm:$0xff] }
 0x15f   :  { %v1169_v25 = vld [vmem:[#allocation8 + $0x1b00] sm:$0xff]  ;;  %v14108_v27 = vcombine.low %v897_v14, %v905_v15 }
 0x160   :  { %8448 = vmatpush1.bf16.msra.mxu0 %v13692_v51  ;;  %8489 = vmatpush1.bf16.msra.mxu1 %v13948_v52  ;;  %v1113_v51 = vld [vmem:[#allocation8 + $0x1940] sm:$0xff]  ;;  %v15564_v52 = vpack.c.bf16 %v112_v44, %v112_v44 }
 0x161   :  { %8449 = vmatprep.subr.bf16.mxu0 %v13709_v53  ;;  %8490 = vmatprep.subr.bf16.mxu1 %v13965_v54  ;;  %v14044_v53 = vcombine.low %v833_v37, %v841_v38  ;;  %v14300_v54 = vcombine.low %v1089_v40, %v1097_v41  ;;  %v14317_v56 = vcombine.high %v1105_v50, %v1113_v51  ;;  %v1177_v26 = vld [vmem:[#allocation8 + $0x1b40] sm:$0xff] }
 0x162   :  { %v929_v33 = vld [vmem:[#allocation8 + $0x1380] sm:$0xff] }
 0x163   :  { %v1185_v38 = vld [vmem:[#allocation8 + $0x1b80] sm:$0xff] }
 0x164   :  { %8450 = vmatpush1.bf16.msra.mxu0 %v13708_v59  ;;  %8491 = vmatpush1.bf16.msra.mxu1 %v13964_v60  ;;  %v1121_v59 = vld [vmem:[#allocation8 + $0x1980] sm:$0xff] }
 0x165   :  { %8451 = vmatprep.subr.bf16.mxu0 %v13725_v61  ;;  %8492 = vmatprep.subr.bf16.mxu1 %v13981_v62  ;;  %v1129_v60 = vld [vmem:[#allocation8 + $0x19c0] sm:$0xff]  ;;  %v14060_v61 = vcombine.low %v849_v48, %v857_v0  ;;  %v14316_v62 = vcombine.low %v1105_v50, %v1113_v51 }
 0x166   :  { %v15549_v7 = vpop.f32.mrb[0].mxu0  ;;  %v15551_v12 = vpop.f32.mrb[0].mxu1  ;;  %v14333_v1 = vcombine.high %v1121_v59, %v1129_v60  ;;  %v1193_v40 = vld [vmem:[#allocation8 + $0x1bc0] sm:$0xff] }
 0x167   :  { %v15553_v13 = vpop.f32.mrb[1].mxu0  ;;  %v15555_v16 = vpop.f32.mrb[1].mxu1  ;;  %v14397_v0 = vcombine.high %v1185_v38, %v1193_v40  ;;  %v945_v50 = vld [vmem:[#allocation8 + $0x1400] sm:$0xff] }
 0x168   :  { %v2843_v17 = vpop.f32.mrb[2].mxu0  ;;  %8452 = vmatpush1.bf16.msra.mxu0 %v13724_v4  ;;  %v2884_v19 = vpop.f32.mrb[2].mxu1  ;;  %8493 = vmatpush1.bf16.msra.mxu1 %v13980_v5  ;;  %v1137_v4 = vld [vmem:[#allocation8 + $0x1a00] sm:$0xff] }
 0x169   :  { %v2844_v20 = vpop.f32.mrb[3].mxu0  ;;  %8453 = vmatprep.subr.bf16.mxu0 %v13741_v6  ;;  %v2885_v23 = vpop.f32.mrb[3].mxu1  ;;  %8494 = vmatprep.subr.bf16.mxu1 %v13997_v8  ;;  %v1145_v5 = vld [vmem:[#allocation8 + $0x1a40] sm:$0xff]  ;;  %v14076_v6 = vcombine.low %v865_v57, %v873_v58  ;;  %v14332_v8 = vcombine.low %v1121_v59, %v1129_v60  ;;  %v14092_v19 = vcombine.low %v881_v2, %v889_v3 }
 0x16a   :  { %v14349_v10 = vcombine.high %v1137_v4, %v1145_v5  ;;  %v1153_v17 = vld [vmem:[#allocation8 + $0x1a80] sm:$0xff]  ;;  %v14348_v20 = vcombine.low %v1137_v4, %v1145_v5 }
 0x16b   :  { %v913_v23 = vld [vmem:[#allocation8 + $0x1300] sm:$0xff] }
 0x16c   :  { %8454 = vmatpush1.bf16.msra.mxu0 %v13740_v18  ;;  %8495 = vmatpush1.bf16.msra.mxu1 %v13996_v21  ;;  %v1161_v18 = vld [vmem:[#allocation8 + $0x1ac0] sm:$0xff]  ;;  %v14109_v21 = vcombine.high %v897_v14, %v905_v15 }
 0x16d   :  { %8455 = vmatprep.subr.bf16.mxu0 %v13757_v22  ;;  %8496 = vmatprep.subr.bf16.mxu1 %v14013_v24  ;;  %v14365_v22 = vcombine.high %v1153_v17, %v1161_v18  ;;  %v921_v24 = vld [vmem:[#allocation8 + $0x1340] sm:$0xff]  ;;  %v14364_v28 = vcombine.low %v1153_v17, %v1161_v18 }
 0x16e   :  { %v953_v51 = vld [vmem:[#allocation8 + $0x1440] sm:$0xff] }
 0x16f   :  { %v14157_v57 = vcombine.high %v945_v50, %v953_v51  ;;  %v961_v59 = vld [vmem:[#allocation8 + $0x1480] sm:$0xff] }
 0x170   :  { %8456 = vmatpush1.bf16.msra.mxu0 %v13756_v29  ;;  %8497 = vmatpush1.bf16.msra.mxu1 %v14012_v32  ;;  %v14125_v29 = vcombine.high %v913_v23, %v921_v24  ;;  %v14381_v32 = vcombine.high %v1169_v25, %v1177_v26  ;;  %v969_v60 = vld [vmem:[#allocation8 + $0x14c0] sm:$0xff] }
 0x171   :  { %8507 = vmatprep.subr.bf16.mxu0 %v14029_v35  ;;  %8548 = vmatprep.subr.bf16.mxu1 %v14285_v36  ;;  %v937_v35 = vld [vmem:[#allocation8 + $0x13c0] sm:$0xff]  ;;  %v14173_v2 = vcombine.high %v961_v59, %v969_v60 }
 0x172   :  { %v977_v4 = vld [vmem:[#allocation8 + $0x1500] sm:$0xff] }
 0x173   :  { %8458 = vmatmul.mubr.bf16.vlgmr.msra.gmra.mrb[24].mxu0 %v15557_v39  ;;  %8499 = vmatmul.mubr.bf16.vlgmr.msra.gmra.mrb[24].mxu1 %v15559_v43  ;;  %v985_v5 = vld [vmem:[#allocation8 + $0x1540] sm:$0xff] }
 0x174   :  { %8508 = vmatpush1.bf16.msra.mxu0 %v14028_v11  ;;  %8549 = vmatpush1.bf16.msra.mxu1 %v14284_v45  ;;  %v14124_v11 = vcombine.low %v913_v23, %v921_v24  ;;  %v14189_v14 = vcombine.high %v977_v4, %v985_v5  ;;  %v993_v17 = vld [vmem:[#allocation8 + $0x1580] sm:$0xff] }
 0x175   :  { %8509 = vmatprep.subr.bf16.mxu0 %v14045_v46  ;;  %8550 = vmatprep.subr.bf16.mxu1 %v14301_v47  ;;  %v14380_v46 = vcombine.low %v1169_v25, %v1177_v26  ;;  %v14141_v47 = vcombine.high %v929_v33, %v937_v35  ;;  %v1001_v18 = vld [vmem:[#allocation8 + $0x15c0] sm:$0xff] }
 0x176   :  { %8539 = vmatprep.mubr.bf16.mxu0 %v15561_v49  ;;  %8580 = vmatprep.mubr.bf16.mxu1 %v15564_v52  ;;  %v14205_v23 = vcombine.high %v993_v17, %v1001_v18  ;;  %v1009_v25 = vld [vmem:[#allocation8 + $0x1600] sm:$0xff] }
 0x177   :  { %v1017_v26 = vld [vmem:[#allocation8 + $0x1640] sm:$0xff] }
 0x178   :  { %8510 = vmatpush1.bf16.msra.mxu0 %v14044_v53  ;;  %8551 = vmatpush1.bf16.msra.mxu1 %v14300_v54  ;;  %v1201_v53 = vld [vmem:[#allocation8 + $0x1c00] sm:$0xff] }
 0x179   :  { %8511 = vmatprep.subr.bf16.mxu0 %v14061_v55  ;;  %8552 = vmatprep.subr.bf16.mxu1 %v14317_v56  ;;  %v1209_v54 = vld [vmem:[#allocation8 + $0x1c40] sm:$0xff]  ;;  %v14140_v55 = vcombine.low %v929_v33, %v937_v35  ;;  %v14396_v56 = vcombine.low %v1185_v38, %v1193_v40  ;;  %v14221_v33 = vcombine.high %v1009_v25, %v1017_v26 }
 0x17a   :  { %v14413_v58 = vcombine.high %v1201_v53, %v1209_v54  ;;  %v1025_v38 = vld [vmem:[#allocation8 + $0x1680] sm:$0xff] }
 0x17b   :  { %v1033_v40 = vld [vmem:[#allocation8 + $0x16c0] sm:$0xff] }
 0x17c   :  { %8512 = vmatpush1.bf16.msra.mxu0 %v14060_v61  ;;  %8553 = vmatpush1.bf16.msra.mxu1 %v14316_v62  ;;  %v1217_v61 = vld [vmem:[#allocation8 + $0x1c80] sm:$0xff] }
 0x17d   :  { %8513 = vmatprep.subr.bf16.mxu0 %v14077_v63  ;;  %8554 = vmatprep.subr.bf16.mxu1 %v14333_v1  ;;  %v1225_v62 = vld [vmem:[#allocation8 + $0x1cc0] sm:$0xff]  ;;  %v14156_v63 = vcombine.low %v945_v50, %v953_v51  ;;  %v14412_v1 = vcombine.low %v1201_v53, %v1209_v54  ;;  %v14236_v53 = vcombine.low %v1025_v38, %v1033_v40 }
 0x17e   :  { %v14429_v3 = vcombine.high %v1217_v61, %v1225_v62  ;;  %v1297_v50 = vld [vmem:[#allocation8 + $0x1f00] sm:$0xff] }
 0x17f   :  { %v1305_v51 = vld [vmem:[#allocation8 + $0x1f40] sm:$0xff] }
 0x180   :  { %8514 = vmatpush1.bf16.msra.mxu0 %v14076_v6  ;;  %8555 = vmatpush1.bf16.msra.mxu1 %v14332_v8  ;;  %v1233_v6 = vld [vmem:[#allocation8 + $0x1d00] sm:$0xff] }
 0x181   :  { %8515 = vmatprep.subr.bf16.mxu0 %v14093_v9  ;;  %8556 = vmatprep.subr.bf16.mxu1 %v14349_v10  ;;  %v1241_v8 = vld [vmem:[#allocation8 + $0x1d40] sm:$0xff]  ;;  %v14172_v9 = vcombine.low %v961_v59, %v969_v60  ;;  %v14428_v10 = vcombine.low %v1217_v61, %v1225_v62 }
 0x182   :  { %v14445_v15 = vcombine.high %v1233_v6, %v1241_v8  ;;  %v1065_v59 = vld [vmem:[#allocation8 + $0x17c0] sm:$0xff] }
 0x183   :  { %v1313_v62 = vld [vmem:[#allocation8 + $0x1f80] sm:$0xff] }
 0x184   :  { %8516 = vmatpush1.bf16.msra.mxu0 %v14092_v19  ;;  %8557 = vmatpush1.bf16.msra.mxu1 %v14348_v20  ;;  %v1249_v19 = vld [vmem:[#allocation8 + $0x1d80] sm:$0xff] }
 0x185   :  { %8517 = vmatprep.subr.bf16.mxu0 %v14109_v21  ;;  %8558 = vmatprep.subr.bf16.mxu1 %v14365_v22  ;;  %v1257_v20 = vld [vmem:[#allocation8 + $0x1dc0] sm:$0xff]  ;;  %v14188_v21 = vcombine.low %v977_v4, %v985_v5  ;;  %v14444_v22 = vcombine.low %v1233_v6, %v1241_v8  ;;  %v14508_v6 = vcombine.low %v1297_v50, %v1305_v51 }
 0x186   :  { %v15569_v30 = vpop.f32.mrb[4].mxu0  ;;  %v15571_v36 = vpop.f32.mrb[4].mxu1  ;;  %v14461_v24 = vcombine.high %v1249_v19, %v1257_v20 }
 0x187   :  { %v15573_v37 = vpop.f32.mrb[5].mxu0  ;;  %v15575_v41 = vpop.f32.mrb[5].mxu1 }
 0x188   :  { %v2925_v42 = vpop.f32.mrb[6].mxu0  ;;  %8518 = vmatpush1.bf16.msra.mxu0 %v14108_v27  ;;  %v2966_v44 = vpop.f32.mrb[6].mxu1  ;;  %8559 = vmatpush1.bf16.msra.mxu1 %v14364_v28  ;;  %v1265_v27 = vld [vmem:[#allocation8 + $0x1e00] sm:$0xff] }
 0x189   :  { %v2926_v45 = vpop.f32.mrb[7].mxu0  ;;  %8519 = vmatprep.subr.bf16.mxu0 %v14125_v29  ;;  %v2967_v48 = vpop.f32.mrb[7].mxu1  ;;  %8560 = vmatprep.subr.bf16.mxu1 %v14381_v32  ;;  %v1273_v28 = vld [vmem:[#allocation8 + $0x1e40] sm:$0xff]  ;;  %v14204_v29 = vcombine.low %v993_v17, %v1001_v18  ;;  %v14460_v32 = vcombine.low %v1249_v19, %v1257_v20  ;;  %v14220_v44 = vcombine.low %v1009_v25, %v1017_v26  ;;  %v562_v17 = vld [vmem:[#allocation8 + $0x808] sm:$0xff] }
 0x18a   :  { %v14477_v35 = vcombine.high %v1265_v27, %v1273_v28  ;;  %v1281_v42 = vld [vmem:[#allocation8 + $0x1e80] sm:$0xff]  ;;  %v14476_v45 = vcombine.low %v1265_v27, %v1273_v28  ;;  %v570_v18 = vld [vmem:[#allocation8 + $0x848] sm:$0xff] }
 0x18b   :  { %v1041_v48 = vld [vmem:[#allocation8 + $0x1700] sm:$0xff]  ;;  %v322_v25 = vld [vmem:[#allocation8 + $0x88] sm:$0xff] }
 0x18c   :  { %8520 = vmatpush1.bf16.msra.mxu0 %v14124_v11  ;;  %8561 = vmatpush1.bf16.msra.mxu1 %v14380_v46  ;;  %v1289_v11 = vld [vmem:[#allocation8 + $0x1ec0] sm:$0xff]  ;;  %v14237_v46 = vcombine.high %v1025_v38, %v1033_v40  ;;  %v330_v26 = vld [vmem:[#allocation8 + $0xc8] sm:$0xff] }
 0x18d   :  { %8521 = vmatprep.subr.bf16.mxu0 %v14141_v47  ;;  %8562 = vmatprep.subr.bf16.mxu1 %v14397_v0  ;;  %v14493_v47 = vcombine.high %v1281_v42, %v1289_v11  ;;  %v1049_v0 = vld [vmem:[#allocation8 + $0x1740] sm:$0xff]  ;;  %v14492_v54 = vcombine.low %v1281_v42, %v1289_v11  ;;  %v578_v28 = vld [vmem:[#allocation8 + $0x888] sm:$0xff]  ;;  %v13535_v38 = vcombine.high %v322_v25, %v330_v26 }
 0x18e   :  { %v109_v20 = vld [vmem:[#allocation5 + $0x20] sm:$0xff]  ;;  %v338_v42 = vld [vmem:[#allocation8 + $0x108] sm:$0xff] }
 0x18f   :  { %v15585_v27 = vpack.c.bf16 %v109_v20, %v109_v20  ;;  %v346_v11 = vld [vmem:[#allocation8 + $0x148] sm:$0xff] }
 0x190   :  { %8522 = vmatpush1.bf16.msra.mxu0 %v14140_v55  ;;  %8563 = vmatpush1.bf16.msra.mxu1 %v14396_v56  ;;  %v14253_v55 = vcombine.high %v1041_v48, %v1049_v0 }
 0x191   :  { %8523 = vmatprep.subr.bf16.mxu0 %v14157_v57  ;;  %8564 = vmatprep.subr.bf16.mxu1 %v14413_v58  ;;  %v14509_v57 = vcombine.high %v1297_v50, %v1305_v51  ;;  %v1057_v58 = vld [vmem:[#allocation8 + $0x1780] sm:$0xff]  ;;  %v354_v50 = vld [vmem:[#allocation8 + $0x188] sm:$0xff] }
 0x192   :  { %v14269_v8 = vcombine.high %v1057_v58, %v1065_v59  ;;  %v14268_v19 = vcombine.low %v1057_v58, %v1065_v59  ;;  %v362_v51 = vld [vmem:[#allocation8 + $0x1c8] sm:$0xff] }
 0x193   :  { %v13567_v58 = vcombine.high %v354_v50, %v362_v51 }
 0x194   :  { %8524 = vmatpush1.bf16.msra.mxu0 %v14156_v63  ;;  %8565 = vmatpush1.bf16.msra.mxu1 %v14412_v1  ;;  %v1321_v63 = vld [vmem:[#allocation8 + $0x1fc0] sm:$0xff] }
 0x195   :  { %8525 = vmatprep.subr.bf16.mxu0 %v14173_v2  ;;  %8566 = vmatprep.subr.bf16.mxu1 %v14429_v3  ;;  %v14252_v3 = vcombine.low %v1041_v48, %v1049_v0  ;;  %v13551_v48 = vcombine.high %v338_v42, %v346_v11 }
 0x198   :  { %8526 = vmatpush1.bf16.msra.mxu0 %v14172_v9  ;;  %8567 = vmatpush1.bf16.msra.mxu1 %v14428_v10  ;;  %v14525_v10 = vcombine.high %v1313_v62, %v1321_v63 }
 0x199   :  { %8527 = vmatprep.subr.bf16.mxu0 %v14189_v14  ;;  %8568 = vmatprep.subr.bf16.mxu1 %v14445_v15  ;;  %v306_v14 = vld [vmem:[#allocation8 + $0x8] sm:$0xff] }
 0x19a   :  { %v314_v15 = vld [vmem:[#allocation8 + $0x48] sm:$0xff] }
 0x19c   :  { %8528 = vmatpush1.bf16.msra.mxu0 %v14188_v21  ;;  %8569 = vmatpush1.bf16.msra.mxu1 %v14444_v22  ;;  %v14524_v21 = vcombine.low %v1313_v62, %v1321_v63  ;;  %v111_v22 = vld [vmem:[#allocation5 + $0x30] sm:$0xff]  ;;  %v370_v62 = vld [vmem:[#allocation8 + $0x208] sm:$0xff] }
 0x19d   :  { %8529 = vmatprep.subr.bf16.mxu0 %v14205_v23  ;;  %8570 = vmatprep.subr.bf16.mxu1 %v14461_v24  ;;  %v13519_v23 = vcombine.high %v306_v14, %v314_v15  ;;  %v13775_v24 = vcombine.high %v562_v17, %v570_v18  ;;  %v378_v63 = vld [vmem:[#allocation8 + $0x248] sm:$0xff] }
 0x1a0   :  { %8530 = vmatpush1.bf16.msra.mxu0 %v14204_v29  ;;  %8571 = vmatpush1.bf16.msra.mxu1 %v14460_v32  ;;  %v586_v29 = vld [vmem:[#allocation8 + $0x8c8] sm:$0xff]  ;;  %v15587_v32 = vpack.c.bf16 %v111_v22, %v111_v22 }
 0x1a1   :  { %8531 = vmatprep.subr.bf16.mxu0 %v14221_v33  ;;  %8572 = vmatprep.subr.bf16.mxu1 %v14477_v35  ;;  %v13518_v33 = vcombine.low %v306_v14, %v314_v15  ;;  %v13774_v35 = vcombine.low %v562_v17, %v570_v18  ;;  %v13791_v40 = vcombine.high %v578_v28, %v586_v29  ;;  %v642_v14 = vld [vmem:[#allocation8 + $0xa88] sm:$0xff] }
 0x1a2   :  { %v650_v15 = vld [vmem:[#allocation8 + $0xac8] sm:$0xff]  ;;  %v13582_v17 = vcombine.low %v370_v62, %v378_v63 }
 0x1a3   :  { %v13855_v20 = vcombine.high %v642_v14, %v650_v15  ;;  %v410_v22 = vld [vmem:[#allocation8 + $0x348] sm:$0xff] }
 0x1a4   :  { %8532 = vmatpush1.bf16.msra.mxu0 %v14220_v44  ;;  %8573 = vmatpush1.bf16.msra.mxu1 %v14476_v45  ;;  %v594_v44 = vld [vmem:[#allocation8 + $0x908] sm:$0xff] }
 0x1a5   :  { %8533 = vmatprep.subr.bf16.mxu0 %v14237_v46  ;;  %8574 = vmatprep.subr.bf16.mxu1 %v14493_v47  ;;  %v602_v45 = vld [vmem:[#allocation8 + $0x948] sm:$0xff]  ;;  %v13534_v46 = vcombine.low %v322_v25, %v330_v26  ;;  %v13790_v47 = vcombine.low %v578_v28, %v586_v29  ;;  %v13854_v26 = vcombine.low %v642_v14, %v650_v15 }
 0x1a6   :  { %v15577_v56 = vpop.f32.mrb[8].mxu0  ;;  %v15579_v60 = vpop.f32.mrb[8].mxu1  ;;  %v13807_v0 = vcombine.high %v594_v44, %v602_v45 }
 0x1a7   :  { %v15581_v61 = vpop.f32.mrb[9].mxu0  ;;  %v15583_v1 = vpop.f32.mrb[9].mxu1 }
 0x1a8   :  { %v3007_v2 = vpop.f32.mrb[10].mxu0  ;;  %8534 = vmatpush1.bf16.msra.mxu0 %v14236_v53  ;;  %v3048_v4 = vpop.f32.mrb[10].mxu1  ;;  %8575 = vmatpush1.bf16.msra.mxu1 %v14492_v54  ;;  %v610_v53 = vld [vmem:[#allocation8 + $0x988] sm:$0xff] }
 0x1a9   :  { %v3008_v5 = vpop.f32.mrb[11].mxu0  ;;  %8535 = vmatprep.subr.bf16.mxu0 %v14253_v55  ;;  %v3049_v9 = vpop.f32.mrb[11].mxu1  ;;  %8576 = vmatprep.subr.bf16.mxu1 %v14509_v57  ;;  %v618_v54 = vld [vmem:[#allocation8 + $0x9c8] sm:$0xff]  ;;  %v13550_v55 = vcombine.low %v338_v42, %v346_v11  ;;  %v13806_v57 = vcombine.low %v594_v44, %v602_v45  ;;  %v13566_v4 = vcombine.low %v354_v50, %v362_v51 }
 0x1aa   :  { %v13823_v59 = vcombine.high %v610_v53, %v618_v54  ;;  %v626_v2 = vld [vmem:[#allocation8 + $0xa08] sm:$0xff]  ;;  %v13822_v5 = vcombine.low %v610_v53, %v618_v54 }
 0x1ab   :  { %v386_v9 = vld [vmem:[#allocation8 + $0x288] sm:$0xff] }
 0x1ac   :  { %8536 = vmatpush1.bf16.msra.mxu0 %v14252_v3  ;;  %8577 = vmatpush1.bf16.msra.mxu1 %v14508_v6  ;;  %v634_v3 = vld [vmem:[#allocation8 + $0xa48] sm:$0xff]  ;;  %v13583_v6 = vcombine.high %v370_v62, %v378_v63 }
 0x1ad   :  { %8537 = vmatprep.subr.bf16.mxu0 %v14269_v8  ;;  %8578 = vmatprep.subr.bf16.mxu1 %v14525_v10  ;;  %v13839_v8 = vcombine.high %v626_v2, %v634_v3  ;;  %v394_v10 = vld [vmem:[#allocation8 + $0x2c8] sm:$0xff]  ;;  %v13838_v18 = vcombine.low %v626_v2, %v634_v3 }
 0x1ae   :  { %v13598_v25 = vcombine.low %v386_v9, %v394_v10  ;;  %v674_v11 = vld [vmem:[#allocation8 + $0xb88] sm:$0xff] }
 0x1af   :  { %v682_v44 = vld [vmem:[#allocation8 + $0xbc8] sm:$0xff] }
 0x1b0   :  { %8538 = vmatpush1.bf16.msra.mxu0 %v14268_v19  ;;  %8579 = vmatpush1.bf16.msra.mxu1 %v14524_v21  ;;  %v13599_v19 = vcombine.high %v386_v9, %v394_v10  ;;  %v402_v21 = vld [vmem:[#allocation8 + $0x308] sm:$0xff]  ;;  %v13887_v54 = vcombine.high %v674_v11, %v682_v44  ;;  %v13886_v63 = vcombine.low %v674_v11, %v682_v44 }
 0x1b1   :  { %8589 = vmatprep.subr.bf16.mxu0 %v13519_v23  ;;  %8630 = vmatprep.subr.bf16.mxu1 %v13775_v24  ;;  %v658_v23 = vld [vmem:[#allocation8 + $0xb08] sm:$0xff]  ;;  %v13615_v28 = vcombine.high %v402_v21, %v410_v22 }
 0x1b2   :  { %v666_v24 = vld [vmem:[#allocation8 + $0xb48] sm:$0xff] }
 0x1b3   :  { %8540 = vmatmul.mubr.bf16.vlgmr.msra.gmra.mrb[28].mxu0 %v15585_v27  ;;  %8581 = vmatmul.mubr.bf16.vlgmr.msra.gmra.mrb[28].mxu1 %v15587_v32  ;;  %v13870_v50 = vcombine.low %v658_v23, %v666_v24 }
 0x1b4   :  { %8590 = vmatpush1.bf16.msra.mxu0 %v13518_v33  ;;  %8631 = vmatpush1.bf16.msra.mxu1 %v13774_v35  ;;  %v13871_v33 = vcombine.high %v658_v23, %v666_v24  ;;  %v418_v35 = vld [vmem:[#allocation8 + $0x388] sm:$0xff] }
 0x1b5   :  { %8591 = vmatprep.subr.bf16.mxu0 %v13535_v38  ;;  %8632 = vmatprep.subr.bf16.mxu1 %v13791_v40  ;;  %v426_v38 = vld [vmem:[#allocation8 + $0x3c8] sm:$0xff] }
 0x1b6   :  { %8621 = vmatprep.mubr.bf16.mxu0 %v15541_v31  ;;  %8662 = vmatprep.mubr.bf16.mxu1 %v15544_v34  ;;  %v13631_v51 = vcombine.high %v418_v35, %v426_v38  ;;  %v13630_v62 = vcombine.low %v418_v35, %v426_v38 }
 0x1b8   :  { %8592 = vmatpush1.bf16.msra.mxu0 %v13534_v46  ;;  %8633 = vmatpush1.bf16.msra.mxu1 %v13790_v47  ;;  %v13614_v47 = vcombine.low %v402_v21, %v410_v22 }
 0x1b9   :  { %8593 = vmatprep.subr.bf16.mxu0 %v13551_v48  ;;  %8634 = vmatprep.subr.bf16.mxu1 %v13807_v0 }
 0x1bc   :  { %8594 = vmatpush1.bf16.msra.mxu0 %v13550_v55  ;;  %8635 = vmatpush1.bf16.msra.mxu1 %v13806_v57  ;;  %v434_v55 = vld [vmem:[#allocation8 + $0x408] sm:$0xff] }
 0x1bd   :  { %8595 = vmatprep.subr.bf16.mxu0 %v13567_v58  ;;  %8636 = vmatprep.subr.bf16.mxu1 %v13823_v59  ;;  %v442_v57 = vld [vmem:[#allocation8 + $0x448] sm:$0xff] }
 0x1be   :  { %v690_v58 = vld [vmem:[#allocation8 + $0xc08] sm:$0xff]  ;;  %v13647_v2 = vcombine.high %v434_v55, %v442_v57  ;;  %v13646_v9 = vcombine.low %v434_v55, %v442_v57 }
 0x1bf   :  { %v698_v59 = vld [vmem:[#allocation8 + $0xc48] sm:$0xff] }
 0x1c0   :  { %8596 = vmatpush1.bf16.msra.mxu0 %v13566_v4  ;;  %8637 = vmatpush1.bf16.msra.mxu1 %v13822_v5  ;;  %v13903_v3 = vcombine.high %v690_v58, %v698_v59  ;;  %v450_v4 = vld [vmem:[#allocation8 + $0x488] sm:$0xff]  ;;  %v13902_v10 = vcombine.low %v690_v58, %v698_v59 }
 0x1c1   :  { %8597 = vmatprep.subr.bf16.mxu0 %v13583_v6  ;;  %8638 = vmatprep.subr.bf16.mxu1 %v13839_v8  ;;  %v458_v5 = vld [vmem:[#allocation8 + $0x4c8] sm:$0xff] }
 0x1c2   :  { %v706_v6 = vld [vmem:[#allocation8 + $0xc88] sm:$0xff]  ;;  %v13663_v14 = vcombine.high %v450_v4, %v458_v5  ;;  %v13662_v21 = vcombine.low %v450_v4, %v458_v5 }
 0x1c3   :  { %v714_v8 = vld [vmem:[#allocation8 + $0xcc8] sm:$0xff] }
 0x1c4   :  { %8598 = vmatpush1.bf16.msra.mxu0 %v13582_v17  ;;  %8639 = vmatpush1.bf16.msra.mxu1 %v13838_v18  ;;  %v13919_v15 = vcombine.high %v706_v6, %v714_v8  ;;  %v466_v17 = vld [vmem:[#allocation8 + $0x508] sm:$0xff]  ;;  %v13918_v22 = vcombine.low %v706_v6, %v714_v8 }
 0x1c5   :  { %8599 = vmatprep.subr.bf16.mxu0 %v13599_v19  ;;  %8640 = vmatprep.subr.bf16.mxu1 %v13855_v20  ;;  %v474_v18 = vld [vmem:[#allocation8 + $0x548] sm:$0xff] }
 0x1c6   :  { %v15593_v29 = vpop.f32.mrb[12].mxu0  ;;  %v15595_v40 = vpop.f32.mrb[12].mxu1  ;;  %v722_v19 = vld [vmem:[#allocation8 + $0xd08] sm:$0xff]  ;;  %v13679_v23 = vcombine.high %v466_v17, %v474_v18  ;;  %v13678_v35 = vcombine.low %v466_v17, %v474_v18 }
 0x1c7   :  { %v15597_v42 = vpop.f32.mrb[13].mxu0  ;;  %v15599_v45 = vpop.f32.mrb[13].mxu1  ;;  %v730_v20 = vld [vmem:[#allocation8 + $0xd48] sm:$0xff] }
 0x1c8   :  { %v3089_v46 = vpop.f32.mrb[14].mxu0  ;;  %8600 = vmatpush1.bf16.msra.mxu0 %v13598_v25  ;;  %v3130_v48 = vpop.f32.mrb[14].mxu1  ;;  %8641 = vmatpush1.bf16.msra.mxu1 %v13854_v26  ;;  %v13935_v24 = vcombine.high %v722_v19, %v730_v20  ;;  %v482_v25 = vld [vmem:[#allocation8 + $0x588] sm:$0xff]  ;;  %v13934_v38 = vcombine.low %v722_v19, %v730_v20 }
 0x1c9   :  { %v3090_v0 = vpop.f32.mrb[15].mxu0  ;;  %8601 = vmatprep.subr.bf16.mxu0 %v13615_v28  ;;  %v3131_v53 = vpop.f32.mrb[15].mxu1  ;;  %8642 = vmatprep.subr.bf16.mxu1 %v13871_v33  ;;  %v490_v26 = vld [vmem:[#allocation8 + $0x5c8] sm:$0xff] }
 0x1ca   :  { %v738_v28 = vld [vmem:[#allocation8 + $0xd88] sm:$0xff]  ;;  %v13695_v11 = vcombine.high %v482_v25, %v490_v26 }
 0x1cb   :  { %v746_v33 = vld [vmem:[#allocation8 + $0xdc8] sm:$0xff] }
 0x1cc   :  { %8602 = vmatpush1.bf16.msra.mxu0 %v13614_v47  ;;  %8643 = vmatpush1.bf16.msra.mxu1 %v13870_v50  ;;  %v13951_v44 = vcombine.high %v738_v28, %v746_v33  ;;  %v498_v46 = vld [vmem:[#allocation8 + $0x608] sm:$0xff]  ;;  %v13694_v50 = vcombine.low %v482_v25, %v490_v26 }
 0x1cd   :  { %8603 = vmatprep.subr.bf16.mxu0 %v13631_v51  ;;  %8644 = vmatprep.subr.bf16.mxu1 %v13887_v54  ;;  %v506_v47 = vld [vmem:[#allocation8 + $0x648] sm:$0xff]  ;;  %v13950_v51 = vcombine.low %v738_v28, %v746_v33 }
 0x1ce   :  { %v754_v48 = vld [vmem:[#allocation8 + $0xe08] sm:$0xff]  ;;  %v13711_v53 = vcombine.high %v498_v46, %v506_v47 }
 0x1cf   :  { %v762_v0 = vld [vmem:[#allocation8 + $0xe48] sm:$0xff] }
 0x1d0   :  { %8604 = vmatpush1.bf16.msra.mxu0 %v13630_v62  ;;  %8645 = vmatpush1.bf16.msra.mxu1 %v13886_v63  ;;  %v13967_v54 = vcombine.high %v754_v48, %v762_v0  ;;  %v514_v55 = vld [vmem:[#allocation8 + $0x688] sm:$0xff]  ;;  %v13710_v62 = vcombine.low %v498_v46, %v506_v47  ;;  %v13966_v63 = vcombine.low %v754_v48, %v762_v0 }
 0x1d1   :  { %8605 = vmatprep.subr.bf16.mxu0 %v13647_v2  ;;  %8646 = vmatprep.subr.bf16.mxu1 %v13903_v3  ;;  %v522_v57 = vld [vmem:[#allocation8 + $0x6c8] sm:$0xff] }
 0x1d2   :  { %v770_v58 = vld [vmem:[#allocation8 + $0xe88] sm:$0xff]  ;;  %v13727_v2 = vcombine.high %v514_v55, %v522_v57 }
 0x1d3   :  { %v778_v59 = vld [vmem:[#allocation8 + $0xec8] sm:$0xff] }
 0x1d4   :  { %8606 = vmatpush1.bf16.msra.mxu0 %v13646_v9  ;;  %8647 = vmatpush1.bf16.msra.mxu1 %v13902_v10  ;;  %v13983_v3 = vcombine.high %v770_v58, %v778_v59  ;;  %v530_v4 = vld [vmem:[#allocation8 + $0x708] sm:$0xff]  ;;  %v13726_v9 = vcombine.low %v514_v55, %v522_v57  ;;  %v13982_v10 = vcombine.low %v770_v58, %v778_v59 }
 0x1d5   :  { %8607 = vmatprep.subr.bf16.mxu0 %v13663_v14  ;;  %8648 = vmatprep.subr.bf16.mxu1 %v13919_v15  ;;  %v538_v5 = vld [vmem:[#allocation8 + $0x748] sm:$0xff] }
 0x1d6   :  { %v786_v6 = vld [vmem:[#allocation8 + $0xf08] sm:$0xff]  ;;  %v13743_v14 = vcombine.high %v530_v4, %v538_v5  ;;  %v13742_v26 = vcombine.low %v530_v4, %v538_v5 }
 0x1d7   :  { %v794_v8 = vld [vmem:[#allocation8 + $0xf48] sm:$0xff] }
 0x1d8   :  { %8608 = vmatpush1.bf16.msra.mxu0 %v13662_v21  ;;  %8649 = vmatpush1.bf16.msra.mxu1 %v13918_v22  ;;  %v13999_v17 = vcombine.high %v786_v6, %v794_v8  ;;  %v546_v18 = vld [vmem:[#allocation8 + $0x788] sm:$0xff] }
 0x1d9   :  { %8609 = vmatprep.subr.bf16.mxu0 %v13679_v23  ;;  %8650 = vmatprep.subr.bf16.mxu1 %v13935_v24  ;;  %v554_v19 = vld [vmem:[#allocation8 + $0x7c8] sm:$0xff] }
 0x1da   :  { %v802_v22 = vld [vmem:[#allocation8 + $0xf88] sm:$0xff] }
 0x1db   :  { %v810_v23 = vld [vmem:[#allocation8 + $0xfc8] sm:$0xff] }
 0x1dc   :  { %8610 = vmatpush1.bf16.msra.mxu0 %v13678_v35  ;;  %8651 = vmatpush1.bf16.msra.mxu1 %v13934_v38  ;;  %v13998_v35 = vcombine.low %v786_v6, %v794_v8  ;;  %v13759_v38 = vcombine.high %v546_v18, %v554_v19  ;;  %v818_v46 = vld [vmem:[#allocation8 + $0x1008] sm:$0xff] }
 0x1dd   :  { %8611 = vmatprep.subr.bf16.mxu0 %v13695_v11  ;;  %8652 = vmatprep.subr.bf16.mxu1 %v13951_v44  ;;  %v14015_v44 = vcombine.high %v802_v22, %v810_v23  ;;  %v826_v47 = vld [vmem:[#allocation8 + $0x1048] sm:$0xff] }
 0x1de   :  { %v1074_v48 = vld [vmem:[#allocation8 + $0x1808] sm:$0xff] }
 0x1df   :  { %v1082_v0 = vld [vmem:[#allocation8 + $0x1848] sm:$0xff] }
 0x1e0   :  { %8612 = vmatpush1.bf16.msra.mxu0 %v13694_v50  ;;  %8653 = vmatpush1.bf16.msra.mxu1 %v13950_v51  ;;  %v13758_v50 = vcombine.low %v546_v18, %v554_v19  ;;  %v14014_v51 = vcombine.low %v802_v22, %v810_v23  ;;  %v834_v55 = vld [vmem:[#allocation8 + $0x1088] sm:$0xff] }
 0x1e1   :  { %8613 = vmatprep.subr.bf16.mxu0 %v13711_v53  ;;  %8654 = vmatprep.subr.bf16.mxu1 %v13967_v54  ;;  %v14031_v53 = vcombine.high %v818_v46, %v826_v47  ;;  %v14287_v54 = vcombine.high %v1074_v48, %v1082_v0  ;;  %v842_v57 = vld [vmem:[#allocation8 + $0x10c8] sm:$0xff] }
 0x1e2   :  { %v1090_v58 = vld [vmem:[#allocation8 + $0x1888] sm:$0xff] }
 0x1e3   :  { %v1098_v59 = vld [vmem:[#allocation8 + $0x18c8] sm:$0xff] }
 0x1e4   :  { %8614 = vmatpush1.bf16.msra.mxu0 %v13710_v62  ;;  %8655 = vmatpush1.bf16.msra.mxu1 %v13966_v63  ;;  %v14030_v62 = vcombine.low %v818_v46, %v826_v47  ;;  %v14286_v63 = vcombine.low %v1074_v48, %v1082_v0  ;;  %v850_v4 = vld [vmem:[#allocation8 + $0x1108] sm:$0xff] }
 0x1e5   :  { %8615 = vmatprep.subr.bf16.mxu0 %v13727_v2  ;;  %8656 = vmatprep.subr.bf16.mxu1 %v13983_v3  ;;  %v14047_v2 = vcombine.high %v834_v55, %v842_v57  ;;  %v14303_v3 = vcombine.high %v1090_v58, %v1098_v59  ;;  %v858_v5 = vld [vmem:[#allocation8 + $0x1148] sm:$0xff] }
 0x1e6   :  { %v15601_v15 = vpop.f32.mrb[16].mxu0  ;;  %v15603_v20 = vpop.f32.mrb[16].mxu1  ;;  %v1106_v6 = vld [vmem:[#allocation8 + $0x1908] sm:$0xff] }
 0x1e7   :  { %v15605_v21 = vpop.f32.mrb[17].mxu0  ;;  %v15607_v24 = vpop.f32.mrb[17].mxu1  ;;  %v1114_v8 = vld [vmem:[#allocation8 + $0x1948] sm:$0xff] }
 0x1e8   :  { %v3171_v25 = vpop.f32.mrb[18].mxu0  ;;  %8616 = vmatpush1.bf16.msra.mxu0 %v13726_v9  ;;  %v3212_v28 = vpop.f32.mrb[18].mxu1  ;;  %8657 = vmatpush1.bf16.msra.mxu1 %v13982_v10  ;;  %v14046_v9 = vcombine.low %v834_v55, %v842_v57  ;;  %v14302_v10 = vcombine.low %v1090_v58, %v1098_v59  ;;  %v866_v18 = vld [vmem:[#allocation8 + $0x1188] sm:$0xff] }
 0x1e9   :  { %v3172_v33 = vpop.f32.mrb[19].mxu0  ;;  %8617 = vmatprep.subr.bf16.mxu0 %v13743_v14  ;;  %v3213_v11 = vpop.f32.mrb[19].mxu1  ;;  %8658 = vmatprep.subr.bf16.mxu1 %v13999_v17  ;;  %v14063_v14 = vcombine.high %v850_v4, %v858_v5  ;;  %v14319_v17 = vcombine.high %v1106_v6, %v1114_v8  ;;  %v874_v19 = vld [vmem:[#allocation8 + $0x11c8] sm:$0xff]  ;;  %v14062_v25 = vcombine.low %v850_v4, %v858_v5 }
 0x1ea   :  { %v1122_v22 = vld [vmem:[#allocation8 + $0x1988] sm:$0xff]  ;;  %v14079_v28 = vcombine.high %v866_v18, %v874_v19  ;;  %v14078_v46 = vcombine.low %v866_v18, %v874_v19 }
 0x1eb   :  { %v1130_v23 = vld [vmem:[#allocation8 + $0x19c8] sm:$0xff] }
 0x1ec   :  { %8618 = vmatpush1.bf16.msra.mxu0 %v13742_v26  ;;  %8659 = vmatpush1.bf16.msra.mxu1 %v13998_v35  ;;  %v14318_v26 = vcombine.low %v1106_v6, %v1114_v8  ;;  %v14335_v33 = vcombine.high %v1122_v22, %v1130_v23  ;;  %v882_v35 = vld [vmem:[#allocation8 + $0x1208] sm:$0xff]  ;;  %v14334_v47 = vcombine.low %v1122_v22, %v1130_v23 }
 0x1ed   :  { %8619 = vmatprep.subr.bf16.mxu0 %v13759_v38  ;;  %8660 = vmatprep.subr.bf16.mxu1 %v14015_v44  ;;  %v890_v38 = vld [vmem:[#allocation8 + $0x1248] sm:$0xff] }
 0x1ee   :  { %v1138_v11 = vld [vmem:[#allocation8 + $0x1a08] sm:$0xff]  ;;  %v14095_v48 = vcombine.high %v882_v35, %v890_v38  ;;  %v14094_v55 = vcombine.low %v882_v35, %v890_v38 }
 0x1ef   :  { %v1146_v44 = vld [vmem:[#allocation8 + $0x1a48] sm:$0xff] }
 0x1f0   :  { %8620 = vmatpush1.bf16.msra.mxu0 %v13758_v50  ;;  %8661 = vmatpush1.bf16.msra.mxu1 %v14014_v51  ;;  %v14351_v0 = vcombine.high %v1138_v11, %v1146_v44  ;;  %v898_v50 = vld [vmem:[#allocation8 + $0x1288] sm:$0xff]  ;;  %v14350_v57 = vcombine.low %v1138_v11, %v1146_v44 }
 0x1f1   :  { %8671 = vmatprep.subr.bf16.mxu0 %v14031_v53  ;;  %8712 = vmatprep.subr.bf16.mxu1 %v14287_v54  ;;  %v906_v51 = vld [vmem:[#allocation8 + $0x12c8] sm:$0xff] }
 0x1f2   :  { %v1154_v53 = vld [vmem:[#allocation8 + $0x1a88] sm:$0xff]  ;;  %v14111_v58 = vcombine.high %v898_v50, %v906_v51  ;;  %v14110_v4 = vcombine.low %v898_v50, %v906_v51 }
 0x1f3   :  { %8622 = vmatmul.mubr.bf16.vlgmr.msra.gmra.mrb[32].mxu0 %v15557_v39  ;;  %8663 = vmatmul.mubr.bf16.vlgmr.msra.gmra.mrb[32].mxu1 %v15559_v43  ;;  %v1162_v54 = vld [vmem:[#allocation8 + $0x1ac8] sm:$0xff] }
 0x1f4   :  { %8672 = vmatpush1.bf16.msra.mxu0 %v14030_v62  ;;  %8713 = vmatpush1.bf16.msra.mxu1 %v14286_v63  ;;  %v14367_v59 = vcombine.high %v1154_v53, %v1162_v54  ;;  %v914_v62 = vld [vmem:[#allocation8 + $0x1308] sm:$0xff]  ;;  %v14366_v5 = vcombine.low %v1154_v53, %v1162_v54 }
 0x1f5   :  { %8673 = vmatprep.subr.bf16.mxu0 %v14047_v2  ;;  %8714 = vmatprep.subr.bf16.mxu1 %v14303_v3  ;;  %v922_v63 = vld [vmem:[#allocation8 + $0x1348] sm:$0xff] }
 0x1f6   :  { %8703 = vmatprep.mubr.bf16.mxu0 %v15561_v49  ;;  %8744 = vmatprep.mubr.bf16.mxu1 %v15564_v52  ;;  %v1170_v2 = vld [vmem:[#allocation8 + $0x1b08] sm:$0xff]  ;;  %v14127_v6 = vcombine.high %v914_v62, %v922_v63 }
 0x1f7   :  { %v1178_v3 = vld [vmem:[#allocation8 + $0x1b48] sm:$0xff] }
 0x1f8   :  { %8674 = vmatpush1.bf16.msra.mxu0 %v14046_v9  ;;  %8715 = vmatpush1.bf16.msra.mxu1 %v14302_v10  ;;  %v14383_v9 = vcombine.high %v1170_v2, %v1178_v3  ;;  %v930_v10 = vld [vmem:[#allocation8 + $0x1388] sm:$0xff]  ;;  %v14382_v35 = vcombine.low %v1170_v2, %v1178_v3 }
 0x1f9   :  { %8675 = vmatprep.subr.bf16.mxu0 %v14063_v14  ;;  %8716 = vmatprep.subr.bf16.mxu1 %v14319_v17  ;;  %v938_v14 = vld [vmem:[#allocation8 + $0x13c8] sm:$0xff] }
 0x1fa   :  { %v1186_v19 = vld [vmem:[#allocation8 + $0x1b88] sm:$0xff]  ;;  %v14143_v38 = vcombine.high %v930_v10, %v938_v14  ;;  %v14142_v50 = vcombine.low %v930_v10, %v938_v14 }
 0x1fb   :  { %v1194_v22 = vld [vmem:[#allocation8 + $0x1bc8] sm:$0xff] }
 0x1fc   :  { %8676 = vmatpush1.bf16.msra.mxu0 %v14062_v25  ;;  %8717 = vmatpush1.bf16.msra.mxu1 %v14318_v26  ;;  %v14126_v26 = vcombine.low %v914_v62, %v922_v63  ;;  %v14399_v44 = vcombine.high %v1186_v19, %v1194_v22  ;;  %v14398_v51 = vcombine.low %v1186_v19, %v1194_v22 }
 0x1fd   :  { %8677 = vmatprep.subr.bf16.mxu0 %v14079_v28  ;;  %8718 = vmatprep.subr.bf16.mxu1 %v14335_v33 }
 0x200   :  { %8678 = vmatpush1.bf16.msra.mxu0 %v14078_v46  ;;  %8719 = vmatpush1.bf16.msra.mxu1 %v14334_v47  ;;  %v946_v46 = vld [vmem:[#allocation8 + $0x1408] sm:$0xff] }
 0x201   :  { %8679 = vmatprep.subr.bf16.mxu0 %v14095_v48  ;;  %8720 = vmatprep.subr.bf16.mxu1 %v14351_v0  ;;  %v954_v47 = vld [vmem:[#allocation8 + $0x1448] sm:$0xff] }
 0x202   :  { %v1202_v48 = vld [vmem:[#allocation8 + $0x1c08] sm:$0xff]  ;;  %v14159_v53 = vcombine.high %v946_v46, %v954_v47  ;;  %v14158_v62 = vcombine.low %v946_v46, %v954_v47 }
 0x203   :  { %v1210_v0 = vld [vmem:[#allocation8 + $0x1c48] sm:$0xff] }
 0x204   :  { %8680 = vmatpush1.bf16.msra.mxu0 %v14094_v55  ;;  %8721 = vmatpush1.bf16.msra.mxu1 %v14350_v57  ;;  %v14415_v54 = vcombine.high %v1202_v48, %v1210_v0  ;;  %v962_v55 = vld [vmem:[#allocation8 + $0x1488] sm:$0xff]  ;;  %v14414_v63 = vcombine.low %v1202_v48, %v1210_v0 }
 0x205   :  { %8681 = vmatprep.subr.bf16.mxu0 %v14111_v58  ;;  %8722 = vmatprep.subr.bf16.mxu1 %v14367_v59  ;;  %v970_v57 = vld [vmem:[#allocation8 + $0x14c8] sm:$0xff] }
 0x206   :  { %v15613_v8 = vpop.f32.mrb[20].mxu0  ;;  %v15615_v17 = vpop.f32.mrb[20].mxu1  ;;  %v1218_v58 = vld [vmem:[#allocation8 + $0x1c88] sm:$0xff]  ;;  %v14175_v2 = vcombine.high %v962_v55, %v970_v57  ;;  %v14174_v10 = vcombine.low %v962_v55, %v970_v57 }
 0x207   :  { %15952 = vst [vmem:[#allocation22_spill] sm:$0xff] %v15615_v17  ;;  %v15617_v18 = vpop.f32.mrb[21].mxu0  ;;  %v15619_v23 = vpop.f32.mrb[21].mxu1  ;;  %v1226_v59 = vld [vmem:[#allocation8 + $0x1cc8] sm:$0xff] }
 0x208   :  { %15953 = vst [vmem:[#allocation23_spill] sm:$0xff] %v15617_v18  ;;  %15954 = vst [vmem:[#allocation24_spill] sm:$0xff] %v15619_v23  ;;  %v3253_v25 = vpop.f32.mrb[22].mxu0  ;;  %8682 = vmatpush1.bf16.msra.mxu0 %v14110_v4  ;;  %v3294_v28 = vpop.f32.mrb[22].mxu1  ;;  %8723 = vmatpush1.bf16.msra.mxu1 %v14366_v5  ;;  %v14431_v3 = vcombine.high %v1218_v58, %v1226_v59  ;;  %v978_v4 = vld [vmem:[#allocation8 + $0x1508] sm:$0xff]  ;;  %v14430_v14 = vcombine.low %v1218_v58, %v1226_v59  ;;  %v951_v18 = vld [vmem:[#allocation8 + $0x1430] sm:$0xff] }
 0x209   :  { %v3254_v33 = vpop.f32.mrb[23].mxu0  ;;  %8683 = vmatprep.subr.bf16.mxu0 %v14127_v6  ;;  %v3295_v11 = vpop.f32.mrb[23].mxu1  ;;  %8724 = vmatprep.subr.bf16.mxu1 %v14383_v9  ;;  %v986_v5 = vld [vmem:[#allocation8 + $0x1548] sm:$0xff] }
 0x20a   :  { %v1234_v6 = vld [vmem:[#allocation8 + $0x1d08] sm:$0xff]  ;;  %v14191_v19 = vcombine.high %v978_v4, %v986_v5 }
 0x20b   :  { %v1242_v9 = vld [vmem:[#allocation8 + $0x1d48] sm:$0xff] }
 0x20c   :  { %8684 = vmatpush1.bf16.msra.mxu0 %v14126_v26  ;;  %8725 = vmatpush1.bf16.msra.mxu1 %v14382_v35  ;;  %v14447_v22 = vcombine.high %v1234_v6, %v1242_v9  ;;  %v994_v25 = vld [vmem:[#allocation8 + $0x1588] sm:$0xff]  ;;  %v14190_v35 = vcombine.low %v978_v4, %v986_v5 }
 0x20d   :  { %8685 = vmatprep.subr.bf16.mxu0 %v14143_v38  ;;  %8726 = vmatprep.subr.bf16.mxu1 %v14399_v44  ;;  %v1002_v26 = vld [vmem:[#allocation8 + $0x15c8] sm:$0xff]  ;;  %v14446_v38 = vcombine.low %v1234_v6, %v1242_v9 }
 0x20e   :  { %v1250_v28 = vld [vmem:[#allocation8 + $0x1d88] sm:$0xff]  ;;  %v14207_v11 = vcombine.high %v994_v25, %v1002_v26 }
 0x20f   :  { %v1258_v33 = vld [vmem:[#allocation8 + $0x1dc8] sm:$0xff] }
 0x210   :  { %8686 = vmatpush1.bf16.msra.mxu0 %v14142_v50  ;;  %8727 = vmatpush1.bf16.msra.mxu1 %v14398_v51  ;;  %v14463_v44 = vcombine.high %v1250_v28, %v1258_v33  ;;  %v1010_v46 = vld [vmem:[#allocation8 + $0x1608] sm:$0xff]  ;;  %v14206_v50 = vcombine.low %v994_v25, %v1002_v26  ;;  %v14462_v51 = vcombine.low %v1250_v28, %v1258_v33 }
 0x211   :  { %8687 = vmatprep.subr.bf16.mxu0 %v14159_v53  ;;  %8728 = vmatprep.subr.bf16.mxu1 %v14415_v54  ;;  %v1018_v47 = vld [vmem:[#allocation8 + $0x1648] sm:$0xff] }
 0x212   :  { %v1266_v48 = vld [vmem:[#allocation8 + $0x1e08] sm:$0xff]  ;;  %v14223_v53 = vcombine.high %v1010_v46, %v1018_v47 }
 0x213   :  { %v1274_v0 = vld [vmem:[#allocation8 + $0x1e48] sm:$0xff] }
 0x214   :  { %8688 = vmatpush1.bf16.msra.mxu0 %v14158_v62  ;;  %8729 = vmatpush1.bf16.msra.mxu1 %v14414_v63  ;;  %v14479_v54 = vcombine.high %v1266_v48, %v1274_v0  ;;  %v1026_v55 = vld [vmem:[#allocation8 + $0x1688] sm:$0xff]  ;;  %v14222_v62 = vcombine.low %v1010_v46, %v1018_v47  ;;  %v14478_v63 = vcombine.low %v1266_v48, %v1274_v0  ;;  %v307_v46 = vld [vmem:[#allocation8 + $0x10] sm:$0xff] }
 0x215   :  { %8689 = vmatprep.subr.bf16.mxu0 %v14175_v2  ;;  %8730 = vmatprep.subr.bf16.mxu1 %v14431_v3  ;;  %v1034_v57 = vld [vmem:[#allocation8 + $0x16c8] sm:$0xff]  ;;  %v315_v47 = vld [vmem:[#allocation8 + $0x50] sm:$0xff] }
 0x216   :  { %v1282_v58 = vld [vmem:[#allocation8 + $0x1e88] sm:$0xff]  ;;  %v14239_v2 = vcombine.high %v1026_v55, %v1034_v57  ;;  %v563_v48 = vld [vmem:[#allocation8 + $0x810] sm:$0xff] }
 0x217   :  { %v1290_v59 = vld [vmem:[#allocation8 + $0x1ec8] sm:$0xff]  ;;  %v571_v0 = vld [vmem:[#allocation8 + $0x850] sm:$0xff] }
 0x218   :  { %8690 = vmatpush1.bf16.msra.mxu0 %v14174_v10  ;;  %8731 = vmatpush1.bf16.msra.mxu1 %v14430_v14  ;;  %v14495_v3 = vcombine.high %v1282_v58, %v1290_v59  ;;  %v1042_v4 = vld [vmem:[#allocation8 + $0x1708] sm:$0xff]  ;;  %v14238_v10 = vcombine.low %v1026_v55, %v1034_v57  ;;  %v14494_v14 = vcombine.low %v1282_v58, %v1290_v59  ;;  %v323_v55 = vld [vmem:[#allocation8 + $0x90] sm:$0xff] }
 0x219   :  { %8691 = vmatprep.subr.bf16.mxu0 %v14191_v19  ;;  %8732 = vmatprep.subr.bf16.mxu1 %v14447_v22  ;;  %v1050_v5 = vld [vmem:[#allocation8 + $0x1748] sm:$0xff]  ;;  %v331_v57 = vld [vmem:[#allocation8 + $0xd0] sm:$0xff] }
 0x21a   :  { %v1298_v6 = vld [vmem:[#allocation8 + $0x1f08] sm:$0xff]  ;;  %v14255_v19 = vcombine.high %v1042_v4, %v1050_v5  ;;  %v579_v58 = vld [vmem:[#allocation8 + $0x890] sm:$0xff] }
 0x21b   :  { %v1306_v9 = vld [vmem:[#allocation8 + $0x1f48] sm:$0xff]  ;;  %v587_v59 = vld [vmem:[#allocation8 + $0x8d0] sm:$0xff] }
 0x21c   :  { %8692 = vmatpush1.bf16.msra.mxu0 %v14190_v35  ;;  %8733 = vmatpush1.bf16.msra.mxu1 %v14446_v38  ;;  %v14511_v22 = vcombine.high %v1298_v6, %v1306_v9  ;;  %v1058_v25 = vld [vmem:[#allocation8 + $0x1788] sm:$0xff]  ;;  %v14254_v35 = vcombine.low %v1042_v4, %v1050_v5  ;;  %v14510_v38 = vcombine.low %v1298_v6, %v1306_v9  ;;  %v339_v4 = vld [vmem:[#allocation8 + $0x110] sm:$0xff] }
 0x21d   :  { %8693 = vmatprep.subr.bf16.mxu0 %v14207_v11  ;;  %8734 = vmatprep.subr.bf16.mxu1 %v14463_v44  ;;  %v1066_v26 = vld [vmem:[#allocation8 + $0x17c8] sm:$0xff]  ;;  %v347_v5 = vld [vmem:[#allocation8 + $0x150] sm:$0xff] }
 0x21e   :  { %v1314_v28 = vld [vmem:[#allocation8 + $0x1f88] sm:$0xff]  ;;  %v14271_v11 = vcombine.high %v1058_v25, %v1066_v26  ;;  %v595_v6 = vld [vmem:[#allocation8 + $0x910] sm:$0xff] }
 0x21f   :  { %v1322_v33 = vld [vmem:[#allocation8 + $0x1fc8] sm:$0xff]  ;;  %v603_v9 = vld [vmem:[#allocation8 + $0x950] sm:$0xff] }
 0x220   :  { %8694 = vmatpush1.bf16.msra.mxu0 %v14206_v50  ;;  %8735 = vmatpush1.bf16.msra.mxu1 %v14462_v51  ;;  %v14527_v44 = vcombine.high %v1314_v28, %v1322_v33  ;;  %v14270_v50 = vcombine.low %v1058_v25, %v1066_v26  ;;  %v14526_v51 = vcombine.low %v1314_v28, %v1322_v33  ;;  %v355_v25 = vld [vmem:[#allocation8 + $0x190] sm:$0xff] }
 0x221   :  { %8695 = vmatprep.subr.bf16.mxu0 %v14223_v53  ;;  %8736 = vmatprep.subr.bf16.mxu1 %v14479_v54  ;;  %v13521_v53 = vcombine.high %v307_v46, %v315_v47  ;;  %v13777_v54 = vcombine.high %v563_v48, %v571_v0  ;;  %v363_v26 = vld [vmem:[#allocation8 + $0x1d0] sm:$0xff] }
 0x222   :  { %v611_v28 = vld [vmem:[#allocation8 + $0x990] sm:$0xff] }
 0x223   :  { %v619_v33 = vld [vmem:[#allocation8 + $0x9d0] sm:$0xff] }
 0x224   :  { %8696 = vmatpush1.bf16.msra.mxu0 %v14222_v62  ;;  %8737 = vmatpush1.bf16.msra.mxu1 %v14478_v63  ;;  %v13520_v62 = vcombine.low %v307_v46, %v315_v47  ;;  %v13776_v63 = vcombine.low %v563_v48, %v571_v0  ;;  %v371_v46 = vld [vmem:[#allocation8 + $0x210] sm:$0xff] }
 0x225   :  { %8697 = vmatprep.subr.bf16.mxu0 %v14239_v2  ;;  %8738 = vmatprep.subr.bf16.mxu1 %v14495_v3  ;;  %v13537_v2 = vcombine.high %v323_v55, %v331_v57  ;;  %v13793_v3 = vcombine.high %v579_v58, %v587_v59  ;;  %v379_v47 = vld [vmem:[#allocation8 + $0x250] sm:$0xff] }
 0x226   :  { %v627_v48 = vld [vmem:[#allocation8 + $0xa10] sm:$0xff] }
 0x227   :  { %v635_v0 = vld [vmem:[#allocation8 + $0xa50] sm:$0xff] }
 0x228   :  { %8698 = vmatpush1.bf16.msra.mxu0 %v14238_v10  ;;  %8739 = vmatpush1.bf16.msra.mxu1 %v14494_v14  ;;  %v13536_v10 = vcombine.low %v323_v55, %v331_v57  ;;  %v13792_v14 = vcombine.low %v579_v58, %v587_v59  ;;  %v387_v55 = vld [vmem:[#allocation8 + $0x290] sm:$0xff] }
 0x229   :  { %8699 = vmatprep.subr.bf16.mxu0 %v14255_v19  ;;  %8740 = vmatprep.subr.bf16.mxu1 %v14511_v22  ;;  %v13553_v19 = vcombine.high %v339_v4, %v347_v5  ;;  %v13809_v22 = vcombine.high %v595_v6, %v603_v9  ;;  %v395_v57 = vld [vmem:[#allocation8 + $0x2d0] sm:$0xff] }
 0x22a   :  { %v643_v58 = vld [vmem:[#allocation8 + $0xa90] sm:$0xff] }
 0x22b   :  { %v651_v59 = vld [vmem:[#allocation8 + $0xad0] sm:$0xff] }
 0x22c   :  { %8700 = vmatpush1.bf16.msra.mxu0 %v14254_v35  ;;  %8741 = vmatpush1.bf16.msra.mxu1 %v14510_v38  ;;  %v13552_v35 = vcombine.low %v339_v4, %v347_v5  ;;  %v13808_v38 = vcombine.low %v595_v6, %v603_v9  ;;  %v403_v4 = vld [vmem:[#allocation8 + $0x310] sm:$0xff] }
 0x22d   :  { %8701 = vmatprep.subr.bf16.mxu0 %v14271_v11  ;;  %8742 = vmatprep.subr.bf16.mxu1 %v14527_v44  ;;  %v13569_v11 = vcombine.high %v355_v25, %v363_v26  ;;  %v13825_v44 = vcombine.high %v611_v28, %v619_v33  ;;  %v411_v5 = vld [vmem:[#allocation8 + $0x350] sm:$0xff] }
 0x22e   :  { %v659_v6 = vld [vmem:[#allocation8 + $0xb10] sm:$0xff] }
 0x22f   :  { %v667_v9 = vld [vmem:[#allocation8 + $0xb50] sm:$0xff] }
 0x230   :  { %8702 = vmatpush1.bf16.msra.mxu0 %v14270_v50  ;;  %8743 = vmatpush1.bf16.msra.mxu1 %v14526_v51  ;;  %v13568_v50 = vcombine.low %v355_v25, %v363_v26  ;;  %v13824_v51 = vcombine.low %v611_v28, %v619_v33  ;;  %v13873_v25 = vcombine.high %v659_v6, %v667_v9  ;;  %v419_v26 = vld [vmem:[#allocation8 + $0x390] sm:$0xff] }
 0x231   :  { %8753 = vmatprep.subr.bf16.mxu0 %v13521_v53  ;;  %8794 = vmatprep.subr.bf16.mxu1 %v13777_v54  ;;  %v13585_v53 = vcombine.high %v371_v46, %v379_v47  ;;  %v13841_v54 = vcombine.high %v627_v48, %v635_v0  ;;  %v427_v28 = vld [vmem:[#allocation8 + $0x3d0] sm:$0xff] }
 0x233   :  { %8704 = vmatmul.mubr.bf16.vlgmr.msra.gmra.mrb[36].mxu0 %v15585_v27  ;;  %8745 = vmatmul.mubr.bf16.vlgmr.msra.gmra.mrb[36].mxu1 %v15587_v32 }
 0x234   :  { %8754 = vmatpush1.bf16.msra.mxu0 %v13520_v62  ;;  %8795 = vmatpush1.bf16.msra.mxu1 %v13776_v63  ;;  %v13584_v62 = vcombine.low %v371_v46, %v379_v47  ;;  %v13840_v63 = vcombine.low %v627_v48, %v635_v0  ;;  %v13616_v48 = vcombine.low %v403_v4, %v411_v5 }
 0x235   :  { %8755 = vmatprep.subr.bf16.mxu0 %v13537_v2  ;;  %8796 = vmatprep.subr.bf16.mxu1 %v13793_v3  ;;  %v13601_v2 = vcombine.high %v387_v55, %v395_v57  ;;  %v13857_v3 = vcombine.high %v643_v58, %v651_v59 }
 0x236   :  { %8785 = vmatprep.mubr.bf16.mxu0 %v15541_v31  ;;  %8826 = vmatprep.mubr.bf16.mxu1 %v15544_v34 }
 0x238   :  { %8756 = vmatpush1.bf16.msra.mxu0 %v13536_v10  ;;  %8797 = vmatpush1.bf16.msra.mxu1 %v13792_v14  ;;  %v13600_v10 = vcombine.low %v387_v55, %v395_v57  ;;  %v13856_v14 = vcombine.low %v643_v58, %v651_v59  ;;  %v435_v58 = vld [vmem:[#allocation8 + $0x410] sm:$0xff] }
 0x239   :  { %8757 = vmatprep.subr.bf16.mxu0 %v13553_v19  ;;  %8798 = vmatprep.subr.bf16.mxu1 %v13809_v22  ;;  %v13617_v19 = vcombine.high %v403_v4, %v411_v5  ;;  %v443_v59 = vld [vmem:[#allocation8 + $0x450] sm:$0xff] }
 0x23a   :  { %v13649_v4 = vcombine.high %v435_v58, %v443_v59 }
 0x23c   :  { %8758 = vmatpush1.bf16.msra.mxu0 %v13552_v35  ;;  %8799 = vmatpush1.bf16.msra.mxu1 %v13808_v38  ;;  %v675_v38 = vld [vmem:[#allocation8 + $0xb90] sm:$0xff] }
 0x23d   :  { %8759 = vmatprep.subr.bf16.mxu0 %v13569_v11  ;;  %8800 = vmatprep.subr.bf16.mxu1 %v13825_v44  ;;  %v683_v11 = vld [vmem:[#allocation8 + $0xbd0] sm:$0xff] }
 0x23e   :  { %v13889_v57 = vcombine.high %v675_v38, %v683_v11 }
 0x240   :  { %8760 = vmatpush1.bf16.msra.mxu0 %v13568_v50  ;;  %8801 = vmatpush1.bf16.msra.mxu1 %v13824_v51 }
 0x241   :  { %8761 = vmatprep.subr.bf16.mxu0 %v13585_v53  ;;  %8802 = vmatprep.subr.bf16.mxu1 %v13841_v54  ;;  %v13872_v53 = vcombine.low %v659_v6, %v667_v9  ;;  %v13633_v54 = vcombine.high %v419_v26, %v427_v28  ;;  %v715_v6 = vld [vmem:[#allocation8 + $0xcd0] sm:$0xff]  ;;  %v13648_v9 = vcombine.low %v435_v58, %v443_v59 }
 0x244   :  { %8762 = vmatpush1.bf16.msra.mxu0 %v13584_v62  ;;  %8803 = vmatpush1.bf16.msra.mxu1 %v13840_v63  ;;  %v691_v62 = vld [vmem:[#allocation8 + $0xc10] sm:$0xff] }
 0x245   :  { %8763 = vmatprep.subr.bf16.mxu0 %v13601_v2  ;;  %8804 = vmatprep.subr.bf16.mxu1 %v13857_v3  ;;  %v699_v63 = vld [vmem:[#allocation8 + $0xc50] sm:$0xff]  ;;  %v13632_v2 = vcombine.low %v419_v26, %v427_v28  ;;  %v13888_v3 = vcombine.low %v675_v38, %v683_v11 }
 0x246   :  { %v8459_v22 = vpop.f32.mrb[24].mxu0  ;;  %v8500_v33 = vpop.f32.mrb[24].mxu1  ;;  %v13905_v5 = vcombine.high %v691_v62, %v699_v63  ;;  %v475_v26 = vld [vmem:[#allocation8 + $0x550] sm:$0xff] }
 0x247   :  { %v8461_v35 = vpop.f32.mrb[25].mxu0  ;;  %v15625_v44 = vadd.f32 %v8500_v33, %v8459_v22  ;;  %v8502_v46 = vpop.f32.mrb[25].mxu1  ;;  %v13904_v22 = vcombine.low %v691_v62, %v699_v63  ;;  %v723_v28 = vld [vmem:[#allocation8 + $0xd10] sm:$0xff] }
 0x248   :  { %v8463_v47 = vpop.f32.mrb[26].mxu0  ;;  %8764 = vmatpush1.bf16.msra.mxu0 %v13600_v10  ;;  %v15627_v0 = vadd.f32 %v8502_v46, %v8461_v35  ;;  %v8504_v50 = vpop.f32.mrb[26].mxu1  ;;  %8805 = vmatpush1.bf16.msra.mxu1 %v13856_v14  ;;  %v451_v10 = vld [vmem:[#allocation8 + $0x490] sm:$0xff] }
 0x249   :  { %v8464_v51 = vpop.f32.mrb[27].mxu0  ;;  %8765 = vmatprep.subr.bf16.mxu0 %v13617_v19  ;;  %v8505_v55 = vpop.f32.mrb[27].mxu1  ;;  %8806 = vmatprep.subr.bf16.mxu1 %v13873_v25  ;;  %v459_v14 = vld [vmem:[#allocation8 + $0x4d0] sm:$0xff] }
 0x24a   :  { %v707_v19 = vld [vmem:[#allocation8 + $0xc90] sm:$0xff]  ;;  %v13665_v25 = vcombine.high %v451_v10, %v459_v14  ;;  %v13664_v38 = vcombine.low %v451_v10, %v459_v14 }
 0x24b   :  { %v13921_v33 = vcombine.high %v707_v19, %v715_v6  ;;  %v467_v35 = vld [vmem:[#allocation8 + $0x510] sm:$0xff]  ;;  %v13920_v11 = vcombine.low %v707_v19, %v715_v6 }
 0x24c   :  { %8766 = vmatpush1.bf16.msra.mxu0 %v13616_v48  ;;  %8807 = vmatpush1.bf16.msra.mxu1 %v13872_v53  ;;  %v731_v46 = vld [vmem:[#allocation8 + $0xd50] sm:$0xff]  ;;  %v13681_v47 = vcombine.high %v467_v35, %v475_v26  ;;  %v13680_v55 = vcombine.low %v467_v35, %v475_v26 }
 0x24d   :  { %8767 = vmatprep.subr.bf16.mxu0 %v13633_v54  ;;  %8808 = vmatprep.subr.bf16.mxu1 %v13889_v57  ;;  %v13937_v48 = vcombine.high %v723_v28, %v731_v46  ;;  %v483_v50 = vld [vmem:[#allocation8 + $0x590] sm:$0xff]  ;;  %v13936_v57 = vcombine.low %v723_v28, %v731_v46 }
 0x24e   :  { %v491_v51 = vld [vmem:[#allocation8 + $0x5d0] sm:$0xff] }
 0x24f   :  { %v739_v53 = vld [vmem:[#allocation8 + $0xd90] sm:$0xff]  ;;  %v13697_v58 = vcombine.high %v483_v50, %v491_v51 }
 0x250   :  { %8768 = vmatpush1.bf16.msra.mxu0 %v13632_v2  ;;  %8809 = vmatpush1.bf16.msra.mxu1 %v13888_v3  ;;  %v747_v54 = vld [vmem:[#allocation8 + $0xdd0] sm:$0xff] }
 0x251   :  { %8769 = vmatprep.subr.bf16.mxu0 %v13649_v4  ;;  %8810 = vmatprep.subr.bf16.mxu1 %v13905_v5  ;;  %v13953_v59 = vcombine.high %v739_v53, %v747_v54  ;;  %v499_v62 = vld [vmem:[#allocation8 + $0x610] sm:$0xff]  ;;  %v13696_v4 = vcombine.low %v483_v50, %v491_v51  ;;  %v13952_v5 = vcombine.low %v739_v53, %v747_v54 }
 0x252   :  { %v507_v63 = vld [vmem:[#allocation8 + $0x650] sm:$0xff] }
 0x253   :  { %v755_v2 = vld [vmem:[#allocation8 + $0xe10] sm:$0xff]  ;;  %v13713_v10 = vcombine.high %v499_v62, %v507_v63 }
 0x254   :  { %8770 = vmatpush1.bf16.msra.mxu0 %v13648_v9  ;;  %8811 = vmatpush1.bf16.msra.mxu1 %v13904_v22  ;;  %v763_v3 = vld [vmem:[#allocation8 + $0xe50] sm:$0xff] }
 0x255   :  { %8771 = vmatprep.subr.bf16.mxu0 %v13665_v25  ;;  %8812 = vmatprep.subr.bf16.mxu1 %v13921_v33  ;;  %v13969_v14 = vcombine.high %v755_v2, %v763_v3  ;;  %v515_v19 = vld [vmem:[#allocation8 + $0x690] sm:$0xff]  ;;  %v13712_v25 = vcombine.low %v499_v62, %v507_v63  ;;  %v13968_v33 = vcombine.low %v755_v2, %v763_v3 }
 0x256   :  { %v523_v6 = vld [vmem:[#allocation8 + $0x6d0] sm:$0xff] }
 0x257   :  { %v771_v9 = vld [vmem:[#allocation8 + $0xe90] sm:$0xff]  ;;  %v13729_v35 = vcombine.high %v515_v19, %v523_v6 }
 0x258   :  { %8772 = vmatpush1.bf16.msra.mxu0 %v13664_v38  ;;  %8813 = vmatpush1.bf16.msra.mxu1 %v13920_v11  ;;  %v779_v22 = vld [vmem:[#allocation8 + $0xed0] sm:$0xff] }
 0x259   :  { %8773 = vmatprep.subr.bf16.mxu0 %v13681_v47  ;;  %8814 = vmatprep.subr.bf16.mxu1 %v13937_v48  ;;  %v13985_v26 = vcombine.high %v771_v9, %v779_v22  ;;  %v531_v28 = vld [vmem:[#allocation8 + $0x710] sm:$0xff]  ;;  %v13728_v47 = vcombine.low %v515_v19, %v523_v6  ;;  %v13984_v48 = vcombine.low %v771_v9, %v779_v22 }
 0x25a   :  { %v539_v46 = vld [vmem:[#allocation8 + $0x750] sm:$0xff] }
 0x25b   :  { %v787_v38 = vld [vmem:[#allocation8 + $0xf10] sm:$0xff]  ;;  %v13745_v50 = vcombine.high %v531_v28, %v539_v46 }
 0x25c   :  { %8774 = vmatpush1.bf16.msra.mxu0 %v13680_v55  ;;  %8815 = vmatpush1.bf16.msra.mxu1 %v13936_v57  ;;  %v795_v11 = vld [vmem:[#allocation8 + $0xf50] sm:$0xff] }
 0x25d   :  { %8775 = vmatprep.subr.bf16.mxu0 %v13697_v58  ;;  %8816 = vmatprep.subr.bf16.mxu1 %v13953_v59  ;;  %v14001_v51 = vcombine.high %v787_v38, %v795_v11  ;;  %v547_v53 = vld [vmem:[#allocation8 + $0x790] sm:$0xff]  ;;  %v13744_v58 = vcombine.low %v531_v28, %v539_v46  ;;  %v14000_v59 = vcombine.low %v787_v38, %v795_v11 }
 0x25e   :  { %v555_v54 = vld [vmem:[#allocation8 + $0x7d0] sm:$0xff] }
 0x25f   :  { %v803_v55 = vld [vmem:[#allocation8 + $0xf90] sm:$0xff]  ;;  %v13761_v62 = vcombine.high %v547_v53, %v555_v54 }
 0x260   :  { %8776 = vmatpush1.bf16.msra.mxu0 %v13696_v4  ;;  %8817 = vmatpush1.bf16.msra.mxu1 %v13952_v5  ;;  %v811_v57 = vld [vmem:[#allocation8 + $0xfd0] sm:$0xff] }
 0x261   :  { %8777 = vmatprep.subr.bf16.mxu0 %v13713_v10  ;;  %8818 = vmatprep.subr.bf16.mxu1 %v13969_v14  ;;  %v14017_v63 = vcombine.high %v803_v55, %v811_v57  ;;  %v819_v2 = vld [vmem:[#allocation8 + $0x1010] sm:$0xff]  ;;  %v13760_v10 = vcombine.low %v547_v53, %v555_v54  ;;  %v14016_v14 = vcombine.low %v803_v55, %v811_v57 }
 0x262   :  { %v827_v3 = vld [vmem:[#allocation8 + $0x1050] sm:$0xff] }
 0x263   :  { %v1075_v4 = vld [vmem:[#allocation8 + $0x1810] sm:$0xff]  ;;  %v14033_v19 = vcombine.high %v819_v2, %v827_v3 }
 0x264   :  { %8778 = vmatpush1.bf16.msra.mxu0 %v13712_v25  ;;  %8819 = vmatpush1.bf16.msra.mxu1 %v13968_v33  ;;  %v1083_v5 = vld [vmem:[#allocation8 + $0x1850] sm:$0xff] }
 0x265   :  { %8779 = vmatprep.subr.bf16.mxu0 %v13729_v35  ;;  %8820 = vmatprep.subr.bf16.mxu1 %v13985_v26  ;;  %v14289_v6 = vcombine.high %v1075_v4, %v1083_v5  ;;  %v835_v9 = vld [vmem:[#allocation8 + $0x1090] sm:$0xff]  ;;  %v14032_v35 = vcombine.low %v819_v2, %v827_v3  ;;  %v14288_v26 = vcombine.low %v1075_v4, %v1083_v5 }
 0x266   :  { %v843_v22 = vld [vmem:[#allocation8 + $0x10d0] sm:$0xff] }
 0x267   :  { %v1091_v25 = vld [vmem:[#allocation8 + $0x1890] sm:$0xff]  ;;  %v14049_v28 = vcombine.high %v835_v9, %v843_v22 }
 0x268   :  { %8780 = vmatpush1.bf16.msra.mxu0 %v13728_v47  ;;  %8821 = vmatpush1.bf16.msra.mxu1 %v13984_v48  ;;  %v1099_v33 = vld [vmem:[#allocation8 + $0x18d0] sm:$0xff] }
 0x269   :  { %8781 = vmatprep.subr.bf16.mxu0 %v13745_v50  ;;  %8822 = vmatprep.subr.bf16.mxu1 %v14001_v51  ;;  %v14305_v46 = vcombine.high %v1091_v25, %v1099_v33  ;;  %v851_v38 = vld [vmem:[#allocation8 + $0x1110] sm:$0xff]  ;;  %v14048_v50 = vcombine.low %v835_v9, %v843_v22  ;;  %v14304_v51 = vcombine.low %v1091_v25, %v1099_v33 }
 0x26a   :  { %v859_v11 = vld [vmem:[#allocation8 + $0x1150] sm:$0xff] }
 0x26b   :  { %v1107_v47 = vld [vmem:[#allocation8 + $0x1910] sm:$0xff]  ;;  %v14065_v53 = vcombine.high %v851_v38, %v859_v11 }
 0x26c   :  { %8782 = vmatpush1.bf16.msra.mxu0 %v13744_v58  ;;  %8823 = vmatpush1.bf16.msra.mxu1 %v14000_v59  ;;  %v1115_v48 = vld [vmem:[#allocation8 + $0x1950] sm:$0xff] }
 0x26d   :  { %8783 = vmatprep.subr.bf16.mxu0 %v13761_v62  ;;  %8824 = vmatprep.subr.bf16.mxu1 %v14017_v63  ;;  %v14321_v54 = vcombine.high %v1107_v47, %v1115_v48  ;;  %v867_v55 = vld [vmem:[#allocation8 + $0x1190] sm:$0xff]  ;;  %v14064_v62 = vcombine.low %v851_v38, %v859_v11  ;;  %v14320_v63 = vcombine.low %v1107_v47, %v1115_v48 }
 0x26e   :  { %v875_v57 = vld [vmem:[#allocation8 + $0x11d0] sm:$0xff] }
 0x26f   :  { %v1123_v58 = vld [vmem:[#allocation8 + $0x1990] sm:$0xff]  ;;  %v14081_v2 = vcombine.high %v867_v55, %v875_v57 }
 0x270   :  { %8784 = vmatpush1.bf16.msra.mxu0 %v13760_v10  ;;  %8825 = vmatpush1.bf16.msra.mxu1 %v14016_v14  ;;  %v1131_v59 = vld [vmem:[#allocation8 + $0x19d0] sm:$0xff] }
 0x271   :  { %8835 = vmatprep.subr.bf16.mxu0 %v14033_v19  ;;  %8876 = vmatprep.subr.bf16.mxu1 %v14289_v6  ;;  %v14337_v3 = vcombine.high %v1123_v58, %v1131_v59  ;;  %v883_v4 = vld [vmem:[#allocation8 + $0x1210] sm:$0xff]  ;;  %v14080_v19 = vcombine.low %v867_v55, %v875_v57  ;;  %v14336_v6 = vcombine.low %v1123_v58, %v1131_v59 }
 0x272   :  { %v891_v5 = vld [vmem:[#allocation8 + $0x1250] sm:$0xff] }
 0x273   :  { %8786 = vmatmul.mubr.bf16.vlgmr.msra.gmra.mrb[40].mxu0 %v15557_v39  ;;  %8827 = vmatmul.mubr.bf16.vlgmr.msra.gmra.mrb[40].mxu1 %v15559_v43  ;;  %v1139_v10 = vld [vmem:[#allocation8 + $0x1a10] sm:$0xff]  ;;  %v14097_v9 = vcombine.high %v883_v4, %v891_v5 }
 0x274   :  { %8836 = vmatpush1.bf16.msra.mxu0 %v14032_v35  ;;  %8877 = vmatpush1.bf16.msra.mxu1 %v14288_v26  ;;  %v1147_v14 = vld [vmem:[#allocation8 + $0x1a50] sm:$0xff] }
 0x275   :  { %8837 = vmatprep.subr.bf16.mxu0 %v14049_v28  ;;  %8878 = vmatprep.subr.bf16.mxu1 %v14305_v46  ;;  %v14353_v22 = vcombine.high %v1139_v10, %v1147_v14  ;;  %v899_v25 = vld [vmem:[#allocation8 + $0x1290] sm:$0xff]  ;;  %v14096_v28 = vcombine.low %v883_v4, %v891_v5  ;;  %v14352_v46 = vcombine.low %v1139_v10, %v1147_v14 }
 0x276   :  { %8867 = vmatprep.mubr.bf16.mxu0 %v15561_v49  ;;  %8908 = vmatprep.mubr.bf16.mxu1 %v15564_v52  ;;  %v907_v33 = vld [vmem:[#allocation8 + $0x12d0] sm:$0xff] }
 0x277   :  { %v1155_v35 = vld [vmem:[#allocation8 + $0x1a90] sm:$0xff]  ;;  %v14113_v38 = vcombine.high %v899_v25, %v907_v33 }
 0x278   :  { %8838 = vmatpush1.bf16.msra.mxu0 %v14048_v50  ;;  %8879 = vmatpush1.bf16.msra.mxu1 %v14304_v51  ;;  %v1163_v26 = vld [vmem:[#allocation8 + $0x1ad0] sm:$0xff] }
 0x279   :  { %8839 = vmatprep.subr.bf16.mxu0 %v14065_v53  ;;  %8880 = vmatprep.subr.bf16.mxu1 %v14321_v54  ;;  %v14369_v11 = vcombine.high %v1155_v35, %v1163_v26  ;;  %v915_v47 = vld [vmem:[#allocation8 + $0x1310] sm:$0xff]  ;;  %v14112_v53 = vcombine.low %v899_v25, %v907_v33  ;;  %v14368_v54 = vcombine.low %v1155_v35, %v1163_v26 }
 0x27a   :  { %v923_v48 = vld [vmem:[#allocation8 + $0x1350] sm:$0xff] }
 0x27b   :  { %v1171_v50 = vld [vmem:[#allocation8 + $0x1b10] sm:$0xff]  ;;  %v14129_v55 = vcombine.high %v915_v47, %v923_v48 }
 0x27c   :  { %8840 = vmatpush1.bf16.msra.mxu0 %v14064_v62  ;;  %8881 = vmatpush1.bf16.msra.mxu1 %v14320_v63  ;;  %v1179_v51 = vld [vmem:[#allocation8 + $0x1b50] sm:$0xff] }
 0x27d   :  { %8841 = vmatprep.subr.bf16.mxu0 %v14081_v2  ;;  %8882 = vmatprep.subr.bf16.mxu1 %v14337_v3  ;;  %v14385_v58 = vcombine.high %v1171_v50, %v1179_v51  ;;  %v931_v59 = vld [vmem:[#allocation8 + $0x1390] sm:$0xff]  ;;  %v14384_v33 = vcombine.low %v1171_v50, %v1179_v51 }
 0x27e   :  { %v939_v62 = vld [vmem:[#allocation8 + $0x13d0] sm:$0xff] }
 0x27f   :  { %v1187_v4 = vld [vmem:[#allocation8 + $0x1b90] sm:$0xff]  ;;  %v14145_v35 = vcombine.high %v931_v59, %v939_v62 }
 0x280   :  { %8842 = vmatpush1.bf16.msra.mxu0 %v14080_v19  ;;  %8883 = vmatpush1.bf16.msra.mxu1 %v14336_v6  ;;  %v1195_v5 = vld [vmem:[#allocation8 + $0x1bd0] sm:$0xff]  ;;  %v14128_v6 = vcombine.low %v915_v47, %v923_v48  ;;  %v14144_v48 = vcombine.low %v931_v59, %v939_v62 }
 0x281   :  { %8843 = vmatprep.subr.bf16.mxu0 %v14097_v9  ;;  %8884 = vmatprep.subr.bf16.mxu1 %v14353_v22  ;;  %v14400_v50 = vcombine.low %v1187_v4, %v1195_v5  ;;  %v987_v59 = vld [vmem:[#allocation8 + $0x1550] sm:$0xff] }
 0x282   :  { %v1235_v62 = vld [vmem:[#allocation8 + $0x1d10] sm:$0xff] }
 0x284   :  { %8844 = vmatpush1.bf16.msra.mxu0 %v14096_v28  ;;  %8885 = vmatpush1.bf16.msra.mxu1 %v14352_v46  ;;  %v947_v46 = vld [vmem:[#allocation8 + $0x1410] sm:$0xff] }
 0x285   :  { %8845 = vmatprep.subr.bf16.mxu0 %v14113_v38  ;;  %8886 = vmatprep.subr.bf16.mxu1 %v14369_v11  ;;  %v955_v38 = vld [vmem:[#allocation8 + $0x1450] sm:$0xff] }
 0x286   :  { %v8541_v57 = vpop.f32.mrb[28].mxu0  ;;  %v8582_v2 = vpop.f32.mrb[28].mxu1  ;;  %v14161_v51 = vcombine.high %v947_v46, %v955_v38 }
 0x287   :  { %v8542_v63 = vadd.f32 %v8541_v57, %v15625_v44  ;;  %v8543_v3 = vpop.f32.mrb[29].mxu0  ;;  %v8584_v14 = vpop.f32.mrb[29].mxu1  ;;  %v14401_v44 = vcombine.high %v1187_v4, %v1195_v5  ;;  %v1211_v57 = vld [vmem:[#allocation8 + $0x1c50] sm:$0xff] }
 0x288   :  { %v8544_v10 = vadd.f32 %v8543_v3, %v15627_v0  ;;  %v8545_v19 = vpop.f32.mrb[30].mxu0  ;;  %8846 = vmatpush1.bf16.msra.mxu0 %v14112_v53  ;;  %v8586_v22 = vpop.f32.mrb[30].mxu1  ;;  %8887 = vmatpush1.bf16.msra.mxu1 %v14368_v54  ;;  %v1203_v0 = vld [vmem:[#allocation8 + $0x1c10] sm:$0xff] }
 0x289   :  { %v8583_v9 = vadd.f32 %v8582_v2, %v8542_v63  ;;  %v8546_v25 = vpop.f32.mrb[31].mxu0  ;;  %8847 = vmatprep.subr.bf16.mxu0 %v14129_v55  ;;  %v8587_v28 = vpop.f32.mrb[31].mxu1  ;;  %8888 = vmatprep.subr.bf16.mxu1 %v14385_v58  ;;  %v14417_v53 = vcombine.high %v1203_v0, %v1211_v57  ;;  %v963_v54 = vld [vmem:[#allocation8 + $0x1490] sm:$0xff]  ;;  %v14416_v2 = vcombine.low %v1203_v0, %v1211_v57 }
 0x28a   :  { %v8585_v26 = vadd.f32 %v8584_v14, %v8544_v10  ;;  %v971_v55 = vld [vmem:[#allocation8 + $0x14d0] sm:$0xff] }
 0x28b   :  { %v15636_v11 = vadd.f32 %v8583_v9, %v15549_v7  ;;  %v1219_v58 = vld [vmem:[#allocation8 + $0x1c90] sm:$0xff]  ;;  %v14160_v7 = vcombine.low %v947_v46, %v955_v38  ;;  %v14177_v3 = vcombine.high %v963_v54, %v971_v55  ;;  %v14176_v4 = vcombine.low %v963_v54, %v971_v55 }
 0x28c   :  { %v15639_v47 = vadd.f32 %v8585_v26, %v15553_v13  ;;  %8848 = vmatpush1.bf16.msra.mxu0 %v14128_v6  ;;  %8889 = vmatpush1.bf16.msra.mxu1 %v14384_v33  ;;  %v1227_v63 = vld [vmem:[#allocation8 + $0x1cd0] sm:$0xff] }
 0x28d   :  { %8849 = vmatprep.subr.bf16.mxu0 %v14145_v35  ;;  %8890 = vmatprep.subr.bf16.mxu1 %v14401_v44  ;;  %v14433_v13 = vcombine.high %v1219_v58, %v1227_v63  ;;  %v979_v10 = vld [vmem:[#allocation8 + $0x1510] sm:$0xff]  ;;  %v14432_v5 = vcombine.low %v1219_v58, %v1227_v63 }
 0x28e   :  { %v1243_v14 = vld [vmem:[#allocation8 + $0x1d50] sm:$0xff]  ;;  %v14193_v19 = vcombine.high %v979_v10, %v987_v59  ;;  %v14192_v35 = vcombine.low %v979_v10, %v987_v59 }
 0x28f   :  { %v14449_v6 = vcombine.high %v1235_v62, %v1243_v14  ;;  %v995_v9 = vld [vmem:[#allocation8 + $0x1590] sm:$0xff]  ;;  %v14448_v26 = vcombine.low %v1235_v62, %v1243_v14 }
 0x290   :  { %8850 = vmatpush1.bf16.msra.mxu0 %v14144_v48  ;;  %8891 = vmatpush1.bf16.msra.mxu1 %v14400_v50  ;;  %v1003_v22 = vld [vmem:[#allocation8 + $0x15d0] sm:$0xff] }
 0x291   :  { %8851 = vmatprep.subr.bf16.mxu0 %v14161_v51  ;;  %8892 = vmatprep.subr.bf16.mxu1 %v14417_v53  ;;  %v1251_v25 = vld [vmem:[#allocation8 + $0x1d90] sm:$0xff]  ;;  %v14209_v28 = vcombine.high %v995_v9, %v1003_v22  ;;  %v14208_v48 = vcombine.low %v995_v9, %v1003_v22 }
 0x292   :  { %v1259_v33 = vld [vmem:[#allocation8 + $0x1dd0] sm:$0xff] }
 0x293   :  { %v14465_v44 = vcombine.high %v1251_v25, %v1259_v33  ;;  %v1011_v46 = vld [vmem:[#allocation8 + $0x1610] sm:$0xff]  ;;  %v14464_v50 = vcombine.low %v1251_v25, %v1259_v33 }
 0x294   :  { %8852 = vmatpush1.bf16.msra.mxu0 %v14160_v7  ;;  %8893 = vmatpush1.bf16.msra.mxu1 %v14416_v2  ;;  %v1019_v38 = vld [vmem:[#allocation8 + $0x1650] sm:$0xff] }
 0x295   :  { %8853 = vmatprep.subr.bf16.mxu0 %v14177_v3  ;;  %8894 = vmatprep.subr.bf16.mxu1 %v14433_v13  ;;  %v1267_v0 = vld [vmem:[#allocation8 + $0x1e10] sm:$0xff]  ;;  %v14225_v51 = vcombine.high %v1011_v46, %v1019_v38  ;;  %v14224_v7 = vcombine.low %v1011_v46, %v1019_v38  ;;  %v308_v46 = vld [vmem:[#allocation8 + $0x18] sm:$0xff] }
 0x296   :  { %v1275_v57 = vld [vmem:[#allocation8 + $0x1e50] sm:$0xff]  ;;  %v316_v38 = vld [vmem:[#allocation8 + $0x58] sm:$0xff] }
 0x297   :  { %v14481_v53 = vcombine.high %v1267_v0, %v1275_v57  ;;  %v1027_v54 = vld [vmem:[#allocation8 + $0x1690] sm:$0xff]  ;;  %v14480_v2 = vcombine.low %v1267_v0, %v1275_v57  ;;  %v564_v0 = vld [vmem:[#allocation8 + $0x818] sm:$0xff] }
 0x298   :  { %8854 = vmatpush1.bf16.msra.mxu0 %v14176_v4  ;;  %8895 = vmatpush1.bf16.msra.mxu1 %v14432_v5  ;;  %v1035_v55 = vld [vmem:[#allocation8 + $0x16d0] sm:$0xff]  ;;  %v572_v57 = vld [vmem:[#allocation8 + $0x858] sm:$0xff] }
 0x299   :  { %8855 = vmatprep.subr.bf16.mxu0 %v14193_v19  ;;  %8896 = vmatprep.subr.bf16.mxu1 %v14449_v6  ;;  %v1283_v58 = vld [vmem:[#allocation8 + $0x1e90] sm:$0xff]  ;;  %v14241_v3 = vcombine.high %v1027_v54, %v1035_v55  ;;  %v14240_v4 = vcombine.low %v1027_v54, %v1035_v55  ;;  %v324_v54 = vld [vmem:[#allocation8 + $0x98] sm:$0xff] }
 0x29a   :  { %v1291_v63 = vld [vmem:[#allocation8 + $0x1ed0] sm:$0xff]  ;;  %v332_v55 = vld [vmem:[#allocation8 + $0xd8] sm:$0xff] }
 0x29b   :  { %v14497_v13 = vcombine.high %v1283_v58, %v1291_v63  ;;  %v1043_v10 = vld [vmem:[#allocation8 + $0x1710] sm:$0xff]  ;;  %v14496_v5 = vcombine.low %v1283_v58, %v1291_v63  ;;  %v580_v58 = vld [vmem:[#allocation8 + $0x898] sm:$0xff] }
 0x29c   :  { %8856 = vmatpush1.bf16.msra.mxu0 %v14192_v35  ;;  %8897 = vmatpush1.bf16.msra.mxu1 %v14448_v26  ;;  %v1051_v59 = vld [vmem:[#allocation8 + $0x1750] sm:$0xff]  ;;  %v588_v63 = vld [vmem:[#allocation8 + $0x8d8] sm:$0xff] }
 0x29d   :  { %8857 = vmatprep.subr.bf16.mxu0 %v14209_v28  ;;  %8898 = vmatprep.subr.bf16.mxu1 %v14465_v44  ;;  %v1299_v62 = vld [vmem:[#allocation8 + $0x1f10] sm:$0xff]  ;;  %v14257_v19 = vcombine.high %v1043_v10, %v1051_v59  ;;  %v14256_v35 = vcombine.low %v1043_v10, %v1051_v59  ;;  %v340_v10 = vld [vmem:[#allocation8 + $0x118] sm:$0xff] }
 0x29e   :  { %v1307_v14 = vld [vmem:[#allocation8 + $0x1f50] sm:$0xff]  ;;  %v348_v59 = vld [vmem:[#allocation8 + $0x158] sm:$0xff] }
 0x29f   :  { %v14513_v6 = vcombine.high %v1299_v62, %v1307_v14  ;;  %v1059_v9 = vld [vmem:[#allocation8 + $0x1790] sm:$0xff]  ;;  %v14512_v26 = vcombine.low %v1299_v62, %v1307_v14  ;;  %v596_v62 = vld [vmem:[#allocation8 + $0x918] sm:$0xff] }
 0x2a0   :  { %8858 = vmatpush1.bf16.msra.mxu0 %v14208_v48  ;;  %8899 = vmatpush1.bf16.msra.mxu1 %v14464_v50  ;;  %v1067_v22 = vld [vmem:[#allocation8 + $0x17d0] sm:$0xff]  ;;  %v604_v14 = vld [vmem:[#allocation8 + $0x958] sm:$0xff] }
 0x2a1   :  { %8859 = vmatprep.subr.bf16.mxu0 %v14225_v51  ;;  %8900 = vmatprep.subr.bf16.mxu1 %v14481_v53  ;;  %v1315_v25 = vld [vmem:[#allocation8 + $0x1f90] sm:$0xff]  ;;  %v14273_v28 = vcombine.high %v1059_v9, %v1067_v22  ;;  %v14272_v48 = vcombine.low %v1059_v9, %v1067_v22  ;;  %v13523_v51 = vcombine.high %v308_v46, %v316_v38  ;;  %v356_v9 = vld [vmem:[#allocation8 + $0x198] sm:$0xff] }
 0x2a2   :  { %v1323_v33 = vld [vmem:[#allocation8 + $0x1fd0] sm:$0xff]  ;;  %v13779_v53 = vcombine.high %v564_v0, %v572_v57  ;;  %v364_v22 = vld [vmem:[#allocation8 + $0x1d8] sm:$0xff] }
 0x2a3   :  { %v14529_v44 = vcombine.high %v1315_v25, %v1323_v33  ;;  %v14528_v50 = vcombine.low %v1315_v25, %v1323_v33  ;;  %v612_v25 = vld [vmem:[#allocation8 + $0x998] sm:$0xff] }
 0x2a4   :  { %8860 = vmatpush1.bf16.msra.mxu0 %v14224_v7  ;;  %8901 = vmatpush1.bf16.msra.mxu1 %v14480_v2  ;;  %v13522_v7 = vcombine.low %v308_v46, %v316_v38  ;;  %v13778_v2 = vcombine.low %v564_v0, %v572_v57  ;;  %v620_v33 = vld [vmem:[#allocation8 + $0x9d8] sm:$0xff] }
 0x2a5   :  { %8861 = vmatprep.subr.bf16.mxu0 %v14241_v3  ;;  %8902 = vmatprep.subr.bf16.mxu1 %v14497_v13  ;;  %v13539_v3 = vcombine.high %v324_v54, %v332_v55  ;;  %v13795_v13 = vcombine.high %v580_v58, %v588_v63  ;;  %v372_v46 = vld [vmem:[#allocation8 + $0x218] sm:$0xff] }
 0x2a6   :  { %v380_v38 = vld [vmem:[#allocation8 + $0x258] sm:$0xff] }
 0x2a7   :  { %v628_v0 = vld [vmem:[#allocation8 + $0xa18] sm:$0xff] }
 0x2a8   :  { %8862 = vmatpush1.bf16.msra.mxu0 %v14240_v4  ;;  %8903 = vmatpush1.bf16.msra.mxu1 %v14496_v5  ;;  %v13538_v4 = vcombine.low %v324_v54, %v332_v55  ;;  %v13794_v5 = vcombine.low %v580_v58, %v588_v63  ;;  %v636_v57 = vld [vmem:[#allocation8 + $0xa58] sm:$0xff] }
 0x2a9   :  { %8863 = vmatprep.subr.bf16.mxu0 %v14257_v19  ;;  %8904 = vmatprep.subr.bf16.mxu1 %v14513_v6  ;;  %v13555_v19 = vcombine.high %v340_v10, %v348_v59  ;;  %v13811_v6 = vcombine.high %v596_v62, %v604_v14  ;;  %v388_v54 = vld [vmem:[#allocation8 + $0x298] sm:$0xff] }
 0x2aa   :  { %v396_v55 = vld [vmem:[#allocation8 + $0x2d8] sm:$0xff] }
 0x2ab   :  { %v644_v58 = vld [vmem:[#allocation8 + $0xa98] sm:$0xff] }
 0x2ac   :  { %8864 = vmatpush1.bf16.msra.mxu0 %v14256_v35  ;;  %8905 = vmatpush1.bf16.msra.mxu1 %v14512_v26  ;;  %v13554_v35 = vcombine.low %v340_v10, %v348_v59  ;;  %v13810_v26 = vcombine.low %v596_v62, %v604_v14  ;;  %v652_v63 = vld [vmem:[#allocation8 + $0xad8] sm:$0xff] }
 0x2ad   :  { %8865 = vmatprep.subr.bf16.mxu0 %v14273_v28  ;;  %8906 = vmatprep.subr.bf16.mxu1 %v14529_v44  ;;  %v13571_v28 = vcombine.high %v356_v9, %v364_v22  ;;  %v13827_v44 = vcombine.high %v612_v25, %v620_v33  ;;  %v404_v10 = vld [vmem:[#allocation8 + $0x318] sm:$0xff] }
 0x2ae   :  { %v412_v59 = vld [vmem:[#allocation8 + $0x358] sm:$0xff] }
 0x2af   :  { %v660_v62 = vld [vmem:[#allocation8 + $0xb18] sm:$0xff] }
 0x2b0   :  { %8866 = vmatpush1.bf16.msra.mxu0 %v14272_v48  ;;  %8907 = vmatpush1.bf16.msra.mxu1 %v14528_v50  ;;  %v13570_v48 = vcombine.low %v356_v9, %v364_v22  ;;  %v13826_v50 = vcombine.low %v612_v25, %v620_v33  ;;  %v668_v14 = vld [vmem:[#allocation8 + $0xb58] sm:$0xff] }
 0x2b1   :  { %8917 = vmatprep.subr.bf16.mxu0 %v13523_v51  ;;  %8958 = vmatprep.subr.bf16.mxu1 %v13779_v53  ;;  %v13587_v51 = vcombine.high %v372_v46, %v380_v38  ;;  %v13843_v53 = vcombine.high %v628_v0, %v636_v57  ;;  %v13875_v9 = vcombine.high %v660_v62, %v668_v14  ;;  %v420_v22 = vld [vmem:[#allocation8 + $0x398] sm:$0xff] }
 0x2b2   :  { %v428_v25 = vld [vmem:[#allocation8 + $0x3d8] sm:$0xff] }
 0x2b3   :  { %8868 = vmatmul.mubr.bf16.vlgmr.msra.gmra.mrb[44].mxu0 %v15585_v27  ;;  %8909 = vmatmul.mubr.bf16.vlgmr.msra.gmra.mrb[44].mxu1 %v15587_v32 }
 0x2b4   :  { %8918 = vmatpush1.bf16.msra.mxu0 %v13522_v7  ;;  %8959 = vmatpush1.bf16.msra.mxu1 %v13778_v2  ;;  %v13586_v7 = vcombine.low %v372_v46, %v380_v38  ;;  %v13842_v2 = vcombine.low %v628_v0, %v636_v57  ;;  %v13618_v0 = vcombine.low %v404_v10, %v412_v59 }
 0x2b5   :  { %8919 = vmatprep.subr.bf16.mxu0 %v13539_v3  ;;  %8960 = vmatprep.subr.bf16.mxu1 %v13795_v13  ;;  %v13603_v3 = vcombine.high %v388_v54, %v396_v55  ;;  %v13859_v13 = vcombine.high %v644_v58, %v652_v63 }
 0x2b6   :  { %8949 = vmatprep.mubr.bf16.mxu0 %v15541_v31  ;;  %8990 = vmatprep.mubr.bf16.mxu1 %v15544_v34 }
 0x2b8   :  { %8920 = vmatpush1.bf16.msra.mxu0 %v13538_v4  ;;  %8961 = vmatpush1.bf16.msra.mxu1 %v13794_v5  ;;  %v13602_v4 = vcombine.low %v388_v54, %v396_v55  ;;  %v13858_v5 = vcombine.low %v644_v58, %v652_v63  ;;  %v436_v58 = vld [vmem:[#allocation8 + $0x418] sm:$0xff] }
 0x2b9   :  { %8921 = vmatprep.subr.bf16.mxu0 %v13555_v19  ;;  %8962 = vmatprep.subr.bf16.mxu1 %v13811_v6  ;;  %v13619_v19 = vcombine.high %v404_v10, %v412_v59  ;;  %v444_v63 = vld [vmem:[#allocation8 + $0x458] sm:$0xff] }
 0x2ba   :  { %v13651_v10 = vcombine.high %v436_v58, %v444_v63 }
 0x2bc   :  { %8922 = vmatpush1.bf16.msra.mxu0 %v13554_v35  ;;  %8963 = vmatpush1.bf16.msra.mxu1 %v13810_v26  ;;  %v676_v26 = vld [vmem:[#allocation8 + $0xb98] sm:$0xff] }
 0x2bd   :  { %8923 = vmatprep.subr.bf16.mxu0 %v13571_v28  ;;  %8964 = vmatprep.subr.bf16.mxu1 %v13827_v44  ;;  %v684_v28 = vld [vmem:[#allocation8 + $0xbd8] sm:$0xff] }
 0x2be   :  { %v13891_v55 = vcombine.high %v676_v26, %v684_v28 }
 0x2c0   :  { %8924 = vmatpush1.bf16.msra.mxu0 %v13570_v48  ;;  %8965 = vmatpush1.bf16.msra.mxu1 %v13826_v50 }
 0x2c1   :  { %8925 = vmatprep.subr.bf16.mxu0 %v13587_v51  ;;  %8966 = vmatprep.subr.bf16.mxu1 %v13843_v53  ;;  %v13874_v51 = vcombine.low %v660_v62, %v668_v14  ;;  %v13635_v53 = vcombine.high %v420_v22, %v428_v25  ;;  %v716_v62 = vld [vmem:[#allocation8 + $0xcd8] sm:$0xff]  ;;  %v13650_v14 = vcombine.low %v436_v58, %v444_v63 }
 0x2c4   :  { %8926 = vmatpush1.bf16.msra.mxu0 %v13586_v7  ;;  %8967 = vmatpush1.bf16.msra.mxu1 %v13842_v2  ;;  %v692_v7 = vld [vmem:[#allocation8 + $0xc18] sm:$0xff] }
 0x2c5   :  { %8927 = vmatprep.subr.bf16.mxu0 %v13603_v3  ;;  %8968 = vmatprep.subr.bf16.mxu1 %v13859_v13  ;;  %v700_v2 = vld [vmem:[#allocation8 + $0xc58] sm:$0xff]  ;;  %v13634_v3 = vcombine.low %v420_v22, %v428_v25  ;;  %v13890_v13 = vcombine.low %v676_v26, %v684_v28 }
 0x2c6   :  { %v8623_v6 = vpop.f32.mrb[32].mxu0  ;;  %v8664_v33 = vpop.f32.mrb[32].mxu1  ;;  %v13907_v59 = vcombine.high %v692_v7, %v700_v2  ;;  %v476_v22 = vld [vmem:[#allocation8 + $0x558] sm:$0xff] }
 0x2c7   :  { %v8625_v35 = vpop.f32.mrb[33].mxu0  ;;  %v15645_v44 = vadd.f32 %v8664_v33, %v8623_v6  ;;  %v8666_v46 = vpop.f32.mrb[33].mxu1  ;;  %v13906_v6 = vcombine.low %v692_v7, %v700_v2  ;;  %v724_v25 = vld [vmem:[#allocation8 + $0xd18] sm:$0xff] }
 0x2c8   :  { %v8627_v38 = vpop.f32.mrb[34].mxu0  ;;  %8928 = vmatpush1.bf16.msra.mxu0 %v13602_v4  ;;  %v15647_v57 = vadd.f32 %v8666_v46, %v8625_v35  ;;  %v8668_v48 = vpop.f32.mrb[34].mxu1  ;;  %8969 = vmatpush1.bf16.msra.mxu1 %v13858_v5  ;;  %v452_v4 = vld [vmem:[#allocation8 + $0x498] sm:$0xff] }
 0x2c9   :  { %v8628_v50 = vpop.f32.mrb[35].mxu0  ;;  %8929 = vmatprep.subr.bf16.mxu0 %v13619_v19  ;;  %v8669_v54 = vpop.f32.mrb[35].mxu1  ;;  %8970 = vmatprep.subr.bf16.mxu1 %v13875_v9  ;;  %v460_v5 = vld [vmem:[#allocation8 + $0x4d8] sm:$0xff] }
 0x2ca   :  { %v708_v19 = vld [vmem:[#allocation8 + $0xc98] sm:$0xff]  ;;  %v13667_v9 = vcombine.high %v452_v4, %v460_v5  ;;  %v13666_v26 = vcombine.low %v452_v4, %v460_v5 }
 0x2cb   :  { %v13923_v33 = vcombine.high %v708_v19, %v716_v62  ;;  %v468_v35 = vld [vmem:[#allocation8 + $0x518] sm:$0xff]  ;;  %v13922_v28 = vcombine.low %v708_v19, %v716_v62 }
 0x2cc   :  { %8930 = vmatpush1.bf16.msra.mxu0 %v13618_v0  ;;  %8971 = vmatpush1.bf16.msra.mxu1 %v13874_v51  ;;  %v732_v46 = vld [vmem:[#allocation8 + $0xd58] sm:$0xff]  ;;  %v13683_v38 = vcombine.high %v468_v35, %v476_v22  ;;  %v13682_v54 = vcombine.low %v468_v35, %v476_v22 }
 0x2cd   :  { %8931 = vmatprep.subr.bf16.mxu0 %v13635_v53  ;;  %8972 = vmatprep.subr.bf16.mxu1 %v13891_v55  ;;  %v13939_v0 = vcombine.high %v724_v25, %v732_v46  ;;  %v484_v48 = vld [vmem:[#allocation8 + $0x598] sm:$0xff]  ;;  %v13938_v55 = vcombine.low %v724_v25, %v732_v46 }
 0x2ce   :  { %v492_v50 = vld [vmem:[#allocation8 + $0x5d8] sm:$0xff] }
 0x2cf   :  { %v740_v51 = vld [vmem:[#allocation8 + $0xd98] sm:$0xff]  ;;  %v13699_v58 = vcombine.high %v484_v48, %v492_v50 }
 0x2d0   :  { %8932 = vmatpush1.bf16.msra.mxu0 %v13634_v3  ;;  %8973 = vmatpush1.bf16.msra.mxu1 %v13890_v13  ;;  %v748_v53 = vld [vmem:[#allocation8 + $0xdd8] sm:$0xff] }
 0x2d1   :  { %8933 = vmatprep.subr.bf16.mxu0 %v13651_v10  ;;  %8974 = vmatprep.subr.bf16.mxu1 %v13907_v59  ;;  %v13955_v63 = vcombine.high %v740_v51, %v748_v53  ;;  %v500_v7 = vld [vmem:[#allocation8 + $0x618] sm:$0xff]  ;;  %v13698_v10 = vcombine.low %v484_v48, %v492_v50  ;;  %v13954_v59 = vcombine.low %v740_v51, %v748_v53 }
 0x2d2   :  { %v508_v2 = vld [vmem:[#allocation8 + $0x658] sm:$0xff] }
 0x2d3   :  { %v756_v3 = vld [vmem:[#allocation8 + $0xe18] sm:$0xff]  ;;  %v13715_v4 = vcombine.high %v500_v7, %v508_v2 }
 0x2d4   :  { %8934 = vmatpush1.bf16.msra.mxu0 %v13650_v14  ;;  %8975 = vmatpush1.bf16.msra.mxu1 %v13906_v6  ;;  %v764_v13 = vld [vmem:[#allocation8 + $0xe58] sm:$0xff] }
 0x2d5   :  { %8935 = vmatprep.subr.bf16.mxu0 %v13667_v9  ;;  %8976 = vmatprep.subr.bf16.mxu1 %v13923_v33  ;;  %v13971_v5 = vcombine.high %v756_v3, %v764_v13  ;;  %v516_v19 = vld [vmem:[#allocation8 + $0x698] sm:$0xff]  ;;  %v13714_v9 = vcombine.low %v500_v7, %v508_v2  ;;  %v13970_v33 = vcombine.low %v756_v3, %v764_v13 }
 0x2d6   :  { %v524_v62 = vld [vmem:[#allocation8 + $0x6d8] sm:$0xff] }
 0x2d7   :  { %v772_v14 = vld [vmem:[#allocation8 + $0xe98] sm:$0xff]  ;;  %v13731_v35 = vcombine.high %v516_v19, %v524_v62 }
 0x2d8   :  { %8936 = vmatpush1.bf16.msra.mxu0 %v13666_v26  ;;  %8977 = vmatpush1.bf16.msra.mxu1 %v13922_v28  ;;  %v780_v6 = vld [vmem:[#allocation8 + $0xed8] sm:$0xff] }
 0x2d9   :  { %8937 = vmatprep.subr.bf16.mxu0 %v13683_v38  ;;  %8978 = vmatprep.subr.bf16.mxu1 %v13939_v0  ;;  %v13987_v22 = vcombine.high %v772_v14, %v780_v6  ;;  %v532_v25 = vld [vmem:[#allocation8 + $0x718] sm:$0xff]  ;;  %v13730_v38 = vcombine.low %v516_v19, %v524_v62  ;;  %v13986_v0 = vcombine.low %v772_v14, %v780_v6 }
 0x2da   :  { %v540_v46 = vld [vmem:[#allocation8 + $0x758] sm:$0xff] }
 0x2db   :  { %v788_v26 = vld [vmem:[#allocation8 + $0xf18] sm:$0xff]  ;;  %v13747_v48 = vcombine.high %v532_v25, %v540_v46 }
 0x2dc   :  { %8938 = vmatpush1.bf16.msra.mxu0 %v13682_v54  ;;  %8979 = vmatpush1.bf16.msra.mxu1 %v13938_v55  ;;  %v796_v28 = vld [vmem:[#allocation8 + $0xf58] sm:$0xff] }
 0x2dd   :  { %8939 = vmatprep.subr.bf16.mxu0 %v13699_v58  ;;  %8980 = vmatprep.subr.bf16.mxu1 %v13955_v63  ;;  %v14003_v50 = vcombine.high %v788_v26, %v796_v28  ;;  %v548_v51 = vld [vmem:[#allocation8 + $0x798] sm:$0xff]  ;;  %v13746_v58 = vcombine.low %v532_v25, %v540_v46  ;;  %v14002_v63 = vcombine.low %v788_v26, %v796_v28 }
 0x2de   :  { %v556_v53 = vld [vmem:[#allocation8 + $0x7d8] sm:$0xff] }
 0x2df   :  { %v804_v54 = vld [vmem:[#allocation8 + $0xf98] sm:$0xff]  ;;  %v13763_v7 = vcombine.high %v548_v51, %v556_v53 }
 0x2e0   :  { %8940 = vmatpush1.bf16.msra.mxu0 %v13698_v10  ;;  %8981 = vmatpush1.bf16.msra.mxu1 %v13954_v59  ;;  %v812_v55 = vld [vmem:[#allocation8 + $0xfd8] sm:$0xff] }
 0x2e1   :  { %8941 = vmatprep.subr.bf16.mxu0 %v13715_v4  ;;  %8982 = vmatprep.subr.bf16.mxu1 %v13971_v5  ;;  %v14019_v2 = vcombine.high %v804_v54, %v812_v55  ;;  %v820_v3 = vld [vmem:[#allocation8 + $0x1018] sm:$0xff]  ;;  %v13762_v4 = vcombine.low %v548_v51, %v556_v53  ;;  %v14018_v5 = vcombine.low %v804_v54, %v812_v55 }
 0x2e2   :  { %v828_v13 = vld [vmem:[#allocation8 + $0x1058] sm:$0xff] }
 0x2e3   :  { %v1076_v10 = vld [vmem:[#allocation8 + $0x1818] sm:$0xff]  ;;  %v14035_v19 = vcombine.high %v820_v3, %v828_v13 }
 0x2e4   :  { %8942 = vmatpush1.bf16.msra.mxu0 %v13714_v9  ;;  %8983 = vmatpush1.bf16.msra.mxu1 %v13970_v33  ;;  %v1084_v59 = vld [vmem:[#allocation8 + $0x1858] sm:$0xff] }
 0x2e5   :  { %8943 = vmatprep.subr.bf16.mxu0 %v13731_v35  ;;  %8984 = vmatprep.subr.bf16.mxu1 %v13987_v22  ;;  %v14291_v62 = vcombine.high %v1076_v10, %v1084_v59  ;;  %v836_v14 = vld [vmem:[#allocation8 + $0x1098] sm:$0xff]  ;;  %v14034_v35 = vcombine.low %v820_v3, %v828_v13  ;;  %v14290_v22 = vcombine.low %v1076_v10, %v1084_v59 }
 0x2e6   :  { %v844_v6 = vld [vmem:[#allocation8 + $0x10d8] sm:$0xff] }
 0x2e7   :  { %v1092_v9 = vld [vmem:[#allocation8 + $0x1898] sm:$0xff]  ;;  %v14051_v25 = vcombine.high %v836_v14, %v844_v6 }
 0x2e8   :  { %8944 = vmatpush1.bf16.msra.mxu0 %v13730_v38  ;;  %8985 = vmatpush1.bf16.msra.mxu1 %v13986_v0  ;;  %v1100_v33 = vld [vmem:[#allocation8 + $0x18d8] sm:$0xff] }
 0x2e9   :  { %8945 = vmatprep.subr.bf16.mxu0 %v13747_v48  ;;  %8986 = vmatprep.subr.bf16.mxu1 %v14003_v50  ;;  %v14307_v46 = vcombine.high %v1092_v9, %v1100_v33  ;;  %v852_v26 = vld [vmem:[#allocation8 + $0x1118] sm:$0xff]  ;;  %v14050_v48 = vcombine.low %v836_v14, %v844_v6  ;;  %v14306_v50 = vcombine.low %v1092_v9, %v1100_v33 }
 0x2ea   :  { %v860_v28 = vld [vmem:[#allocation8 + $0x1158] sm:$0xff] }
 0x2eb   :  { %v1108_v38 = vld [vmem:[#allocation8 + $0x1918] sm:$0xff]  ;;  %v14067_v51 = vcombine.high %v852_v26, %v860_v28 }
 0x2ec   :  { %8946 = vmatpush1.bf16.msra.mxu0 %v13746_v58  ;;  %8987 = vmatpush1.bf16.msra.mxu1 %v14002_v63  ;;  %v1116_v0 = vld [vmem:[#allocation8 + $0x1958] sm:$0xff] }
 0x2ed   :  { %8947 = vmatprep.subr.bf16.mxu0 %v13763_v7  ;;  %8988 = vmatprep.subr.bf16.mxu1 %v14019_v2  ;;  %v14323_v53 = vcombine.high %v1108_v38, %v1116_v0  ;;  %v868_v54 = vld [vmem:[#allocation8 + $0x1198] sm:$0xff]  ;;  %v14066_v7 = vcombine.low %v852_v26, %v860_v28  ;;  %v14322_v2 = vcombine.low %v1108_v38, %v1116_v0 }
 0x2ee   :  { %v876_v55 = vld [vmem:[#allocation8 + $0x11d8] sm:$0xff] }
 0x2ef   :  { %v1124_v58 = vld [vmem:[#allocation8 + $0x1998] sm:$0xff]  ;;  %v14083_v3 = vcombine.high %v868_v54, %v876_v55 }
 0x2f0   :  { %8948 = vmatpush1.bf16.msra.mxu0 %v13762_v4  ;;  %8989 = vmatpush1.bf16.msra.mxu1 %v14018_v5  ;;  %v1132_v63 = vld [vmem:[#allocation8 + $0x19d8] sm:$0xff] }
 0x2f1   :  { %8999 = vmatprep.subr.bf16.mxu0 %v14035_v19  ;;  %9040 = vmatprep.subr.bf16.mxu1 %v14291_v62  ;;  %v14339_v13 = vcombine.high %v1124_v58, %v1132_v63  ;;  %v884_v10 = vld [vmem:[#allocation8 + $0x1218] sm:$0xff]  ;;  %v14082_v19 = vcombine.low %v868_v54, %v876_v55  ;;  %v14338_v62 = vcombine.low %v1124_v58, %v1132_v63 }
 0x2f2   :  { %v892_v59 = vld [vmem:[#allocation8 + $0x1258] sm:$0xff] }
 0x2f3   :  { %8950 = vmatmul.mubr.bf16.vlgmr.msra.gmra.mrb[48].mxu0 %v15557_v39  ;;  %8991 = vmatmul.mubr.bf16.vlgmr.msra.gmra.mrb[48].mxu1 %v15559_v43  ;;  %v1140_v4 = vld [vmem:[#allocation8 + $0x1a18] sm:$0xff]  ;;  %v14099_v14 = vcombine.high %v884_v10, %v892_v59 }
 0x2f4   :  { %9000 = vmatpush1.bf16.msra.mxu0 %v14034_v35  ;;  %9041 = vmatpush1.bf16.msra.mxu1 %v14290_v22  ;;  %v1148_v5 = vld [vmem:[#allocation8 + $0x1a58] sm:$0xff] }
 0x2f5   :  { %9001 = vmatprep.subr.bf16.mxu0 %v14051_v25  ;;  %9042 = vmatprep.subr.bf16.mxu1 %v14307_v46  ;;  %v14355_v6 = vcombine.high %v1140_v4, %v1148_v5  ;;  %v900_v9 = vld [vmem:[#allocation8 + $0x1298] sm:$0xff]  ;;  %v14098_v25 = vcombine.low %v884_v10, %v892_v59  ;;  %v14354_v46 = vcombine.low %v1140_v4, %v1148_v5 }
 0x2f6   :  { %9031 = vmatprep.mubr.bf16.mxu0 %v15561_v49  ;;  %9072 = vmatprep.mubr.bf16.mxu1 %v15564_v52  ;;  %v908_v33 = vld [vmem:[#allocation8 + $0x12d8] sm:$0xff] }
 0x2f7   :  { %v1156_v35 = vld [vmem:[#allocation8 + $0x1a98] sm:$0xff]  ;;  %v14115_v26 = vcombine.high %v900_v9, %v908_v33 }
 0x2f8   :  { %9002 = vmatpush1.bf16.msra.mxu0 %v14050_v48  ;;  %9043 = vmatpush1.bf16.msra.mxu1 %v14306_v50  ;;  %v1164_v22 = vld [vmem:[#allocation8 + $0x1ad8] sm:$0xff] }
 0x2f9   :  { %9003 = vmatprep.subr.bf16.mxu0 %v14067_v51  ;;  %9044 = vmatprep.subr.bf16.mxu1 %v14323_v53  ;;  %v14371_v28 = vcombine.high %v1156_v35, %v1164_v22  ;;  %v916_v38 = vld [vmem:[#allocation8 + $0x1318] sm:$0xff]  ;;  %v14114_v51 = vcombine.low %v900_v9, %v908_v33  ;;  %v14370_v53 = vcombine.low %v1156_v35, %v1164_v22 }
 0x2fa   :  { %v924_v0 = vld [vmem:[#allocation8 + $0x1358] sm:$0xff] }
 0x2fb   :  { %v1172_v48 = vld [vmem:[#allocation8 + $0x1b18] sm:$0xff]  ;;  %v14131_v54 = vcombine.high %v916_v38, %v924_v0 }
 0x2fc   :  { %9004 = vmatpush1.bf16.msra.mxu0 %v14066_v7  ;;  %9045 = vmatpush1.bf16.msra.mxu1 %v14322_v2  ;;  %v1180_v50 = vld [vmem:[#allocation8 + $0x1b58] sm:$0xff] }
 0x2fd   :  { %9005 = vmatprep.subr.bf16.mxu0 %v14083_v3  ;;  %9046 = vmatprep.subr.bf16.mxu1 %v14339_v13  ;;  %v14387_v58 = vcombine.high %v1172_v48, %v1180_v50  ;;  %v932_v63 = vld [vmem:[#allocation8 + $0x1398] sm:$0xff]  ;;  %v14386_v33 = vcombine.low %v1172_v48, %v1180_v50 }
 0x2fe   :  { %v940_v7 = vld [vmem:[#allocation8 + $0x13d8] sm:$0xff] }
 0x2ff   :  { %v1188_v10 = vld [vmem:[#allocation8 + $0x1b98] sm:$0xff]  ;;  %v14147_v35 = vcombine.high %v932_v63, %v940_v7 }
 0x300   :  { %9006 = vmatpush1.bf16.msra.mxu0 %v14082_v19  ;;  %9047 = vmatpush1.bf16.msra.mxu1 %v14338_v62  ;;  %v1196_v59 = vld [vmem:[#allocation8 + $0x1bd8] sm:$0xff]  ;;  %v14130_v62 = vcombine.low %v916_v38, %v924_v0  ;;  %v14146_v0 = vcombine.low %v932_v63, %v940_v7 }
 0x301   :  { %9007 = vmatprep.subr.bf16.mxu0 %v14099_v14  ;;  %9048 = vmatprep.subr.bf16.mxu1 %v14355_v6  ;;  %v14402_v48 = vcombine.low %v1188_v10, %v1196_v59  ;;  %v988_v63 = vld [vmem:[#allocation8 + $0x1558] sm:$0xff] }
 0x302   :  { %v1236_v7 = vld [vmem:[#allocation8 + $0x1d18] sm:$0xff] }
 0x304   :  { %9008 = vmatpush1.bf16.msra.mxu0 %v14098_v25  ;;  %9049 = vmatpush1.bf16.msra.mxu1 %v14354_v46  ;;  %v948_v46 = vld [vmem:[#allocation8 + $0x1418] sm:$0xff] }
 0x305   :  { %9009 = vmatprep.subr.bf16.mxu0 %v14115_v26  ;;  %9050 = vmatprep.subr.bf16.mxu1 %v14371_v28  ;;  %v956_v26 = vld [vmem:[#allocation8 + $0x1458] sm:$0xff] }
 0x306   :  { %v8705_v55 = vpop.f32.mrb[36].mxu0  ;;  %v8746_v3 = vpop.f32.mrb[36].mxu1  ;;  %v14163_v50 = vcombine.high %v948_v46, %v956_v26 }
 0x307   :  { %v8706_v2 = vadd.f32 %v8705_v55, %v15645_v44  ;;  %v8707_v13 = vpop.f32.mrb[37].mxu0  ;;  %v8748_v5 = vpop.f32.mrb[37].mxu1  ;;  %v14403_v44 = vcombine.high %v1188_v10, %v1196_v59  ;;  %v1212_v55 = vld [vmem:[#allocation8 + $0x1c58] sm:$0xff] }
 0x308   :  { %v8708_v4 = vadd.f32 %v8707_v13, %v15647_v57  ;;  %v8709_v19 = vpop.f32.mrb[38].mxu0  ;;  %9010 = vmatpush1.bf16.msra.mxu0 %v14114_v51  ;;  %v8750_v6 = vpop.f32.mrb[38].mxu1  ;;  %9051 = vmatpush1.bf16.msra.mxu1 %v14370_v53  ;;  %v1204_v57 = vld [vmem:[#allocation8 + $0x1c18] sm:$0xff] }
 0x309   :  { %v8747_v14 = vadd.f32 %v8746_v3, %v8706_v2  ;;  %v8710_v9 = vpop.f32.mrb[39].mxu0  ;;  %9011 = vmatprep.subr.bf16.mxu0 %v14131_v54  ;;  %v8751_v25 = vpop.f32.mrb[39].mxu1  ;;  %9052 = vmatprep.subr.bf16.mxu1 %v14387_v58  ;;  %v14419_v51 = vcombine.high %v1204_v57, %v1212_v55  ;;  %v964_v53 = vld [vmem:[#allocation8 + $0x1498] sm:$0xff]  ;;  %v14418_v3 = vcombine.low %v1204_v57, %v1212_v55 }
 0x30a   :  { %v8749_v22 = vadd.f32 %v8748_v5, %v8708_v4  ;;  %v972_v54 = vld [vmem:[#allocation8 + $0x14d8] sm:$0xff] }
 0x30b   :  { %v15656_v28 = vadd.f32 %v8747_v14, %v15551_v12  ;;  %v1220_v58 = vld [vmem:[#allocation8 + $0x1c98] sm:$0xff]  ;;  %v14162_v12 = vcombine.low %v948_v46, %v956_v26  ;;  %v14179_v13 = vcombine.high %v964_v53, %v972_v54  ;;  %v14178_v10 = vcombine.low %v964_v53, %v972_v54 }
 0x30c   :  { %v15659_v38 = vadd.f32 %v8749_v22, %v15555_v16  ;;  %9012 = vmatpush1.bf16.msra.mxu0 %v14130_v62  ;;  %9053 = vmatpush1.bf16.msra.mxu1 %v14386_v33  ;;  %v1228_v2 = vld [vmem:[#allocation8 + $0x1cd8] sm:$0xff] }
 0x30d   :  { %9013 = vmatprep.subr.bf16.mxu0 %v14147_v35  ;;  %9054 = vmatprep.subr.bf16.mxu1 %v14403_v44  ;;  %v14435_v16 = vcombine.high %v1220_v58, %v1228_v2  ;;  %v980_v4 = vld [vmem:[#allocation8 + $0x1518] sm:$0xff]  ;;  %v14434_v59 = vcombine.low %v1220_v58, %v1228_v2 }
 0x30e   :  { %v1244_v5 = vld [vmem:[#allocation8 + $0x1d58] sm:$0xff]  ;;  %v14195_v19 = vcombine.high %v980_v4, %v988_v63  ;;  %v14194_v35 = vcombine.low %v980_v4, %v988_v63 }
 0x30f   :  { %v14451_v62 = vcombine.high %v1236_v7, %v1244_v5  ;;  %v996_v14 = vld [vmem:[#allocation8 + $0x1598] sm:$0xff]  ;;  %v14450_v22 = vcombine.low %v1236_v7, %v1244_v5 }
 0x310   :  { %9014 = vmatpush1.bf16.msra.mxu0 %v14146_v0  ;;  %9055 = vmatpush1.bf16.msra.mxu1 %v14402_v48  ;;  %v1004_v6 = vld [vmem:[#allocation8 + $0x15d8] sm:$0xff] }
 0x311   :  { %9015 = vmatprep.subr.bf16.mxu0 %v14163_v50  ;;  %9056 = vmatprep.subr.bf16.mxu1 %v14419_v51  ;;  %v1252_v9 = vld [vmem:[#allocation8 + $0x1d98] sm:$0xff]  ;;  %v14211_v25 = vcombine.high %v996_v14, %v1004_v6  ;;  %v14210_v0 = vcombine.low %v996_v14, %v1004_v6 }
 0x312   :  { %v1260_v33 = vld [vmem:[#allocation8 + $0x1dd8] sm:$0xff] }
 0x313   :  { %v14467_v44 = vcombine.high %v1252_v9, %v1260_v33  ;;  %v1012_v46 = vld [vmem:[#allocation8 + $0x1618] sm:$0xff]  ;;  %v14466_v48 = vcombine.low %v1252_v9, %v1260_v33 }
 0x314   :  { %9016 = vmatpush1.bf16.msra.mxu0 %v14162_v12  ;;  %9057 = vmatpush1.bf16.msra.mxu1 %v14418_v3  ;;  %v1020_v26 = vld [vmem:[#allocation8 + $0x1658] sm:$0xff] }
 0x315   :  { %9017 = vmatprep.subr.bf16.mxu0 %v14179_v13  ;;  %9058 = vmatprep.subr.bf16.mxu1 %v14435_v16  ;;  %v1268_v57 = vld [vmem:[#allocation8 + $0x1e18] sm:$0xff]  ;;  %v14227_v50 = vcombine.high %v1012_v46, %v1020_v26  ;;  %v14226_v12 = vcombine.low %v1012_v46, %v1020_v26  ;;  %v309_v46 = vld [vmem:[#allocation8 + $0x20] sm:$0xff] }
 0x316   :  { %v1276_v55 = vld [vmem:[#allocation8 + $0x1e58] sm:$0xff]  ;;  %v317_v26 = vld [vmem:[#allocation8 + $0x60] sm:$0xff] }
 0x317   :  { %v14483_v51 = vcombine.high %v1268_v57, %v1276_v55  ;;  %v1028_v53 = vld [vmem:[#allocation8 + $0x1698] sm:$0xff]  ;;  %v14482_v3 = vcombine.low %v1268_v57, %v1276_v55  ;;  %v565_v57 = vld [vmem:[#allocation8 + $0x820] sm:$0xff] }
 0x318   :  { %9018 = vmatpush1.bf16.msra.mxu0 %v14178_v10  ;;  %9059 = vmatpush1.bf16.msra.mxu1 %v14434_v59  ;;  %v1036_v54 = vld [vmem:[#allocation8 + $0x16d8] sm:$0xff]  ;;  %v573_v55 = vld [vmem:[#allocation8 + $0x860] sm:$0xff] }
 0x319   :  { %9019 = vmatprep.subr.bf16.mxu0 %v14195_v19  ;;  %9060 = vmatprep.subr.bf16.mxu1 %v14451_v62  ;;  %v1284_v58 = vld [vmem:[#allocation8 + $0x1e98] sm:$0xff]  ;;  %v14243_v13 = vcombine.high %v1028_v53, %v1036_v54  ;;  %v14242_v10 = vcombine.low %v1028_v53, %v1036_v54  ;;  %v325_v53 = vld [vmem:[#allocation8 + $0xa0] sm:$0xff] }
 0x31a   :  { %v1292_v2 = vld [vmem:[#allocation8 + $0x1ed8] sm:$0xff]  ;;  %v333_v54 = vld [vmem:[#allocation8 + $0xe0] sm:$0xff] }
 0x31b   :  { %v14499_v16 = vcombine.high %v1284_v58, %v1292_v2  ;;  %v1044_v4 = vld [vmem:[#allocation8 + $0x1718] sm:$0xff]  ;;  %v14498_v59 = vcombine.low %v1284_v58, %v1292_v2  ;;  %v581_v58 = vld [vmem:[#allocation8 + $0x8a0] sm:$0xff] }
 0x31c   :  { %9020 = vmatpush1.bf16.msra.mxu0 %v14194_v35  ;;  %9061 = vmatpush1.bf16.msra.mxu1 %v14450_v22  ;;  %v1052_v63 = vld [vmem:[#allocation8 + $0x1758] sm:$0xff]  ;;  %v589_v2 = vld [vmem:[#allocation8 + $0x8e0] sm:$0xff] }
 0x31d   :  { %9021 = vmatprep.subr.bf16.mxu0 %v14211_v25  ;;  %9062 = vmatprep.subr.bf16.mxu1 %v14467_v44  ;;  %v1300_v7 = vld [vmem:[#allocation8 + $0x1f18] sm:$0xff]  ;;  %v14259_v19 = vcombine.high %v1044_v4, %v1052_v63  ;;  %v14258_v35 = vcombine.low %v1044_v4, %v1052_v63  ;;  %v341_v4 = vld [vmem:[#allocation8 + $0x120] sm:$0xff] }
 0x31e   :  { %v1308_v5 = vld [vmem:[#allocation8 + $0x1f58] sm:$0xff]  ;;  %v349_v63 = vld [vmem:[#allocation8 + $0x160] sm:$0xff] }
 0x31f   :  { %v14515_v62 = vcombine.high %v1300_v7, %v1308_v5  ;;  %v1060_v14 = vld [vmem:[#allocation8 + $0x1798] sm:$0xff]  ;;  %v14514_v22 = vcombine.low %v1300_v7, %v1308_v5  ;;  %v597_v7 = vld [vmem:[#allocation8 + $0x920] sm:$0xff] }
 0x320   :  { %9022 = vmatpush1.bf16.msra.mxu0 %v14210_v0  ;;  %9063 = vmatpush1.bf16.msra.mxu1 %v14466_v48  ;;  %v1068_v6 = vld [vmem:[#allocation8 + $0x17d8] sm:$0xff]  ;;  %v605_v5 = vld [vmem:[#allocation8 + $0x960] sm:$0xff] }
 0x321   :  { %9023 = vmatprep.subr.bf16.mxu0 %v14227_v50  ;;  %9064 = vmatprep.subr.bf16.mxu1 %v14483_v51  ;;  %v1316_v9 = vld [vmem:[#allocation8 + $0x1f98] sm:$0xff]  ;;  %v14275_v25 = vcombine.high %v1060_v14, %v1068_v6  ;;  %v14274_v0 = vcombine.low %v1060_v14, %v1068_v6  ;;  %v13525_v50 = vcombine.high %v309_v46, %v317_v26  ;;  %v357_v14 = vld [vmem:[#allocation8 + $0x1a0] sm:$0xff] }
 0x322   :  { %v1324_v33 = vld [vmem:[#allocation8 + $0x1fd8] sm:$0xff]  ;;  %v13781_v51 = vcombine.high %v565_v57, %v573_v55  ;;  %v365_v6 = vld [vmem:[#allocation8 + $0x1e0] sm:$0xff] }
 0x323   :  { %v14531_v44 = vcombine.high %v1316_v9, %v1324_v33  ;;  %v14530_v48 = vcombine.low %v1316_v9, %v1324_v33  ;;  %v613_v9 = vld [vmem:[#allocation8 + $0x9a0] sm:$0xff] }
 0x324   :  { %9024 = vmatpush1.bf16.msra.mxu0 %v14226_v12  ;;  %9065 = vmatpush1.bf16.msra.mxu1 %v14482_v3  ;;  %v13524_v12 = vcombine.low %v309_v46, %v317_v26  ;;  %v13780_v3 = vcombine.low %v565_v57, %v573_v55  ;;  %v621_v33 = vld [vmem:[#allocation8 + $0x9e0] sm:$0xff] }
 0x325   :  { %9025 = vmatprep.subr.bf16.mxu0 %v14243_v13  ;;  %9066 = vmatprep.subr.bf16.mxu1 %v14499_v16  ;;  %v13541_v13 = vcombine.high %v325_v53, %v333_v54  ;;  %v13797_v16 = vcombine.high %v581_v58, %v589_v2  ;;  %v373_v46 = vld [vmem:[#allocation8 + $0x220] sm:$0xff] }
 0x326   :  { %v381_v26 = vld [vmem:[#allocation8 + $0x260] sm:$0xff] }
 0x327   :  { %v629_v57 = vld [vmem:[#allocation8 + $0xa20] sm:$0xff] }
 0x328   :  { %9026 = vmatpush1.bf16.msra.mxu0 %v14242_v10  ;;  %9067 = vmatpush1.bf16.msra.mxu1 %v14498_v59  ;;  %v13540_v10 = vcombine.low %v325_v53, %v333_v54  ;;  %v13796_v59 = vcombine.low %v581_v58, %v589_v2  ;;  %v637_v55 = vld [vmem:[#allocation8 + $0xa60] sm:$0xff] }
 0x329   :  { %9027 = vmatprep.subr.bf16.mxu0 %v14259_v19  ;;  %9068 = vmatprep.subr.bf16.mxu1 %v14515_v62  ;;  %v13557_v19 = vcombine.high %v341_v4, %v349_v63  ;;  %v13813_v62 = vcombine.high %v597_v7, %v605_v5  ;;  %v389_v53 = vld [vmem:[#allocation8 + $0x2a0] sm:$0xff] }
 0x32a   :  { %v397_v54 = vld [vmem:[#allocation8 + $0x2e0] sm:$0xff] }
 0x32b   :  { %v645_v58 = vld [vmem:[#allocation8 + $0xaa0] sm:$0xff] }
 0x32c   :  { %9028 = vmatpush1.bf16.msra.mxu0 %v14258_v35  ;;  %9069 = vmatpush1.bf16.msra.mxu1 %v14514_v22  ;;  %v13556_v35 = vcombine.low %v341_v4, %v349_v63  ;;  %v13812_v22 = vcombine.low %v597_v7, %v605_v5  ;;  %v653_v2 = vld [vmem:[#allocation8 + $0xae0] sm:$0xff] }
 0x32d   :  { %9029 = vmatprep.subr.bf16.mxu0 %v14275_v25  ;;  %9070 = vmatprep.subr.bf16.mxu1 %v14531_v44  ;;  %v13573_v25 = vcombine.high %v357_v14, %v365_v6  ;;  %v13829_v44 = vcombine.high %v613_v9, %v621_v33  ;;  %v405_v4 = vld [vmem:[#allocation8 + $0x320] sm:$0xff] }
 0x32e   :  { %v413_v63 = vld [vmem:[#allocation8 + $0x360] sm:$0xff] }
 0x32f   :  { %v661_v7 = vld [vmem:[#allocation8 + $0xb20] sm:$0xff] }
 0x330   :  { %9030 = vmatpush1.bf16.msra.mxu0 %v14274_v0  ;;  %9071 = vmatpush1.bf16.msra.mxu1 %v14530_v48  ;;  %v13572_v0 = vcombine.low %v357_v14, %v365_v6  ;;  %v13828_v48 = vcombine.low %v613_v9, %v621_v33  ;;  %v669_v5 = vld [vmem:[#allocation8 + $0xb60] sm:$0xff] }
 0x331   :  { %9081 = vmatprep.subr.bf16.mxu0 %v13525_v50  ;;  %9122 = vmatprep.subr.bf16.mxu1 %v13781_v51  ;;  %v13589_v50 = vcombine.high %v373_v46, %v381_v26  ;;  %v13845_v51 = vcombine.high %v629_v57, %v637_v55  ;;  %v13877_v14 = vcombine.high %v661_v7, %v669_v5  ;;  %v421_v6 = vld [vmem:[#allocation8 + $0x3a0] sm:$0xff] }
 0x332   :  { %v429_v9 = vld [vmem:[#allocation8 + $0x3e0] sm:$0xff] }
 0x333   :  { %9032 = vmatmul.mubr.bf16.vlgmr.msra.gmra.mrb[52].mxu0 %v15585_v27  ;;  %9073 = vmatmul.mubr.bf16.vlgmr.msra.gmra.mrb[52].mxu1 %v15587_v32 }
 0x334   :  { %9082 = vmatpush1.bf16.msra.mxu0 %v13524_v12  ;;  %9123 = vmatpush1.bf16.msra.mxu1 %v13780_v3  ;;  %v13588_v12 = vcombine.low %v373_v46, %v381_v26  ;;  %v13844_v3 = vcombine.low %v629_v57, %v637_v55  ;;  %v13620_v57 = vcombine.low %v405_v4, %v413_v63 }
 0x335   :  { %9083 = vmatprep.subr.bf16.mxu0 %v13541_v13  ;;  %9124 = vmatprep.subr.bf16.mxu1 %v13797_v16  ;;  %v13605_v13 = vcombine.high %v389_v53, %v397_v54  ;;  %v13861_v16 = vcombine.high %v645_v58, %v653_v2 }
 0x336   :  { %9113 = vmatprep.mubr.bf16.mxu0 %v15541_v31  ;;  %9154 = vmatprep.mubr.bf16.mxu1 %v15544_v34 }
 0x338   :  { %9084 = vmatpush1.bf16.msra.mxu0 %v13540_v10  ;;  %9125 = vmatpush1.bf16.msra.mxu1 %v13796_v59  ;;  %v13604_v10 = vcombine.low %v389_v53, %v397_v54  ;;  %v13860_v59 = vcombine.low %v645_v58, %v653_v2  ;;  %v437_v58 = vld [vmem:[#allocation8 + $0x420] sm:$0xff] }
 0x339   :  { %9085 = vmatprep.subr.bf16.mxu0 %v13557_v19  ;;  %9126 = vmatprep.subr.bf16.mxu1 %v13813_v62  ;;  %v13621_v19 = vcombine.high %v405_v4, %v413_v63  ;;  %v445_v2 = vld [vmem:[#allocation8 + $0x460] sm:$0xff] }
 0x33a   :  { %v13653_v4 = vcombine.high %v437_v58, %v445_v2 }
 0x33c   :  { %9086 = vmatpush1.bf16.msra.mxu0 %v13556_v35  ;;  %9127 = vmatpush1.bf16.msra.mxu1 %v13812_v22  ;;  %v677_v22 = vld [vmem:[#allocation8 + $0xba0] sm:$0xff] }
 0x33d   :  { %9087 = vmatprep.subr.bf16.mxu0 %v13573_v25  ;;  %9128 = vmatprep.subr.bf16.mxu1 %v13829_v44  ;;  %v685_v25 = vld [vmem:[#allocation8 + $0xbe0] sm:$0xff] }
 0x33e   :  { %v13893_v54 = vcombine.high %v677_v22, %v685_v25 }
 0x340   :  { %9088 = vmatpush1.bf16.msra.mxu0 %v13572_v0  ;;  %9129 = vmatpush1.bf16.msra.mxu1 %v13828_v48 }
 0x341   :  { %9089 = vmatprep.subr.bf16.mxu0 %v13589_v50  ;;  %9130 = vmatprep.subr.bf16.mxu1 %v13845_v51  ;;  %v13876_v50 = vcombine.low %v661_v7, %v669_v5  ;;  %v13637_v51 = vcombine.high %v421_v6, %v429_v9  ;;  %v717_v7 = vld [vmem:[#allocation8 + $0xce0] sm:$0xff]  ;;  %v13652_v5 = vcombine.low %v437_v58, %v445_v2 }
 0x344   :  { %9090 = vmatpush1.bf16.msra.mxu0 %v13588_v12  ;;  %9131 = vmatpush1.bf16.msra.mxu1 %v13844_v3  ;;  %v693_v12 = vld [vmem:[#allocation8 + $0xc20] sm:$0xff] }
 0x345   :  { %9091 = vmatprep.subr.bf16.mxu0 %v13605_v13  ;;  %9132 = vmatprep.subr.bf16.mxu1 %v13861_v16  ;;  %v701_v3 = vld [vmem:[#allocation8 + $0xc60] sm:$0xff]  ;;  %v13636_v13 = vcombine.low %v421_v6, %v429_v9  ;;  %v13892_v16 = vcombine.low %v677_v22, %v685_v25 }
 0x346   :  { %v8787_v62 = vpop.f32.mrb[40].mxu0  ;;  %v8828_v33 = vpop.f32.mrb[40].mxu1  ;;  %v13909_v63 = vcombine.high %v693_v12, %v701_v3  ;;  %v477_v6 = vld [vmem:[#allocation8 + $0x560] sm:$0xff] }
 0x347   :  { %v8789_v35 = vpop.f32.mrb[41].mxu0  ;;  %v15665_v44 = vadd.f32 %v8828_v33, %v8787_v62  ;;  %v8830_v46 = vpop.f32.mrb[41].mxu1  ;;  %v13908_v62 = vcombine.low %v693_v12, %v701_v3  ;;  %v725_v9 = vld [vmem:[#allocation8 + $0xd20] sm:$0xff] }
 0x348   :  { %v8791_v26 = vpop.f32.mrb[42].mxu0  ;;  %9092 = vmatpush1.bf16.msra.mxu0 %v13604_v10  ;;  %v15667_v55 = vadd.f32 %v8830_v46, %v8789_v35  ;;  %v8832_v0 = vpop.f32.mrb[42].mxu1  ;;  %9133 = vmatpush1.bf16.msra.mxu1 %v13860_v59  ;;  %v453_v10 = vld [vmem:[#allocation8 + $0x4a0] sm:$0xff] }
 0x349   :  { %v8792_v48 = vpop.f32.mrb[43].mxu0  ;;  %9093 = vmatprep.subr.bf16.mxu0 %v13621_v19  ;;  %v8833_v53 = vpop.f32.mrb[43].mxu1  ;;  %9134 = vmatprep.subr.bf16.mxu1 %v13877_v14  ;;  %v461_v59 = vld [vmem:[#allocation8 + $0x4e0] sm:$0xff] }
 0x34a   :  { %v709_v19 = vld [vmem:[#allocation8 + $0xca0] sm:$0xff]  ;;  %v13669_v14 = vcombine.high %v453_v10, %v461_v59  ;;  %v13668_v22 = vcombine.low %v453_v10, %v461_v59 }
 0x34b   :  { %v13925_v33 = vcombine.high %v709_v19, %v717_v7  ;;  %v469_v35 = vld [vmem:[#allocation8 + $0x520] sm:$0xff]  ;;  %v13924_v25 = vcombine.low %v709_v19, %v717_v7 }
 0x34c   :  { %9094 = vmatpush1.bf16.msra.mxu0 %v13620_v57  ;;  %9135 = vmatpush1.bf16.msra.mxu1 %v13876_v50  ;;  %v733_v46 = vld [vmem:[#allocation8 + $0xd60] sm:$0xff]  ;;  %v13685_v26 = vcombine.high %v469_v35, %v477_v6  ;;  %v13684_v53 = vcombine.low %v469_v35, %v477_v6 }
 0x34d   :  { %9095 = vmatprep.subr.bf16.mxu0 %v13637_v51  ;;  %9136 = vmatprep.subr.bf16.mxu1 %v13893_v54  ;;  %v13941_v57 = vcombine.high %v725_v9, %v733_v46  ;;  %v485_v0 = vld [vmem:[#allocation8 + $0x5a0] sm:$0xff]  ;;  %v13940_v54 = vcombine.low %v725_v9, %v733_v46 }
 0x34e   :  { %v493_v48 = vld [vmem:[#allocation8 + $0x5e0] sm:$0xff] }
 0x34f   :  { %v741_v50 = vld [vmem:[#allocation8 + $0xda0] sm:$0xff]  ;;  %v13701_v58 = vcombine.high %v485_v0, %v493_v48 }
 0x350   :  { %9096 = vmatpush1.bf16.msra.mxu0 %v13636_v13  ;;  %9137 = vmatpush1.bf16.msra.mxu1 %v13892_v16  ;;  %v749_v51 = vld [vmem:[#allocation8 + $0xde0] sm:$0xff] }
 0x351   :  { %9097 = vmatprep.subr.bf16.mxu0 %v13653_v4  ;;  %9138 = vmatprep.subr.bf16.mxu1 %v13909_v63  ;;  %v13957_v2 = vcombine.high %v741_v50, %v749_v51  ;;  %v501_v12 = vld [vmem:[#allocation8 + $0x620] sm:$0xff]  ;;  %v13700_v4 = vcombine.low %v485_v0, %v493_v48  ;;  %v13956_v63 = vcombine.low %v741_v50, %v749_v51 }
 0x352   :  { %v509_v3 = vld [vmem:[#allocation8 + $0x660] sm:$0xff] }
 0x353   :  { %v757_v13 = vld [vmem:[#allocation8 + $0xe20] sm:$0xff]  ;;  %v13717_v10 = vcombine.high %v501_v12, %v509_v3 }
 0x354   :  { %9098 = vmatpush1.bf16.msra.mxu0 %v13652_v5  ;;  %9139 = vmatpush1.bf16.msra.mxu1 %v13908_v62  ;;  %v765_v16 = vld [vmem:[#allocation8 + $0xe60] sm:$0xff] }
 0x355   :  { %9099 = vmatprep.subr.bf16.mxu0 %v13669_v14  ;;  %9140 = vmatprep.subr.bf16.mxu1 %v13925_v33  ;;  %v13973_v59 = vcombine.high %v757_v13, %v765_v16  ;;  %v517_v19 = vld [vmem:[#allocation8 + $0x6a0] sm:$0xff]  ;;  %v13716_v14 = vcombine.low %v501_v12, %v509_v3  ;;  %v13972_v33 = vcombine.low %v757_v13, %v765_v16 }
 0x356   :  { %v525_v7 = vld [vmem:[#allocation8 + $0x6e0] sm:$0xff] }
 0x357   :  { %v773_v5 = vld [vmem:[#allocation8 + $0xea0] sm:$0xff]  ;;  %v13733_v35 = vcombine.high %v517_v19, %v525_v7 }
 0x358   :  { %9100 = vmatpush1.bf16.msra.mxu0 %v13668_v22  ;;  %9141 = vmatpush1.bf16.msra.mxu1 %v13924_v25  ;;  %v781_v62 = vld [vmem:[#allocation8 + $0xee0] sm:$0xff] }
 0x359   :  { %9101 = vmatprep.subr.bf16.mxu0 %v13685_v26  ;;  %9142 = vmatprep.subr.bf16.mxu1 %v13941_v57  ;;  %v13989_v6 = vcombine.high %v773_v5, %v781_v62  ;;  %v533_v9 = vld [vmem:[#allocation8 + $0x720] sm:$0xff]  ;;  %v13732_v26 = vcombine.low %v517_v19, %v525_v7  ;;  %v13988_v57 = vcombine.low %v773_v5, %v781_v62 }
 0x35a   :  { %v541_v46 = vld [vmem:[#allocation8 + $0x760] sm:$0xff] }
 0x35b   :  { %v789_v22 = vld [vmem:[#allocation8 + $0xf20] sm:$0xff]  ;;  %v13749_v0 = vcombine.high %v533_v9, %v541_v46 }
 0x35c   :  { %9102 = vmatpush1.bf16.msra.mxu0 %v13684_v53  ;;  %9143 = vmatpush1.bf16.msra.mxu1 %v13940_v54  ;;  %v797_v25 = vld [vmem:[#allocation8 + $0xf60] sm:$0xff] }
 0x35d   :  { %9103 = vmatprep.subr.bf16.mxu0 %v13701_v58  ;;  %9144 = vmatprep.subr.bf16.mxu1 %v13957_v2  ;;  %v14005_v48 = vcombine.high %v789_v22, %v797_v25  ;;  %v549_v50 = vld [vmem:[#allocation8 + $0x7a0] sm:$0xff]  ;;  %v13748_v58 = vcombine.low %v533_v9, %v541_v46  ;;  %v14004_v2 = vcombine.low %v789_v22, %v797_v25 }
 0x35e   :  { %v557_v51 = vld [vmem:[#allocation8 + $0x7e0] sm:$0xff] }
 0x35f   :  { %v805_v53 = vld [vmem:[#allocation8 + $0xfa0] sm:$0xff]  ;;  %v13765_v12 = vcombine.high %v549_v50, %v557_v51 }
 0x360   :  { %9104 = vmatpush1.bf16.msra.mxu0 %v13700_v4  ;;  %9145 = vmatpush1.bf16.msra.mxu1 %v13956_v63  ;;  %v813_v54 = vld [vmem:[#allocation8 + $0xfe0] sm:$0xff] }
 0x361   :  { %9105 = vmatprep.subr.bf16.mxu0 %v13717_v10  ;;  %9146 = vmatprep.subr.bf16.mxu1 %v13973_v59  ;;  %v14021_v3 = vcombine.high %v805_v53, %v813_v54  ;;  %v821_v13 = vld [vmem:[#allocation8 + $0x1020] sm:$0xff]  ;;  %v13764_v10 = vcombine.low %v549_v50, %v557_v51  ;;  %v14020_v59 = vcombine.low %v805_v53, %v813_v54 }
 0x362   :  { %v829_v16 = vld [vmem:[#allocation8 + $0x1060] sm:$0xff] }
 0x363   :  { %v1077_v4 = vld [vmem:[#allocation8 + $0x1820] sm:$0xff]  ;;  %v14037_v19 = vcombine.high %v821_v13, %v829_v16 }
 0x364   :  { %9106 = vmatpush1.bf16.msra.mxu0 %v13716_v14  ;;  %9147 = vmatpush1.bf16.msra.mxu1 %v13972_v33  ;;  %v1085_v63 = vld [vmem:[#allocation8 + $0x1860] sm:$0xff] }
 0x365   :  { %9107 = vmatprep.subr.bf16.mxu0 %v13733_v35  ;;  %9148 = vmatprep.subr.bf16.mxu1 %v13989_v6  ;;  %v14293_v7 = vcombine.high %v1077_v4, %v1085_v63  ;;  %v837_v5 = vld [vmem:[#allocation8 + $0x10a0] sm:$0xff]  ;;  %v14036_v35 = vcombine.low %v821_v13, %v829_v16  ;;  %v14292_v6 = vcombine.low %v1077_v4, %v1085_v63 }
 0x366   :  { %v845_v62 = vld [vmem:[#allocation8 + $0x10e0] sm:$0xff] }
 0x367   :  { %v1093_v14 = vld [vmem:[#allocation8 + $0x18a0] sm:$0xff]  ;;  %v14053_v9 = vcombine.high %v837_v5, %v845_v62 }
 0x368   :  { %9108 = vmatpush1.bf16.msra.mxu0 %v13732_v26  ;;  %9149 = vmatpush1.bf16.msra.mxu1 %v13988_v57  ;;  %v1101_v33 = vld [vmem:[#allocation8 + $0x18e0] sm:$0xff] }
 0x369   :  { %9109 = vmatprep.subr.bf16.mxu0 %v13749_v0  ;;  %9150 = vmatprep.subr.bf16.mxu1 %v14005_v48  ;;  %v14309_v46 = vcombine.high %v1093_v14, %v1101_v33  ;;  %v853_v22 = vld [vmem:[#allocation8 + $0x1120] sm:$0xff]  ;;  %v14052_v0 = vcombine.low %v837_v5, %v845_v62  ;;  %v14308_v48 = vcombine.low %v1093_v14, %v1101_v33 }
 0x36a   :  { %v861_v25 = vld [vmem:[#allocation8 + $0x1160] sm:$0xff] }
 0x36b   :  { %v1109_v26 = vld [vmem:[#allocation8 + $0x1920] sm:$0xff]  ;;  %v14069_v50 = vcombine.high %v853_v22, %v861_v25 }
 0x36c   :  { %9110 = vmatpush1.bf16.msra.mxu0 %v13748_v58  ;;  %9151 = vmatpush1.bf16.msra.mxu1 %v14004_v2  ;;  %v1117_v57 = vld [vmem:[#allocation8 + $0x1960] sm:$0xff] }
 0x36d   :  { %9111 = vmatprep.subr.bf16.mxu0 %v13765_v12  ;;  %9152 = vmatprep.subr.bf16.mxu1 %v14021_v3  ;;  %v14325_v51 = vcombine.high %v1109_v26, %v1117_v57  ;;  %v869_v53 = vld [vmem:[#allocation8 + $0x11a0] sm:$0xff]  ;;  %v14068_v12 = vcombine.low %v853_v22, %v861_v25  ;;  %v14324_v3 = vcombine.low %v1109_v26, %v1117_v57 }
 0x36e   :  { %v877_v54 = vld [vmem:[#allocation8 + $0x11e0] sm:$0xff] }
 0x36f   :  { %v1125_v58 = vld [vmem:[#allocation8 + $0x19a0] sm:$0xff]  ;;  %v14085_v13 = vcombine.high %v869_v53, %v877_v54 }
 0x370   :  { %9112 = vmatpush1.bf16.msra.mxu0 %v13764_v10  ;;  %9153 = vmatpush1.bf16.msra.mxu1 %v14020_v59  ;;  %v1133_v2 = vld [vmem:[#allocation8 + $0x19e0] sm:$0xff] }
 0x371   :  { %9163 = vmatprep.subr.bf16.mxu0 %v14037_v19  ;;  %9204 = vmatprep.subr.bf16.mxu1 %v14293_v7  ;;  %v14341_v16 = vcombine.high %v1125_v58, %v1133_v2  ;;  %v885_v4 = vld [vmem:[#allocation8 + $0x1220] sm:$0xff]  ;;  %v14084_v19 = vcombine.low %v869_v53, %v877_v54  ;;  %v14340_v7 = vcombine.low %v1125_v58, %v1133_v2 }
 0x372   :  { %v893_v63 = vld [vmem:[#allocation8 + $0x1260] sm:$0xff] }
 0x373   :  { %9114 = vmatmul.mubr.bf16.vlgmr.msra.gmra.mrb[56].mxu0 %v15557_v39  ;;  %9155 = vmatmul.mubr.bf16.vlgmr.msra.gmra.mrb[56].mxu1 %v15559_v43  ;;  %v1141_v10 = vld [vmem:[#allocation8 + $0x1a20] sm:$0xff]  ;;  %v14101_v5 = vcombine.high %v885_v4, %v893_v63 }
 0x374   :  { %9164 = vmatpush1.bf16.msra.mxu0 %v14036_v35  ;;  %9205 = vmatpush1.bf16.msra.mxu1 %v14292_v6  ;;  %v1149_v59 = vld [vmem:[#allocation8 + $0x1a60] sm:$0xff] }
 0x375   :  { %9165 = vmatprep.subr.bf16.mxu0 %v14053_v9  ;;  %9206 = vmatprep.subr.bf16.mxu1 %v14309_v46  ;;  %v14357_v62 = vcombine.high %v1141_v10, %v1149_v59  ;;  %v901_v14 = vld [vmem:[#allocation8 + $0x12a0] sm:$0xff]  ;;  %v14100_v9 = vcombine.low %v885_v4, %v893_v63  ;;  %v14356_v46 = vcombine.low %v1141_v10, %v1149_v59 }
 0x376   :  { %9195 = vmatprep.mubr.bf16.mxu0 %v15561_v49  ;;  %9236 = vmatprep.mubr.bf16.mxu1 %v15564_v52  ;;  %v909_v33 = vld [vmem:[#allocation8 + $0x12e0] sm:$0xff] }
 0x377   :  { %v1157_v35 = vld [vmem:[#allocation8 + $0x1aa0] sm:$0xff]  ;;  %v14117_v22 = vcombine.high %v901_v14, %v909_v33 }
 0x378   :  { %9166 = vmatpush1.bf16.msra.mxu0 %v14052_v0  ;;  %9207 = vmatpush1.bf16.msra.mxu1 %v14308_v48  ;;  %v1165_v6 = vld [vmem:[#allocation8 + $0x1ae0] sm:$0xff] }
 0x379   :  { %9167 = vmatprep.subr.bf16.mxu0 %v14069_v50  ;;  %9208 = vmatprep.subr.bf16.mxu1 %v14325_v51  ;;  %v14373_v25 = vcombine.high %v1157_v35, %v1165_v6  ;;  %v917_v26 = vld [vmem:[#allocation8 + $0x1320] sm:$0xff]  ;;  %v14116_v50 = vcombine.low %v901_v14, %v909_v33  ;;  %v14372_v51 = vcombine.low %v1157_v35, %v1165_v6 }
 0x37a   :  { %v925_v57 = vld [vmem:[#allocation8 + $0x1360] sm:$0xff] }
 0x37b   :  { %v1173_v0 = vld [vmem:[#allocation8 + $0x1b20] sm:$0xff]  ;;  %v14133_v53 = vcombine.high %v917_v26, %v925_v57 }
 0x37c   :  { %9168 = vmatpush1.bf16.msra.mxu0 %v14068_v12  ;;  %9209 = vmatpush1.bf16.msra.mxu1 %v14324_v3  ;;  %v1181_v48 = vld [vmem:[#allocation8 + $0x1b60] sm:$0xff] }
 0x37d   :  { %9169 = vmatprep.subr.bf16.mxu0 %v14085_v13  ;;  %9210 = vmatprep.subr.bf16.mxu1 %v14341_v16  ;;  %v14389_v58 = vcombine.high %v1173_v0, %v1181_v48  ;;  %v933_v2 = vld [vmem:[#allocation8 + $0x13a0] sm:$0xff]  ;;  %v14388_v33 = vcombine.low %v1173_v0, %v1181_v48 }
 0x37e   :  { %v941_v12 = vld [vmem:[#allocation8 + $0x13e0] sm:$0xff] }
 0x37f   :  { %v1189_v4 = vld [vmem:[#allocation8 + $0x1ba0] sm:$0xff]  ;;  %v14149_v35 = vcombine.high %v933_v2, %v941_v12 }
 0x380   :  { %9170 = vmatpush1.bf16.msra.mxu0 %v14084_v19  ;;  %9211 = vmatpush1.bf16.msra.mxu1 %v14340_v7  ;;  %v1197_v63 = vld [vmem:[#allocation8 + $0x1be0] sm:$0xff]  ;;  %v14132_v7 = vcombine.low %v917_v26, %v925_v57  ;;  %v14148_v57 = vcombine.low %v933_v2, %v941_v12 }
 0x381   :  { %9171 = vmatprep.subr.bf16.mxu0 %v14101_v5  ;;  %9212 = vmatprep.subr.bf16.mxu1 %v14357_v62  ;;  %v14404_v0 = vcombine.low %v1189_v4, %v1197_v63  ;;  %v989_v2 = vld [vmem:[#allocation8 + $0x1560] sm:$0xff] }
 0x382   :  { %v1237_v12 = vld [vmem:[#allocation8 + $0x1d20] sm:$0xff] }
 0x384   :  { %9172 = vmatpush1.bf16.msra.mxu0 %v14100_v9  ;;  %9213 = vmatpush1.bf16.msra.mxu1 %v14356_v46  ;;  %v949_v46 = vld [vmem:[#allocation8 + $0x1420] sm:$0xff] }
 0x385   :  { %9173 = vmatprep.subr.bf16.mxu0 %v14117_v22  ;;  %9214 = vmatprep.subr.bf16.mxu1 %v14373_v25  ;;  %v957_v22 = vld [vmem:[#allocation8 + $0x1460] sm:$0xff] }
 0x386   :  { %v8869_v54 = vpop.f32.mrb[44].mxu0  ;;  %v8910_v13 = vpop.f32.mrb[44].mxu1  ;;  %v14165_v48 = vcombine.high %v949_v46, %v957_v22 }
 0x387   :  { %v8870_v3 = vadd.f32 %v8869_v54, %v15665_v44  ;;  %v8871_v16 = vpop.f32.mrb[45].mxu0  ;;  %v8912_v59 = vpop.f32.mrb[45].mxu1  ;;  %v14405_v44 = vcombine.high %v1189_v4, %v1197_v63  ;;  %v1213_v54 = vld [vmem:[#allocation8 + $0x1c60] sm:$0xff] }
 0x388   :  { %v8872_v10 = vadd.f32 %v8871_v16, %v15667_v55  ;;  %v8873_v19 = vpop.f32.mrb[46].mxu0  ;;  %9174 = vmatpush1.bf16.msra.mxu0 %v14116_v50  ;;  %v8914_v62 = vpop.f32.mrb[46].mxu1  ;;  %9215 = vmatpush1.bf16.msra.mxu1 %v14372_v51  ;;  %v1205_v55 = vld [vmem:[#allocation8 + $0x1c20] sm:$0xff] }
 0x389   :  { %v8911_v5 = vadd.f32 %v8910_v13, %v8870_v3  ;;  %v8874_v14 = vpop.f32.mrb[47].mxu0  ;;  %9175 = vmatprep.subr.bf16.mxu0 %v14133_v53  ;;  %v8915_v9 = vpop.f32.mrb[47].mxu1  ;;  %9216 = vmatprep.subr.bf16.mxu1 %v14389_v58  ;;  %v14421_v50 = vcombine.high %v1205_v55, %v1213_v54  ;;  %v965_v51 = vld [vmem:[#allocation8 + $0x14a0] sm:$0xff]  ;;  %v14420_v13 = vcombine.low %v1205_v55, %v1213_v54 }
 0x38a   :  { %v8913_v6 = vadd.f32 %v8912_v59, %v8872_v10  ;;  %v973_v53 = vld [vmem:[#allocation8 + $0x14e0] sm:$0xff] }
 0x38b   :  { %v15676_v25 = vadd.f32 %v8911_v5, %v15569_v30  ;;  %v1221_v58 = vld [vmem:[#allocation8 + $0x1ca0] sm:$0xff]  ;;  %v14164_v30 = vcombine.low %v949_v46, %v957_v22  ;;  %v14181_v16 = vcombine.high %v965_v51, %v973_v53  ;;  %v14180_v4 = vcombine.low %v965_v51, %v973_v53 }
 0x38c   :  { %v15679_v26 = vadd.f32 %v8913_v6, %v15573_v37  ;;  %9176 = vmatpush1.bf16.msra.mxu0 %v14132_v7  ;;  %9217 = vmatpush1.bf16.msra.mxu1 %v14388_v33  ;;  %v1229_v3 = vld [vmem:[#allocation8 + $0x1ce0] sm:$0xff] }
 0x38d   :  { %9177 = vmatprep.subr.bf16.mxu0 %v14149_v35  ;;  %9218 = vmatprep.subr.bf16.mxu1 %v14405_v44  ;;  %v14437_v37 = vcombine.high %v1221_v58, %v1229_v3  ;;  %v981_v10 = vld [vmem:[#allocation8 + $0x1520] sm:$0xff]  ;;  %v14436_v63 = vcombine.low %v1221_v58, %v1229_v3 }
 0x38e   :  { %v1245_v59 = vld [vmem:[#allocation8 + $0x1d60] sm:$0xff]  ;;  %v14197_v19 = vcombine.high %v981_v10, %v989_v2  ;;  %v14196_v35 = vcombine.low %v981_v10, %v989_v2 }
 0x38f   :  { %v14453_v7 = vcombine.high %v1237_v12, %v1245_v59  ;;  %v997_v5 = vld [vmem:[#allocation8 + $0x15a0] sm:$0xff]  ;;  %v14452_v6 = vcombine.low %v1237_v12, %v1245_v59 }
 0x390   :  { %9178 = vmatpush1.bf16.msra.mxu0 %v14148_v57  ;;  %9219 = vmatpush1.bf16.msra.mxu1 %v14404_v0  ;;  %v1005_v62 = vld [vmem:[#allocation8 + $0x15e0] sm:$0xff] }
 0x391   :  { %9179 = vmatprep.subr.bf16.mxu0 %v14165_v48  ;;  %9220 = vmatprep.subr.bf16.mxu1 %v14421_v50  ;;  %v1253_v14 = vld [vmem:[#allocation8 + $0x1da0] sm:$0xff]  ;;  %v14213_v9 = vcombine.high %v997_v5, %v1005_v62  ;;  %v14212_v57 = vcombine.low %v997_v5, %v1005_v62 }
 0x392   :  { %v1261_v33 = vld [vmem:[#allocation8 + $0x1de0] sm:$0xff] }
 0x393   :  { %v14469_v44 = vcombine.high %v1253_v14, %v1261_v33  ;;  %v1013_v46 = vld [vmem:[#allocation8 + $0x1620] sm:$0xff]  ;;  %v14468_v0 = vcombine.low %v1253_v14, %v1261_v33 }
 0x394   :  { %9180 = vmatpush1.bf16.msra.mxu0 %v14164_v30  ;;  %9221 = vmatpush1.bf16.msra.mxu1 %v14420_v13  ;;  %v1021_v22 = vld [vmem:[#allocation8 + $0x1660] sm:$0xff] }
 0x395   :  { %9181 = vmatprep.subr.bf16.mxu0 %v14181_v16  ;;  %9222 = vmatprep.subr.bf16.mxu1 %v14437_v37  ;;  %v1269_v55 = vld [vmem:[#allocation8 + $0x1e20] sm:$0xff]  ;;  %v14229_v48 = vcombine.high %v1013_v46, %v1021_v22  ;;  %v14228_v30 = vcombine.low %v1013_v46, %v1021_v22  ;;  %v310_v46 = vld [vmem:[#allocation8 + $0x28] sm:$0xff] }
 0x396   :  { %v1277_v54 = vld [vmem:[#allocation8 + $0x1e60] sm:$0xff]  ;;  %v318_v22 = vld [vmem:[#allocation8 + $0x68] sm:$0xff] }
 0x397   :  { %v14485_v50 = vcombine.high %v1269_v55, %v1277_v54  ;;  %v1029_v51 = vld [vmem:[#allocation8 + $0x16a0] sm:$0xff]  ;;  %v14484_v13 = vcombine.low %v1269_v55, %v1277_v54  ;;  %v566_v55 = vld [vmem:[#allocation8 + $0x828] sm:$0xff] }
 0x398   :  { %9182 = vmatpush1.bf16.msra.mxu0 %v14180_v4  ;;  %9223 = vmatpush1.bf16.msra.mxu1 %v14436_v63  ;;  %v1037_v53 = vld [vmem:[#allocation8 + $0x16e0] sm:$0xff]  ;;  %v574_v54 = vld [vmem:[#allocation8 + $0x868] sm:$0xff] }
 0x399   :  { %9183 = vmatprep.subr.bf16.mxu0 %v14197_v19  ;;  %9224 = vmatprep.subr.bf16.mxu1 %v14453_v7  ;;  %v1285_v58 = vld [vmem:[#allocation8 + $0x1ea0] sm:$0xff]  ;;  %v14245_v16 = vcombine.high %v1029_v51, %v1037_v53  ;;  %v14244_v4 = vcombine.low %v1029_v51, %v1037_v53  ;;  %v326_v51 = vld [vmem:[#allocation8 + $0xa8] sm:$0xff] }
 0x39a   :  { %v1293_v3 = vld [vmem:[#allocation8 + $0x1ee0] sm:$0xff]  ;;  %v334_v53 = vld [vmem:[#allocation8 + $0xe8] sm:$0xff] }
 0x39b   :  { %v14501_v37 = vcombine.high %v1285_v58, %v1293_v3  ;;  %v1045_v10 = vld [vmem:[#allocation8 + $0x1720] sm:$0xff]  ;;  %v14500_v63 = vcombine.low %v1285_v58, %v1293_v3  ;;  %v582_v58 = vld [vmem:[#allocation8 + $0x8a8] sm:$0xff] }
 0x39c   :  { %9184 = vmatpush1.bf16.msra.mxu0 %v14196_v35  ;;  %9225 = vmatpush1.bf16.msra.mxu1 %v14452_v6  ;;  %v1053_v2 = vld [vmem:[#allocation8 + $0x1760] sm:$0xff]  ;;  %v590_v3 = vld [vmem:[#allocation8 + $0x8e8] sm:$0xff] }
 0x39d   :  { %9185 = vmatprep.subr.bf16.mxu0 %v14213_v9  ;;  %9226 = vmatprep.subr.bf16.mxu1 %v14469_v44  ;;  %v1301_v12 = vld [vmem:[#allocation8 + $0x1f20] sm:$0xff]  ;;  %v14261_v19 = vcombine.high %v1045_v10, %v1053_v2  ;;  %v14260_v35 = vcombine.low %v1045_v10, %v1053_v2  ;;  %v342_v10 = vld [vmem:[#allocation8 + $0x128] sm:$0xff] }
 0x39e   :  { %v1309_v59 = vld [vmem:[#allocation8 + $0x1f60] sm:$0xff]  ;;  %v350_v2 = vld [vmem:[#allocation8 + $0x168] sm:$0xff] }
 0x39f   :  { %v14517_v7 = vcombine.high %v1301_v12, %v1309_v59  ;;  %v1061_v5 = vld [vmem:[#allocation8 + $0x17a0] sm:$0xff]  ;;  %v14516_v6 = vcombine.low %v1301_v12, %v1309_v59  ;;  %v598_v12 = vld [vmem:[#allocation8 + $0x928] sm:$0xff] }
 0x3a0   :  { %9186 = vmatpush1.bf16.msra.mxu0 %v14212_v57  ;;  %9227 = vmatpush1.bf16.msra.mxu1 %v14468_v0  ;;  %v1069_v62 = vld [vmem:[#allocation8 + $0x17e0] sm:$0xff]  ;;  %v606_v59 = vld [vmem:[#allocation8 + $0x968] sm:$0xff] }
 0x3a1   :  { %9187 = vmatprep.subr.bf16.mxu0 %v14229_v48  ;;  %9228 = vmatprep.subr.bf16.mxu1 %v14485_v50  ;;  %v1317_v14 = vld [vmem:[#allocation8 + $0x1fa0] sm:$0xff]  ;;  %v14277_v9 = vcombine.high %v1061_v5, %v1069_v62  ;;  %v14276_v57 = vcombine.low %v1061_v5, %v1069_v62  ;;  %v13527_v48 = vcombine.high %v310_v46, %v318_v22  ;;  %v358_v5 = vld [vmem:[#allocation8 + $0x1a8] sm:$0xff] }
 0x3a2   :  { %v1325_v33 = vld [vmem:[#allocation8 + $0x1fe0] sm:$0xff]  ;;  %v13783_v50 = vcombine.high %v566_v55, %v574_v54  ;;  %v366_v62 = vld [vmem:[#allocation8 + $0x1e8] sm:$0xff] }
 0x3a3   :  { %v14533_v44 = vcombine.high %v1317_v14, %v1325_v33  ;;  %v14532_v0 = vcombine.low %v1317_v14, %v1325_v33  ;;  %v614_v14 = vld [vmem:[#allocation8 + $0x9a8] sm:$0xff] }
 0x3a4   :  { %9188 = vmatpush1.bf16.msra.mxu0 %v14228_v30  ;;  %9229 = vmatpush1.bf16.msra.mxu1 %v14484_v13  ;;  %v13526_v30 = vcombine.low %v310_v46, %v318_v22  ;;  %v13782_v13 = vcombine.low %v566_v55, %v574_v54  ;;  %v622_v33 = vld [vmem:[#allocation8 + $0x9e8] sm:$0xff] }
 0x3a5   :  { %9189 = vmatprep.subr.bf16.mxu0 %v14245_v16  ;;  %9230 = vmatprep.subr.bf16.mxu1 %v14501_v37  ;;  %v13543_v16 = vcombine.high %v326_v51, %v334_v53  ;;  %v13799_v37 = vcombine.high %v582_v58, %v590_v3  ;;  %v374_v46 = vld [vmem:[#allocation8 + $0x228] sm:$0xff] }
 0x3a6   :  { %v382_v22 = vld [vmem:[#allocation8 + $0x268] sm:$0xff] }
 0x3a7   :  { %v630_v55 = vld [vmem:[#allocation8 + $0xa28] sm:$0xff] }
 0x3a8   :  { %9190 = vmatpush1.bf16.msra.mxu0 %v14244_v4  ;;  %9231 = vmatpush1.bf16.msra.mxu1 %v14500_v63  ;;  %v13542_v4 = vcombine.low %v326_v51, %v334_v53  ;;  %v13798_v63 = vcombine.low %v582_v58, %v590_v3  ;;  %v638_v54 = vld [vmem:[#allocation8 + $0xa68] sm:$0xff] }
 0x3a9   :  { %9191 = vmatprep.subr.bf16.mxu0 %v14261_v19  ;;  %9232 = vmatprep.subr.bf16.mxu1 %v14517_v7  ;;  %v13559_v19 = vcombine.high %v342_v10, %v350_v2  ;;  %v13815_v7 = vcombine.high %v598_v12, %v606_v59  ;;  %v390_v51 = vld [vmem:[#allocation8 + $0x2a8] sm:$0xff] }
 0x3aa   :  { %v398_v53 = vld [vmem:[#allocation8 + $0x2e8] sm:$0xff] }
 0x3ab   :  { %v646_v58 = vld [vmem:[#allocation8 + $0xaa8] sm:$0xff] }
 0x3ac   :  { %9192 = vmatpush1.bf16.msra.mxu0 %v14260_v35  ;;  %9233 = vmatpush1.bf16.msra.mxu1 %v14516_v6  ;;  %v13558_v35 = vcombine.low %v342_v10, %v350_v2  ;;  %v13814_v6 = vcombine.low %v598_v12, %v606_v59  ;;  %v654_v3 = vld [vmem:[#allocation8 + $0xae8] sm:$0xff] }
 0x3ad   :  { %9193 = vmatprep.subr.bf16.mxu0 %v14277_v9  ;;  %9234 = vmatprep.subr.bf16.mxu1 %v14533_v44  ;;  %v13575_v9 = vcombine.high %v358_v5, %v366_v62  ;;  %v13831_v44 = vcombine.high %v614_v14, %v622_v33  ;;  %v406_v10 = vld [vmem:[#allocation8 + $0x328] sm:$0xff] }
 0x3ae   :  { %v414_v2 = vld [vmem:[#allocation8 + $0x368] sm:$0xff] }
 0x3af   :  { %v662_v12 = vld [vmem:[#allocation8 + $0xb28] sm:$0xff] }
 0x3b0   :  { %9194 = vmatpush1.bf16.msra.mxu0 %v14276_v57  ;;  %9235 = vmatpush1.bf16.msra.mxu1 %v14532_v0  ;;  %v13574_v57 = vcombine.low %v358_v5, %v366_v62  ;;  %v13830_v0 = vcombine.low %v614_v14, %v622_v33  ;;  %v670_v59 = vld [vmem:[#allocation8 + $0xb68] sm:$0xff] }
 0x3b1   :  { %9245 = vmatprep.subr.bf16.mxu0 %v13527_v48  ;;  %9286 = vmatprep.subr.bf16.mxu1 %v13783_v50  ;;  %v13591_v48 = vcombine.high %v374_v46, %v382_v22  ;;  %v13847_v50 = vcombine.high %v630_v55, %v638_v54  ;;  %v13879_v5 = vcombine.high %v662_v12, %v670_v59  ;;  %v422_v62 = vld [vmem:[#allocation8 + $0x3a8] sm:$0xff] }
 0x3b2   :  { %v430_v14 = vld [vmem:[#allocation8 + $0x3e8] sm:$0xff] }
 0x3b3   :  { %9196 = vmatmul.mubr.bf16.vlgmr.msra.gmra.mrb[60].mxu0 %v15585_v27  ;;  %9237 = vmatmul.mubr.bf16.vlgmr.msra.gmra.mrb[60].mxu1 %v15587_v32 }
 0x3b4   :  { %9246 = vmatpush1.bf16.msra.mxu0 %v13526_v30  ;;  %9287 = vmatpush1.bf16.msra.mxu1 %v13782_v13  ;;  %v13590_v30 = vcombine.low %v374_v46, %v382_v22  ;;  %v13846_v13 = vcombine.low %v630_v55, %v638_v54  ;;  %v13622_v55 = vcombine.low %v406_v10, %v414_v2 }
 0x3b5   :  { %9247 = vmatprep.subr.bf16.mxu0 %v13543_v16  ;;  %9288 = vmatprep.subr.bf16.mxu1 %v13799_v37  ;;  %v13607_v16 = vcombine.high %v390_v51, %v398_v53  ;;  %v13863_v37 = vcombine.high %v646_v58, %v654_v3 }
 0x3b6   :  { %9277 = vmatprep.mubr.bf16.mxu0 %v15541_v31  ;;  %9318 = vmatprep.mubr.bf16.mxu1 %v15544_v34 }
 0x3b8   :  { %9248 = vmatpush1.bf16.msra.mxu0 %v13542_v4  ;;  %9289 = vmatpush1.bf16.msra.mxu1 %v13798_v63  ;;  %v13606_v4 = vcombine.low %v390_v51, %v398_v53  ;;  %v13862_v63 = vcombine.low %v646_v58, %v654_v3  ;;  %v438_v58 = vld [vmem:[#allocation8 + $0x428] sm:$0xff] }
 0x3b9   :  { %9249 = vmatprep.subr.bf16.mxu0 %v13559_v19  ;;  %9290 = vmatprep.subr.bf16.mxu1 %v13815_v7  ;;  %v13623_v19 = vcombine.high %v406_v10, %v414_v2  ;;  %v446_v3 = vld [vmem:[#allocation8 + $0x468] sm:$0xff] }
 0x3ba   :  { %v13655_v10 = vcombine.high %v438_v58, %v446_v3 }
 0x3bc   :  { %9250 = vmatpush1.bf16.msra.mxu0 %v13558_v35  ;;  %9291 = vmatpush1.bf16.msra.mxu1 %v13814_v6  ;;  %v678_v6 = vld [vmem:[#allocation8 + $0xba8] sm:$0xff] }
 0x3bd   :  { %9251 = vmatprep.subr.bf16.mxu0 %v13575_v9  ;;  %9292 = vmatprep.subr.bf16.mxu1 %v13831_v44  ;;  %v686_v9 = vld [vmem:[#allocation8 + $0xbe8] sm:$0xff] }
 0x3be   :  { %v13895_v53 = vcombine.high %v678_v6, %v686_v9 }
 0x3c0   :  { %9252 = vmatpush1.bf16.msra.mxu0 %v13574_v57  ;;  %9293 = vmatpush1.bf16.msra.mxu1 %v13830_v0 }
 0x3c1   :  { %9253 = vmatprep.subr.bf16.mxu0 %v13591_v48  ;;  %9294 = vmatprep.subr.bf16.mxu1 %v13847_v50  ;;  %v13878_v48 = vcombine.low %v662_v12, %v670_v59  ;;  %v13639_v50 = vcombine.high %v422_v62, %v430_v14  ;;  %v718_v12 = vld [vmem:[#allocation8 + $0xce8] sm:$0xff]  ;;  %v13654_v59 = vcombine.low %v438_v58, %v446_v3 }
 0x3c4   :  { %9254 = vmatpush1.bf16.msra.mxu0 %v13590_v30  ;;  %9295 = vmatpush1.bf16.msra.mxu1 %v13846_v13  ;;  %v694_v30 = vld [vmem:[#allocation8 + $0xc28] sm:$0xff] }
 0x3c5   :  { %9255 = vmatprep.subr.bf16.mxu0 %v13607_v16  ;;  %9296 = vmatprep.subr.bf16.mxu1 %v13863_v37  ;;  %v702_v13 = vld [vmem:[#allocation8 + $0xc68] sm:$0xff]  ;;  %v13638_v16 = vcombine.low %v422_v62, %v430_v14  ;;  %v13894_v37 = vcombine.low %v678_v6, %v686_v9 }
 0x3c6   :  { %v8951_v7 = vpop.f32.mrb[48].mxu0  ;;  %v8992_v33 = vpop.f32.mrb[48].mxu1  ;;  %v13911_v2 = vcombine.high %v694_v30, %v702_v13  ;;  %v478_v62 = vld [vmem:[#allocation8 + $0x568] sm:$0xff] }
 0x3c7   :  { %v8953_v35 = vpop.f32.mrb[49].mxu0  ;;  %v15685_v44 = vadd.f32 %v8992_v33, %v8951_v7  ;;  %v8994_v46 = vpop.f32.mrb[49].mxu1  ;;  %v13910_v7 = vcombine.low %v694_v30, %v702_v13  ;;  %v726_v14 = vld [vmem:[#allocation8 + $0xd28] sm:$0xff] }
 0x3c8   :  { %v8955_v22 = vpop.f32.mrb[50].mxu0  ;;  %9256 = vmatpush1.bf16.msra.mxu0 %v13606_v4  ;;  %v15687_v54 = vadd.f32 %v8994_v46, %v8953_v35  ;;  %v8996_v57 = vpop.f32.mrb[50].mxu1  ;;  %9297 = vmatpush1.bf16.msra.mxu1 %v13862_v63  ;;  %v454_v4 = vld [vmem:[#allocation8 + $0x4a8] sm:$0xff] }
 0x3c9   :  { %v8956_v0 = vpop.f32.mrb[51].mxu0  ;;  %9257 = vmatprep.subr.bf16.mxu0 %v13623_v19  ;;  %v8997_v51 = vpop.f32.mrb[51].mxu1  ;;  %9298 = vmatprep.subr.bf16.mxu1 %v13879_v5  ;;  %v462_v63 = vld [vmem:[#allocation8 + $0x4e8] sm:$0xff] }
 0x3ca   :  { %v710_v19 = vld [vmem:[#allocation8 + $0xca8] sm:$0xff]  ;;  %v13671_v5 = vcombine.high %v454_v4, %v462_v63  ;;  %v13670_v6 = vcombine.low %v454_v4, %v462_v63 }
 0x3cb   :  { %v13927_v33 = vcombine.high %v710_v19, %v718_v12  ;;  %v470_v35 = vld [vmem:[#allocation8 + $0x528] sm:$0xff]  ;;  %v13926_v9 = vcombine.low %v710_v19, %v718_v12 }
 0x3cc   :  { %9258 = vmatpush1.bf16.msra.mxu0 %v13622_v55  ;;  %9299 = vmatpush1.bf16.msra.mxu1 %v13878_v48  ;;  %v734_v46 = vld [vmem:[#allocation8 + $0xd68] sm:$0xff]  ;;  %v13687_v22 = vcombine.high %v470_v35, %v478_v62  ;;  %v13686_v51 = vcombine.low %v470_v35, %v478_v62 }
 0x3cd   :  { %9259 = vmatprep.subr.bf16.mxu0 %v13639_v50  ;;  %9300 = vmatprep.subr.bf16.mxu1 %v13895_v53  ;;  %v13943_v55 = vcombine.high %v726_v14, %v734_v46  ;;  %v486_v57 = vld [vmem:[#allocation8 + $0x5a8] sm:$0xff]  ;;  %v13942_v53 = vcombine.low %v726_v14, %v734_v46 }
 0x3ce   :  { %v494_v0 = vld [vmem:[#allocation8 + $0x5e8] sm:$0xff] }
 0x3cf   :  { %v742_v48 = vld [vmem:[#allocation8 + $0xda8] sm:$0xff]  ;;  %v13703_v58 = vcombine.high %v486_v57, %v494_v0 }
 0x3d0   :  { %9260 = vmatpush1.bf16.msra.mxu0 %v13638_v16  ;;  %9301 = vmatpush1.bf16.msra.mxu1 %v13894_v37  ;;  %v750_v50 = vld [vmem:[#allocation8 + $0xde8] sm:$0xff] }
 0x3d1   :  { %9261 = vmatprep.subr.bf16.mxu0 %v13655_v10  ;;  %9302 = vmatprep.subr.bf16.mxu1 %v13911_v2  ;;  %v13959_v3 = vcombine.high %v742_v48, %v750_v50  ;;  %v502_v30 = vld [vmem:[#allocation8 + $0x628] sm:$0xff]  ;;  %v13702_v10 = vcombine.low %v486_v57, %v494_v0  ;;  %v13958_v2 = vcombine.low %v742_v48, %v750_v50 }
 0x3d2   :  { %v510_v13 = vld [vmem:[#allocation8 + $0x668] sm:$0xff] }
 0x3d3   :  { %v758_v16 = vld [vmem:[#allocation8 + $0xe28] sm:$0xff]  ;;  %v13719_v4 = vcombine.high %v502_v30, %v510_v13 }
 0x3d4   :  { %9262 = vmatpush1.bf16.msra.mxu0 %v13654_v59  ;;  %9303 = vmatpush1.bf16.msra.mxu1 %v13910_v7  ;;  %v766_v37 = vld [vmem:[#allocation8 + $0xe68] sm:$0xff] }
 0x3d5   :  { %9263 = vmatprep.subr.bf16.mxu0 %v13671_v5  ;;  %9304 = vmatprep.subr.bf16.mxu1 %v13927_v33  ;;  %v13975_v63 = vcombine.high %v758_v16, %v766_v37  ;;  %v518_v19 = vld [vmem:[#allocation8 + $0x6a8] sm:$0xff]  ;;  %v13718_v5 = vcombine.low %v502_v30, %v510_v13  ;;  %v13974_v33 = vcombine.low %v758_v16, %v766_v37 }
 0x3d6   :  { %v526_v12 = vld [vmem:[#allocation8 + $0x6e8] sm:$0xff] }
 0x3d7   :  { %v774_v59 = vld [vmem:[#allocation8 + $0xea8] sm:$0xff]  ;;  %v13735_v35 = vcombine.high %v518_v19, %v526_v12 }
 0x3d8   :  { %9264 = vmatpush1.bf16.msra.mxu0 %v13670_v6  ;;  %9305 = vmatpush1.bf16.msra.mxu1 %v13926_v9  ;;  %v782_v7 = vld [vmem:[#allocation8 + $0xee8] sm:$0xff] }
 0x3d9   :  { %9265 = vmatprep.subr.bf16.mxu0 %v13687_v22  ;;  %9306 = vmatprep.subr.bf16.mxu1 %v13943_v55  ;;  %v13991_v62 = vcombine.high %v774_v59, %v782_v7  ;;  %v534_v14 = vld [vmem:[#allocation8 + $0x728] sm:$0xff]  ;;  %v13734_v22 = vcombine.low %v518_v19, %v526_v12  ;;  %v13990_v55 = vcombine.low %v774_v59, %v782_v7 }
 0x3da   :  { %v542_v46 = vld [vmem:[#allocation8 + $0x768] sm:$0xff] }
 0x3db   :  { %v790_v6 = vld [vmem:[#allocation8 + $0xf28] sm:$0xff]  ;;  %v13751_v57 = vcombine.high %v534_v14, %v542_v46 }
 0x3dc   :  { %9266 = vmatpush1.bf16.msra.mxu0 %v13686_v51  ;;  %9307 = vmatpush1.bf16.msra.mxu1 %v13942_v53  ;;  %v798_v9 = vld [vmem:[#allocation8 + $0xf68] sm:$0xff] }
 0x3dd   :  { %9267 = vmatprep.subr.bf16.mxu0 %v13703_v58  ;;  %9308 = vmatprep.subr.bf16.mxu1 %v13959_v3  ;;  %v14007_v0 = vcombine.high %v790_v6, %v798_v9  ;;  %v550_v48 = vld [vmem:[#allocation8 + $0x7a8] sm:$0xff]  ;;  %v13750_v58 = vcombine.low %v534_v14, %v542_v46  ;;  %v14006_v3 = vcombine.low %v790_v6, %v798_v9 }
 0x3de   :  { %v558_v50 = vld [vmem:[#allocation8 + $0x7e8] sm:$0xff] }
 0x3df   :  { %v806_v51 = vld [vmem:[#allocation8 + $0xfa8] sm:$0xff]  ;;  %v13767_v30 = vcombine.high %v550_v48, %v558_v50 }
 0x3e0   :  { %9268 = vmatpush1.bf16.msra.mxu0 %v13702_v10  ;;  %9309 = vmatpush1.bf16.msra.mxu1 %v13958_v2  ;;  %v814_v53 = vld [vmem:[#allocation8 + $0xfe8] sm:$0xff] }
 0x3e1   :  { %9269 = vmatprep.subr.bf16.mxu0 %v13719_v4  ;;  %9310 = vmatprep.subr.bf16.mxu1 %v13975_v63  ;;  %v14023_v13 = vcombine.high %v806_v51, %v814_v53  ;;  %v822_v16 = vld [vmem:[#allocation8 + $0x1028] sm:$0xff]  ;;  %v13766_v4 = vcombine.low %v550_v48, %v558_v50  ;;  %v14022_v63 = vcombine.low %v806_v51, %v814_v53 }
 0x3e2   :  { %v830_v37 = vld [vmem:[#allocation8 + $0x1068] sm:$0xff] }
 0x3e3   :  { %v1078_v10 = vld [vmem:[#allocation8 + $0x1828] sm:$0xff]  ;;  %v14039_v19 = vcombine.high %v822_v16, %v830_v37 }
 0x3e4   :  { %9270 = vmatpush1.bf16.msra.mxu0 %v13718_v5  ;;  %9311 = vmatpush1.bf16.msra.mxu1 %v13974_v33  ;;  %v1086_v2 = vld [vmem:[#allocation8 + $0x1868] sm:$0xff] }
 0x3e5   :  { %9271 = vmatprep.subr.bf16.mxu0 %v13735_v35  ;;  %9312 = vmatprep.subr.bf16.mxu1 %v13991_v62  ;;  %v14295_v12 = vcombine.high %v1078_v10, %v1086_v2  ;;  %v838_v59 = vld [vmem:[#allocation8 + $0x10a8] sm:$0xff]  ;;  %v14038_v35 = vcombine.low %v822_v16, %v830_v37  ;;  %v14294_v62 = vcombine.low %v1078_v10, %v1086_v2 }
 0x3e6   :  { %v846_v7 = vld [vmem:[#allocation8 + $0x10e8] sm:$0xff] }
 0x3e7   :  { %v1094_v5 = vld [vmem:[#allocation8 + $0x18a8] sm:$0xff]  ;;  %v14055_v14 = vcombine.high %v838_v59, %v846_v7 }
 0x3e8   :  { %9272 = vmatpush1.bf16.msra.mxu0 %v13734_v22  ;;  %9313 = vmatpush1.bf16.msra.mxu1 %v13990_v55  ;;  %v1102_v33 = vld [vmem:[#allocation8 + $0x18e8] sm:$0xff] }
 0x3e9   :  { %9273 = vmatprep.subr.bf16.mxu0 %v13751_v57  ;;  %9314 = vmatprep.subr.bf16.mxu1 %v14007_v0  ;;  %v14311_v46 = vcombine.high %v1094_v5, %v1102_v33  ;;  %v854_v6 = vld [vmem:[#allocation8 + $0x1128] sm:$0xff]  ;;  %v14054_v57 = vcombine.low %v838_v59, %v846_v7  ;;  %v14310_v0 = vcombine.low %v1094_v5, %v1102_v33 }
 0x3ea   :  { %v862_v9 = vld [vmem:[#allocation8 + $0x1168] sm:$0xff] }
 0x3eb   :  { %v1110_v22 = vld [vmem:[#allocation8 + $0x1928] sm:$0xff]  ;;  %v14071_v48 = vcombine.high %v854_v6, %v862_v9 }
 0x3ec   :  { %9274 = vmatpush1.bf16.msra.mxu0 %v13750_v58  ;;  %9315 = vmatpush1.bf16.msra.mxu1 %v14006_v3  ;;  %v1118_v55 = vld [vmem:[#allocation8 + $0x1968] sm:$0xff] }
 0x3ed   :  { %9275 = vmatprep.subr.bf16.mxu0 %v13767_v30  ;;  %9316 = vmatprep.subr.bf16.mxu1 %v14023_v13  ;;  %v14327_v50 = vcombine.high %v1110_v22, %v1118_v55  ;;  %v870_v51 = vld [vmem:[#allocation8 + $0x11a8] sm:$0xff]  ;;  %v14070_v30 = vcombine.low %v854_v6, %v862_v9  ;;  %v14326_v13 = vcombine.low %v1110_v22, %v1118_v55 }
 0x3ee   :  { %v878_v53 = vld [vmem:[#allocation8 + $0x11e8] sm:$0xff] }
 0x3ef   :  { %v1126_v58 = vld [vmem:[#allocation8 + $0x19a8] sm:$0xff]  ;;  %v14087_v16 = vcombine.high %v870_v51, %v878_v53 }
 0x3f0   :  { %9276 = vmatpush1.bf16.msra.mxu0 %v13766_v4  ;;  %9317 = vmatpush1.bf16.msra.mxu1 %v14022_v63  ;;  %v1134_v3 = vld [vmem:[#allocation8 + $0x19e8] sm:$0xff] }
 0x3f1   :  { %9327 = vmatprep.subr.bf16.mxu0 %v14039_v19  ;;  %9368 = vmatprep.subr.bf16.mxu1 %v14295_v12  ;;  %v14343_v37 = vcombine.high %v1126_v58, %v1134_v3  ;;  %v886_v10 = vld [vmem:[#allocation8 + $0x1228] sm:$0xff]  ;;  %v14086_v19 = vcombine.low %v870_v51, %v878_v53  ;;  %v14342_v12 = vcombine.low %v1126_v58, %v1134_v3 }
 0x3f2   :  { %v894_v2 = vld [vmem:[#allocation8 + $0x1268] sm:$0xff] }
 0x3f3   :  { %9278 = vmatmul.mubr.bf16.vlgmr.msra.gmra.mrb[64].mxu0 %v15557_v39  ;;  %9319 = vmatmul.mubr.bf16.vlgmr.msra.gmra.mrb[64].mxu1 %v15559_v43  ;;  %v1142_v4 = vld [vmem:[#allocation8 + $0x1a28] sm:$0xff]  ;;  %v14103_v59 = vcombine.high %v886_v10, %v894_v2 }
 0x3f4   :  { %9328 = vmatpush1.bf16.msra.mxu0 %v14038_v35  ;;  %9369 = vmatpush1.bf16.msra.mxu1 %v14294_v62  ;;  %v1150_v63 = vld [vmem:[#allocation8 + $0x1a68] sm:$0xff] }
 0x3f5   :  { %9329 = vmatprep.subr.bf16.mxu0 %v14055_v14  ;;  %9370 = vmatprep.subr.bf16.mxu1 %v14311_v46  ;;  %v14359_v7 = vcombine.high %v1142_v4, %v1150_v63  ;;  %v902_v5 = vld [vmem:[#allocation8 + $0x12a8] sm:$0xff]  ;;  %v14102_v14 = vcombine.low %v886_v10, %v894_v2  ;;  %v14358_v46 = vcombine.low %v1142_v4, %v1150_v63 }
 0x3f6   :  { %9359 = vmatprep.mubr.bf16.mxu0 %v15561_v49  ;;  %9400 = vmatprep.mubr.bf16.mxu1 %v15564_v52  ;;  %v910_v33 = vld [vmem:[#allocation8 + $0x12e8] sm:$0xff] }
 0x3f7   :  { %v1158_v35 = vld [vmem:[#allocation8 + $0x1aa8] sm:$0xff]  ;;  %v14119_v6 = vcombine.high %v902_v5, %v910_v33 }
 0x3f8   :  { %9330 = vmatpush1.bf16.msra.mxu0 %v14054_v57  ;;  %9371 = vmatpush1.bf16.msra.mxu1 %v14310_v0  ;;  %v1166_v62 = vld [vmem:[#allocation8 + $0x1ae8] sm:$0xff] }
 0x3f9   :  { %9331 = vmatprep.subr.bf16.mxu0 %v14071_v48  ;;  %9372 = vmatprep.subr.bf16.mxu1 %v14327_v50  ;;  %v14375_v9 = vcombine.high %v1158_v35, %v1166_v62  ;;  %v918_v22 = vld [vmem:[#allocation8 + $0x1328] sm:$0xff]  ;;  %v14118_v48 = vcombine.low %v902_v5, %v910_v33  ;;  %v14374_v50 = vcombine.low %v1158_v35, %v1166_v62 }
 0x3fa   :  { %v926_v55 = vld [vmem:[#allocation8 + $0x1368] sm:$0xff] }
 0x3fb   :  { %v1174_v57 = vld [vmem:[#allocation8 + $0x1b28] sm:$0xff]  ;;  %v14135_v51 = vcombine.high %v918_v22, %v926_v55 }
 0x3fc   :  { %9332 = vmatpush1.bf16.msra.mxu0 %v14070_v30  ;;  %9373 = vmatpush1.bf16.msra.mxu1 %v14326_v13  ;;  %v1182_v0 = vld [vmem:[#allocation8 + $0x1b68] sm:$0xff] }
 0x3fd   :  { %9333 = vmatprep.subr.bf16.mxu0 %v14087_v16  ;;  %9374 = vmatprep.subr.bf16.mxu1 %v14343_v37  ;;  %v14391_v58 = vcombine.high %v1174_v57, %v1182_v0  ;;  %v934_v3 = vld [vmem:[#allocation8 + $0x13a8] sm:$0xff]  ;;  %v14390_v33 = vcombine.low %v1174_v57, %v1182_v0 }
 0x3fe   :  { %v942_v30 = vld [vmem:[#allocation8 + $0x13e8] sm:$0xff] }
 0x3ff   :  { %v1190_v10 = vld [vmem:[#allocation8 + $0x1ba8] sm:$0xff]  ;;  %v14151_v35 = vcombine.high %v934_v3, %v942_v30 }
 0x400   :  { %9334 = vmatpush1.bf16.msra.mxu0 %v14086_v19  ;;  %9375 = vmatpush1.bf16.msra.mxu1 %v14342_v12  ;;  %v1198_v2 = vld [vmem:[#allocation8 + $0x1be8] sm:$0xff]  ;;  %v14134_v12 = vcombine.low %v918_v22, %v926_v55  ;;  %v14150_v55 = vcombine.low %v934_v3, %v942_v30 }
 0x401   :  { %9335 = vmatprep.subr.bf16.mxu0 %v14103_v59  ;;  %9376 = vmatprep.subr.bf16.mxu1 %v14359_v7  ;;  %v14406_v57 = vcombine.low %v1190_v10, %v1198_v2  ;;  %v990_v3 = vld [vmem:[#allocation8 + $0x1568] sm:$0xff] }
 0x402   :  { %v1238_v30 = vld [vmem:[#allocation8 + $0x1d28] sm:$0xff] }
 0x404   :  { %9336 = vmatpush1.bf16.msra.mxu0 %v14102_v14  ;;  %9377 = vmatpush1.bf16.msra.mxu1 %v14358_v46  ;;  %v950_v46 = vld [vmem:[#allocation8 + $0x1428] sm:$0xff] }
 0x405   :  { %9337 = vmatprep.subr.bf16.mxu0 %v14119_v6  ;;  %9378 = vmatprep.subr.bf16.mxu1 %v14375_v9  ;;  %v958_v6 = vld [vmem:[#allocation8 + $0x1468] sm:$0xff] }
 0x406   :  { %v9033_v53 = vpop.f32.mrb[52].mxu0  ;;  %v9074_v16 = vpop.f32.mrb[52].mxu1  ;;  %v14167_v0 = vcombine.high %v950_v46, %v958_v6 }
 0x407   :  { %v9034_v13 = vadd.f32 %v9033_v53, %v15685_v44  ;;  %v9035_v37 = vpop.f32.mrb[53].mxu0  ;;  %v9076_v63 = vpop.f32.mrb[53].mxu1  ;;  %v14407_v44 = vcombine.high %v1190_v10, %v1198_v2  ;;  %v1214_v53 = vld [vmem:[#allocation8 + $0x1c68] sm:$0xff] }
 0x408   :  { %v9036_v4 = vadd.f32 %v9035_v37, %v15687_v54  ;;  %v9037_v19 = vpop.f32.mrb[54].mxu0  ;;  %9338 = vmatpush1.bf16.msra.mxu0 %v14118_v48  ;;  %v9078_v7 = vpop.f32.mrb[54].mxu1  ;;  %9379 = vmatpush1.bf16.msra.mxu1 %v14374_v50  ;;  %v1206_v54 = vld [vmem:[#allocation8 + $0x1c28] sm:$0xff] }
 0x409   :  { %v9075_v59 = vadd.f32 %v9074_v16, %v9034_v13  ;;  %v9038_v5 = vpop.f32.mrb[55].mxu0  ;;  %9339 = vmatprep.subr.bf16.mxu0 %v14135_v51  ;;  %v9079_v14 = vpop.f32.mrb[55].mxu1  ;;  %9380 = vmatprep.subr.bf16.mxu1 %v14391_v58  ;;  %v14423_v48 = vcombine.high %v1206_v54, %v1214_v53  ;;  %v966_v50 = vld [vmem:[#allocation8 + $0x14a8] sm:$0xff]  ;;  %v14422_v16 = vcombine.low %v1206_v54, %v1214_v53 }
 0x40a   :  { %v9077_v62 = vadd.f32 %v9076_v63, %v9036_v4  ;;  %v974_v51 = vld [vmem:[#allocation8 + $0x14e8] sm:$0xff] }
 0x40b   :  { %v15696_v9 = vadd.f32 %v9075_v59, %v15571_v36  ;;  %v1222_v58 = vld [vmem:[#allocation8 + $0x1ca8] sm:$0xff]  ;;  %v14166_v36 = vcombine.low %v950_v46, %v958_v6  ;;  %v14183_v37 = vcombine.high %v966_v50, %v974_v51  ;;  %v14182_v10 = vcombine.low %v966_v50, %v974_v51 }
 0x40c   :  { %v15699_v22 = vadd.f32 %v9077_v62, %v15575_v41  ;;  %9340 = vmatpush1.bf16.msra.mxu0 %v14134_v12  ;;  %9381 = vmatpush1.bf16.msra.mxu1 %v14390_v33  ;;  %v1230_v13 = vld [vmem:[#allocation8 + $0x1ce8] sm:$0xff] }
 0x40d   :  { %9341 = vmatprep.subr.bf16.mxu0 %v14151_v35  ;;  %9382 = vmatprep.subr.bf16.mxu1 %v14407_v44  ;;  %v14439_v41 = vcombine.high %v1222_v58, %v1230_v13  ;;  %v982_v4 = vld [vmem:[#allocation8 + $0x1528] sm:$0xff]  ;;  %v14438_v2 = vcombine.low %v1222_v58, %v1230_v13 }
 0x40e   :  { %v1246_v63 = vld [vmem:[#allocation8 + $0x1d68] sm:$0xff]  ;;  %v14199_v19 = vcombine.high %v982_v4, %v990_v3  ;;  %v14198_v35 = vcombine.low %v982_v4, %v990_v3 }
 0x40f   :  { %v14455_v12 = vcombine.high %v1238_v30, %v1246_v63  ;;  %v998_v59 = vld [vmem:[#allocation8 + $0x15a8] sm:$0xff]  ;;  %v14454_v62 = vcombine.low %v1238_v30, %v1246_v63 }
 0x410   :  { %9342 = vmatpush1.bf16.msra.mxu0 %v14150_v55  ;;  %9383 = vmatpush1.bf16.msra.mxu1 %v14406_v57  ;;  %v1006_v7 = vld [vmem:[#allocation8 + $0x15e8] sm:$0xff] }
 0x411   :  { %9343 = vmatprep.subr.bf16.mxu0 %v14167_v0  ;;  %9384 = vmatprep.subr.bf16.mxu1 %v14423_v48  ;;  %v1254_v5 = vld [vmem:[#allocation8 + $0x1da8] sm:$0xff]  ;;  %v14215_v14 = vcombine.high %v998_v59, %v1006_v7  ;;  %v14214_v55 = vcombine.low %v998_v59, %v1006_v7 }
 0x412   :  { %v1262_v33 = vld [vmem:[#allocation8 + $0x1de8] sm:$0xff] }
 0x413   :  { %v14471_v44 = vcombine.high %v1254_v5, %v1262_v33  ;;  %v1014_v46 = vld [vmem:[#allocation8 + $0x1628] sm:$0xff]  ;;  %v14470_v57 = vcombine.low %v1254_v5, %v1262_v33 }
 0x414   :  { %9344 = vmatpush1.bf16.msra.mxu0 %v14166_v36  ;;  %9385 = vmatpush1.bf16.msra.mxu1 %v14422_v16  ;;  %v1022_v6 = vld [vmem:[#allocation8 + $0x1668] sm:$0xff] }
 0x415   :  { %9345 = vmatprep.subr.bf16.mxu0 %v14183_v37  ;;  %9386 = vmatprep.subr.bf16.mxu1 %v14439_v41  ;;  %v1270_v54 = vld [vmem:[#allocation8 + $0x1e28] sm:$0xff]  ;;  %v14231_v0 = vcombine.high %v1014_v46, %v1022_v6  ;;  %v14230_v36 = vcombine.low %v1014_v46, %v1022_v6  ;;  %v311_v46 = vld [vmem:[#allocation8 + $0x30] sm:$0xff] }
 0x416   :  { %v1278_v53 = vld [vmem:[#allocation8 + $0x1e68] sm:$0xff]  ;;  %v319_v6 = vld [vmem:[#allocation8 + $0x70] sm:$0xff] }
 0x417   :  { %v14487_v48 = vcombine.high %v1270_v54, %v1278_v53  ;;  %v1030_v50 = vld [vmem:[#allocation8 + $0x16a8] sm:$0xff]  ;;  %v14486_v16 = vcombine.low %v1270_v54, %v1278_v53  ;;  %v567_v54 = vld [vmem:[#allocation8 + $0x830] sm:$0xff] }
 0x418   :  { %9346 = vmatpush1.bf16.msra.mxu0 %v14182_v10  ;;  %9387 = vmatpush1.bf16.msra.mxu1 %v14438_v2  ;;  %v1038_v51 = vld [vmem:[#allocation8 + $0x16e8] sm:$0xff]  ;;  %v575_v53 = vld [vmem:[#allocation8 + $0x870] sm:$0xff] }
 0x419   :  { %9347 = vmatprep.subr.bf16.mxu0 %v14199_v19  ;;  %9388 = vmatprep.subr.bf16.mxu1 %v14455_v12  ;;  %v1286_v58 = vld [vmem:[#allocation8 + $0x1ea8] sm:$0xff]  ;;  %v14247_v37 = vcombine.high %v1030_v50, %v1038_v51  ;;  %v14246_v10 = vcombine.low %v1030_v50, %v1038_v51  ;;  %v327_v50 = vld [vmem:[#allocation8 + $0xb0] sm:$0xff] }
 0x41a   :  { %v1294_v13 = vld [vmem:[#allocation8 + $0x1ee8] sm:$0xff]  ;;  %v335_v51 = vld [vmem:[#allocation8 + $0xf0] sm:$0xff] }
 0x41b   :  { %v14503_v41 = vcombine.high %v1286_v58, %v1294_v13  ;;  %v1046_v4 = vld [vmem:[#allocation8 + $0x1728] sm:$0xff]  ;;  %v14502_v2 = vcombine.low %v1286_v58, %v1294_v13  ;;  %v583_v58 = vld [vmem:[#allocation8 + $0x8b0] sm:$0xff] }
 0x41c   :  { %9348 = vmatpush1.bf16.msra.mxu0 %v14198_v35  ;;  %9389 = vmatpush1.bf16.msra.mxu1 %v14454_v62  ;;  %v1054_v3 = vld [vmem:[#allocation8 + $0x1768] sm:$0xff]  ;;  %v591_v13 = vld [vmem:[#allocation8 + $0x8f0] sm:$0xff] }
 0x41d   :  { %9349 = vmatprep.subr.bf16.mxu0 %v14215_v14  ;;  %9390 = vmatprep.subr.bf16.mxu1 %v14471_v44  ;;  %v1302_v30 = vld [vmem:[#allocation8 + $0x1f28] sm:$0xff]  ;;  %v14263_v19 = vcombine.high %v1046_v4, %v1054_v3  ;;  %v14262_v35 = vcombine.low %v1046_v4, %v1054_v3  ;;  %v343_v4 = vld [vmem:[#allocation8 + $0x130] sm:$0xff] }
 0x41e   :  { %v1310_v63 = vld [vmem:[#allocation8 + $0x1f68] sm:$0xff]  ;;  %v351_v3 = vld [vmem:[#allocation8 + $0x170] sm:$0xff] }
 0x41f   :  { %v14519_v12 = vcombine.high %v1302_v30, %v1310_v63  ;;  %v1062_v59 = vld [vmem:[#allocation8 + $0x17a8] sm:$0xff]  ;;  %v14518_v62 = vcombine.low %v1302_v30, %v1310_v63  ;;  %v599_v30 = vld [vmem:[#allocation8 + $0x930] sm:$0xff] }
 0x420   :  { %9350 = vmatpush1.bf16.msra.mxu0 %v14214_v55  ;;  %9391 = vmatpush1.bf16.msra.mxu1 %v14470_v57  ;;  %v1070_v7 = vld [vmem:[#allocation8 + $0x17e8] sm:$0xff]  ;;  %v607_v63 = vld [vmem:[#allocation8 + $0x970] sm:$0xff] }
 0x421   :  { %9351 = vmatprep.subr.bf16.mxu0 %v14231_v0  ;;  %9392 = vmatprep.subr.bf16.mxu1 %v14487_v48  ;;  %v1318_v5 = vld [vmem:[#allocation8 + $0x1fa8] sm:$0xff]  ;;  %v14279_v14 = vcombine.high %v1062_v59, %v1070_v7  ;;  %v14278_v55 = vcombine.low %v1062_v59, %v1070_v7  ;;  %v13529_v0 = vcombine.high %v311_v46, %v319_v6  ;;  %v359_v59 = vld [vmem:[#allocation8 + $0x1b0] sm:$0xff] }
 0x422   :  { %v1326_v33 = vld [vmem:[#allocation8 + $0x1fe8] sm:$0xff]  ;;  %v13785_v48 = vcombine.high %v567_v54, %v575_v53  ;;  %v367_v7 = vld [vmem:[#allocation8 + $0x1f0] sm:$0xff] }
 0x423   :  { %v14535_v44 = vcombine.high %v1318_v5, %v1326_v33  ;;  %v14534_v57 = vcombine.low %v1318_v5, %v1326_v33  ;;  %v615_v5 = vld [vmem:[#allocation8 + $0x9b0] sm:$0xff] }
 0x424   :  { %9352 = vmatpush1.bf16.msra.mxu0 %v14230_v36  ;;  %9393 = vmatpush1.bf16.msra.mxu1 %v14486_v16  ;;  %v13528_v36 = vcombine.low %v311_v46, %v319_v6  ;;  %v13784_v16 = vcombine.low %v567_v54, %v575_v53  ;;  %v623_v33 = vld [vmem:[#allocation8 + $0x9f0] sm:$0xff] }
 0x425   :  { %9353 = vmatprep.subr.bf16.mxu0 %v14247_v37  ;;  %9394 = vmatprep.subr.bf16.mxu1 %v14503_v41  ;;  %v13545_v37 = vcombine.high %v327_v50, %v335_v51  ;;  %v13801_v41 = vcombine.high %v583_v58, %v591_v13  ;;  %v375_v46 = vld [vmem:[#allocation8 + $0x230] sm:$0xff] }
 0x426   :  { %v383_v6 = vld [vmem:[#allocation8 + $0x270] sm:$0xff] }
 0x427   :  { %v631_v54 = vld [vmem:[#allocation8 + $0xa30] sm:$0xff] }
 0x428   :  { %9354 = vmatpush1.bf16.msra.mxu0 %v14246_v10  ;;  %9395 = vmatpush1.bf16.msra.mxu1 %v14502_v2  ;;  %v13544_v10 = vcombine.low %v327_v50, %v335_v51  ;;  %v13800_v2 = vcombine.low %v583_v58, %v591_v13  ;;  %v639_v53 = vld [vmem:[#allocation8 + $0xa70] sm:$0xff] }
 0x429   :  { %9355 = vmatprep.subr.bf16.mxu0 %v14263_v19  ;;  %9396 = vmatprep.subr.bf16.mxu1 %v14519_v12  ;;  %v13561_v19 = vcombine.high %v343_v4, %v351_v3  ;;  %v13817_v12 = vcombine.high %v599_v30, %v607_v63  ;;  %v391_v50 = vld [vmem:[#allocation8 + $0x2b0] sm:$0xff] }
 0x42a   :  { %v399_v51 = vld [vmem:[#allocation8 + $0x2f0] sm:$0xff] }
 0x42b   :  { %v647_v58 = vld [vmem:[#allocation8 + $0xab0] sm:$0xff] }
 0x42c   :  { %9356 = vmatpush1.bf16.msra.mxu0 %v14262_v35  ;;  %9397 = vmatpush1.bf16.msra.mxu1 %v14518_v62  ;;  %v13560_v35 = vcombine.low %v343_v4, %v351_v3  ;;  %v13816_v62 = vcombine.low %v599_v30, %v607_v63  ;;  %v655_v13 = vld [vmem:[#allocation8 + $0xaf0] sm:$0xff] }
 0x42d   :  { %9357 = vmatprep.subr.bf16.mxu0 %v14279_v14  ;;  %9398 = vmatprep.subr.bf16.mxu1 %v14535_v44  ;;  %v13577_v14 = vcombine.high %v359_v59, %v367_v7  ;;  %v13833_v44 = vcombine.high %v615_v5, %v623_v33  ;;  %v407_v4 = vld [vmem:[#allocation8 + $0x330] sm:$0xff] }
 0x42e   :  { %v415_v3 = vld [vmem:[#allocation8 + $0x370] sm:$0xff] }
 0x42f   :  { %v663_v30 = vld [vmem:[#allocation8 + $0xb30] sm:$0xff] }
 0x430   :  { %9358 = vmatpush1.bf16.msra.mxu0 %v14278_v55  ;;  %9399 = vmatpush1.bf16.msra.mxu1 %v14534_v57  ;;  %v13576_v55 = vcombine.low %v359_v59, %v367_v7  ;;  %v13832_v57 = vcombine.low %v615_v5, %v623_v33  ;;  %v671_v63 = vld [vmem:[#allocation8 + $0xb70] sm:$0xff] }
 0x431   :  { %9409 = vmatprep.subr.bf16.mxu0 %v13529_v0  ;;  %9450 = vmatprep.subr.bf16.mxu1 %v13785_v48  ;;  %v13593_v0 = vcombine.high %v375_v46, %v383_v6  ;;  %v13849_v48 = vcombine.high %v631_v54, %v639_v53  ;;  %v13881_v59 = vcombine.high %v663_v30, %v671_v63  ;;  %v423_v7 = vld [vmem:[#allocation8 + $0x3b0] sm:$0xff] }
 0x432   :  { %v431_v5 = vld [vmem:[#allocation8 + $0x3f0] sm:$0xff] }
 0x433   :  { %9360 = vmatmul.mubr.bf16.vlgmr.msra.gmra.mrb[68].mxu0 %v15585_v27  ;;  %9401 = vmatmul.mubr.bf16.vlgmr.msra.gmra.mrb[68].mxu1 %v15587_v32 }
 0x434   :  { %9410 = vmatpush1.bf16.msra.mxu0 %v13528_v36  ;;  %9451 = vmatpush1.bf16.msra.mxu1 %v13784_v16  ;;  %v13592_v36 = vcombine.low %v375_v46, %v383_v6  ;;  %v13848_v16 = vcombine.low %v631_v54, %v639_v53  ;;  %v13624_v54 = vcombine.low %v407_v4, %v415_v3 }
 0x435   :  { %9411 = vmatprep.subr.bf16.mxu0 %v13545_v37  ;;  %9452 = vmatprep.subr.bf16.mxu1 %v13801_v41  ;;  %v13609_v37 = vcombine.high %v391_v50, %v399_v51  ;;  %v13865_v41 = vcombine.high %v647_v58, %v655_v13 }
 0x436   :  { %9441 = vmatprep.mubr.bf16.mxu0 %v15541_v31  ;;  %9482 = vmatprep.mubr.bf16.mxu1 %v15544_v34 }
 0x438   :  { %9412 = vmatpush1.bf16.msra.mxu0 %v13544_v10  ;;  %9453 = vmatpush1.bf16.msra.mxu1 %v13800_v2  ;;  %v13608_v10 = vcombine.low %v391_v50, %v399_v51  ;;  %v13864_v2 = vcombine.low %v647_v58, %v655_v13  ;;  %v439_v58 = vld [vmem:[#allocation8 + $0x430] sm:$0xff] }
 0x439   :  { %9413 = vmatprep.subr.bf16.mxu0 %v13561_v19  ;;  %9454 = vmatprep.subr.bf16.mxu1 %v13817_v12  ;;  %v13625_v19 = vcombine.high %v407_v4, %v415_v3  ;;  %v447_v13 = vld [vmem:[#allocation8 + $0x470] sm:$0xff] }
 0x43a   :  { %v13657_v4 = vcombine.high %v439_v58, %v447_v13 }
 0x43c   :  { %9414 = vmatpush1.bf16.msra.mxu0 %v13560_v35  ;;  %9455 = vmatpush1.bf16.msra.mxu1 %v13816_v62  ;;  %v679_v62 = vld [vmem:[#allocation8 + $0xbb0] sm:$0xff] }
 0x43d   :  { %9415 = vmatprep.subr.bf16.mxu0 %v13577_v14  ;;  %9456 = vmatprep.subr.bf16.mxu1 %v13833_v44  ;;  %v687_v14 = vld [vmem:[#allocation8 + $0xbf0] sm:$0xff] }
 0x43e   :  { %v13897_v51 = vcombine.high %v679_v62, %v687_v14 }
 0x440   :  { %9416 = vmatpush1.bf16.msra.mxu0 %v13576_v55  ;;  %9457 = vmatpush1.bf16.msra.mxu1 %v13832_v57 }
 0x441   :  { %9417 = vmatprep.subr.bf16.mxu0 %v13593_v0  ;;  %9458 = vmatprep.subr.bf16.mxu1 %v13849_v48  ;;  %v13880_v0 = vcombine.low %v663_v30, %v671_v63  ;;  %v13641_v48 = vcombine.high %v423_v7, %v431_v5  ;;  %v719_v30 = vld [vmem:[#allocation8 + $0xcf0] sm:$0xff]  ;;  %v13656_v63 = vcombine.low %v439_v58, %v447_v13 }
 0x444   :  { %9418 = vmatpush1.bf16.msra.mxu0 %v13592_v36  ;;  %9459 = vmatpush1.bf16.msra.mxu1 %v13848_v16  ;;  %v695_v36 = vld [vmem:[#allocation8 + $0xc30] sm:$0xff] }
 0x445   :  { %9419 = vmatprep.subr.bf16.mxu0 %v13609_v37  ;;  %9460 = vmatprep.subr.bf16.mxu1 %v13865_v41  ;;  %v703_v16 = vld [vmem:[#allocation8 + $0xc70] sm:$0xff]  ;;  %v13640_v37 = vcombine.low %v423_v7, %v431_v5  ;;  %v13896_v41 = vcombine.low %v679_v62, %v687_v14 }
 0x446   :  { %v9115_v12 = vpop.f32.mrb[56].mxu0  ;;  %v9156_v33 = vpop.f32.mrb[56].mxu1  ;;  %v13913_v3 = vcombine.high %v695_v36, %v703_v16  ;;  %v479_v7 = vld [vmem:[#allocation8 + $0x570] sm:$0xff] }
 0x447   :  { %v9117_v35 = vpop.f32.mrb[57].mxu0  ;;  %v15705_v44 = vadd.f32 %v9156_v33, %v9115_v12  ;;  %v9158_v46 = vpop.f32.mrb[57].mxu1  ;;  %v13912_v12 = vcombine.low %v695_v36, %v703_v16  ;;  %v727_v5 = vld [vmem:[#allocation8 + $0xd30] sm:$0xff] }
 0x448   :  { %v9119_v6 = vpop.f32.mrb[58].mxu0  ;;  %9420 = vmatpush1.bf16.msra.mxu0 %v13608_v10  ;;  %v15707_v53 = vadd.f32 %v9158_v46, %v9117_v35  ;;  %v9160_v55 = vpop.f32.mrb[58].mxu1  ;;  %9461 = vmatpush1.bf16.msra.mxu1 %v13864_v2  ;;  %v455_v10 = vld [vmem:[#allocation8 + $0x4b0] sm:$0xff] }
 0x449   :  { %v9120_v57 = vpop.f32.mrb[59].mxu0  ;;  %9421 = vmatprep.subr.bf16.mxu0 %v13625_v19  ;;  %v9161_v50 = vpop.f32.mrb[59].mxu1  ;;  %9462 = vmatprep.subr.bf16.mxu1 %v13881_v59  ;;  %v463_v2 = vld [vmem:[#allocation8 + $0x4f0] sm:$0xff] }
 0x44a   :  { %v711_v19 = vld [vmem:[#allocation8 + $0xcb0] sm:$0xff]  ;;  %v13673_v59 = vcombine.high %v455_v10, %v463_v2  ;;  %v13672_v62 = vcombine.low %v455_v10, %v463_v2 }
 0x44b   :  { %v13929_v33 = vcombine.high %v711_v19, %v719_v30  ;;  %v471_v35 = vld [vmem:[#allocation8 + $0x530] sm:$0xff]  ;;  %v13928_v14 = vcombine.low %v711_v19, %v719_v30 }
 0x44c   :  { %9422 = vmatpush1.bf16.msra.mxu0 %v13624_v54  ;;  %9463 = vmatpush1.bf16.msra.mxu1 %v13880_v0  ;;  %v735_v46 = vld [vmem:[#allocation8 + $0xd70] sm:$0xff]  ;;  %v13689_v6 = vcombine.high %v471_v35, %v479_v7  ;;  %v13688_v50 = vcombine.low %v471_v35, %v479_v7 }
 0x44d   :  { %9423 = vmatprep.subr.bf16.mxu0 %v13641_v48  ;;  %9464 = vmatprep.subr.bf16.mxu1 %v13897_v51  ;;  %v13945_v54 = vcombine.high %v727_v5, %v735_v46  ;;  %v487_v55 = vld [vmem:[#allocation8 + $0x5b0] sm:$0xff]  ;;  %v13944_v51 = vcombine.low %v727_v5, %v735_v46 }
 0x44e   :  { %v495_v57 = vld [vmem:[#allocation8 + $0x5f0] sm:$0xff] }
 0x44f   :  { %v743_v0 = vld [vmem:[#allocation8 + $0xdb0] sm:$0xff]  ;;  %v13705_v58 = vcombine.high %v487_v55, %v495_v57 }
 0x450   :  { %9424 = vmatpush1.bf16.msra.mxu0 %v13640_v37  ;;  %9465 = vmatpush1.bf16.msra.mxu1 %v13896_v41  ;;  %v751_v48 = vld [vmem:[#allocation8 + $0xdf0] sm:$0xff] }
 0x451   :  { %9425 = vmatprep.subr.bf16.mxu0 %v13657_v4  ;;  %9466 = vmatprep.subr.bf16.mxu1 %v13913_v3  ;;  %v13961_v13 = vcombine.high %v743_v0, %v751_v48  ;;  %v503_v36 = vld [vmem:[#allocation8 + $0x630] sm:$0xff]  ;;  %v13704_v4 = vcombine.low %v487_v55, %v495_v57  ;;  %v13960_v3 = vcombine.low %v743_v0, %v751_v48 }
 0x452   :  { %v511_v16 = vld [vmem:[#allocation8 + $0x670] sm:$0xff] }
 0x453   :  { %v759_v37 = vld [vmem:[#allocation8 + $0xe30] sm:$0xff]  ;;  %v13721_v10 = vcombine.high %v503_v36, %v511_v16 }
 0x454   :  { %9426 = vmatpush1.bf16.msra.mxu0 %v13656_v63  ;;  %9467 = vmatpush1.bf16.msra.mxu1 %v13912_v12  ;;  %v767_v41 = vld [vmem:[#allocation8 + $0xe70] sm:$0xff] }
 0x455   :  { %9427 = vmatprep.subr.bf16.mxu0 %v13673_v59  ;;  %9468 = vmatprep.subr.bf16.mxu1 %v13929_v33  ;;  %v13977_v2 = vcombine.high %v759_v37, %v767_v41  ;;  %v519_v19 = vld [vmem:[#allocation8 + $0x6b0] sm:$0xff]  ;;  %v13720_v59 = vcombine.low %v503_v36, %v511_v16  ;;  %v13976_v33 = vcombine.low %v759_v37, %v767_v41 }
 0x456   :  { %v527_v30 = vld [vmem:[#allocation8 + $0x6f0] sm:$0xff] }
 0x457   :  { %v775_v63 = vld [vmem:[#allocation8 + $0xeb0] sm:$0xff]  ;;  %v13737_v35 = vcombine.high %v519_v19, %v527_v30 }
 0x458   :  { %9428 = vmatpush1.bf16.msra.mxu0 %v13672_v62  ;;  %9469 = vmatpush1.bf16.msra.mxu1 %v13928_v14  ;;  %v783_v12 = vld [vmem:[#allocation8 + $0xef0] sm:$0xff] }
 0x459   :  { %9429 = vmatprep.subr.bf16.mxu0 %v13689_v6  ;;  %9470 = vmatprep.subr.bf16.mxu1 %v13945_v54  ;;  %v13993_v7 = vcombine.high %v775_v63, %v783_v12  ;;  %v535_v5 = vld [vmem:[#allocation8 + $0x730] sm:$0xff]  ;;  %v13736_v6 = vcombine.low %v519_v19, %v527_v30  ;;  %v13992_v54 = vcombine.low %v775_v63, %v783_v12 }
 0x45a   :  { %v543_v46 = vld [vmem:[#allocation8 + $0x770] sm:$0xff] }
 0x45b   :  { %v791_v62 = vld [vmem:[#allocation8 + $0xf30] sm:$0xff]  ;;  %v13753_v55 = vcombine.high %v535_v5, %v543_v46 }
 0x45c   :  { %9430 = vmatpush1.bf16.msra.mxu0 %v13688_v50  ;;  %9471 = vmatpush1.bf16.msra.mxu1 %v13944_v51  ;;  %v799_v14 = vld [vmem:[#allocation8 + $0xf70] sm:$0xff] }
 0x45d   :  { %9431 = vmatprep.subr.bf16.mxu0 %v13705_v58  ;;  %9472 = vmatprep.subr.bf16.mxu1 %v13961_v13  ;;  %v14009_v57 = vcombine.high %v791_v62, %v799_v14  ;;  %v551_v0 = vld [vmem:[#allocation8 + $0x7b0] sm:$0xff]  ;;  %v13752_v58 = vcombine.low %v535_v5, %v543_v46  ;;  %v14008_v13 = vcombine.low %v791_v62, %v799_v14 }
 0x45e   :  { %v559_v48 = vld [vmem:[#allocation8 + $0x7f0] sm:$0xff] }
 0x45f   :  { %v807_v50 = vld [vmem:[#allocation8 + $0xfb0] sm:$0xff]  ;;  %v13769_v36 = vcombine.high %v551_v0, %v559_v48 }
 0x460   :  { %9432 = vmatpush1.bf16.msra.mxu0 %v13704_v4  ;;  %9473 = vmatpush1.bf16.msra.mxu1 %v13960_v3  ;;  %v815_v51 = vld [vmem:[#allocation8 + $0xff0] sm:$0xff] }
 0x461   :  { %9433 = vmatprep.subr.bf16.mxu0 %v13721_v10  ;;  %9474 = vmatprep.subr.bf16.mxu1 %v13977_v2  ;;  %v14025_v16 = vcombine.high %v807_v50, %v815_v51  ;;  %v823_v37 = vld [vmem:[#allocation8 + $0x1030] sm:$0xff]  ;;  %v13768_v10 = vcombine.low %v551_v0, %v559_v48  ;;  %v14024_v2 = vcombine.low %v807_v50, %v815_v51 }
 0x462   :  { %v831_v41 = vld [vmem:[#allocation8 + $0x1070] sm:$0xff] }
 0x463   :  { %v1079_v4 = vld [vmem:[#allocation8 + $0x1830] sm:$0xff]  ;;  %v14041_v19 = vcombine.high %v823_v37, %v831_v41 }
 0x464   :  { %9434 = vmatpush1.bf16.msra.mxu0 %v13720_v59  ;;  %9475 = vmatpush1.bf16.msra.mxu1 %v13976_v33  ;;  %v1087_v3 = vld [vmem:[#allocation8 + $0x1870] sm:$0xff] }
 0x465   :  { %9435 = vmatprep.subr.bf16.mxu0 %v13737_v35  ;;  %9476 = vmatprep.subr.bf16.mxu1 %v13993_v7  ;;  %v14297_v30 = vcombine.high %v1079_v4, %v1087_v3  ;;  %v839_v63 = vld [vmem:[#allocation8 + $0x10b0] sm:$0xff]  ;;  %v14040_v35 = vcombine.low %v823_v37, %v831_v41  ;;  %v14296_v7 = vcombine.low %v1079_v4, %v1087_v3 }
 0x466   :  { %v847_v12 = vld [vmem:[#allocation8 + $0x10f0] sm:$0xff] }
 0x467   :  { %v1095_v59 = vld [vmem:[#allocation8 + $0x18b0] sm:$0xff]  ;;  %v14057_v5 = vcombine.high %v839_v63, %v847_v12 }
 0x468   :  { %9436 = vmatpush1.bf16.msra.mxu0 %v13736_v6  ;;  %9477 = vmatpush1.bf16.msra.mxu1 %v13992_v54  ;;  %v1103_v33 = vld [vmem:[#allocation8 + $0x18f0] sm:$0xff] }
 0x469   :  { %9437 = vmatprep.subr.bf16.mxu0 %v13753_v55  ;;  %9478 = vmatprep.subr.bf16.mxu1 %v14009_v57  ;;  %v14313_v46 = vcombine.high %v1095_v59, %v1103_v33  ;;  %v855_v62 = vld [vmem:[#allocation8 + $0x1130] sm:$0xff]  ;;  %v14056_v55 = vcombine.low %v839_v63, %v847_v12  ;;  %v14312_v57 = vcombine.low %v1095_v59, %v1103_v33  ;;  %v9746_v12 = vlaneseq }
 0x46a   :  { %v863_v14 = vld [vmem:[#allocation8 + $0x1170] sm:$0xff] }
 0x46b   :  { %v1111_v6 = vld [vmem:[#allocation8 + $0x1930] sm:$0xff]  ;;  %v14073_v0 = vcombine.high %v855_v62, %v863_v14 }
 0x46c   :  { %9438 = vmatpush1.bf16.msra.mxu0 %v13752_v58  ;;  %9479 = vmatpush1.bf16.msra.mxu1 %v14008_v13  ;;  %v1119_v54 = vld [vmem:[#allocation8 + $0x1970] sm:$0xff] }
 0x46d   :  { %9439 = vmatprep.subr.bf16.mxu0 %v13769_v36  ;;  %9480 = vmatprep.subr.bf16.mxu1 %v14025_v16  ;;  %v14329_v48 = vcombine.high %v1111_v6, %v1119_v54  ;;  %v871_v50 = vld [vmem:[#allocation8 + $0x11b0] sm:$0xff]  ;;  %v14072_v36 = vcombine.low %v855_v62, %v863_v14  ;;  %v14328_v16 = vcombine.low %v1111_v6, %v1119_v54  ;;  %v15713_v6 = vshrl.u32 %v9746_v12, 7 }
 0x46e   :  { %v879_v51 = vld [vmem:[#allocation8 + $0x11f0] sm:$0xff] }
 0x46f   :  { %v1127_v58 = vld [vmem:[#allocation8 + $0x19b0] sm:$0xff]  ;;  %v14089_v37 = vcombine.high %v871_v50, %v879_v51 }
 0x470   :  { %9440 = vmatpush1.bf16.msra.mxu0 %v13768_v10  ;;  %9481 = vmatpush1.bf16.msra.mxu1 %v14024_v2  ;;  %v1135_v13 = vld [vmem:[#allocation8 + $0x19f0] sm:$0xff] }
 0x471   :  { %9491 = vmatprep.subr.bf16.mxu0 %v14041_v19  ;;  %9532 = vmatprep.subr.bf16.mxu1 %v14297_v30  ;;  %v14345_v41 = vcombine.high %v1127_v58, %v1135_v13  ;;  %v887_v4 = vld [vmem:[#allocation8 + $0x1230] sm:$0xff]  ;;  %v14088_v19 = vcombine.low %v871_v50, %v879_v51  ;;  %v14344_v30 = vcombine.low %v1127_v58, %v1135_v13  ;;  %v15715_v51 = vld [vmem:[#allocation11 + $0x8] sm:$0xff] }
 0x472   :  { %v895_v3 = vld [vmem:[#allocation8 + $0x1270] sm:$0xff] }
 0x473   :  { %9442 = vmatmul.mubr.bf16.vlgmr.msra.gmra.mrb[72].mxu0 %v15557_v39  ;;  %9483 = vmatmul.mubr.bf16.vlgmr.msra.gmra.mrb[72].mxu1 %v15559_v43  ;;  %v1143_v10 = vld [vmem:[#allocation8 + $0x1a30] sm:$0xff]  ;;  %v14105_v63 = vcombine.high %v887_v4, %v895_v3 }
 0x474   :  { %9492 = vmatpush1.bf16.msra.mxu0 %v14040_v35  ;;  %9533 = vmatpush1.bf16.msra.mxu1 %v14296_v7  ;;  %v1151_v2 = vld [vmem:[#allocation8 + $0x1a70] sm:$0xff] }
 0x475   :  { %9493 = vmatprep.subr.bf16.mxu0 %v14057_v5  ;;  %9534 = vmatprep.subr.bf16.mxu1 %v14313_v46  ;;  %v14361_v59 = vcombine.high %v1143_v10, %v1151_v2  ;;  %v903_v33 = vld [vmem:[#allocation8 + $0x12b0] sm:$0xff]  ;;  %v14104_v46 = vcombine.low %v887_v4, %v895_v3  ;;  %v14360_v62 = vcombine.low %v1143_v10, %v1151_v2 }
 0x476   :  { %9523 = vmatprep.mubr.bf16.mxu0 %v15561_v49  ;;  %9564 = vmatprep.mubr.bf16.mxu1 %v15564_v52  ;;  %v911_v35 = vld [vmem:[#allocation8 + $0x12f0] sm:$0xff] }
 0x477   :  { %v1159_v7 = vld [vmem:[#allocation8 + $0x1ab0] sm:$0xff]  ;;  %v14121_v14 = vcombine.high %v903_v33, %v911_v35  ;;  %v14120_v50 = vcombine.low %v903_v33, %v911_v35 }
 0x478   :  { %9494 = vmatpush1.bf16.msra.mxu0 %v14056_v55  ;;  %9535 = vmatpush1.bf16.msra.mxu1 %v14312_v57  ;;  %v1167_v5 = vld [vmem:[#allocation8 + $0x1af0] sm:$0xff] }
 0x479   :  { %9495 = vmatprep.subr.bf16.mxu0 %v14073_v0  ;;  %9536 = vmatprep.subr.bf16.mxu1 %v14329_v48  ;;  %v14377_v54 = vcombine.high %v1159_v7, %v1167_v5  ;;  %v919_v55 = vld [vmem:[#allocation8 + $0x1330] sm:$0xff]  ;;  %v14376_v58 = vcombine.low %v1159_v7, %v1167_v5 }
 0x47a   :  { %v927_v57 = vld [vmem:[#allocation8 + $0x1370] sm:$0xff] }
 0x47b   :  { %v1175_v0 = vld [vmem:[#allocation8 + $0x1b30] sm:$0xff]  ;;  %v14137_v13 = vcombine.high %v919_v55, %v927_v57  ;;  %v14136_v7 = vcombine.low %v919_v55, %v927_v57 }
 0x47c   :  { %9496 = vmatpush1.bf16.msra.mxu0 %v14072_v36  ;;  %9537 = vmatpush1.bf16.msra.mxu1 %v14328_v16  ;;  %v1183_v48 = vld [vmem:[#allocation8 + $0x1b70] sm:$0xff]  ;;  %v15718_v36 = vsub.s32 0, %v15713_v6 }
 0x47d   :  { %9497 = vmatprep.subr.bf16.mxu0 %v14089_v37  ;;  %9538 = vmatprep.subr.bf16.mxu1 %v14345_v41  ;;  %v14393_v37 = vcombine.high %v1175_v0, %v1183_v48  ;;  %v935_v41 = vld [vmem:[#allocation8 + $0x13b0] sm:$0xff] }
 0x47e   :  { %v943_v4 = vld [vmem:[#allocation8 + $0x13f0] sm:$0xff]  ;;  %v9854_v12 = vrot.slane %v15715_v51, %v15718_v36 }
 0x47f   :  { %v1215_v55 = vld [vmem:[#allocation8 + $0x1c70] sm:$0xff] }
 0x480   :  { %9498 = vmatpush1.bf16.msra.mxu0 %v14088_v19  ;;  %9539 = vmatpush1.bf16.msra.mxu1 %v14344_v30  ;;  %v1191_v19 = vld [vmem:[#allocation8 + $0x1bb0] sm:$0xff] }
 0x481   :  { %9499 = vmatprep.subr.bf16.mxu0 %v14105_v63  ;;  %9540 = vmatprep.subr.bf16.mxu1 %v14361_v59  ;;  %v1199_v30 = vld [vmem:[#allocation8 + $0x1bf0] sm:$0xff]  ;;  %v15722_v63 = vsub.s32 1, %v15713_v6 }
 0x482   :  { %v14409_v17 = vcombine.high %v1191_v19, %v1199_v30 }
 0x484   :  { %9500 = vmatpush1.bf16.msra.mxu0 %v14104_v46  ;;  %9541 = vmatpush1.bf16.msra.mxu1 %v14360_v62  ;;  %v14392_v62 = vcombine.low %v1175_v0, %v1183_v48  ;;  %v14408_v0 = vcombine.low %v1191_v19, %v1199_v30  ;;  %v983_v19 = vld [vmem:[#allocation8 + $0x1530] sm:$0xff] }
 0x485   :  { %9501 = vmatprep.subr.bf16.mxu0 %v14121_v14  ;;  %9542 = vmatprep.subr.bf16.mxu1 %v14377_v54  ;;  %v14153_v14 = vcombine.high %v935_v41, %v943_v4  ;;  %v991_v30 = vld [vmem:[#allocation8 + $0x1570] sm:$0xff] }
 0x486   :  { %v9197_v16 = vpop.f32.mrb[60].mxu0  ;;  %v9238_v10 = vpop.f32.mrb[60].mxu1 }
 0x487   :  { %v9198_v3 = vadd.f32 %v9197_v16, %v15705_v44  ;;  %v9199_v2 = vpop.f32.mrb[61].mxu0  ;;  %v9240_v33 = vpop.f32.mrb[61].mxu1  ;;  %v9858_v16 = vrot.slane %v15715_v51, %v15722_v63 }
 0x488   :  { %v9200_v59 = vadd.f32 %v9199_v2, %v15707_v53  ;;  %v9201_v35 = vpop.f32.mrb[62].mxu0  ;;  %9502 = vmatpush1.bf16.msra.mxu0 %v14120_v50  ;;  %v9242_v46 = vpop.f32.mrb[62].mxu1  ;;  %9543 = vmatpush1.bf16.msra.mxu1 %v14376_v58  ;;  %v959_v53 = vld [vmem:[#allocation8 + $0x1470] sm:$0xff]  ;;  %v14152_v58 = vcombine.low %v935_v41, %v943_v4 }
 0x489   :  { %v9239_v5 = vadd.f32 %v9238_v10, %v9198_v3  ;;  %v9202_v44 = vpop.f32.mrb[63].mxu0  ;;  %9503 = vmatprep.subr.bf16.mxu0 %v14137_v13  ;;  %v9243_v23 = vpop.f32.mrb[63].mxu1  ;;  %9544 = vmatprep.subr.bf16.mxu1 %v14393_v37  ;;  %v1207_v50 = vld [vmem:[#allocation8 + $0x1c30] sm:$0xff]  ;;  %v14169_v48 = vcombine.high %v951_v18, %v959_v53 }
 0x48a   :  { %v9241_v54 = vadd.f32 %v9240_v33, %v9200_v59  ;;  %v14425_v23 = vcombine.high %v1207_v50, %v1215_v55  ;;  %v967_v37 = vld [vmem:[#allocation8 + $0x14b0] sm:$0xff]  ;;  %v14201_v44 = vcombine.high %v983_v19, %v991_v30 }
 0x48b   :  { %v9842_v2 = vadd.f32 %v9239_v5, %v15577_v56  ;;  %v975_v10 = vld [vmem:[#allocation8 + $0x14f0] sm:$0xff]  ;;  %v14168_v5 = vcombine.low %v951_v18, %v959_v53  ;;  %v14200_v53 = vcombine.low %v983_v19, %v991_v30 }
 0x48c   :  { %v9843_v57 = vadd.f32 %v9241_v54, %v15581_v61  ;;  %9504 = vmatpush1.bf16.msra.mxu0 %v14136_v7  ;;  %9545 = vmatpush1.bf16.msra.mxu1 %v14392_v62  ;;  %v1223_v33 = vld [vmem:[#allocation8 + $0x1cb0] sm:$0xff]  ;;  %v14424_v61 = vcombine.low %v1207_v50, %v1215_v55  ;;  %v14185_v41 = vcombine.high %v967_v37, %v975_v10 }
 0x48d   :  { %v9891_v13 = vadd.f32 %v9854_v12, %v9842_v2  ;;  %9505 = vmatprep.subr.bf16.mxu0 %v14153_v14  ;;  %9546 = vmatprep.subr.bf16.mxu1 %v14409_v17  ;;  %v1231_v35 = vld [vmem:[#allocation8 + $0x1cf0] sm:$0xff]  ;;  %v14184_v7 = vcombine.low %v967_v37, %v975_v10 }
 0x48e   :  { %v9892_v3 = vadd.f32 %v9858_v16, %v9843_v57  ;;  %v14441_v4 = vcombine.high %v1223_v33, %v1231_v35  ;;  %v1239_v17 = vld [vmem:[#allocation8 + $0x1d30] sm:$0xff]  ;;  %v14440_v46 = vcombine.low %v1223_v33, %v1231_v35 }
 0x48f   :  { %v14548_v59 = vmul.f32 -1.442695, %v9891_v13  ;;  %v1247_v12 = vld [vmem:[#allocation8 + $0x1d70] sm:$0xff] }
 0x490   :  { %v14549_v56 = vmul.f32 -1.442695, %v9892_v3  ;;  %9506 = vmatpush1.bf16.msra.mxu0 %v14152_v58  ;;  %9547 = vmatpush1.bf16.msra.mxu1 %v14408_v0  ;;  %v14457_v18 = vcombine.high %v1239_v17, %v1247_v12  ;;  %v999_v62 = vld [vmem:[#allocation8 + $0x15b0] sm:$0xff]  ;;  %v14456_v2 = vcombine.low %v1239_v17, %v1247_v12 }
 0x491   :  { %15083 = vpow2.f32 %v14548_v59  ;;  %9507 = vmatprep.subr.bf16.mxu0 %v14169_v48  ;;  %9548 = vmatprep.subr.bf16.mxu1 %v14425_v23  ;;  %v1007_v14 = vld [vmem:[#allocation8 + $0x15f0] sm:$0xff] }
 0x492   :  { %15085 = vpow2.f32 %v14549_v56  ;;  %v1255_v54 = vld [vmem:[#allocation8 + $0x1db0] sm:$0xff]  ;;  %v14217_v50 = vcombine.high %v999_v62, %v1007_v14  ;;  %v14216_v37 = vcombine.low %v999_v62, %v1007_v14 }
 0x493   :  { %v1263_v16 = vld [vmem:[#allocation8 + $0x1df0] sm:$0xff] }
 0x494   :  { %9508 = vmatpush1.bf16.msra.mxu0 %v14168_v5  ;;  %9549 = vmatpush1.bf16.msra.mxu1 %v14424_v61  ;;  %v14473_v55 = vcombine.high %v1255_v54, %v1263_v16  ;;  %v1015_v57 = vld [vmem:[#allocation8 + $0x1630] sm:$0xff]  ;;  %v14472_v59 = vcombine.low %v1255_v54, %v1263_v16 }
 0x495   :  { %9509 = vmatprep.subr.bf16.mxu0 %v14185_v41  ;;  %9550 = vmatprep.subr.bf16.mxu1 %v14441_v4  ;;  %v1023_v58 = vld [vmem:[#allocation8 + $0x1670] sm:$0xff] }
 0x496   :  { %v1271_v0 = vld [vmem:[#allocation8 + $0x1e30] sm:$0xff]  ;;  %v14233_v33 = vcombine.high %v1015_v57, %v1023_v58  ;;  %v14232_v4 = vcombine.low %v1015_v57, %v1023_v58 }
 0x497   :  { %v1279_v48 = vld [vmem:[#allocation8 + $0x1e70] sm:$0xff] }
 0x498   :  { %9510 = vmatpush1.bf16.msra.mxu0 %v14184_v7  ;;  %9551 = vmatpush1.bf16.msra.mxu1 %v14440_v46  ;;  %v14489_v35 = vcombine.high %v1271_v0, %v1279_v48  ;;  %v1031_v56 = vld [vmem:[#allocation8 + $0x16b0] sm:$0xff]  ;;  %v14488_v19 = vcombine.low %v1271_v0, %v1279_v48 }
 0x499   :  { %9511 = vmatprep.subr.bf16.mxu0 %v14201_v44  ;;  %9552 = vmatprep.subr.bf16.mxu1 %v14457_v18  ;;  %v1039_v5 = vld [vmem:[#allocation8 + $0x16f0] sm:$0xff] }
 0x49a   :  { %v1287_v61 = vld [vmem:[#allocation8 + $0x1eb0] sm:$0xff]  ;;  %v14249_v30 = vcombine.high %v1031_v56, %v1039_v5  ;;  %v14248_v18 = vcombine.low %v1031_v56, %v1039_v5  ;;  %v328_v5 = vld [vmem:[#allocation8 + $0xb8] sm:$0xff] }
 0x49b   :  { %v15084_v13 = vpop.eup %15083  ;;  %v1295_v41 = vld [vmem:[#allocation8 + $0x1ef0] sm:$0xff] }
 0x49c   :  { %v15086_v3 = vpop.eup %15085  ;;  %v9923_v23 = vadd.f32 1.0, %v15084_v13  ;;  %9512 = vmatpush1.bf16.msra.mxu0 %v14200_v53  ;;  %9553 = vmatpush1.bf16.msra.mxu1 %v14456_v2  ;;  %v14505_v17 = vcombine.high %v1287_v61, %v1295_v41  ;;  %v1047_v12 = vld [vmem:[#allocation8 + $0x1730] sm:$0xff]  ;;  %v14504_v62 = vcombine.low %v1287_v61, %v1295_v41  ;;  %v336_v61 = vld [vmem:[#allocation8 + $0xf8] sm:$0xff] }
 0x49d   :  { %v9924_v10 = vadd.f32 1.0, %v15086_v3  ;;  %9513 = vmatprep.subr.bf16.mxu0 %v14217_v50  ;;  %9554 = vmatprep.subr.bf16.mxu1 %v14473_v55  ;;  %v1055_v7 = vld [vmem:[#allocation8 + $0x1770] sm:$0xff]  ;;  %v312_v3 = vld [vmem:[#allocation8 + $0x38] sm:$0xff] }
 0x49e   :  { %15087 = vrcp.f32 %v9923_v23  ;;  %v1303_v46 = vld [vmem:[#allocation8 + $0x1f30] sm:$0xff]  ;;  %v14265_v14 = vcombine.high %v1047_v12, %v1055_v7  ;;  %v14264_v57 = vcombine.low %v1047_v12, %v1055_v7  ;;  %v320_v23 = vld [vmem:[#allocation8 + $0x78] sm:$0xff] }
 0x49f   :  { %15089 = vrcp.f32 %v9924_v10  ;;  %v1311_v44 = vld [vmem:[#allocation8 + $0x1f70] sm:$0xff]  ;;  %v576_v10 = vld [vmem:[#allocation8 + $0x878] sm:$0xff] }
 0x4a0   :  { %9514 = vmatpush1.bf16.msra.mxu0 %v14216_v37  ;;  %9555 = vmatpush1.bf16.msra.mxu1 %v14472_v59  ;;  %v14521_v54 = vcombine.high %v1303_v46, %v1311_v44  ;;  %v1063_v16 = vld [vmem:[#allocation8 + $0x17b0] sm:$0xff]  ;;  %v14520_v13 = vcombine.low %v1303_v46, %v1311_v44  ;;  %v568_v37 = vld [vmem:[#allocation8 + $0x838] sm:$0xff] }
 0x4a1   :  { %9515 = vmatprep.subr.bf16.mxu0 %v14233_v33  ;;  %9556 = vmatprep.subr.bf16.mxu1 %v14489_v35  ;;  %v1071_v53 = vld [vmem:[#allocation8 + $0x17f0] sm:$0xff]  ;;  %v13531_v35 = vcombine.high %v312_v3, %v320_v23  ;;  %v13787_v56 = vcombine.high %v568_v37, %v576_v10  ;;  %v584_v41 = vld [vmem:[#allocation8 + $0x8b8] sm:$0xff] }
 0x4a2   :  { %v1319_v2 = vld [vmem:[#allocation8 + $0x1fb0] sm:$0xff]  ;;  %v14281_v0 = vcombine.high %v1063_v16, %v1071_v53  ;;  %v14280_v59 = vcombine.low %v1063_v16, %v1071_v53  ;;  %v344_v7 = vld [vmem:[#allocation8 + $0x138] sm:$0xff] }
 0x4a3   :  { %v1327_v50 = vld [vmem:[#allocation8 + $0x1ff0] sm:$0xff]  ;;  %v352_v46 = vld [vmem:[#allocation8 + $0x178] sm:$0xff] }
 0x4a4   :  { %9516 = vmatpush1.bf16.msra.mxu0 %v14232_v4  ;;  %9557 = vmatpush1.bf16.msra.mxu1 %v14488_v19  ;;  %v14537_v48 = vcombine.high %v1319_v2, %v1327_v50  ;;  %v14536_v33 = vcombine.low %v1319_v2, %v1327_v50  ;;  %v592_v4 = vld [vmem:[#allocation8 + $0x8f8] sm:$0xff]  ;;  %v13530_v19 = vcombine.low %v312_v3, %v320_v23 }
 0x4a5   :  { %9517 = vmatprep.subr.bf16.mxu0 %v14249_v30  ;;  %9558 = vmatprep.subr.bf16.mxu1 %v14505_v17  ;;  %v13786_v30 = vcombine.low %v568_v37, %v576_v10  ;;  %v13547_v17 = vcombine.high %v328_v5, %v336_v61  ;;  %v13803_v12 = vcombine.high %v584_v41, %v592_v4  ;;  %v600_v44 = vld [vmem:[#allocation8 + $0x938] sm:$0xff] }
 0x4a6   :  { %v360_v53 = vld [vmem:[#allocation8 + $0x1b8] sm:$0xff] }
 0x4a7   :  { %v368_v2 = vld [vmem:[#allocation8 + $0x1f8] sm:$0xff] }
 0x4a8   :  { %v15088_v55 = vpop.eup %15087  ;;  %9518 = vmatpush1.bf16.msra.mxu0 %v14248_v18  ;;  %9559 = vmatpush1.bf16.msra.mxu1 %v14504_v62  ;;  %v608_v18 = vld [vmem:[#allocation8 + $0x978] sm:$0xff]  ;;  %v13546_v62 = vcombine.low %v328_v5, %v336_v61  ;;  %v13578_v10 = vcombine.low %v360_v53, %v368_v2 }
 0x4a9   :  { %v15090_v58 = vpop.eup %15089  ;;  %13284 = vst [vmem:[#allocation14] sm:$0xff] %v15088_v55  ;;  %9519 = vmatprep.subr.bf16.mxu0 %v14265_v14  ;;  %9560 = vmatprep.subr.bf16.mxu1 %v14521_v54  ;;  %v13802_v14 = vcombine.low %v584_v41, %v592_v4  ;;  %v13563_v54 = vcombine.high %v344_v7, %v352_v46  ;;  %v616_v50 = vld [vmem:[#allocation8 + $0x9b8] sm:$0xff] }
 0x4aa   :  { %13285 = vst [vmem:[#allocation14 + $0x8] sm:$0xff] %v15090_v58  ;;  %v13819_v16 = vcombine.high %v600_v44, %v608_v18  ;;  %v624_v55 = vld [vmem:[#allocation8 + $0x9f8] sm:$0xff]  ;;  %v13818_v58 = vcombine.low %v600_v44, %v608_v18 }
 0x4ab   :  { %v384_v3 = vld [vmem:[#allocation8 + $0x278] sm:$0xff] }
 0x4ac   :  { %9520 = vmatpush1.bf16.msra.mxu0 %v14264_v57  ;;  %9561 = vmatpush1.bf16.msra.mxu1 %v14520_v13  ;;  %v13562_v57 = vcombine.low %v344_v7, %v352_v46  ;;  %v13579_v13 = vcombine.high %v360_v53, %v368_v2  ;;  %v632_v23 = vld [vmem:[#allocation8 + $0xa38] sm:$0xff] }
 0x4ad   :  { %9521 = vmatprep.subr.bf16.mxu0 %v14281_v0  ;;  %9562 = vmatprep.subr.bf16.mxu1 %v14537_v48  ;;  %v13835_v0 = vcombine.high %v616_v50, %v624_v55  ;;  %v376_v48 = vld [vmem:[#allocation8 + $0x238] sm:$0xff] }
 0x4ae   :  { %v640_v37 = vld [vmem:[#allocation8 + $0xa78] sm:$0xff]  ;;  %v13594_v61 = vcombine.low %v376_v48, %v384_v3 }
 0x4af   :  { %v656_v5 = vld [vmem:[#allocation8 + $0xaf8] sm:$0xff]  ;;  %v13850_v41 = vcombine.low %v632_v23, %v640_v37 }
 0x4b0   :  { %9522 = vmatpush1.bf16.msra.mxu0 %v14280_v59  ;;  %9563 = vmatpush1.bf16.msra.mxu1 %v14536_v33  ;;  %v13595_v59 = vcombine.high %v376_v48, %v384_v3  ;;  %v392_v33 = vld [vmem:[#allocation8 + $0x2b8] sm:$0xff] }
 0x4b1   :  { %9573 = vmatprep.subr.bf16.mxu0 %v13531_v35  ;;  %9614 = vmatprep.subr.bf16.mxu1 %v13787_v56  ;;  %v400_v35 = vld [vmem:[#allocation8 + $0x2f8] sm:$0xff] }
 0x4b2   :  { %v648_v56 = vld [vmem:[#allocation8 + $0xab8] sm:$0xff]  ;;  %v13611_v4 = vcombine.high %v392_v33, %v400_v35  ;;  %v13610_v46 = vcombine.low %v392_v33, %v400_v35 }
 0x4b3   :  { %9524 = vmatmul.mubr.bf16.vlgmr.msra.gmra.mrb[76].mxu0 %v15585_v27  ;;  %9565 = vmatmul.mubr.bf16.vlgmr.msra.gmra.mrb[76].mxu1 %v15587_v32  ;;  %v672_v7 = vld [vmem:[#allocation8 + $0xb78] sm:$0xff]  ;;  %v13866_v44 = vcombine.low %v648_v56, %v656_v5 }
 0x4b4   :  { %9574 = vmatpush1.bf16.msra.mxu0 %v13530_v19  ;;  %9615 = vmatpush1.bf16.msra.mxu1 %v13786_v30  ;;  %v13867_v19 = vcombine.high %v648_v56, %v656_v5  ;;  %v408_v30 = vld [vmem:[#allocation8 + $0x338] sm:$0xff] }
 0x4b5   :  { %9575 = vmatprep.subr.bf16.mxu0 %v13547_v17  ;;  %9616 = vmatprep.subr.bf16.mxu1 %v13803_v12  ;;  %v416_v17 = vld [vmem:[#allocation8 + $0x378] sm:$0xff] }
 0x4b6   :  { %9605 = vmatprep.mubr.bf16.mxu0 %v15541_v31  ;;  %9646 = vmatprep.mubr.bf16.mxu1 %v15544_v34  ;;  %v13834_v31 = vcombine.low %v616_v50, %v624_v55  ;;  %v13851_v34 = vcombine.high %v632_v23, %v640_v37  ;;  %v664_v12 = vld [vmem:[#allocation8 + $0xb38] sm:$0xff]  ;;  %v13627_v18 = vcombine.high %v408_v30, %v416_v17 }
 0x4b7   :  { %v680_v50 = vld [vmem:[#allocation8 + $0xbb8] sm:$0xff]  ;;  %v13882_v37 = vcombine.low %v664_v12, %v672_v7 }
 0x4b8   :  { %9576 = vmatpush1.bf16.msra.mxu0 %v13546_v62  ;;  %9617 = vmatpush1.bf16.msra.mxu1 %v13802_v14  ;;  %v13883_v14 = vcombine.high %v664_v12, %v672_v7  ;;  %v688_v55 = vld [vmem:[#allocation8 + $0xbf8] sm:$0xff] }
 0x4b9   :  { %9577 = vmatprep.subr.bf16.mxu0 %v13563_v54  ;;  %9618 = vmatprep.subr.bf16.mxu1 %v13819_v16  ;;  %v424_v54 = vld [vmem:[#allocation8 + $0x3b8] sm:$0xff] }
 0x4ba   :  { %v432_v16 = vld [vmem:[#allocation8 + $0x3f8] sm:$0xff] }
 0x4bb   :  { %v448_v33 = vld [vmem:[#allocation8 + $0x478] sm:$0xff]  ;;  %v13642_v5 = vcombine.low %v424_v54, %v432_v16 }
 0x4bc   :  { %9578 = vmatpush1.bf16.msra.mxu0 %v13562_v57  ;;  %9619 = vmatpush1.bf16.msra.mxu1 %v13818_v58  ;;  %v696_v35 = vld [vmem:[#allocation8 + $0xc38] sm:$0xff] }
 0x4bd   :  { %9579 = vmatprep.subr.bf16.mxu0 %v13579_v13  ;;  %9620 = vmatprep.subr.bf16.mxu1 %v13835_v0  ;;  %v13626_v0 = vcombine.low %v408_v30, %v416_v17  ;;  %v704_v56 = vld [vmem:[#allocation8 + $0xc78] sm:$0xff] }
 0x4be   :  { %v464_v30 = vld [vmem:[#allocation8 + $0x4f8] sm:$0xff] }
 0x4bf   :  { %v712_v17 = vld [vmem:[#allocation8 + $0xcb8] sm:$0xff] }
 0x4c0   :  { %9580 = vmatpush1.bf16.msra.mxu0 %v13578_v10  ;;  %9621 = vmatpush1.bf16.msra.mxu1 %v13834_v31  ;;  %v13643_v10 = vcombine.high %v424_v54, %v432_v16  ;;  %v720_v12 = vld [vmem:[#allocation8 + $0xcf8] sm:$0xff] }
 0x4c1   :  { %9581 = vmatprep.subr.bf16.mxu0 %v13595_v59  ;;  %9622 = vmatprep.subr.bf16.mxu1 %v13851_v34  ;;  %v13899_v59 = vcombine.high %v680_v50, %v688_v55  ;;  %v440_v34 = vld [vmem:[#allocation8 + $0x438] sm:$0xff] }
 0x4c2   :  { %v13658_v7 = vcombine.low %v440_v34, %v448_v33  ;;  %v728_v54 = vld [vmem:[#allocation8 + $0xd38] sm:$0xff] }
 0x4c3   :  { %v736_v16 = vld [vmem:[#allocation8 + $0xd78] sm:$0xff] }
 0x4c4   :  { %9582 = vmatpush1.bf16.msra.mxu0 %v13594_v61  ;;  %9623 = vmatpush1.bf16.msra.mxu1 %v13850_v41  ;;  %v13898_v61 = vcombine.low %v680_v50, %v688_v55  ;;  %v13659_v41 = vcombine.high %v440_v34, %v448_v33  ;;  %v13947_v55 = vcombine.high %v728_v54, %v736_v16  ;;  %v512_v34 = vld [vmem:[#allocation8 + $0x678] sm:$0xff] }
 0x4c5   :  { %9583 = vmatprep.subr.bf16.mxu0 %v13611_v4  ;;  %9624 = vmatprep.subr.bf16.mxu1 %v13867_v19  ;;  %v13915_v4 = vcombine.high %v696_v35, %v704_v56  ;;  %v456_v19 = vld [vmem:[#allocation8 + $0x4b8] sm:$0xff] }
 0x4c6   :  { %v9279_v62 = vpop.f32.mrb[64].mxu0  ;;  %v9320_v53 = vpop.f32.mrb[64].mxu1  ;;  %v760_v33 = vld [vmem:[#allocation8 + $0xe38] sm:$0xff] }
 0x4c7   :  { %v9281_v2 = vpop.f32.mrb[65].mxu0  ;;  %v15735_v57 = vadd.f32 %v9320_v53, %v9279_v62  ;;  %v9322_v58 = vpop.f32.mrb[65].mxu1  ;;  %v472_v62 = vld [vmem:[#allocation8 + $0x538] sm:$0xff]  ;;  %v13674_v53 = vcombine.low %v456_v19, %v464_v30 }
 0x4c8   :  { %v9283_v13 = vpop.f32.mrb[66].mxu0  ;;  %9584 = vmatpush1.bf16.msra.mxu0 %v13610_v46  ;;  %v15737_v48 = vadd.f32 %v9322_v58, %v9281_v2  ;;  %v9324_v3 = vpop.f32.mrb[66].mxu1  ;;  %9625 = vmatpush1.bf16.msra.mxu1 %v13866_v44  ;;  %v13914_v46 = vcombine.low %v696_v35, %v704_v56  ;;  %v13675_v44 = vcombine.high %v456_v19, %v464_v30  ;;  %v488_v58 = vld [vmem:[#allocation8 + $0x5b8] sm:$0xff] }
 0x4c9   :  { %v9284_v23 = vpop.f32.mrb[67].mxu0  ;;  %9585 = vmatprep.subr.bf16.mxu0 %v13627_v18  ;;  %v9325_v31 = vpop.f32.mrb[67].mxu1  ;;  %9626 = vmatprep.subr.bf16.mxu1 %v13883_v14  ;;  %v13931_v18 = vcombine.high %v712_v17, %v720_v12  ;;  %v480_v14 = vld [vmem:[#allocation8 + $0x578] sm:$0xff]  ;;  %v13930_v2 = vcombine.low %v712_v17, %v720_v12 }
 0x4ca   :  { %v13691_v50 = vcombine.high %v472_v62, %v480_v14  ;;  %v496_v13 = vld [vmem:[#allocation8 + $0x5f8] sm:$0xff]  ;;  %v13690_v23 = vcombine.low %v472_v62, %v480_v14 }
 0x4cb   :  { %v752_v3 = vld [vmem:[#allocation8 + $0xdf8] sm:$0xff]  ;;  %v13706_v56 = vcombine.low %v488_v58, %v496_v13 }
 0x4cc   :  { %9586 = vmatpush1.bf16.msra.mxu0 %v13626_v0  ;;  %9627 = vmatpush1.bf16.msra.mxu1 %v13882_v37  ;;  %v744_v0 = vld [vmem:[#allocation8 + $0xdb8] sm:$0xff]  ;;  %v13946_v37 = vcombine.low %v728_v54, %v736_v16 }
 0x4cd   :  { %9587 = vmatprep.subr.bf16.mxu0 %v13643_v10  ;;  %9628 = vmatprep.subr.bf16.mxu1 %v13899_v59  ;;  %v13707_v10 = vcombine.high %v488_v58, %v496_v13  ;;  %v13963_v31 = vcombine.high %v744_v0, %v752_v3  ;;  %v504_v59 = vld [vmem:[#allocation8 + $0x638] sm:$0xff] }
 0x4ce   :  { %v768_v35 = vld [vmem:[#allocation8 + $0xe78] sm:$0xff]  ;;  %v13722_v12 = vcombine.low %v504_v59, %v512_v34 }
 0x4cf   :  { %v528_v19 = vld [vmem:[#allocation8 + $0x6f8] sm:$0xff] }
 0x4d0   :  { %9588 = vmatpush1.bf16.msra.mxu0 %v13642_v5  ;;  %9629 = vmatpush1.bf16.msra.mxu1 %v13898_v61  ;;  %v13962_v5 = vcombine.low %v744_v0, %v752_v3  ;;  %v13723_v61 = vcombine.high %v504_v59, %v512_v34  ;;  %v776_v30 = vld [vmem:[#allocation8 + $0xeb8] sm:$0xff] }
 0x4d1   :  { %9589 = vmatprep.subr.bf16.mxu0 %v13659_v41  ;;  %9630 = vmatprep.subr.bf16.mxu1 %v13915_v4  ;;  %v13979_v41 = vcombine.high %v760_v33, %v768_v35  ;;  %v520_v4 = vld [vmem:[#allocation8 + $0x6b8] sm:$0xff] }
 0x4d2   :  { %v784_v17 = vld [vmem:[#allocation8 + $0xef8] sm:$0xff]  ;;  %v13738_v16 = vcombine.low %v520_v4, %v528_v19 }
 0x4d3   :  { %v544_v62 = vld [vmem:[#allocation8 + $0x778] sm:$0xff] }
 0x4d4   :  { %9590 = vmatpush1.bf16.msra.mxu0 %v13658_v7  ;;  %9631 = vmatpush1.bf16.msra.mxu1 %v13914_v46  ;;  %v13978_v7 = vcombine.low %v760_v33, %v768_v35  ;;  %v13739_v46 = vcombine.high %v520_v4, %v528_v19  ;;  %v792_v14 = vld [vmem:[#allocation8 + $0xf38] sm:$0xff] }
 0x4d5   :  { %9591 = vmatprep.subr.bf16.mxu0 %v13675_v44  ;;  %9632 = vmatprep.subr.bf16.mxu1 %v13931_v18  ;;  %v13995_v44 = vcombine.high %v776_v30, %v784_v17  ;;  %v536_v18 = vld [vmem:[#allocation8 + $0x738] sm:$0xff] }
 0x4d6   :  { %v800_v54 = vld [vmem:[#allocation8 + $0xf78] sm:$0xff]  ;;  %v13754_v3 = vcombine.low %v536_v18, %v544_v62 }
 0x4d7   :  { %v560_v58 = vld [vmem:[#allocation8 + $0x7f8] sm:$0xff] }
 0x4d8   :  { %9592 = vmatpush1.bf16.msra.mxu0 %v13674_v53  ;;  %9633 = vmatpush1.bf16.msra.mxu1 %v13930_v2  ;;  %v13994_v53 = vcombine.low %v776_v30, %v784_v17  ;;  %v13755_v2 = vcombine.high %v536_v18, %v544_v62  ;;  %v808_v13 = vld [vmem:[#allocation8 + $0xfb8] sm:$0xff] }
 0x4d9   :  { %9593 = vmatprep.subr.bf16.mxu0 %v13691_v50  ;;  %9634 = vmatprep.subr.bf16.mxu1 %v13947_v55  ;;  %v14011_v50 = vcombine.high %v792_v14, %v800_v54  ;;  %v552_v55 = vld [vmem:[#allocation8 + $0x7b8] sm:$0xff] }
 0x4da   :  { %v816_v0 = vld [vmem:[#allocation8 + $0xff8] sm:$0xff]  ;;  %v13770_v35 = vcombine.low %v552_v55, %v560_v58 }
 0x4db   :  { %v832_v59 = vld [vmem:[#allocation8 + $0x1078] sm:$0xff] }
 0x4dc   :  { %9594 = vmatpush1.bf16.msra.mxu0 %v13690_v23  ;;  %9635 = vmatpush1.bf16.msra.mxu1 %v13946_v37  ;;  %v14010_v23 = vcombine.low %v792_v14, %v800_v54  ;;  %v13771_v37 = vcombine.high %v552_v55, %v560_v58  ;;  %v1080_v34 = vld [vmem:[#allocation8 + $0x1838] sm:$0xff] }
 0x4dd   :  { %9595 = vmatprep.subr.bf16.mxu0 %v13707_v10  ;;  %9636 = vmatprep.subr.bf16.mxu1 %v13963_v31  ;;  %v14027_v10 = vcombine.high %v808_v13, %v816_v0  ;;  %v824_v31 = vld [vmem:[#allocation8 + $0x1038] sm:$0xff] }
 0x4de   :  { %v1088_v33 = vld [vmem:[#allocation8 + $0x1878] sm:$0xff]  ;;  %v14042_v17 = vcombine.low %v824_v31, %v832_v59 }
 0x4df   :  { %v848_v4 = vld [vmem:[#allocation8 + $0x10f8] sm:$0xff] }
 0x4e0   :  { %9596 = vmatpush1.bf16.msra.mxu0 %v13706_v56  ;;  %9637 = vmatpush1.bf16.msra.mxu1 %v13962_v5  ;;  %v14026_v56 = vcombine.low %v808_v13, %v816_v0  ;;  %v14043_v5 = vcombine.high %v824_v31, %v832_v59  ;;  %v1096_v19 = vld [vmem:[#allocation8 + $0x18b8] sm:$0xff] }
 0x4e1   :  { %9597 = vmatprep.subr.bf16.mxu0 %v13723_v61  ;;  %9638 = vmatprep.subr.bf16.mxu1 %v13979_v41  ;;  %v14299_v61 = vcombine.high %v1080_v34, %v1088_v33  ;;  %v840_v41 = vld [vmem:[#allocation8 + $0x10b8] sm:$0xff] }
 0x4e2   :  { %v1104_v30 = vld [vmem:[#allocation8 + $0x18f8] sm:$0xff]  ;;  %v14058_v54 = vcombine.low %v840_v41, %v848_v4 }
 0x4e3   :  { %v864_v18 = vld [vmem:[#allocation8 + $0x1178] sm:$0xff] }
 0x4e4   :  { %9598 = vmatpush1.bf16.msra.mxu0 %v13722_v12  ;;  %9639 = vmatpush1.bf16.msra.mxu1 %v13978_v7  ;;  %v14298_v12 = vcombine.low %v1080_v34, %v1088_v33  ;;  %v14059_v7 = vcombine.high %v840_v41, %v848_v4  ;;  %v1112_v62 = vld [vmem:[#allocation8 + $0x1938] sm:$0xff]  ;;  %v15746_v41 = vsub.s32 3, %v15713_v6 }
 0x4e5   :  { %9599 = vmatprep.subr.bf16.mxu0 %v13739_v46  ;;  %9640 = vmatprep.subr.bf16.mxu1 %v13995_v44  ;;  %v14315_v46 = vcombine.high %v1096_v19, %v1104_v30  ;;  %v856_v44 = vld [vmem:[#allocation8 + $0x1138] sm:$0xff] }
 0x4e6   :  { %v1120_v14 = vld [vmem:[#allocation8 + $0x1978] sm:$0xff] }
 0x4e7   :  { %v880_v55 = vld [vmem:[#allocation8 + $0x11f8] sm:$0xff] }
 0x4e8   :  { %9600 = vmatpush1.bf16.msra.mxu0 %v13738_v16  ;;  %9641 = vmatpush1.bf16.msra.mxu1 %v13994_v53  ;;  %v14314_v16 = vcombine.low %v1096_v19, %v1104_v30  ;;  %v14075_v53 = vcombine.high %v856_v44, %v864_v18  ;;  %v1128_v58 = vld [vmem:[#allocation8 + $0x19b8] sm:$0xff] }
 0x4e9   :  { %9601 = vmatprep.subr.bf16.mxu0 %v13755_v2  ;;  %9642 = vmatprep.subr.bf16.mxu1 %v14011_v50  ;;  %v14331_v2 = vcombine.high %v1112_v62, %v1120_v14  ;;  %v872_v50 = vld [vmem:[#allocation8 + $0x11b8] sm:$0xff] }
 0x4ea   :  { %v1136_v13 = vld [vmem:[#allocation8 + $0x19f8] sm:$0xff]  ;;  %v14091_v0 = vcombine.high %v872_v50, %v880_v55  ;;  %v14090_v59 = vcombine.low %v872_v50, %v880_v55 }
 0x4eb   :  { %v1152_v31 = vld [vmem:[#allocation8 + $0x1a78] sm:$0xff] }
 0x4ec   :  { %9602 = vmatpush1.bf16.msra.mxu0 %v13754_v3  ;;  %9643 = vmatpush1.bf16.msra.mxu1 %v14010_v23  ;;  %v14347_v3 = vcombine.high %v1128_v58, %v1136_v13  ;;  %v888_v23 = vld [vmem:[#allocation8 + $0x1238] sm:$0xff] }
 0x4ed   :  { %9603 = vmatprep.subr.bf16.mxu0 %v13771_v37  ;;  %9644 = vmatprep.subr.bf16.mxu1 %v14027_v10  ;;  %v896_v37 = vld [vmem:[#allocation8 + $0x1278] sm:$0xff] }
 0x4ee   :  { %v1144_v10 = vld [vmem:[#allocation8 + $0x1a38] sm:$0xff]  ;;  %v14107_v34 = vcombine.high %v888_v23, %v896_v37  ;;  %v14106_v4 = vcombine.low %v888_v23, %v896_v37 }
 0x4ef   :  { %v904_v33 = vld [vmem:[#allocation8 + $0x12b8] sm:$0xff]  ;;  %v14362_v19 = vcombine.low %v1144_v10, %v1152_v31 }
 0x4f0   :  { %9604 = vmatpush1.bf16.msra.mxu0 %v13770_v35  ;;  %9645 = vmatpush1.bf16.msra.mxu1 %v14026_v56  ;;  %v912_v35 = vld [vmem:[#allocation8 + $0x12f8] sm:$0xff] }
 0x4f1   :  { %9655 = vmatprep.subr.bf16.mxu0 %v14043_v5  ;;  %9696 = vmatprep.subr.bf16.mxu1 %v14299_v61  ;;  %v1160_v56 = vld [vmem:[#allocation8 + $0x1ab8] sm:$0xff]  ;;  %v15743_v61 = vld [vmem:[#allocation11] sm:$0xff]  ;;  %v14123_v30 = vcombine.high %v904_v33, %v912_v35 }
 0x4f2   :  { %v1168_v5 = vld [vmem:[#allocation8 + $0x1af8] sm:$0xff] }
 0x4f3   :  { %9606 = vmatmul.mubr.bf16.vlgmr.msra.gmra.mrb[80].mxu0 %v15557_v39  ;;  %9647 = vmatmul.mubr.bf16.vlgmr.msra.gmra.mrb[80].mxu1 %v15559_v43  ;;  %v14074_v39 = vcombine.low %v856_v44, %v864_v18  ;;  %v14330_v43 = vcombine.low %v1112_v62, %v1120_v14  ;;  %v1176_v44 = vld [vmem:[#allocation8 + $0x1b38] sm:$0xff]  ;;  %v9761_v62 = vrot.slane %v15743_v61, %v15746_v41 }
 0x4f4   :  { %9656 = vmatpush1.bf16.msra.mxu0 %v14042_v17  ;;  %9697 = vmatpush1.bf16.msra.mxu1 %v14298_v12  ;;  %v14379_v17 = vcombine.high %v1160_v56, %v1168_v5  ;;  %v920_v12 = vld [vmem:[#allocation8 + $0x1338] sm:$0xff]  ;;  %v14122_v14 = vcombine.low %v904_v33, %v912_v35 }
 0x4f5   :  { %9657 = vmatprep.subr.bf16.mxu0 %v14059_v7  ;;  %9698 = vmatprep.subr.bf16.mxu1 %v14315_v46  ;;  %v928_v7 = vld [vmem:[#allocation8 + $0x1378] sm:$0xff]  ;;  %v9753_v46 = vrot.slane %v15743_v61, %v15722_v63  ;;  %v9789_v37 = vadd.f32 %v9761_v62, %v15659_v38  ;;  %v9866_v38 = vrot.slane %v15715_v51, %v15746_v41 }
 0x4f6   :  { %9687 = vmatprep.mubr.bf16.mxu0 %v15561_v49  ;;  %9728 = vmatprep.mubr.bf16.mxu1 %v15564_v52  ;;  %v14346_v49 = vcombine.low %v1128_v58, %v1136_v13  ;;  %v14363_v52 = vcombine.high %v1144_v10, %v1152_v31  ;;  %v1184_v18 = vld [vmem:[#allocation8 + $0x1b78] sm:$0xff] }
 0x4f7   :  { %v14395_v50 = vcombine.high %v1176_v44, %v1184_v18  ;;  %v936_v55 = vld [vmem:[#allocation8 + $0x13b8] sm:$0xff]  ;;  %v9787_v13 = vadd.f32 %v9753_v46, %v15639_v47  ;;  %v14543_v46 = vmul.f32 -1.442695, %v9789_v37 }
 0x4f8   :  { %9658 = vmatpush1.bf16.msra.mxu0 %v14058_v54  ;;  %9699 = vmatpush1.bf16.msra.mxu1 %v14314_v16  ;;  %v14378_v54 = vcombine.low %v1160_v56, %v1168_v5  ;;  %v14139_v16 = vcombine.high %v920_v12, %v928_v7  ;;  %v944_v58 = vld [vmem:[#allocation8 + $0x13f8] sm:$0xff] }
 0x4f9   :  { %9659 = vmatprep.subr.bf16.mxu0 %v14075_v53  ;;  %9700 = vmatprep.subr.bf16.mxu1 %v14331_v2  ;;  %v15753_v53 = vsub.s32 2, %v15713_v6  ;;  %v1200_v23 = vld [vmem:[#allocation8 + $0x1bf8] sm:$0xff]  ;;  %v14155_v35 = vcombine.high %v936_v55, %v944_v58 }
 0x4fa   :  { %v1240_v37 = vld [vmem:[#allocation8 + $0x1d38] sm:$0xff] }
 0x4fb   :  { %v9862_v10 = vrot.slane %v15715_v51, %v15753_v53 }
 0x4fc   :  { %9660 = vmatpush1.bf16.msra.mxu0 %v14074_v39  ;;  %9701 = vmatpush1.bf16.msra.mxu1 %v14330_v43 }
 0x4fd   :  { %9661 = vmatprep.subr.bf16.mxu0 %v14091_v0  ;;  %9702 = vmatprep.subr.bf16.mxu1 %v14347_v3  ;;  %v1192_v3 = vld [vmem:[#allocation8 + $0x1bb8] sm:$0xff] }
 0x500   :  { %9662 = vmatpush1.bf16.msra.mxu0 %v14090_v59  ;;  %9703 = vmatpush1.bf16.msra.mxu1 %v14346_v49 }
 0x501   :  { %9663 = vmatprep.subr.bf16.mxu0 %v14107_v34  ;;  %9704 = vmatprep.subr.bf16.mxu1 %v14363_v52  ;;  %v14138_v34 = vcombine.low %v920_v12, %v928_v7  ;;  %v1208_v12 = vld [vmem:[#allocation8 + $0x1c38] sm:$0xff] }
 0x502   :  { %v1216_v7 = vld [vmem:[#allocation8 + $0x1c78] sm:$0xff] }
 0x504   :  { %9664 = vmatpush1.bf16.msra.mxu0 %v14106_v4  ;;  %9705 = vmatpush1.bf16.msra.mxu1 %v14362_v19  ;;  %v14411_v4 = vcombine.high %v1192_v3, %v1200_v23  ;;  %v952_v19 = vld [vmem:[#allocation8 + $0x1438] sm:$0xff] }
 0x505   :  { %9665 = vmatprep.subr.bf16.mxu0 %v14123_v30  ;;  %9706 = vmatprep.subr.bf16.mxu1 %v14379_v17  ;;  %v14541_v30 = vmul.f32 -1.442695, %v9787_v13 }
 0x506   :  { %v9361_v2 = vpop.f32.mrb[68].mxu0  ;;  %v9402_v43 = vpop.f32.mrb[68].mxu1 }
 0x507   :  { %v9362_v39 = vadd.f32 %v9361_v2, %v15735_v57  ;;  %v9363_v0 = vpop.f32.mrb[69].mxu0  ;;  %v9404_v59 = vpop.f32.mrb[69].mxu1  ;;  %v14394_v57 = vcombine.low %v1176_v44, %v1184_v18  ;;  %v14154_v44 = vcombine.low %v936_v55, %v944_v58  ;;  %v968_v2 = vld [vmem:[#allocation8 + $0x14b8] sm:$0xff]  ;;  %15091 = vpow2.f32 %v14541_v30 }
 0x508   :  { %v9364_v31 = vadd.f32 %v9363_v0, %v15737_v48  ;;  %v9365_v49 = vpop.f32.mrb[70].mxu0  ;;  %9666 = vmatpush1.bf16.msra.mxu0 %v14122_v14  ;;  %v9406_v33 = vpop.f32.mrb[70].mxu1  ;;  %9707 = vmatpush1.bf16.msra.mxu1 %v14378_v54  ;;  %v960_v48 = vld [vmem:[#allocation8 + $0x1478] sm:$0xff]  ;;  %v14410_v14 = vcombine.low %v1192_v3, %v1200_v23  ;;  %15093 = vpow2.f32 %v14543_v46  ;;  %v14426_v55 = vcombine.low %v1208_v12, %v1216_v7 }
 0x509   :  { %v9403_v52 = vadd.f32 %v9402_v43, %v9362_v39  ;;  %v9366_v47 = vpop.f32.mrb[71].mxu0  ;;  %9667 = vmatprep.subr.bf16.mxu0 %v14139_v16  ;;  %v9407_v5 = vpop.f32.mrb[71].mxu1  ;;  %9708 = vmatprep.subr.bf16.mxu1 %v14395_v50  ;;  %v14171_v51 = vcombine.high %v952_v19, %v960_v48  ;;  %v14427_v16 = vcombine.high %v1208_v12, %v1216_v7  ;;  %v976_v50 = vld [vmem:[#allocation8 + $0x14f8] sm:$0xff] }
 0x50a   :  { %v9405_v56 = vadd.f32 %v9404_v59, %v9364_v31  ;;  %v1232_v39 = vld [vmem:[#allocation8 + $0x1cf8] sm:$0xff]  ;;  %v14187_v58 = vcombine.high %v968_v2, %v976_v50  ;;  %v14186_v31 = vcombine.low %v968_v2, %v976_v50 }
 0x50b   :  { %v9844_v17 = vadd.f32 %v9403_v52, %v15579_v60  ;;  %v1224_v60 = vld [vmem:[#allocation8 + $0x1cb8] sm:$0xff] }
 0x50c   :  { %v9845_v62 = vadd.f32 %v9405_v56, %v15583_v1  ;;  %9668 = vmatpush1.bf16.msra.mxu0 %v14138_v34  ;;  %9709 = vmatpush1.bf16.msra.mxu1 %v14394_v57  ;;  %v14170_v1 = vcombine.low %v952_v19, %v960_v48  ;;  %v14443_v0 = vcombine.high %v1224_v60, %v1232_v39  ;;  %v984_v3 = vld [vmem:[#allocation8 + $0x1538] sm:$0xff] }
 0x50d   :  { %v9893_v18 = vadd.f32 %v9862_v10, %v9844_v17  ;;  %9669 = vmatprep.subr.bf16.mxu0 %v14155_v35  ;;  %9710 = vmatprep.subr.bf16.mxu1 %v14411_v4  ;;  %v992_v23 = vld [vmem:[#allocation8 + $0x1578] sm:$0xff]  ;;  %v14442_v59 = vcombine.low %v1224_v60, %v1232_v39 }
 0x50e   :  { %v9894_v54 = vadd.f32 %v9866_v38, %v9845_v62  ;;  %v1248_v10 = vld [vmem:[#allocation8 + $0x1d78] sm:$0xff]  ;;  %v14203_v49 = vcombine.high %v984_v3, %v992_v23  ;;  %v14202_v35 = vcombine.low %v984_v3, %v992_v23 }
 0x50f   :  { %v14550_v13 = vmul.f32 -1.442695, %v9893_v18  ;;  %v14459_v34 = vcombine.high %v1240_v37, %v1248_v10  ;;  %v1000_v52 = vld [vmem:[#allocation8 + $0x15b8] sm:$0xff]  ;;  %v14458_v38 = vcombine.low %v1240_v37, %v1248_v10 }
 0x510   :  { %v14551_v43 = vmul.f32 -1.442695, %v9894_v54  ;;  %9670 = vmatpush1.bf16.msra.mxu0 %v14154_v44  ;;  %9711 = vmatpush1.bf16.msra.mxu1 %v14410_v14  ;;  %v1008_v33 = vld [vmem:[#allocation8 + $0x15f8] sm:$0xff] }
 0x511   :  { %15095 = vpow2.f32 %v14550_v13  ;;  %9671 = vmatprep.subr.bf16.mxu0 %v14171_v51  ;;  %9712 = vmatprep.subr.bf16.mxu1 %v14427_v16  ;;  %v1256_v47 = vld [vmem:[#allocation8 + $0x1db8] sm:$0xff]  ;;  %v15092_v56 = vpop.eup %15091  ;;  %v14219_v5 = vcombine.high %v1000_v52, %v1008_v33  ;;  %v14218_v44 = vcombine.low %v1000_v52, %v1008_v33 }
 0x512   :  { %15097 = vpow2.f32 %v14551_v43  ;;  %v1264_v57 = vld [vmem:[#allocation8 + $0x1df8] sm:$0xff]  ;;  %v15094_v4 = vpop.eup %15093  ;;  %v9819_v54 = vadd.f32 1.0, %v15092_v56 }
 0x513   :  { %v14475_v19 = vcombine.high %v1256_v47, %v1264_v57  ;;  %v1016_v48 = vld [vmem:[#allocation8 + $0x1638] sm:$0xff]  ;;  %v14474_v14 = vcombine.low %v1256_v47, %v1264_v57  ;;  %v9821_v13 = vadd.f32 1.0, %v15094_v4 }
 0x514   :  { %9672 = vmatpush1.bf16.msra.mxu0 %v14170_v1  ;;  %9713 = vmatpush1.bf16.msra.mxu1 %v14426_v55  ;;  %v1024_v30 = vld [vmem:[#allocation8 + $0x1678] sm:$0xff] }
 0x515   :  { %9673 = vmatprep.subr.bf16.mxu0 %v14187_v58  ;;  %9714 = vmatprep.subr.bf16.mxu1 %v14443_v0  ;;  %v1272_v12 = vld [vmem:[#allocation8 + $0x1e38] sm:$0xff]  ;;  %v14235_v51 = vcombine.high %v1016_v48, %v1024_v30  ;;  %v14234_v43 = vcombine.low %v1016_v48, %v1024_v30  ;;  %v1333_v48 = vld [vmem:[#allocation10 + $0x20] sm:$0xff] }
 0x516   :  { %v1280_v7 = vld [vmem:[#allocation8 + $0x1e78] sm:$0xff]  ;;  %v1457_v30 = vld [vmem:[#allocation10 + $0x400] sm:$0xff] }
 0x517   :  { %v14491_v16 = vcombine.high %v1272_v12, %v1280_v7  ;;  %v1032_v2 = vld [vmem:[#allocation8 + $0x16b8] sm:$0xff]  ;;  %v14490_v1 = vcombine.low %v1272_v12, %v1280_v7 }
 0x518   :  { %9674 = vmatpush1.bf16.msra.mxu0 %v14186_v31  ;;  %9715 = vmatpush1.bf16.msra.mxu1 %v14442_v59  ;;  %v1040_v50 = vld [vmem:[#allocation8 + $0x16f8] sm:$0xff] }
 0x519   :  { %9675 = vmatprep.subr.bf16.mxu0 %v14203_v49  ;;  %9716 = vmatprep.subr.bf16.mxu1 %v14459_v34  ;;  %v1288_v60 = vld [vmem:[#allocation8 + $0x1eb8] sm:$0xff]  ;;  %v14251_v55 = vcombine.high %v1032_v2, %v1040_v50  ;;  %v14250_v10 = vcombine.low %v1032_v2, %v1040_v50 }
 0x51a   :  { %v1296_v39 = vld [vmem:[#allocation8 + $0x1ef8] sm:$0xff] }
 0x51b   :  { %v15096_v17 = vpop.eup %15095  ;;  %v14507_v58 = vcombine.high %v1288_v60, %v1296_v39  ;;  %v1048_v0 = vld [vmem:[#allocation8 + $0x1738] sm:$0xff]  ;;  %v14506_v31 = vcombine.low %v1288_v60, %v1296_v39  ;;  %v1465_v60 = vld [vmem:[#allocation10 + $0x440] sm:$0xff] }
 0x51c   :  { %v15098_v46 = vpop.eup %15097  ;;  %v9925_v62 = vadd.f32 1.0, %v15096_v17  ;;  %9676 = vmatpush1.bf16.msra.mxu0 %v14202_v35  ;;  %9717 = vmatpush1.bf16.msra.mxu1 %v14458_v38  ;;  %v1056_v3 = vld [vmem:[#allocation8 + $0x1778] sm:$0xff]  ;;  %v1461_v17 = vld [vmem:[#allocation10 + $0x420] sm:$0xff] }
 0x51d   :  { %v9926_v18 = vadd.f32 1.0, %v15098_v46  ;;  %9677 = vmatprep.subr.bf16.mxu0 %v14219_v5  ;;  %9718 = vmatprep.subr.bf16.mxu1 %v14475_v19  ;;  %v1304_v23 = vld [vmem:[#allocation8 + $0x1f38] sm:$0xff]  ;;  %v14267_v59 = vcombine.high %v1048_v0, %v1056_v3  ;;  %v14266_v35 = vcombine.low %v1048_v0, %v1056_v3  ;;  %v1329_v19 = vld [vmem:[#allocation10] sm:$0xff] }
 0x51e   :  { %15099 = vrcp.f32 %v9925_v62  ;;  %v1312_v37 = vld [vmem:[#allocation8 + $0x1f78] sm:$0xff]  ;;  %v14556_v2 = vcombine.low %v1329_v19, %v1333_v48  ;;  %v1469_v39 = vld [vmem:[#allocation10 + $0x460] sm:$0xff] }
 0x51f   :  { %15101 = vrcp.f32 %v9926_v18  ;;  %v14523_v49 = vcombine.high %v1304_v23, %v1312_v37  ;;  %v1064_v34 = vld [vmem:[#allocation8 + $0x17b8] sm:$0xff]  ;;  %v14522_v38 = vcombine.low %v1304_v23, %v1312_v37  ;;  %v14685_v18 = vcombine.high %v1457_v30, %v1461_v17  ;;  %v1473_v23 = vld [vmem:[#allocation10 + $0x480] sm:$0xff] }
 0x520   :  { %9678 = vmatpush1.bf16.msra.mxu0 %v14218_v44  ;;  %9719 = vmatpush1.bf16.msra.mxu1 %v14474_v14  ;;  %15103 = vrcp.f32 %v9819_v54  ;;  %v1072_v52 = vld [vmem:[#allocation8 + $0x17f8] sm:$0xff]  ;;  %v14557_v44 = vcombine.high %v1329_v19, %v1333_v48  ;;  %v15163_v14 = vld [vmem:[#allocation5 + $0x8] sm:$0xff]  ;;  %v1337_v54 = vld [vmem:[#allocation10 + $0x40] sm:$0xff]  ;;  %v14693_v3 = vcombine.high %v1465_v60, %v1469_v39 }
 0x521   :  { %9679 = vmatprep.subr.bf16.mxu0 %v14235_v51  ;;  %9720 = vmatprep.subr.bf16.mxu1 %v14491_v16  ;;  %15105 = vrcp.f32 %v9821_v13  ;;  %v1320_v33 = vld [vmem:[#allocation8 + $0x1fb8] sm:$0xff]  ;;  %v14283_v5 = vcombine.high %v1064_v34, %v1072_v52  ;;  %v14282_v7 = vcombine.low %v1064_v34, %v1072_v52  ;;  %v1341_v16 = vld [vmem:[#allocation10 + $0x60] sm:$0xff] }
 0x522   :  { %v1328_v47 = vld [vmem:[#allocation8 + $0x1ff8] sm:$0xff]  ;;  %v1477_v37 = vld [vmem:[#allocation10 + $0x4a0] sm:$0xff] }
 0x523   :  { %v14539_v4 = vcombine.high %v1320_v33, %v1328_v47  ;;  %v14538_v62 = vcombine.low %v1320_v33, %v1328_v47  ;;  %v15164_v50 = vld [vmem:[#allocation5 + $0x18] sm:$0xff]  ;;  %v1353_v34 = vld [vmem:[#allocation10 + $0xc0] sm:$0xff] }
 0x524   :  { %9680 = vmatpush1.bf16.msra.mxu0 %v14234_v43  ;;  %9721 = vmatpush1.bf16.msra.mxu1 %v14490_v1  ;;  %v14684_v43 = vcombine.low %v1457_v30, %v1461_v17  ;;  %v14565_v1 = vcombine.high %v1337_v54, %v1341_v16  ;;  %v1357_v52 = vld [vmem:[#allocation10 + $0xe0] sm:$0xff] }
 0x525   :  { %9681 = vmatprep.subr.bf16.mxu0 %v14251_v55  ;;  %9722 = vmatprep.subr.bf16.mxu1 %v14507_v58  ;;  %v1345_v55 = vld [vmem:[#allocation10 + $0x80] sm:$0xff]  ;;  %v14580_v48 = vcombine.low %v1353_v34, %v1357_v52 }
 0x526   :  { %v1349_v58 = vld [vmem:[#allocation10 + $0xa0] sm:$0xff] }
 0x527   :  { %v1481_v33 = vld [vmem:[#allocation10 + $0x4c0] sm:$0xff] }
 0x528   :  { %v15100_v57 = vpop.eup %15099  ;;  %9682 = vmatpush1.bf16.msra.mxu0 %v14250_v10  ;;  %9723 = vmatpush1.bf16.msra.mxu1 %v14506_v31  ;;  %v14564_v31 = vcombine.low %v1337_v54, %v1341_v16  ;;  %v1485_v47 = vld [vmem:[#allocation10 + $0x4e0] sm:$0xff]  ;;  %v15777_v16 = vsub.s32 7, %v15713_v6 }
 0x529   :  { %v15102_v56 = vpop.eup %15101  ;;  %13286 = vst [vmem:[#allocation14 + $0x10] sm:$0xff] %v15100_v57  ;;  %9683 = vmatprep.subr.bf16.mxu0 %v14267_v59  ;;  %9724 = vmatprep.subr.bf16.mxu1 %v14523_v49  ;;  %v14692_v59 = vcombine.low %v1465_v60, %v1469_v39  ;;  %v14573_v49 = vcombine.high %v1345_v55, %v1349_v58  ;;  %v1493_v19 = vld [vmem:[#allocation10 + $0x520] sm:$0xff] }
 0x52a   :  { %13287 = vst [vmem:[#allocation14 + $0x18] sm:$0xff] %v15102_v56  ;;  %v15104_v12 = vpop.eup %15103  ;;  %v14700_v57 = vcombine.low %v1473_v23, %v1477_v37  ;;  %v14709_v56 = vcombine.high %v1481_v33, %v1485_v47  ;;  %v14708_v30 = vcombine.low %v1481_v33, %v1485_v47  ;;  %v9749_v60 = vrot.slane %v15743_v61, %v15718_v36  ;;  %v1505_v39 = vld [vmem:[#allocation10 + $0x580] sm:$0xff] }
 0x52b   :  { %v15106_v46 = vpop.eup %15105  ;;  %v9948_v51 = vmul.f32 %v15163_v14, %v15104_v12  ;;  %v1513_v47 = vld [vmem:[#allocation10 + $0x5c0] sm:$0xff] }
 0x52c   :  { %9684 = vmatpush1.bf16.msra.mxu0 %v14266_v35  ;;  %9725 = vmatpush1.bf16.msra.mxu1 %v14522_v38  ;;  %v9950_v13 = vmul.f32 %v15164_v50, %v15106_v46  ;;  %v14581_v35 = vcombine.high %v1353_v34, %v1357_v52  ;;  %v1361_v38 = vld [vmem:[#allocation10 + $0x100] sm:$0xff]  ;;  %v9786_v34 = vadd.f32 %v9749_v60, %v15636_v11 }
 0x52d   :  { %9685 = vmatprep.subr.bf16.mxu0 %v14283_v5  ;;  %9726 = vmatprep.subr.bf16.mxu1 %v14539_v4  ;;  %v15766_v0 = vpack.c.bf16 %v9948_v51, %v9948_v51  ;;  %v1365_v5 = vld [vmem:[#allocation10 + $0x120] sm:$0xff] }
 0x52e   :  { %v15769_v10 = vpack.c.bf16 %v9950_v13, %v9950_v13  ;;  %v1489_v4 = vld [vmem:[#allocation10 + $0x500] sm:$0xff]  ;;  %v14589_v17 = vcombine.high %v1361_v38, %v1365_v5  ;;  %v14588_v14 = vcombine.low %v1361_v38, %v1365_v5 }
 0x52f   :  { %v14717_v12 = vcombine.high %v1489_v4, %v1493_v19  ;;  %v1373_v46 = vld [vmem:[#allocation10 + $0x160] sm:$0xff]  ;;  %v14716_v51 = vcombine.low %v1489_v4, %v1493_v19 }
 0x530   :  { %9686 = vmatpush1.bf16.msra.mxu0 %v14282_v7  ;;  %9727 = vmatpush1.bf16.msra.mxu1 %v14538_v62  ;;  %v1369_v7 = vld [vmem:[#allocation10 + $0x140] sm:$0xff] }
 0x531   :  { %12523 = vmatprep.subr.bf16.mxu0 %v14557_v44  ;;  %12564 = vmatprep.subr.bf16.mxu1 %v14685_v18  ;;  %v1497_v62 = vld [vmem:[#allocation10 + $0x540] sm:$0xff]  ;;  %v15774_v18 = vsub.s32 5, %v15713_v6  ;;  %v14597_v54 = vcombine.high %v1369_v7, %v1373_v46 }
 0x532   :  { %v1501_v44 = vld [vmem:[#allocation10 + $0x560] sm:$0xff] }
 0x533   :  { %9688 = vmatmul.mubr.bf16.vlgmr.msra.gmra.mrb[84].mxu0 %v15585_v27  ;;  %9729 = vmatmul.mubr.bf16.vlgmr.msra.gmra.mrb[84].mxu1 %v15587_v32  ;;  %v14701_v27 = vcombine.high %v1473_v23, %v1477_v37  ;;  %v14572_v32 = vcombine.low %v1345_v55, %v1349_v58  ;;  %v1377_v50 = vld [vmem:[#allocation10 + $0x180] sm:$0xff]  ;;  %v9769_v55 = vrot.slane %v15743_v61, %v15774_v18 }
 0x534   :  { %12524 = vmatpush1.bf16.msra.mxu0 %v14556_v2  ;;  %12555 = vmatprep.mubr.bf16.mxu0 %v15766_v0  ;;  %v14725_v2 = vcombine.high %v1497_v62, %v1501_v44  ;;  %v1381_v13 = vld [vmem:[#allocation10 + $0x1a0] sm:$0xff]  ;;  %v14596_v58 = vcombine.low %v1369_v7, %v1373_v46  ;;  %v9777_v37 = vrot.slane %v15743_v61, %v15777_v16 }
 0x535   :  { %12565 = vmatpush1.bf16.msra.mxu1 %v14684_v43  ;;  %12596 = vmatprep.mubr.bf16.mxu1 %v15769_v10  ;;  %v1509_v43 = vld [vmem:[#allocation10 + $0x5a0] sm:$0xff]  ;;  %v14605_v23 = vcombine.high %v1377_v50, %v1381_v13  ;;  %v14604_v4 = vcombine.low %v1377_v50, %v1381_v13 }
 0x536   :  { %12525 = vmatprep.subr.bf16.mxu0 %v14565_v1  ;;  %12566 = vmatprep.subr.bf16.mxu1 %v14693_v3  ;;  %v9757_v1 = vrot.slane %v15743_v61, %v15753_v53  ;;  %v14724_v3 = vcombine.low %v1497_v62, %v1501_v44  ;;  %v14732_v11 = vcombine.low %v1505_v39, %v1509_v43  ;;  %v1397_v46 = vld [vmem:[#allocation10 + $0x220] sm:$0xff]  ;;  %v14540_v62 = vmul.f32 -1.442695, %v9786_v34 }
 0x537   :  { %v1521_v44 = vld [vmem:[#allocation10 + $0x600] sm:$0xff] }
 0x538   :  { %12526 = vmatpush1.bf16.msra.mxu0 %v14564_v31  ;;  %15107 = vpow2.f32 %v14540_v62 }
 0x539   :  { %12567 = vmatpush1.bf16.msra.mxu1 %v14692_v59  ;;  %12527 = vmatprep.subr.bf16.mxu0 %v14573_v49  ;;  %v14733_v59 = vcombine.high %v1505_v39, %v1509_v43  ;;  %v1385_v49 = vld [vmem:[#allocation10 + $0x1c0] sm:$0xff] }
 0x53a   :  { %12568 = vmatprep.subr.bf16.mxu1 %v14701_v27  ;;  %v1389_v27 = vld [vmem:[#allocation10 + $0x1e0] sm:$0xff] }
 0x53b   :  { %v1405_v43 = vld [vmem:[#allocation10 + $0x260] sm:$0xff] }
 0x53c   :  { %12528 = vmatpush1.bf16.msra.mxu0 %v14572_v32  ;;  %v1517_v32 = vld [vmem:[#allocation10 + $0x5e0] sm:$0xff] }
 0x53d   :  { %12569 = vmatpush1.bf16.msra.mxu1 %v14700_v57  ;;  %12529 = vmatprep.subr.bf16.mxu0 %v14581_v35  ;;  %v9788_v57 = vadd.f32 %v9757_v1, %v15656_v28  ;;  %v9791_v35 = vadd.f32 %v9769_v55, %v15679_v26  ;;  %v14741_v28 = vcombine.high %v1513_v47, %v1517_v32  ;;  %v1393_v26 = vld [vmem:[#allocation10 + $0x200] sm:$0xff] }
 0x53e   :  { %12570 = vmatprep.subr.bf16.mxu1 %v14709_v56  ;;  %v14740_v50 = vcombine.low %v1513_v47, %v1517_v32  ;;  %v14621_v13 = vcombine.high %v1393_v26, %v1397_v46  ;;  %v1529_v1 = vld [vmem:[#allocation10 + $0x640] sm:$0xff] }
 0x53f   :  { %v1533_v55 = vld [vmem:[#allocation10 + $0x660] sm:$0xff] }
 0x540   :  { %12530 = vmatpush1.bf16.msra.mxu0 %v14580_v48  ;;  %v1417_v32 = vld [vmem:[#allocation10 + $0x2c0] sm:$0xff] }
 0x541   :  { %12571 = vmatpush1.bf16.msra.mxu1 %v14708_v30  ;;  %12531 = vmatprep.subr.bf16.mxu0 %v14589_v17  ;;  %v14613_v17 = vcombine.high %v1385_v49, %v1389_v27 }
 0x542   :  { %12572 = vmatprep.subr.bf16.mxu1 %v14717_v12  ;;  %v9793_v12 = vadd.f32 %v9777_v37, %v15699_v22  ;;  %v1401_v22 = vld [vmem:[#allocation10 + $0x240] sm:$0xff]  ;;  %v14757_v37 = vcombine.high %v1529_v1, %v1533_v55 }
 0x543   :  { %v14628_v34 = vcombine.low %v1401_v22, %v1405_v43 }
 0x544   :  { %12532 = vmatpush1.bf16.msra.mxu0 %v14588_v14  ;;  %v1525_v14 = vld [vmem:[#allocation10 + $0x620] sm:$0xff]  ;;  %v14547_v60 = vmul.f32 -1.442695, %v9793_v12 }
 0x545   :  { %12573 = vmatpush1.bf16.msra.mxu1 %v14716_v51  ;;  %12533 = vmatprep.subr.bf16.mxu0 %v14597_v54  ;;  %v14542_v51 = vmul.f32 -1.442695, %v9788_v57  ;;  %v14612_v54 = vcombine.low %v1385_v49, %v1389_v27  ;;  %v14749_v39 = vcombine.high %v1521_v44, %v1525_v14  ;;  %v1537_v49 = vld [vmem:[#allocation10 + $0x680] sm:$0xff] }
 0x546   :  { %v9443_v31 = vpop.f32.mrb[72].mxu0  ;;  %12574 = vmatprep.subr.bf16.mxu1 %v14725_v2  ;;  %v9484_v52 = vpop.f32.mrb[72].mxu1  ;;  %v14545_v2 = vmul.f32 -1.442695, %v9791_v35  ;;  %v1541_v27 = vld [vmem:[#allocation10 + $0x6a0] sm:$0xff] }
 0x547   :  { %v9445_v33 = vpop.f32.mrb[73].mxu0  ;;  %v15790_v56 = vadd.f32 %v9484_v52, %v9443_v31  ;;  %v9486_v38 = vpop.f32.mrb[73].mxu1  ;;  %15109 = vpow2.f32 %v14542_v51  ;;  %v1409_v31 = vld [vmem:[#allocation10 + $0x280] sm:$0xff]  ;;  %v14756_v52 = vcombine.low %v1529_v1, %v1533_v55  ;;  %v14765_v47 = vcombine.high %v1537_v49, %v1541_v27 }
 0x548   :  { %v9447_v5 = vpop.f32.mrb[74].mxu0  ;;  %12534 = vmatpush1.bf16.msra.mxu0 %v14596_v58  ;;  %v15792_v19 = vadd.f32 %v9486_v38, %v9445_v33  ;;  %v9488_v48 = vpop.f32.mrb[74].mxu1  ;;  %v14620_v58 = vcombine.low %v1393_v26, %v1397_v46  ;;  %15111 = vpow2.f32 %v14545_v2  ;;  %v1421_v57 = vld [vmem:[#allocation10 + $0x2e0] sm:$0xff] }
 0x549   :  { %12575 = vmatpush1.bf16.msra.mxu1 %v14724_v3  ;;  %v9448_v30 = vpop.f32.mrb[75].mxu0  ;;  %12535 = vmatprep.subr.bf16.mxu0 %v14605_v23  ;;  %v9489_v7 = vpop.f32.mrb[75].mxu1  ;;  %v14748_v3 = vcombine.low %v1521_v44, %v1525_v14  ;;  %v14629_v23 = vcombine.high %v1401_v22, %v1405_v43  ;;  %15113 = vpow2.f32 %v14547_v60  ;;  %v1545_v35 = vld [vmem:[#allocation10 + $0x6c0] sm:$0xff]  ;;  %v14764_v48 = vcombine.low %v1537_v49, %v1541_v27 }
 0x54a   :  { %12576 = vmatprep.subr.bf16.mxu1 %v14733_v59  ;;  %v1413_v59 = vld [vmem:[#allocation10 + $0x2a0] sm:$0xff]  ;;  %v14645_v30 = vcombine.high %v1417_v32, %v1421_v57  ;;  %v14644_v14 = vcombine.low %v1417_v32, %v1421_v57 }
 0x54b   :  { %v14637_v33 = vcombine.high %v1409_v31, %v1413_v59  ;;  %v1549_v38 = vld [vmem:[#allocation10 + $0x6e0] sm:$0xff]  ;;  %v14636_v5 = vcombine.low %v1409_v31, %v1413_v59 }
 0x54c   :  { %12536 = vmatpush1.bf16.msra.mxu0 %v14604_v4  ;;  %v15108_v4 = vpop.eup %15107  ;;  %v1425_v12 = vld [vmem:[#allocation10 + $0x300] sm:$0xff] }
 0x54d   :  { %12577 = vmatpush1.bf16.msra.mxu1 %v14732_v11  ;;  %12537 = vmatprep.subr.bf16.mxu0 %v14613_v17  ;;  %v14773_v17 = vcombine.high %v1545_v35, %v1549_v38  ;;  %v1429_v7 = vld [vmem:[#allocation10 + $0x320] sm:$0xff]  ;;  %v9818_v44 = vadd.f32 1.0, %v15108_v4 }
 0x54e   :  { %12578 = vmatprep.subr.bf16.mxu1 %v14741_v28  ;;  %v1553_v26 = vld [vmem:[#allocation10 + $0x700] sm:$0xff]  ;;  %v14653_v2 = vcombine.high %v1425_v12, %v1429_v7  ;;  %v14652_v55 = vcombine.low %v1425_v12, %v1429_v7 }
 0x54f   :  { %v1557_v46 = vld [vmem:[#allocation10 + $0x720] sm:$0xff]  ;;  %15115 = vrcp.f32 %v9818_v44 }
 0x550   :  { %12538 = vmatpush1.bf16.msra.mxu0 %v14612_v54  ;;  %v14772_v54 = vcombine.low %v1545_v35, %v1549_v38  ;;  %v1433_v60 = vld [vmem:[#allocation10 + $0x340] sm:$0xff] }
 0x551   :  { %12579 = vmatpush1.bf16.msra.mxu1 %v14740_v50  ;;  %12539 = vmatprep.subr.bf16.mxu0 %v14621_v13  ;;  %v15110_v11 = vpop.eup %15109  ;;  %v14781_v13 = vcombine.high %v1553_v26, %v1557_v46  ;;  %v1561_v43 = vld [vmem:[#allocation10 + $0x740] sm:$0xff] }
 0x552   :  { %12580 = vmatprep.subr.bf16.mxu1 %v14749_v39  ;;  %v15112_v28 = vpop.eup %15111  ;;  %v9820_v51 = vadd.f32 1.0, %v15110_v11  ;;  %v1437_v39 = vld [vmem:[#allocation10 + $0x360] sm:$0xff] }
 0x553   :  { %v15114_v62 = vpop.eup %15113  ;;  %v9823_v50 = vadd.f32 1.0, %v15112_v28  ;;  %v1565_v1 = vld [vmem:[#allocation10 + $0x760] sm:$0xff]  ;;  %v14660_v27 = vcombine.low %v1433_v60, %v1437_v39 }
 0x554   :  { %12540 = vmatpush1.bf16.msra.mxu0 %v14620_v58  ;;  %v9825_v22 = vadd.f32 1.0, %v15114_v62  ;;  %15117 = vrcp.f32 %v9820_v51  ;;  %v14780_v58 = vcombine.low %v1553_v26, %v1557_v46  ;;  %v1445_v31 = vld [vmem:[#allocation10 + $0x3a0] sm:$0xff] }
 0x555   :  { %12581 = vmatpush1.bf16.msra.mxu1 %v14748_v3  ;;  %12541 = vmatprep.subr.bf16.mxu0 %v14629_v23  ;;  %v14661_v3 = vcombine.high %v1433_v60, %v1437_v39  ;;  %15119 = vrcp.f32 %v9823_v50  ;;  %v14789_v23 = vcombine.high %v1561_v43, %v1565_v1  ;;  %v1569_v59 = vld [vmem:[#allocation10 + $0x780] sm:$0xff]  ;;  %v15167_v60 = vld [vmem:[#allocation5 + $0x28] sm:$0xff] }
 0x556   :  { %12582 = vmatprep.subr.bf16.mxu1 %v14757_v37  ;;  %v1441_v37 = vld [vmem:[#allocation10 + $0x380] sm:$0xff]  ;;  %15121 = vrcp.f32 %v9825_v22 }
 0x557   :  { %v1573_v49 = vld [vmem:[#allocation10 + $0x7a0] sm:$0xff]  ;;  %v14668_v38 = vcombine.low %v1441_v37, %v1445_v31 }
 0x558   :  { %12542 = vmatpush1.bf16.msra.mxu0 %v14628_v34  ;;  %v14788_v34 = vcombine.low %v1561_v43, %v1565_v1  ;;  %v1453_v32 = vld [vmem:[#allocation10 + $0x3e0] sm:$0xff] }
 0x559   :  { %12583 = vmatpush1.bf16.msra.mxu1 %v14756_v52  ;;  %12543 = vmatprep.subr.bf16.mxu0 %v14637_v33  ;;  %v14669_v52 = vcombine.high %v1441_v37, %v1445_v31  ;;  %v14797_v33 = vcombine.high %v1569_v59, %v1573_v49  ;;  %v1577_v57 = vld [vmem:[#allocation10 + $0x7c0] sm:$0xff] }
 0x55a   :  { %12584 = vmatprep.subr.bf16.mxu1 %v14765_v47  ;;  %v1449_v47 = vld [vmem:[#allocation10 + $0x3c0] sm:$0xff] }
 0x55b   :  { %v1581_v35 = vld [vmem:[#allocation10 + $0x7e0] sm:$0xff]  ;;  %v14677_v4 = vcombine.high %v1449_v47, %v1453_v32  ;;  %v14676_v46 = vcombine.low %v1449_v47, %v1453_v32 }
 0x55c   :  { %12544 = vmatpush1.bf16.msra.mxu0 %v14636_v5  ;;  %v14796_v5 = vcombine.low %v1569_v59, %v1573_v49  ;;  %v1585_v11 = vld [vmem:[#allocation10 + $0x800] sm:$0xff]  ;;  %v14804_v44 = vcombine.low %v1577_v57, %v1581_v35 }
 0x55d   :  { %12585 = vmatpush1.bf16.msra.mxu1 %v14764_v48  ;;  %12545 = vmatprep.subr.bf16.mxu0 %v14645_v30  ;;  %v15116_v48 = vpop.eup %15115  ;;  %v14805_v30 = vcombine.high %v1577_v57, %v1581_v35  ;;  %v1713_v7 = vld [vmem:[#allocation10 + $0xc00] sm:$0xff] }
 0x55e   :  { %12586 = vmatprep.subr.bf16.mxu1 %v14773_v17  ;;  %v1589_v17 = vld [vmem:[#allocation10 + $0x820] sm:$0xff]  ;;  %v15118_v12 = vpop.eup %15117 }
 0x55f   :  { %v1717_v28 = vld [vmem:[#allocation10 + $0xc20] sm:$0xff]  ;;  %v15120_v26 = vpop.eup %15119  ;;  %v14812_v1 = vcombine.low %v1585_v11, %v1589_v17 }
 0x560   :  { %12546 = vmatpush1.bf16.msra.mxu0 %v14644_v14  ;;  %v15122_v62 = vpop.eup %15121  ;;  %v15165_v14 = vld [vmem:[#allocation5] sm:$0xff]  ;;  %v9952_v39 = vmul.f32 %v15167_v60, %v15120_v26  ;;  %v14940_v31 = vcombine.low %v1713_v7, %v1717_v28 }
 0x561   :  { %12587 = vmatpush1.bf16.msra.mxu1 %v14772_v54  ;;  %12547 = vmatprep.subr.bf16.mxu0 %v14653_v2  ;;  %v9947_v51 = vmul.f32 %v15165_v14, %v15116_v48  ;;  %v14813_v54 = vcombine.high %v1585_v11, %v1589_v17  ;;  %v15166_v2 = vld [vmem:[#allocation5 + $0x10] sm:$0xff]  ;;  %v1593_v22 = vld [vmem:[#allocation10 + $0x840] sm:$0xff] }
 0x562   :  { %12588 = vmatprep.subr.bf16.mxu1 %v14781_v13  ;;  %v9949_v50 = vmul.f32 %v15166_v2, %v15118_v12  ;;  %v14941_v13 = vcombine.high %v1713_v7, %v1717_v28  ;;  %v1597_v43 = vld [vmem:[#allocation10 + $0x860] sm:$0xff] }
 0x563   :  { %v15795_v37 = vpack.c.bf16 %v9947_v51, %v9947_v51  ;;  %v14821_v49 = vcombine.high %v1593_v22, %v1597_v43  ;;  %v1729_v47 = vld [vmem:[#allocation10 + $0xc80] sm:$0xff]  ;;  %v14820_v35 = vcombine.low %v1593_v22, %v1597_v43 }
 0x564   :  { %12548 = vmatpush1.bf16.msra.mxu0 %v14652_v55  ;;  %v15168_v55 = vld [vmem:[#allocation5 + $0x38] sm:$0xff]  ;;  %v15797_v59 = vpack.c.bf16 %v9949_v50, %v9949_v50  ;;  %v1733_v32 = vld [vmem:[#allocation10 + $0xca0] sm:$0xff] }
 0x565   :  { %12589 = vmatpush1.bf16.msra.mxu1 %v14780_v58  ;;  %12549 = vmatprep.subr.bf16.mxu0 %v14661_v3  ;;  %v9954_v58 = vmul.f32 %v15168_v55, %v15122_v62  ;;  %v1721_v3 = vld [vmem:[#allocation10 + $0xc40] sm:$0xff]  ;;  %v14956_v7 = vcombine.low %v1729_v47, %v1733_v32 }
 0x566   :  { %12590 = vmatprep.subr.bf16.mxu1 %v14789_v23  ;;  %v1725_v23 = vld [vmem:[#allocation10 + $0xc60] sm:$0xff] }
 0x567   :  { %v15803_v57 = vpack.c.bf16 %v9954_v58, %v9954_v58  ;;  %v1609_v48 = vld [vmem:[#allocation10 + $0x8c0] sm:$0xff] }
 0x568   :  { %12550 = vmatpush1.bf16.msra.mxu0 %v14660_v27  ;;  %v1601_v27 = vld [vmem:[#allocation10 + $0x880] sm:$0xff] }
 0x569   :  { %12591 = vmatpush1.bf16.msra.mxu1 %v14788_v34  ;;  %12551 = vmatprep.subr.bf16.mxu0 %v14669_v52  ;;  %v1605_v34 = vld [vmem:[#allocation10 + $0x8a0] sm:$0xff]  ;;  %v15800_v52 = vpack.c.bf16 %v9952_v39, %v9952_v39  ;;  %v15808_v39 = vsub.s32 4, %v15713_v6 }
 0x56a   :  { %12592 = vmatprep.subr.bf16.mxu1 %v14797_v33  ;;  %v14949_v33 = vcombine.high %v1721_v3, %v1725_v23  ;;  %v1737_v11 = vld [vmem:[#allocation10 + $0xcc0] sm:$0xff]  ;;  %v14828_v12 = vcombine.low %v1601_v27, %v1605_v34 }
 0x56b   :  { %v1741_v17 = vld [vmem:[#allocation10 + $0xce0] sm:$0xff] }
 0x56c   :  { %12552 = vmatpush1.bf16.msra.mxu0 %v14668_v38  ;;  %v14948_v38 = vcombine.low %v1721_v3, %v1725_v23  ;;  %v14965_v26 = vcombine.high %v1737_v11, %v1741_v17  ;;  %v1621_v62 = vld [vmem:[#allocation10 + $0x920] sm:$0xff] }
 0x56d   :  { %12593 = vmatpush1.bf16.msra.mxu1 %v14796_v5  ;;  %12553 = vmatprep.subr.bf16.mxu0 %v14677_v4  ;;  %v14829_v5 = vcombine.high %v1601_v27, %v1605_v34  ;;  %v14957_v4 = vcombine.high %v1729_v47, %v1733_v32  ;;  %v1749_v14 = vld [vmem:[#allocation10 + $0xd20] sm:$0xff]  ;;  %v9765_v27 = vrot.slane %v15743_v61, %v15808_v39 }
 0x56e   :  { %12594 = vmatprep.subr.bf16.mxu1 %v14805_v30  ;;  %v1613_v30 = vld [vmem:[#allocation10 + $0x8e0] sm:$0xff] }
 0x56f   :  { %v14837_v28 = vcombine.high %v1609_v48, %v1613_v30  ;;  %v14836_v51 = vcombine.low %v1609_v48, %v1613_v30  ;;  %v1629_v60 = vld [vmem:[#allocation10 + $0x960] sm:$0xff] }
 0x570   :  { %12554 = vmatpush1.bf16.msra.mxu0 %v14676_v46  ;;  %v1617_v46 = vld [vmem:[#allocation10 + $0x900] sm:$0xff] }
 0x571   :  { %12595 = vmatpush1.bf16.msra.mxu1 %v14804_v44  ;;  %12605 = vmatprep.subr.bf16.mxu0 %v14813_v54  ;;  %v1745_v44 = vld [vmem:[#allocation10 + $0xd00] sm:$0xff]  ;;  %v14964_v54 = vcombine.low %v1737_v11, %v1741_v17  ;;  %v14845_v2 = vcombine.high %v1617_v46, %v1621_v62  ;;  %v14844_v55 = vcombine.low %v1617_v46, %v1621_v62  ;;  %v15819_v46 = vld [vmem:[#allocation11 + $0x8] sm:$0xff] }
 0x572   :  { %12646 = vmatprep.subr.bf16.mxu1 %v14941_v13  ;;  %v14973_v50 = vcombine.high %v1745_v44, %v1749_v14  ;;  %v1625_v13 = vld [vmem:[#allocation10 + $0x940] sm:$0xff]  ;;  %v14972_v58 = vcombine.low %v1745_v44, %v1749_v14  ;;  %v9790_v11 = vadd.f32 %v9765_v27, %v15676_v25  ;;  %v9870_v62 = vrot.slane %v15819_v46, %v15808_v39 }
 0x573   :  { %12556 = vmatmul.mubr.bf16.vlgmr.msra.gmra.mrb[88].mxu0 %v15795_v37  ;;  %v1753_v22 = vld [vmem:[#allocation10 + $0xd40] sm:$0xff]  ;;  %v14853_v3 = vcombine.high %v1625_v13, %v1629_v60 }
 0x574   :  { %12597 = vmatmul.mubr.bf16.vlgmr.msra.gmra.mrb[88].mxu1 %v15797_v59  ;;  %12606 = vmatpush1.bf16.msra.mxu0 %v14812_v1  ;;  %v1757_v43 = vld [vmem:[#allocation10 + $0xd60] sm:$0xff]  ;;  %v15811_v1 = vsub.s32 6, %v15713_v6  ;;  %v14852_v6 = vcombine.low %v1625_v13, %v1629_v60 }
 0x575   :  { %12637 = vmatprep.mubr.bf16.mxu0 %v15800_v52  ;;  %12647 = vmatpush1.bf16.msra.mxu1 %v14940_v31  ;;  %v14981_v23 = vcombine.high %v1753_v22, %v1757_v43  ;;  %v1633_v31 = vld [vmem:[#allocation10 + $0x980] sm:$0xff] }
 0x576   :  { %12678 = vmatprep.mubr.bf16.mxu1 %v15803_v57  ;;  %12607 = vmatprep.subr.bf16.mxu0 %v14821_v49  ;;  %v1637_v49 = vld [vmem:[#allocation10 + $0x9a0] sm:$0xff] }
 0x577   :  { %12648 = vmatprep.subr.bf16.mxu1 %v14949_v33  ;;  %v1761_v34 = vld [vmem:[#allocation10 + $0xd80] sm:$0xff] }
 0x578   :  { %12608 = vmatpush1.bf16.msra.mxu0 %v14820_v35  ;;  %v1765_v33 = vld [vmem:[#allocation10 + $0xda0] sm:$0xff]  ;;  %v14980_v35 = vcombine.low %v1753_v22, %v1757_v43 }
 0x579   :  { %12649 = vmatpush1.bf16.msra.mxu1 %v14948_v38  ;;  %12609 = vmatprep.subr.bf16.mxu0 %v14829_v5  ;;  %v15169_v47 = vld [vmem:[#allocation11] sm:$0xff]  ;;  %v14861_v38 = vcombine.high %v1633_v31, %v1637_v49 }
 0x57a   :  { %12650 = vmatprep.subr.bf16.mxu1 %v14957_v4  ;;  %v9773_v32 = vrot.slane %v15169_v47, %v15811_v1  ;;  %v14989_v4 = vcombine.high %v1761_v34, %v1765_v33  ;;  %v1641_v48 = vld [vmem:[#allocation10 + $0x9c0] sm:$0xff] }
 0x57b   :  { %v1645_v30 = vld [vmem:[#allocation10 + $0x9e0] sm:$0xff] }
 0x57c   :  { %12610 = vmatpush1.bf16.msra.mxu0 %v14828_v12  ;;  %v14869_v13 = vcombine.high %v1641_v48, %v1645_v30 }
 0x57d   :  { %12651 = vmatpush1.bf16.msra.mxu1 %v14956_v7  ;;  %12611 = vmatprep.subr.bf16.mxu0 %v14837_v28  ;;  %v1769_v7 = vld [vmem:[#allocation10 + $0xdc0] sm:$0xff] }
 0x57e   :  { %12652 = vmatprep.subr.bf16.mxu1 %v14965_v26  ;;  %v1773_v28 = vld [vmem:[#allocation10 + $0xde0] sm:$0xff]  ;;  %v9792_v26 = vadd.f32 %v9773_v32, %v15696_v9  ;;  %v9874_v9 = vrot.slane %v15819_v46, %v15774_v18 }
 0x57f   :  { %v14997_v43 = vcombine.high %v1769_v7, %v1773_v28  ;;  %v14996_v47 = vcombine.low %v1769_v7, %v1773_v28  ;;  %v1669_v7 = vld [vmem:[#allocation10 + $0xaa0] sm:$0xff] }
 0x580   :  { %12612 = vmatpush1.bf16.msra.mxu0 %v14836_v51  ;;  %v1793_v28 = vld [vmem:[#allocation10 + $0xe80] sm:$0xff] }
 0x581   :  { %12653 = vmatpush1.bf16.msra.mxu1 %v14964_v54  ;;  %12613 = vmatprep.subr.bf16.mxu0 %v14845_v2  ;;  %v14860_v54 = vcombine.low %v1633_v31, %v1637_v49  ;;  %v1781_v31 = vld [vmem:[#allocation10 + $0xe20] sm:$0xff]  ;;  %v14546_v49 = vmul.f32 -1.442695, %v9792_v26 }
 0x582   :  { %12654 = vmatprep.subr.bf16.mxu1 %v14973_v50  ;;  %v14988_v50 = vcombine.low %v1761_v34, %v1765_v33  ;;  %v14868_v34 = vcombine.low %v1641_v48, %v1645_v30  ;;  %v1797_v26 = vld [vmem:[#allocation10 + $0xea0] sm:$0xff] }
 0x584   :  { %12614 = vmatpush1.bf16.msra.mxu0 %v14844_v55  ;;  %v1649_v55 = vld [vmem:[#allocation10 + $0xa00] sm:$0xff] }
 0x585   :  { %12655 = vmatpush1.bf16.msra.mxu1 %v14972_v58  ;;  %12615 = vmatprep.subr.bf16.mxu0 %v14853_v3  ;;  %v14544_v58 = vmul.f32 -1.442695, %v9790_v11  ;;  %v1789_v11 = vld [vmem:[#allocation10 + $0xe60] sm:$0xff] }
 0x586   :  { %v9525_v5 = vpop.f32.mrb[76].mxu0  ;;  %12656 = vmatprep.subr.bf16.mxu1 %v14981_v23  ;;  %v9566_v17 = vpop.f32.mrb[76].mxu1  ;;  %v1777_v23 = vld [vmem:[#allocation10 + $0xe00] sm:$0xff] }
 0x587   :  { %v9526_v61 = vadd.f32 %v9525_v5, %v15790_v56  ;;  %v9527_v12 = vpop.f32.mrb[77].mxu0  ;;  %v9568_v14 = vpop.f32.mrb[77].mxu1  ;;  %v1661_v5 = vld [vmem:[#allocation10 + $0xa60] sm:$0xff]  ;;  %15123 = vpow2.f32 %v14544_v58  ;;  %v15004_v48 = vcombine.low %v1777_v23, %v1781_v31 }
 0x588   :  { %v9528_v44 = vadd.f32 %v9527_v12, %v15792_v19  ;;  %v9529_v51 = vpop.f32.mrb[78].mxu0  ;;  %12616 = vmatpush1.bf16.msra.mxu0 %v14852_v6  ;;  %v9570_v2 = vpop.f32.mrb[78].mxu1  ;;  %v1653_v19 = vld [vmem:[#allocation10 + $0xa20] sm:$0xff]  ;;  %15125 = vpow2.f32 %v14546_v49 }
 0x589   :  { %v9567_v25 = vadd.f32 %v9566_v17, %v9526_v61  ;;  %12657 = vmatpush1.bf16.msra.mxu1 %v14980_v35  ;;  %v9530_v56 = vpop.f32.mrb[79].mxu0  ;;  %12617 = vmatprep.subr.bf16.mxu0 %v14861_v38  ;;  %v9571_v22 = vpop.f32.mrb[79].mxu1  ;;  %v14877_v32 = vcombine.high %v1649_v55, %v1653_v19  ;;  %v15005_v35 = vcombine.high %v1777_v23, %v1781_v31  ;;  %v1657_v38 = vld [vmem:[#allocation10 + $0xa40] sm:$0xff] }
 0x58a   :  { %v9569_v60 = vadd.f32 %v9568_v14, %v9528_v44  ;;  %12658 = vmatprep.subr.bf16.mxu1 %v14989_v4  ;;  %v14885_v30 = vcombine.high %v1657_v38, %v1661_v5  ;;  %v1665_v12 = vld [vmem:[#allocation10 + $0xa80] sm:$0xff]  ;;  %v15021_v51 = vcombine.high %v1793_v28, %v1797_v26 }
 0x58b   :  { %v9846_v3 = vadd.f32 %v9567_v25, %v15593_v29  ;;  %v1785_v29 = vld [vmem:[#allocation10 + $0xe40] sm:$0xff]  ;;  %v14893_v14 = vcombine.high %v1665_v12, %v1669_v7 }
 0x58c   :  { %v9847_v27 = vadd.f32 %v9569_v60, %v15597_v42  ;;  %12618 = vmatpush1.bf16.msra.mxu0 %v14860_v54  ;;  %v14876_v42 = vcombine.low %v1649_v55, %v1653_v19  ;;  %v15013_v17 = vcombine.high %v1785_v29, %v1789_v11  ;;  %v15012_v44 = vcombine.low %v1785_v29, %v1789_v11  ;;  %v1673_v54 = vld [vmem:[#allocation10 + $0xac0] sm:$0xff] }
 0x58d   :  { %v9895_v33 = vadd.f32 %v9870_v62, %v9846_v3  ;;  %12659 = vmatpush1.bf16.msra.mxu1 %v14988_v50  ;;  %12619 = vmatprep.subr.bf16.mxu0 %v14869_v13  ;;  %v14884_v62 = vcombine.low %v1657_v38, %v1661_v5  ;;  %v1677_v25 = vld [vmem:[#allocation10 + $0xae0] sm:$0xff]  ;;  %v14892_v50 = vcombine.low %v1665_v12, %v1669_v7 }
 0x58e   :  { %v9896_v6 = vadd.f32 %v9874_v9, %v9847_v27  ;;  %12660 = vmatprep.subr.bf16.mxu1 %v14997_v43  ;;  %v1801_v2 = vld [vmem:[#allocation10 + $0xec0] sm:$0xff]  ;;  %v15020_v60 = vcombine.low %v1793_v28, %v1797_v26  ;;  %v14901_v9 = vcombine.high %v1673_v54, %v1677_v25 }
 0x58f   :  { %v14552_v4 = vmul.f32 -1.442695, %v9895_v33  ;;  %v1805_v56 = vld [vmem:[#allocation10 + $0xee0] sm:$0xff] }
 0x590   :  { %v14553_v61 = vmul.f32 -1.442695, %v9896_v6  ;;  %12620 = vmatpush1.bf16.msra.mxu0 %v14868_v34  ;;  %v15029_v43 = vcombine.high %v1801_v2, %v1805_v56  ;;  %v1681_v55 = vld [vmem:[#allocation10 + $0xb00] sm:$0xff]  ;;  %v14900_v34 = vcombine.low %v1673_v54, %v1677_v25 }
 0x591   :  { %15127 = vpow2.f32 %v14552_v4  ;;  %12661 = vmatpush1.bf16.msra.mxu1 %v14996_v47  ;;  %12621 = vmatprep.subr.bf16.mxu0 %v14877_v32  ;;  %v15124_v13 = vpop.eup %15123  ;;  %v1685_v19 = vld [vmem:[#allocation10 + $0xb20] sm:$0xff]  ;;  %v15028_v32 = vcombine.low %v1801_v2, %v1805_v56 }
 0x592   :  { %15129 = vpow2.f32 %v14553_v61  ;;  %12662 = vmatprep.subr.bf16.mxu1 %v15005_v35  ;;  %v15126_v22 = vpop.eup %15125  ;;  %v1809_v3 = vld [vmem:[#allocation10 + $0xf00] sm:$0xff]  ;;  %v9822_v49 = vadd.f32 1.0, %v15124_v13  ;;  %v14909_v6 = vcombine.high %v1681_v55, %v1685_v19  ;;  %v14908_v11 = vcombine.low %v1681_v55, %v1685_v19  ;;  %v1334_v55 = vld [vmem:[#allocation10 + $0x28] sm:$0xff] }
 0x593   :  { %v1813_v23 = vld [vmem:[#allocation10 + $0xf20] sm:$0xff]  ;;  %v9824_v33 = vadd.f32 1.0, %v15126_v22 }
 0x594   :  { %12622 = vmatpush1.bf16.msra.mxu0 %v14876_v42  ;;  %v15037_v35 = vcombine.high %v1809_v3, %v1813_v23  ;;  %v1689_v38 = vld [vmem:[#allocation10 + $0xb40] sm:$0xff]  ;;  %v15036_v61 = vcombine.low %v1809_v3, %v1813_v23  ;;  %v1462_v3 = vld [vmem:[#allocation10 + $0x428] sm:$0xff] }
 0x595   :  { %12663 = vmatpush1.bf16.msra.mxu1 %v15004_v48  ;;  %12623 = vmatprep.subr.bf16.mxu0 %v14885_v30  ;;  %v1693_v5 = vld [vmem:[#allocation10 + $0xb60] sm:$0xff] }
 0x596   :  { %12664 = vmatprep.subr.bf16.mxu1 %v15013_v17  ;;  %v1817_v4 = vld [vmem:[#allocation10 + $0xf40] sm:$0xff]  ;;  %v14917_v42 = vcombine.high %v1689_v38, %v1693_v5  ;;  %v14916_v28 = vcombine.low %v1689_v38, %v1693_v5  ;;  %v1466_v5 = vld [vmem:[#allocation10 + $0x448] sm:$0xff] }
 0x597   :  { %v1821_v29 = vld [vmem:[#allocation10 + $0xf60] sm:$0xff] }
 0x598   :  { %12624 = vmatpush1.bf16.msra.mxu0 %v14884_v62  ;;  %v15045_v48 = vcombine.high %v1817_v4, %v1821_v29  ;;  %v1697_v30 = vld [vmem:[#allocation10 + $0xb80] sm:$0xff]  ;;  %v15044_v26 = vcombine.low %v1817_v4, %v1821_v29  ;;  %v1470_v4 = vld [vmem:[#allocation10 + $0x468] sm:$0xff] }
 0x599   :  { %12665 = vmatpush1.bf16.msra.mxu1 %v15012_v44  ;;  %12625 = vmatprep.subr.bf16.mxu0 %v14893_v14  ;;  %v1701_v17 = vld [vmem:[#allocation10 + $0xba0] sm:$0xff] }
 0x59a   :  { %12666 = vmatprep.subr.bf16.mxu1 %v15021_v51  ;;  %v1825_v12 = vld [vmem:[#allocation10 + $0xf80] sm:$0xff]  ;;  %v14925_v62 = vcombine.high %v1697_v30, %v1701_v17  ;;  %v14924_v56 = vcombine.low %v1697_v30, %v1701_v17  ;;  %v1350_v30 = vld [vmem:[#allocation10 + $0xa8] sm:$0xff]  ;;  %v14695_v17 = vcombine.high %v1466_v5, %v1470_v4 }
 0x59b   :  { %v15128_v58 = vpop.eup %15127  ;;  %v1829_v7 = vld [vmem:[#allocation10 + $0xfa0] sm:$0xff] }
 0x59c   :  { %v15130_v31 = vpop.eup %15129  ;;  %v9927_v27 = vadd.f32 1.0, %v15128_v58  ;;  %12626 = vmatpush1.bf16.msra.mxu0 %v14892_v50  ;;  %v15053_v44 = vcombine.high %v1825_v12, %v1829_v7  ;;  %v1705_v14 = vld [vmem:[#allocation10 + $0xbc0] sm:$0xff]  ;;  %v15052_v13 = vcombine.low %v1825_v12, %v1829_v7  ;;  %v1458_v58 = vld [vmem:[#allocation10 + $0x408] sm:$0xff] }
 0x59d   :  { %v9928_v47 = vadd.f32 1.0, %v15130_v31  ;;  %12667 = vmatpush1.bf16.msra.mxu1 %v15020_v60  ;;  %12627 = vmatprep.subr.bf16.mxu0 %v14901_v9  ;;  %v1709_v51 = vld [vmem:[#allocation10 + $0xbe0] sm:$0xff]  ;;  %v1474_v12 = vld [vmem:[#allocation10 + $0x488] sm:$0xff] }
 0x59e   :  { %15131 = vrcp.f32 %v9927_v27  ;;  %12668 = vmatprep.subr.bf16.mxu1 %v15029_v43  ;;  %v1833_v54 = vld [vmem:[#allocation10 + $0xfc0] sm:$0xff]  ;;  %v14933_v60 = vcombine.high %v1705_v14, %v1709_v51  ;;  %v1330_v43 = vld [vmem:[#allocation10 + $0x8] sm:$0xff]  ;;  %v14932_v23 = vcombine.low %v1705_v14, %v1709_v51 }
 0x59f   :  { %15133 = vrcp.f32 %v9928_v47  ;;  %v1837_v25 = vld [vmem:[#allocation10 + $0xfe0] sm:$0xff]  ;;  %v14558_v38 = vcombine.low %v1330_v43, %v1334_v55  ;;  %v1478_v7 = vld [vmem:[#allocation10 + $0x4a8] sm:$0xff] }
 0x5a0   :  { %15135 = vrcp.f32 %v9822_v49  ;;  %12628 = vmatpush1.bf16.msra.mxu0 %v14900_v34  ;;  %v15061_v22 = vcombine.high %v1833_v54, %v1837_v25  ;;  %v15060_v31 = vcombine.low %v1833_v54, %v1837_v25  ;;  %v15171_v49 = vld [vmem:[#allocation5 + $0x20] sm:$0xff]  ;;  %v14559_v34 = vcombine.high %v1330_v43, %v1334_v55  ;;  %v1354_v14 = vld [vmem:[#allocation10 + $0xc8] sm:$0xff] }
 0x5a1   :  { %15137 = vrcp.f32 %v9824_v33  ;;  %12669 = vmatpush1.bf16.msra.mxu1 %v15028_v32  ;;  %12629 = vmatprep.subr.bf16.mxu0 %v14909_v6  ;;  %v15172_v33 = vld [vmem:[#allocation5 + $0x30] sm:$0xff]  ;;  %v14687_v32 = vcombine.high %v1458_v58, %v1462_v3  ;;  %v1338_v6 = vld [vmem:[#allocation10 + $0x48] sm:$0xff] }
 0x5a2   :  { %12670 = vmatprep.subr.bf16.mxu1 %v15037_v35  ;;  %v1342_v35 = vld [vmem:[#allocation10 + $0x68] sm:$0xff] }
 0x5a3   :  { %v1358_v51 = vld [vmem:[#allocation10 + $0xe8] sm:$0xff] }
 0x5a4   :  { %12630 = vmatpush1.bf16.msra.mxu0 %v14908_v11  ;;  %v14686_v11 = vcombine.low %v1458_v58, %v1462_v3  ;;  %v1482_v54 = vld [vmem:[#allocation10 + $0x4c8] sm:$0xff]  ;;  %v14582_v55 = vcombine.low %v1354_v14, %v1358_v51 }
 0x5a5   :  { %12671 = vmatpush1.bf16.msra.mxu1 %v15036_v61  ;;  %12631 = vmatprep.subr.bf16.mxu0 %v14917_v42  ;;  %v14567_v42 = vcombine.high %v1338_v6, %v1342_v35  ;;  %v1486_v25 = vld [vmem:[#allocation10 + $0x4e8] sm:$0xff] }
 0x5a6   :  { %12672 = vmatprep.subr.bf16.mxu1 %v15045_v48  ;;  %v1346_v48 = vld [vmem:[#allocation10 + $0x88] sm:$0xff] }
 0x5a7   :  { %v1494_v43 = vld [vmem:[#allocation10 + $0x528] sm:$0xff] }
 0x5a8   :  { %v15132_v2 = vpop.eup %15131  ;;  %12632 = vmatpush1.bf16.msra.mxu0 %v14916_v28  ;;  %v14566_v28 = vcombine.low %v1338_v6, %v1342_v35  ;;  %v1378_v6 = vld [vmem:[#allocation10 + $0x188] sm:$0xff] }
 0x5a9   :  { %v15134_v50 = vpop.eup %15133  ;;  %13288 = vst [vmem:[#allocation14 + $0x20] sm:$0xff] %v15132_v2  ;;  %12673 = vmatpush1.bf16.msra.mxu1 %v15044_v26  ;;  %12633 = vmatprep.subr.bf16.mxu0 %v14925_v62  ;;  %v14694_v26 = vcombine.low %v1466_v5, %v1470_v4  ;;  %v14575_v62 = vcombine.high %v1346_v48, %v1350_v30  ;;  %v1382_v35 = vld [vmem:[#allocation10 + $0x1a8] sm:$0xff] }
 0x5aa   :  { %v15136_v9 = vpop.eup %15135  ;;  %13289 = vst [vmem:[#allocation14 + $0x28] sm:$0xff] %v15134_v50  ;;  %12674 = vmatprep.subr.bf16.mxu1 %v15053_v44  ;;  %v14703_v44 = vcombine.high %v1474_v12, %v1478_v7  ;;  %v14574_v2 = vcombine.low %v1346_v48, %v1350_v30  ;;  %v14583_v50 = vcombine.high %v1354_v14, %v1358_v51  ;;  %v1510_v5 = vld [vmem:[#allocation10 + $0x5a8] sm:$0xff] }
 0x5ab   :  { %v15138_v19 = vpop.eup %15137  ;;  %v9951_v27 = vmul.f32 %v15171_v49, %v15136_v9  ;;  %v1366_v9 = vld [vmem:[#allocation10 + $0x128] sm:$0xff] }
 0x5ac   :  { %12634 = vmatpush1.bf16.msra.mxu0 %v14924_v56  ;;  %v9953_v47 = vmul.f32 %v15172_v33, %v15138_v19  ;;  %v14702_v56 = vcombine.low %v1474_v12, %v1478_v7  ;;  %v14710_v19 = vcombine.low %v1482_v54, %v1486_v25  ;;  %v1498_v49 = vld [vmem:[#allocation10 + $0x548] sm:$0xff] }
 0x5ad   :  { %12675 = vmatpush1.bf16.msra.mxu1 %v15052_v13  ;;  %12635 = vmatprep.subr.bf16.mxu0 %v14933_v60  ;;  %v15828_v29 = vpack.c.bf16 %v9951_v27, %v9951_v27  ;;  %v14711_v13 = vcombine.high %v1482_v54, %v1486_v25  ;;  %v1362_v60 = vld [vmem:[#allocation10 + $0x108] sm:$0xff]  ;;  %v14606_v54 = vcombine.low %v1378_v6, %v1382_v35 }
 0x5ae   :  { %12676 = vmatprep.subr.bf16.mxu1 %v15061_v22  ;;  %v15830_v61 = vpack.c.bf16 %v9953_v47, %v9953_v47  ;;  %v1490_v22 = vld [vmem:[#allocation10 + $0x508] sm:$0xff]  ;;  %v14591_v58 = vcombine.high %v1362_v60, %v1366_v9 }
 0x5af   :  { %v14719_v3 = vcombine.high %v1490_v22, %v1494_v43  ;;  %v1502_v27 = vld [vmem:[#allocation10 + $0x568] sm:$0xff]  ;;  %v14718_v33 = vcombine.low %v1490_v22, %v1494_v43 }
 0x5b0   :  { %12636 = vmatpush1.bf16.msra.mxu0 %v14932_v23  ;;  %v1370_v23 = vld [vmem:[#allocation10 + $0x148] sm:$0xff] }
 0x5b1   :  { %12677 = vmatpush1.bf16.msra.mxu1 %v15060_v31  ;;  %12687 = vmatprep.subr.bf16.mxu0 %v14559_v34  ;;  %v1374_v31 = vld [vmem:[#allocation10 + $0x168] sm:$0xff]  ;;  %v14590_v34 = vcombine.low %v1362_v60, %v1366_v9 }
 0x5b2   :  { %12728 = vmatprep.subr.bf16.mxu1 %v14687_v32  ;;  %v14599_v47 = vcombine.high %v1370_v23, %v1374_v31  ;;  %v14727_v32 = vcombine.high %v1498_v49, %v1502_v27  ;;  %v14598_v4 = vcombine.low %v1370_v23, %v1374_v31  ;;  %v1390_v12 = vld [vmem:[#allocation10 + $0x1e8] sm:$0xff] }
 0x5b3   :  { %12638 = vmatmul.mubr.bf16.vlgmr.msra.gmra.mrb[92].mxu0 %v15828_v29  ;;  %v1394_v22 = vld [vmem:[#allocation10 + $0x208] sm:$0xff] }
 0x5b4   :  { %12679 = vmatmul.mubr.bf16.vlgmr.msra.gmra.mrb[92].mxu1 %v15830_v61  ;;  %12688 = vmatpush1.bf16.msra.mxu0 %v14558_v38  ;;  %v1506_v38 = vld [vmem:[#allocation10 + $0x588] sm:$0xff] }
 0x5b5   :  { %12719 = vmatprep.mubr.bf16.mxu0 %v15766_v0  ;;  %12729 = vmatpush1.bf16.msra.mxu1 %v14686_v11  ;;  %v14726_v11 = vcombine.low %v1498_v49, %v1502_v27  ;;  %v14735_v30 = vcombine.high %v1506_v38, %v1510_v5  ;;  %v1398_v43 = vld [vmem:[#allocation10 + $0x228] sm:$0xff] }
 0x5b6   :  { %12760 = vmatprep.mubr.bf16.mxu1 %v15769_v10  ;;  %12689 = vmatprep.subr.bf16.mxu0 %v14567_v42  ;;  %v14607_v42 = vcombine.high %v1378_v6, %v1382_v35  ;;  %v14623_v23 = vcombine.high %v1394_v22, %v1398_v43  ;;  %v1402_v49 = vld [vmem:[#allocation10 + $0x248] sm:$0xff] }
 0x5b7   :  { %12730 = vmatprep.subr.bf16.mxu1 %v14695_v17  ;;  %v1386_v17 = vld [vmem:[#allocation10 + $0x1c8] sm:$0xff] }
 0x5b8   :  { %12690 = vmatpush1.bf16.msra.mxu0 %v14566_v28  ;;  %v1406_v27 = vld [vmem:[#allocation10 + $0x268] sm:$0xff] }
 0x5b9   :  { %12731 = vmatpush1.bf16.msra.mxu1 %v14694_v26  ;;  %12691 = vmatprep.subr.bf16.mxu0 %v14575_v62  ;;  %v1514_v26 = vld [vmem:[#allocation10 + $0x5c8] sm:$0xff]  ;;  %v14631_v6 = vcombine.high %v1402_v49, %v1406_v27 }
 0x5ba   :  { %12732 = vmatprep.subr.bf16.mxu1 %v14703_v44  ;;  %v1518_v62 = vld [vmem:[#allocation10 + $0x5e8] sm:$0xff] }
 0x5bb   :  { %v14743_v9 = vcombine.high %v1514_v26, %v1518_v62 }
 0x5bc   :  { %12692 = vmatpush1.bf16.msra.mxu0 %v14574_v2 }
 0x5bd   :  { %12733 = vmatpush1.bf16.msra.mxu1 %v14702_v56  ;;  %12693 = vmatprep.subr.bf16.mxu0 %v14583_v50  ;;  %v14734_v50 = vcombine.low %v1506_v38, %v1510_v5  ;;  %v1410_v38 = vld [vmem:[#allocation10 + $0x288] sm:$0xff] }
 0x5be   :  { %12734 = vmatprep.subr.bf16.mxu1 %v14711_v13  ;;  %v14615_v13 = vcombine.high %v1386_v17, %v1390_v12  ;;  %v1414_v5 = vld [vmem:[#allocation10 + $0x2a8] sm:$0xff] }
 0x5c0   :  { %12694 = vmatpush1.bf16.msra.mxu0 %v14582_v55  ;;  %v1522_v55 = vld [vmem:[#allocation10 + $0x608] sm:$0xff] }
 0x5c1   :  { %12735 = vmatpush1.bf16.msra.mxu1 %v14710_v19  ;;  %12695 = vmatprep.subr.bf16.mxu0 %v14591_v58  ;;  %v1526_v19 = vld [vmem:[#allocation10 + $0x628] sm:$0xff]  ;;  %v14614_v58 = vcombine.low %v1386_v17, %v1390_v12 }
 0x5c2   :  { %12736 = vmatprep.subr.bf16.mxu1 %v14719_v3  ;;  %v14742_v3 = vcombine.low %v1514_v26, %v1518_v62  ;;  %v14751_v31 = vcombine.high %v1522_v55, %v1526_v19  ;;  %v1418_v12 = vld [vmem:[#allocation10 + $0x2c8] sm:$0xff]  ;;  %v14638_v62 = vcombine.low %v1410_v38, %v1414_v5 }
 0x5c3   :  { %v1550_v26 = vld [vmem:[#allocation10 + $0x6e8] sm:$0xff] }
 0x5c4   :  { %12696 = vmatpush1.bf16.msra.mxu0 %v14590_v34  ;;  %v1530_v34 = vld [vmem:[#allocation10 + $0x648] sm:$0xff] }
 0x5c5   :  { %12737 = vmatpush1.bf16.msra.mxu1 %v14718_v33  ;;  %12697 = vmatprep.subr.bf16.mxu0 %v14599_v47  ;;  %v1534_v33 = vld [vmem:[#allocation10 + $0x668] sm:$0xff]  ;;  %v14622_v47 = vcombine.low %v1394_v22, %v1398_v43 }
 0x5c6   :  { %v9607_v48 = vpop.f32.mrb[80].mxu0  ;;  %12738 = vmatprep.subr.bf16.mxu1 %v14727_v32  ;;  %v9648_v7 = vpop.f32.mrb[80].mxu1  ;;  %v14750_v32 = vcombine.low %v1522_v55, %v1526_v19  ;;  %v14759_v35 = vcombine.high %v1530_v34, %v1534_v33  ;;  %v1434_v55 = vld [vmem:[#allocation10 + $0x348] sm:$0xff] }
 0x5c7   :  { %v9609_v28 = vpop.f32.mrb[81].mxu0  ;;  %v15836_v44 = vadd.f32 %v9648_v7, %v9607_v48  ;;  %v9650_v14 = vpop.f32.mrb[81].mxu1  ;;  %v14758_v48 = vcombine.low %v1530_v34, %v1534_v33  ;;  %v1422_v7 = vld [vmem:[#allocation10 + $0x2e8] sm:$0xff] }
 0x5c8   :  { %v9611_v51 = vpop.f32.mrb[82].mxu0  ;;  %12698 = vmatpush1.bf16.msra.mxu0 %v14598_v4  ;;  %v15838_v25 = vadd.f32 %v9650_v14, %v9609_v28  ;;  %v9652_v2 = vpop.f32.mrb[82].mxu1  ;;  %v1538_v4 = vld [vmem:[#allocation10 + $0x688] sm:$0xff] }
 0x5c9   :  { %12739 = vmatpush1.bf16.msra.mxu1 %v14726_v11  ;;  %v9612_v56 = vpop.f32.mrb[83].mxu0  ;;  %12699 = vmatprep.subr.bf16.mxu0 %v14607_v42  ;;  %v9653_v60 = vpop.f32.mrb[83].mxu1  ;;  %v1542_v11 = vld [vmem:[#allocation10 + $0x6a8] sm:$0xff]  ;;  %v14630_v42 = vcombine.low %v1402_v49, %v1406_v27  ;;  %v14647_v51 = vcombine.high %v1418_v12, %v1422_v7 }
 0x5ca   :  { %12740 = vmatprep.subr.bf16.mxu1 %v14735_v30  ;;  %v14639_v30 = vcombine.high %v1410_v38, %v1414_v5  ;;  %v14767_v17 = vcombine.high %v1538_v4, %v1542_v11  ;;  %v1546_v28 = vld [vmem:[#allocation10 + $0x6c8] sm:$0xff]  ;;  %v14766_v14 = vcombine.low %v1538_v4, %v1542_v11  ;;  %v14646_v60 = vcombine.low %v1418_v12, %v1422_v7 }
 0x5cb   :  { %v1426_v2 = vld [vmem:[#allocation10 + $0x308] sm:$0xff] }
 0x5cc   :  { %12700 = vmatpush1.bf16.msra.mxu0 %v14606_v54  ;;  %v14775_v54 = vcombine.high %v1546_v28, %v1550_v26  ;;  %v1430_v56 = vld [vmem:[#allocation10 + $0x328] sm:$0xff] }
 0x5cd   :  { %12741 = vmatpush1.bf16.msra.mxu1 %v14734_v50  ;;  %12701 = vmatprep.subr.bf16.mxu0 %v14615_v13  ;;  %v1554_v50 = vld [vmem:[#allocation10 + $0x708] sm:$0xff]  ;;  %v14655_v22 = vcombine.high %v1426_v2, %v1430_v56 }
 0x5ce   :  { %12742 = vmatprep.subr.bf16.mxu1 %v14743_v9  ;;  %v1558_v13 = vld [vmem:[#allocation10 + $0x728] sm:$0xff]  ;;  %v14774_v9 = vcombine.low %v1546_v28, %v1550_v26 }
 0x5cf   :  { %v14783_v43 = vcombine.high %v1554_v50, %v1558_v13  ;;  %v1438_v19 = vld [vmem:[#allocation10 + $0x368] sm:$0xff] }
 0x5d0   :  { %12702 = vmatpush1.bf16.msra.mxu0 %v14614_v58  ;;  %v1562_v58 = vld [vmem:[#allocation10 + $0x748] sm:$0xff]  ;;  %v14663_v49 = vcombine.high %v1434_v55, %v1438_v19 }
 0x5d1   :  { %12743 = vmatpush1.bf16.msra.mxu1 %v14742_v3  ;;  %12703 = vmatprep.subr.bf16.mxu0 %v14623_v23  ;;  %v1566_v3 = vld [vmem:[#allocation10 + $0x768] sm:$0xff]  ;;  %v14654_v23 = vcombine.low %v1426_v2, %v1430_v56 }
 0x5d2   :  { %12744 = vmatprep.subr.bf16.mxu1 %v14751_v31  ;;  %v14782_v31 = vcombine.low %v1554_v50, %v1558_v13  ;;  %v14791_v27 = vcombine.high %v1562_v58, %v1566_v3  ;;  %v1442_v34 = vld [vmem:[#allocation10 + $0x388] sm:$0xff] }
 0x5d3   :  { %v1446_v33 = vld [vmem:[#allocation10 + $0x3a8] sm:$0xff] }
 0x5d4   :  { %12704 = vmatpush1.bf16.msra.mxu0 %v14622_v47  ;;  %v1570_v47 = vld [vmem:[#allocation10 + $0x788] sm:$0xff]  ;;  %v14671_v38 = vcombine.high %v1442_v34, %v1446_v33 }
 0x5d5   :  { %12745 = vmatpush1.bf16.msra.mxu1 %v14750_v32  ;;  %12705 = vmatprep.subr.bf16.mxu0 %v14631_v6  ;;  %v1574_v32 = vld [vmem:[#allocation10 + $0x7a8] sm:$0xff]  ;;  %v14662_v6 = vcombine.low %v1434_v55, %v1438_v19 }
 0x5d6   :  { %12746 = vmatprep.subr.bf16.mxu1 %v14759_v35  ;;  %v14790_v35 = vcombine.low %v1562_v58, %v1566_v3  ;;  %v14799_v5 = vcombine.high %v1570_v47, %v1574_v32  ;;  %v1450_v4 = vld [vmem:[#allocation10 + $0x3c8] sm:$0xff] }
 0x5d7   :  { %v1454_v11 = vld [vmem:[#allocation10 + $0x3e8] sm:$0xff] }
 0x5d8   :  { %12706 = vmatpush1.bf16.msra.mxu0 %v14630_v42  ;;  %v1578_v42 = vld [vmem:[#allocation10 + $0x7c8] sm:$0xff]  ;;  %v14679_v12 = vcombine.high %v1450_v4, %v1454_v11 }
 0x5d9   :  { %12747 = vmatpush1.bf16.msra.mxu1 %v14758_v48  ;;  %12707 = vmatprep.subr.bf16.mxu0 %v14639_v30  ;;  %v1582_v48 = vld [vmem:[#allocation10 + $0x7e8] sm:$0xff]  ;;  %v14670_v30 = vcombine.low %v1442_v34, %v1446_v33 }
 0x5da   :  { %12748 = vmatprep.subr.bf16.mxu1 %v14767_v17  ;;  %v14798_v17 = vcombine.low %v1570_v47, %v1574_v32  ;;  %v14807_v7 = vcombine.high %v1578_v42, %v1582_v48  ;;  %v1586_v28 = vld [vmem:[#allocation10 + $0x808] sm:$0xff] }
 0x5db   :  { %v1590_v26 = vld [vmem:[#allocation10 + $0x828] sm:$0xff] }
 0x5dc   :  { %12708 = vmatpush1.bf16.msra.mxu0 %v14638_v62  ;;  %v1714_v62 = vld [vmem:[#allocation10 + $0xc08] sm:$0xff]  ;;  %v14815_v2 = vcombine.high %v1586_v28, %v1590_v26 }
 0x5dd   :  { %12749 = vmatpush1.bf16.msra.mxu1 %v14766_v14  ;;  %12709 = vmatprep.subr.bf16.mxu0 %v14647_v51  ;;  %v1718_v14 = vld [vmem:[#allocation10 + $0xc28] sm:$0xff]  ;;  %v14678_v51 = vcombine.low %v1450_v4, %v1454_v11 }
 0x5de   :  { %12750 = vmatprep.subr.bf16.mxu1 %v14775_v54  ;;  %v14806_v54 = vcombine.low %v1578_v42, %v1582_v48  ;;  %v14943_v56 = vcombine.high %v1714_v62, %v1718_v14  ;;  %v1594_v50 = vld [vmem:[#allocation10 + $0x848] sm:$0xff] }
 0x5df   :  { %v1598_v13 = vld [vmem:[#allocation10 + $0x868] sm:$0xff] }
 0x5e0   :  { %12710 = vmatpush1.bf16.msra.mxu0 %v14646_v60  ;;  %v14814_v60 = vcombine.low %v1586_v28, %v1590_v26  ;;  %v14823_v55 = vcombine.high %v1594_v50, %v1598_v13  ;;  %v1602_v19 = vld [vmem:[#allocation10 + $0x888] sm:$0xff] }
 0x5e1   :  { %12751 = vmatpush1.bf16.msra.mxu1 %v14774_v9  ;;  %12711 = vmatprep.subr.bf16.mxu0 %v14655_v22  ;;  %v1722_v9 = vld [vmem:[#allocation10 + $0xc48] sm:$0xff] }
 0x5e2   :  { %12752 = vmatprep.subr.bf16.mxu1 %v14783_v43  ;;  %v1726_v22 = vld [vmem:[#allocation10 + $0xc68] sm:$0xff]  ;;  %v14942_v43 = vcombine.low %v1714_v62, %v1718_v14 }
 0x5e3   :  { %v1606_v58 = vld [vmem:[#allocation10 + $0x8a8] sm:$0xff]  ;;  %v14951_v3 = vcombine.high %v1722_v9, %v1726_v22 }
 0x5e4   :  { %12712 = vmatpush1.bf16.msra.mxu0 %v14654_v23  ;;  %v1730_v23 = vld [vmem:[#allocation10 + $0xc88] sm:$0xff]  ;;  %v14831_v34 = vcombine.high %v1602_v19, %v1606_v58 }
 0x5e5   :  { %12753 = vmatpush1.bf16.msra.mxu1 %v14782_v31  ;;  %12713 = vmatprep.subr.bf16.mxu0 %v14663_v49  ;;  %v1734_v31 = vld [vmem:[#allocation10 + $0xca8] sm:$0xff]  ;;  %v14822_v49 = vcombine.low %v1594_v50, %v1598_v13 }
 0x5e6   :  { %12754 = vmatprep.subr.bf16.mxu1 %v14791_v27  ;;  %v14950_v27 = vcombine.low %v1722_v9, %v1726_v22  ;;  %v14959_v33 = vcombine.high %v1730_v23, %v1734_v31  ;;  %v1610_v47 = vld [vmem:[#allocation10 + $0x8c8] sm:$0xff] }
 0x5e7   :  { %v1614_v32 = vld [vmem:[#allocation10 + $0x8e8] sm:$0xff] }
 0x5e8   :  { %12714 = vmatpush1.bf16.msra.mxu0 %v14662_v6  ;;  %v1738_v6 = vld [vmem:[#allocation10 + $0xcc8] sm:$0xff]  ;;  %v14839_v4 = vcombine.high %v1610_v47, %v1614_v32 }
 0x5e9   :  { %12755 = vmatpush1.bf16.msra.mxu1 %v14790_v35  ;;  %12715 = vmatprep.subr.bf16.mxu0 %v14671_v38  ;;  %v1742_v35 = vld [vmem:[#allocation10 + $0xce8] sm:$0xff]  ;;  %v14830_v38 = vcombine.low %v1602_v19, %v1606_v58 }
 0x5ea   :  { %12756 = vmatprep.subr.bf16.mxu1 %v14799_v5  ;;  %v14958_v5 = vcombine.low %v1730_v23, %v1734_v31  ;;  %v14967_v11 = vcombine.high %v1738_v6, %v1742_v35  ;;  %v1618_v42 = vld [vmem:[#allocation10 + $0x908] sm:$0xff] }
 0x5eb   :  { %v1622_v48 = vld [vmem:[#allocation10 + $0x928] sm:$0xff] }
 0x5ec   :  { %12716 = vmatpush1.bf16.msra.mxu0 %v14670_v30  ;;  %v1746_v30 = vld [vmem:[#allocation10 + $0xd08] sm:$0xff]  ;;  %v14847_v28 = vcombine.high %v1618_v42, %v1622_v48 }
 0x5ed   :  { %12757 = vmatpush1.bf16.msra.mxu1 %v14798_v17  ;;  %12717 = vmatprep.subr.bf16.mxu0 %v14679_v12  ;;  %v1750_v17 = vld [vmem:[#allocation10 + $0xd28] sm:$0xff]  ;;  %v14838_v12 = vcombine.low %v1610_v47, %v1614_v32 }
 0x5ee   :  { %12758 = vmatprep.subr.bf16.mxu1 %v14807_v7  ;;  %v14966_v7 = vcombine.low %v1738_v6, %v1742_v35  ;;  %v14975_v26 = vcombine.high %v1746_v30, %v1750_v17  ;;  %v1626_v62 = vld [vmem:[#allocation10 + $0x948] sm:$0xff]  ;;  %v9878_v6 = vrot.slane %v15819_v46, %v15811_v1 }
 0x5ef   :  { %v1630_v14 = vld [vmem:[#allocation10 + $0x968] sm:$0xff] }
 0x5f0   :  { %12718 = vmatpush1.bf16.msra.mxu0 %v14678_v51  ;;  %v1754_v51 = vld [vmem:[#allocation10 + $0xd48] sm:$0xff]  ;;  %v14855_v50 = vcombine.high %v1626_v62, %v1630_v14 }
 0x5f1   :  { %12759 = vmatpush1.bf16.msra.mxu1 %v14806_v54  ;;  %12769 = vmatprep.subr.bf16.mxu0 %v14815_v2  ;;  %v1758_v54 = vld [vmem:[#allocation10 + $0xd68] sm:$0xff]  ;;  %v14846_v2 = vcombine.low %v1618_v42, %v1622_v48 }
 0x5f2   :  { %12810 = vmatprep.subr.bf16.mxu1 %v14943_v56  ;;  %v14974_v56 = vcombine.low %v1746_v30, %v1750_v17  ;;  %v14983_v13 = vcombine.high %v1754_v51, %v1758_v54  ;;  %v1638_v9 = vld [vmem:[#allocation10 + $0x9a8] sm:$0xff]  ;;  %v14982_v19 = vcombine.low %v1754_v51, %v1758_v54 }
 0x5f3   :  { %12720 = vmatmul.mubr.bf16.vlgmr.msra.gmra.mrb[96].mxu0 %v15795_v37  ;;  %v1762_v22 = vld [vmem:[#allocation10 + $0xd88] sm:$0xff] }
 0x5f4   :  { %12761 = vmatmul.mubr.bf16.vlgmr.msra.gmra.mrb[96].mxu1 %v15797_v59  ;;  %12770 = vmatpush1.bf16.msra.mxu0 %v14814_v60  ;;  %v1634_v60 = vld [vmem:[#allocation10 + $0x988] sm:$0xff] }
 0x5f5   :  { %12801 = vmatprep.mubr.bf16.mxu0 %v15800_v52  ;;  %12811 = vmatpush1.bf16.msra.mxu1 %v14942_v43  ;;  %v1766_v43 = vld [vmem:[#allocation10 + $0xda8] sm:$0xff]  ;;  %v14863_v58 = vcombine.high %v1634_v60, %v1638_v9 }
 0x5f6   :  { %12842 = vmatprep.mubr.bf16.mxu1 %v15803_v57  ;;  %12771 = vmatprep.subr.bf16.mxu0 %v14823_v55  ;;  %v14854_v55 = vcombine.low %v1626_v62, %v1630_v14  ;;  %v14991_v23 = vcombine.high %v1762_v22, %v1766_v43  ;;  %v1642_v31 = vld [vmem:[#allocation10 + $0x9c8] sm:$0xff]  ;;  %v14990_v30 = vcombine.low %v1762_v22, %v1766_v43 }
 0x5f7   :  { %12812 = vmatprep.subr.bf16.mxu1 %v14951_v3  ;;  %v1770_v47 = vld [vmem:[#allocation10 + $0xdc8] sm:$0xff] }
 0x5f8   :  { %12772 = vmatpush1.bf16.msra.mxu0 %v14822_v49  ;;  %v1646_v49 = vld [vmem:[#allocation10 + $0x9e8] sm:$0xff] }
 0x5f9   :  { %12813 = vmatpush1.bf16.msra.mxu1 %v14950_v27  ;;  %12773 = vmatprep.subr.bf16.mxu0 %v14831_v34  ;;  %v1774_v32 = vld [vmem:[#allocation10 + $0xde8] sm:$0xff] }
 0x5fa   :  { %12814 = vmatprep.subr.bf16.mxu1 %v14959_v33  ;;  %v1778_v14 = vld [vmem:[#allocation10 + $0xe08] sm:$0xff] }
 0x5fb   :  { %v1782_v51 = vld [vmem:[#allocation10 + $0xe28] sm:$0xff] }
 0x5fc   :  { %12774 = vmatpush1.bf16.msra.mxu0 %v14830_v38  ;;  %v1662_v22 = vld [vmem:[#allocation10 + $0xa68] sm:$0xff] }
 0x5fd   :  { %12815 = vmatpush1.bf16.msra.mxu1 %v14958_v5  ;;  %12775 = vmatprep.subr.bf16.mxu0 %v14839_v4  ;;  %v14862_v4 = vcombine.low %v1634_v60, %v1638_v9  ;;  %v1658_v9 = vld [vmem:[#allocation10 + $0xa48] sm:$0xff] }
 0x5fe   :  { %12816 = vmatprep.subr.bf16.mxu1 %v14967_v11 }
 0x600   :  { %12776 = vmatpush1.bf16.msra.mxu0 %v14838_v12  ;;  %v9882_v12 = vrot.slane %v15819_v46, %v15777_v16  ;;  %v15007_v46 = vcombine.high %v1778_v14, %v1782_v51 }
 0x601   :  { %12817 = vmatpush1.bf16.msra.mxu1 %v14966_v7  ;;  %12777 = vmatprep.subr.bf16.mxu0 %v14847_v28  ;;  %v14999_v28 = vcombine.high %v1770_v47, %v1774_v32 }
 0x602   :  { %12818 = vmatprep.subr.bf16.mxu1 %v14975_v26  ;;  %v1650_v26 = vld [vmem:[#allocation10 + $0xa08] sm:$0xff] }
 0x604   :  { %12778 = vmatpush1.bf16.msra.mxu0 %v14846_v2  ;;  %v14870_v2 = vcombine.low %v1642_v31, %v1646_v49 }
 0x605   :  { %12819 = vmatpush1.bf16.msra.mxu1 %v14974_v56  ;;  %12779 = vmatprep.subr.bf16.mxu0 %v14855_v50  ;;  %v14998_v50 = vcombine.low %v1770_v47, %v1774_v32 }
 0x606   :  { %v9689_v3 = vpop.f32.mrb[84].mxu0  ;;  %12820 = vmatprep.subr.bf16.mxu1 %v14983_v13  ;;  %v9730_v34 = vpop.f32.mrb[84].mxu1 }
 0x607   :  { %v9690_v27 = vadd.f32 %v9689_v3, %v15836_v44  ;;  %v9691_v33 = vpop.f32.mrb[85].mxu0  ;;  %v9732_v38 = vpop.f32.mrb[85].mxu1  ;;  %v14871_v44 = vcombine.high %v1642_v31, %v1646_v49  ;;  %v14887_v3 = vcombine.high %v1658_v9, %v1662_v22  ;;  %v1666_v31 = vld [vmem:[#allocation10 + $0xa88] sm:$0xff] }
 0x608   :  { %v9692_v35 = vadd.f32 %v9691_v33, %v15838_v25  ;;  %v9693_v5 = vpop.f32.mrb[86].mxu0  ;;  %12780 = vmatpush1.bf16.msra.mxu0 %v14854_v55  ;;  %v9734_v42 = vpop.f32.mrb[86].mxu1  ;;  %v1654_v25 = vld [vmem:[#allocation10 + $0xa28] sm:$0xff]  ;;  %v14886_v33 = vcombine.low %v1658_v9, %v1662_v22 }
 0x609   :  { %v9731_v11 = vadd.f32 %v9730_v34, %v9690_v27  ;;  %12821 = vmatpush1.bf16.msra.mxu1 %v14982_v19  ;;  %v9694_v48 = vpop.f32.mrb[87].mxu0  ;;  %12781 = vmatprep.subr.bf16.mxu0 %v14863_v58  ;;  %v9735_v7 = vpop.f32.mrb[87].mxu1  ;;  %v14879_v13 = vcombine.high %v1650_v26, %v1654_v25  ;;  %v1786_v55 = vld [vmem:[#allocation10 + $0xe48] sm:$0xff]  ;;  %v14878_v58 = vcombine.low %v1650_v26, %v1654_v25 }
 0x60a   :  { %v9733_v17 = vadd.f32 %v9732_v38, %v9692_v35  ;;  %12822 = vmatprep.subr.bf16.mxu1 %v14991_v23  ;;  %v1790_v19 = vld [vmem:[#allocation10 + $0xe68] sm:$0xff] }
 0x60b   :  { %v9848_v62 = vadd.f32 %v9731_v11, %v15595_v40  ;;  %v15015_v23 = vcombine.high %v1786_v55, %v1790_v19  ;;  %v1670_v49 = vld [vmem:[#allocation10 + $0xaa8] sm:$0xff]  ;;  %v15014_v47 = vcombine.low %v1786_v55, %v1790_v19 }
 0x60c   :  { %v9849_v54 = vadd.f32 %v9733_v17, %v15599_v45  ;;  %12782 = vmatpush1.bf16.msra.mxu0 %v14862_v4  ;;  %v15006_v45 = vcombine.low %v1778_v14, %v1782_v51  ;;  %v1794_v27 = vld [vmem:[#allocation10 + $0xe88] sm:$0xff]  ;;  %v14895_v32 = vcombine.high %v1666_v31, %v1670_v49  ;;  %v14894_v11 = vcombine.low %v1666_v31, %v1670_v49 }
 0x60d   :  { %v9897_v56 = vadd.f32 %v9878_v6, %v9848_v62  ;;  %12823 = vmatpush1.bf16.msra.mxu1 %v14990_v30  ;;  %12783 = vmatprep.subr.bf16.mxu0 %v14871_v44  ;;  %v1798_v34 = vld [vmem:[#allocation10 + $0xea8] sm:$0xff] }
 0x60e   :  { %v9898_v60 = vadd.f32 %v9882_v12, %v9849_v54  ;;  %12824 = vmatprep.subr.bf16.mxu1 %v14999_v28  ;;  %v15023_v6 = vcombine.high %v1794_v27, %v1798_v34  ;;  %v1674_v35 = vld [vmem:[#allocation10 + $0xac8] sm:$0xff]  ;;  %v15022_v42 = vcombine.low %v1794_v27, %v1798_v34 }
 0x60f   :  { %v14554_v43 = vmul.f32 -1.442695, %v9897_v56  ;;  %v1678_v38 = vld [vmem:[#allocation10 + $0xae8] sm:$0xff] }
 0x610   :  { %v14555_v40 = vmul.f32 -1.442695, %v9898_v60  ;;  %12784 = vmatpush1.bf16.msra.mxu0 %v14870_v2  ;;  %v1802_v5 = vld [vmem:[#allocation10 + $0xec8] sm:$0xff]  ;;  %v14903_v48 = vcombine.high %v1674_v35, %v1678_v38  ;;  %v14902_v62 = vcombine.low %v1674_v35, %v1678_v38 }
 0x611   :  { %15139 = vpow2.f32 %v14554_v43  ;;  %12825 = vmatpush1.bf16.msra.mxu1 %v14998_v50  ;;  %12785 = vmatprep.subr.bf16.mxu0 %v14879_v13  ;;  %v1806_v4 = vld [vmem:[#allocation10 + $0xee8] sm:$0xff] }
 0x612   :  { %15141 = vpow2.f32 %v14555_v40  ;;  %12826 = vmatprep.subr.bf16.mxu1 %v15007_v46  ;;  %v15031_v30 = vcombine.high %v1802_v5, %v1806_v4  ;;  %v1682_v44 = vld [vmem:[#allocation10 + $0xb08] sm:$0xff]  ;;  %v15030_v51 = vcombine.low %v1802_v5, %v1806_v4  ;;  %v1331_v4 = vld [vmem:[#allocation10 + $0x10] sm:$0xff] }
 0x613   :  { %v1686_v17 = vld [vmem:[#allocation10 + $0xb28] sm:$0xff] }
 0x614   :  { %12786 = vmatpush1.bf16.msra.mxu0 %v14878_v58  ;;  %v1810_v7 = vld [vmem:[#allocation10 + $0xf08] sm:$0xff]  ;;  %v14911_v54 = vcombine.high %v1682_v44, %v1686_v17  ;;  %v14910_v46 = vcombine.low %v1682_v44, %v1686_v17 }
 0x615   :  { %12827 = vmatpush1.bf16.msra.mxu1 %v15006_v45  ;;  %12787 = vmatprep.subr.bf16.mxu0 %v14887_v3  ;;  %v1814_v28 = vld [vmem:[#allocation10 + $0xf28] sm:$0xff] }
 0x616   :  { %12828 = vmatprep.subr.bf16.mxu1 %v15015_v23  ;;  %v15039_v2 = vcombine.high %v1810_v7, %v1814_v28  ;;  %v1690_v56 = vld [vmem:[#allocation10 + $0xb48] sm:$0xff]  ;;  %v15038_v9 = vcombine.low %v1810_v7, %v1814_v28  ;;  %v1339_v7 = vld [vmem:[#allocation10 + $0x50] sm:$0xff] }
 0x617   :  { %v1694_v50 = vld [vmem:[#allocation10 + $0xb68] sm:$0xff]  ;;  %v1343_v28 = vld [vmem:[#allocation10 + $0x70] sm:$0xff] }
 0x618   :  { %12788 = vmatpush1.bf16.msra.mxu0 %v14886_v33  ;;  %v1818_v13 = vld [vmem:[#allocation10 + $0xf48] sm:$0xff]  ;;  %v14919_v22 = vcombine.high %v1690_v56, %v1694_v50  ;;  %v14918_v45 = vcombine.low %v1690_v56, %v1694_v50  ;;  %v1475_v50 = vld [vmem:[#allocation10 + $0x490] sm:$0xff] }
 0x619   :  { %12829 = vmatpush1.bf16.msra.mxu1 %v15014_v47  ;;  %12789 = vmatprep.subr.bf16.mxu0 %v14895_v32  ;;  %v1822_v60 = vld [vmem:[#allocation10 + $0xf68] sm:$0xff] }
 0x61a   :  { %12830 = vmatprep.subr.bf16.mxu1 %v15023_v6  ;;  %v15047_v43 = vcombine.high %v1818_v13, %v1822_v60  ;;  %v1698_v55 = vld [vmem:[#allocation10 + $0xb88] sm:$0xff]  ;;  %v15046_v3 = vcombine.low %v1818_v13, %v1822_v60  ;;  %v1479_v13 = vld [vmem:[#allocation10 + $0x4b0] sm:$0xff]  ;;  %v14568_v60 = vcombine.low %v1339_v7, %v1343_v28 }
 0x61b   :  { %v15140_v12 = vpop.eup %15139  ;;  %v1702_v19 = vld [vmem:[#allocation10 + $0xba8] sm:$0xff] }
 0x61c   :  { %v15142_v26 = vpop.eup %15141  ;;  %v9929_v25 = vadd.f32 1.0, %v15140_v12  ;;  %12790 = vmatpush1.bf16.msra.mxu0 %v14894_v11  ;;  %v1826_v40 = vld [vmem:[#allocation10 + $0xf88] sm:$0xff]  ;;  %v14927_v23 = vcombine.high %v1698_v55, %v1702_v19  ;;  %v14926_v32 = vcombine.low %v1698_v55, %v1702_v19  ;;  %v1335_v11 = vld [vmem:[#allocation10 + $0x30] sm:$0xff] }
 0x61d   :  { %v9930_v14 = vadd.f32 1.0, %v15142_v26  ;;  %12831 = vmatpush1.bf16.msra.mxu1 %v15022_v42  ;;  %12791 = vmatprep.subr.bf16.mxu0 %v14903_v48  ;;  %v1830_v58 = vld [vmem:[#allocation10 + $0xfa8] sm:$0xff]  ;;  %v1459_v42 = vld [vmem:[#allocation10 + $0x410] sm:$0xff]  ;;  %v14561_v17 = vcombine.high %v1331_v4, %v1335_v11  ;;  %v14560_v26 = vcombine.low %v1331_v4, %v1335_v11 }
 0x61e   :  { %15143 = vrcp.f32 %v9929_v25  ;;  %12832 = vmatprep.subr.bf16.mxu1 %v15031_v30  ;;  %v15055_v31 = vcombine.high %v1826_v40, %v1830_v58  ;;  %v1706_v49 = vld [vmem:[#allocation10 + $0xbc8] sm:$0xff]  ;;  %v15054_v35 = vcombine.low %v1826_v40, %v1830_v58  ;;  %v1463_v48 = vld [vmem:[#allocation10 + $0x430] sm:$0xff] }
 0x61f   :  { %15145 = vrcp.f32 %v9930_v14  ;;  %v1710_v27 = vld [vmem:[#allocation10 + $0xbe8] sm:$0xff]  ;;  %v14689_v12 = vcombine.high %v1459_v42, %v1463_v48  ;;  %v1467_v25 = vld [vmem:[#allocation10 + $0x450] sm:$0xff]  ;;  %v14688_v14 = vcombine.low %v1459_v42, %v1463_v48 }
 0x620   :  { %12792 = vmatpush1.bf16.msra.mxu0 %v14902_v62  ;;  %v1834_v34 = vld [vmem:[#allocation10 + $0xfc8] sm:$0xff]  ;;  %v14935_v38 = vcombine.high %v1706_v49, %v1710_v27  ;;  %v14934_v30 = vcombine.low %v1706_v49, %v1710_v27  ;;  %v1471_v62 = vld [vmem:[#allocation10 + $0x470] sm:$0xff] }
 0x621   :  { %12833 = vmatpush1.bf16.msra.mxu1 %v15030_v51  ;;  %12793 = vmatprep.subr.bf16.mxu0 %v14911_v54  ;;  %v1838_v33 = vld [vmem:[#allocation10 + $0xfe8] sm:$0xff]  ;;  %v14569_v51 = vcombine.high %v1339_v7, %v1343_v28  ;;  %v1347_v54 = vld [vmem:[#allocation10 + $0x90] sm:$0xff]  ;;  %v14697_v56 = vcombine.high %v1467_v25, %v1471_v62 }
 0x622   :  { %12834 = vmatprep.subr.bf16.mxu1 %v15039_v2  ;;  %v15063_v5 = vcombine.high %v1834_v34, %v1838_v33  ;;  %v15062_v44 = vcombine.low %v1834_v34, %v1838_v33  ;;  %v1351_v2 = vld [vmem:[#allocation10 + $0xb0] sm:$0xff] }
 0x623   :  { %v1359_v55 = vld [vmem:[#allocation10 + $0xf0] sm:$0xff]  ;;  %v14576_v58 = vcombine.low %v1347_v54, %v1351_v2 }
 0x624   :  { %12794 = vmatpush1.bf16.msra.mxu0 %v14910_v46  ;;  %v14696_v46 = vcombine.low %v1467_v25, %v1471_v62  ;;  %v1483_v19 = vld [vmem:[#allocation10 + $0x4d0] sm:$0xff] }
 0x625   :  { %12835 = vmatpush1.bf16.msra.mxu1 %v15038_v9  ;;  %12795 = vmatprep.subr.bf16.mxu0 %v14919_v22  ;;  %v14577_v9 = vcombine.high %v1347_v54, %v1351_v2  ;;  %v14705_v22 = vcombine.high %v1475_v50, %v1479_v13  ;;  %v1487_v40 = vld [vmem:[#allocation10 + $0x4f0] sm:$0xff] }
 0x626   :  { %12836 = vmatprep.subr.bf16.mxu1 %v15047_v43  ;;  %v1355_v43 = vld [vmem:[#allocation10 + $0xd0] sm:$0xff] }
 0x627   :  { %v1367_v49 = vld [vmem:[#allocation10 + $0x130] sm:$0xff]  ;;  %v14584_v33 = vcombine.low %v1355_v43, %v1359_v55 }
 0x628   :  { %v15852_v47 = vpop.eup %15143  ;;  %12796 = vmatpush1.bf16.msra.mxu0 %v14918_v45  ;;  %v14704_v45 = vcombine.low %v1475_v50, %v1479_v13  ;;  %v1491_v27 = vld [vmem:[#allocation10 + $0x510] sm:$0xff] }
 0x629   :  { %v15854_v6 = vpop.eup %15145  ;;  %13290 = vst [vmem:[#allocation14 + $0x30] sm:$0xff] %v15852_v47  ;;  %12837 = vmatpush1.bf16.msra.mxu1 %v15046_v3  ;;  %12797 = vmatprep.subr.bf16.mxu0 %v14927_v23  ;;  %v14585_v3 = vcombine.high %v1355_v43, %v1359_v55  ;;  %v14713_v23 = vcombine.high %v1483_v19, %v1487_v40  ;;  %v1495_v34 = vld [vmem:[#allocation10 + $0x530] sm:$0xff] }
 0x62a   :  { %13291 = vst [vmem:[#allocation14 + $0x38] sm:$0xff] %v15854_v6  ;;  %12838 = vmatprep.subr.bf16.mxu1 %v15055_v31  ;;  %v1363_v31 = vld [vmem:[#allocation10 + $0x110] sm:$0xff] }
 0x62b   :  { %v1375_v4 = vld [vmem:[#allocation10 + $0x170] sm:$0xff]  ;;  %v14592_v48 = vcombine.low %v1363_v31, %v1367_v49 }
 0x62c   :  { %12798 = vmatpush1.bf16.msra.mxu0 %v14926_v32  ;;  %v14712_v32 = vcombine.low %v1483_v19, %v1487_v40  ;;  %v1499_v11 = vld [vmem:[#allocation10 + $0x550] sm:$0xff] }
 0x62d   :  { %12839 = vmatpush1.bf16.msra.mxu1 %v15054_v35  ;;  %12799 = vmatprep.subr.bf16.mxu0 %v14935_v38  ;;  %v14593_v35 = vcombine.high %v1363_v31, %v1367_v49  ;;  %v14721_v38 = vcombine.high %v1491_v27, %v1495_v34  ;;  %v1503_v42 = vld [vmem:[#allocation10 + $0x570] sm:$0xff] }
 0x62e   :  { %12840 = vmatprep.subr.bf16.mxu1 %v15063_v5  ;;  %v1371_v5 = vld [vmem:[#allocation10 + $0x150] sm:$0xff]  ;;  %v14728_v62 = vcombine.low %v1499_v11, %v1503_v42 }
 0x62f   :  { %v1383_v7 = vld [vmem:[#allocation10 + $0x1b0] sm:$0xff]  ;;  %v14600_v25 = vcombine.low %v1371_v5, %v1375_v4 }
 0x630   :  { %12800 = vmatpush1.bf16.msra.mxu0 %v14934_v30  ;;  %v14720_v30 = vcombine.low %v1491_v27, %v1495_v34  ;;  %v1507_v28 = vld [vmem:[#allocation10 + $0x590] sm:$0xff] }
 0x631   :  { %12841 = vmatpush1.bf16.msra.mxu1 %v15062_v44  ;;  %12851 = vmatprep.subr.bf16.mxu0 %v14561_v17  ;;  %v14601_v44 = vcombine.high %v1371_v5, %v1375_v4  ;;  %v14729_v17 = vcombine.high %v1499_v11, %v1503_v42  ;;  %v1387_v2 = vld [vmem:[#allocation10 + $0x1d0] sm:$0xff] }
 0x632   :  { %12892 = vmatprep.subr.bf16.mxu1 %v14689_v12  ;;  %v1379_v12 = vld [vmem:[#allocation10 + $0x190] sm:$0xff] }
 0x633   :  { %12802 = vmatmul.mubr.bf16.vlgmr.msra.gmra.mrb[100].mxu0 %v15828_v29  ;;  %v14608_v55 = vcombine.low %v1379_v12, %v1383_v7  ;;  %v1395_v49 = vld [vmem:[#allocation10 + $0x210] sm:$0xff] }
 0x634   :  { %12843 = vmatmul.mubr.bf16.vlgmr.msra.gmra.mrb[100].mxu1 %v15830_v61  ;;  %12852 = vmatpush1.bf16.msra.mxu0 %v14560_v26  ;;  %v1511_v26 = vld [vmem:[#allocation10 + $0x5b0] sm:$0xff] }
 0x635   :  { %12883 = vmatprep.mubr.bf16.mxu0 %v15766_v0  ;;  %12893 = vmatpush1.bf16.msra.mxu1 %v14688_v14  ;;  %v14609_v14 = vcombine.high %v1379_v12, %v1383_v7  ;;  %v14737_v54 = vcombine.high %v1507_v28, %v1511_v26  ;;  %v1399_v27 = vld [vmem:[#allocation10 + $0x230] sm:$0xff] }
 0x636   :  { %12924 = vmatprep.mubr.bf16.mxu1 %v15769_v10  ;;  %12853 = vmatprep.subr.bf16.mxu0 %v14569_v51  ;;  %v1523_v34 = vld [vmem:[#allocation10 + $0x610] sm:$0xff] }
 0x637   :  { %12894 = vmatprep.subr.bf16.mxu1 %v14697_v56  ;;  %v1391_v56 = vld [vmem:[#allocation10 + $0x1f0] sm:$0xff] }
 0x638   :  { %12854 = vmatpush1.bf16.msra.mxu0 %v14568_v60  ;;  %v1515_v60 = vld [vmem:[#allocation10 + $0x5d0] sm:$0xff] }
 0x639   :  { %12895 = vmatpush1.bf16.msra.mxu1 %v14696_v46  ;;  %12855 = vmatprep.subr.bf16.mxu0 %v14577_v9  ;;  %v1519_v46 = vld [vmem:[#allocation10 + $0x5f0] sm:$0xff] }
 0x63a   :  { %12896 = vmatprep.subr.bf16.mxu1 %v14705_v22  ;;  %v14745_v31 = vcombine.high %v1515_v60, %v1519_v46  ;;  %v1403_v4 = vld [vmem:[#allocation10 + $0x250] sm:$0xff] }
 0x63b   :  { %v1407_v11 = vld [vmem:[#allocation10 + $0x270] sm:$0xff] }
 0x63c   :  { %12856 = vmatpush1.bf16.msra.mxu0 %v14576_v58  ;;  %v1531_v42 = vld [vmem:[#allocation10 + $0x650] sm:$0xff] }
 0x63d   :  { %12897 = vmatpush1.bf16.msra.mxu1 %v14704_v45  ;;  %12857 = vmatprep.subr.bf16.mxu0 %v14585_v3  ;;  %v14736_v45 = vcombine.low %v1507_v28, %v1511_v26  ;;  %v14617_v3 = vcombine.high %v1387_v2, %v1391_v56  ;;  %v1411_v7 = vld [vmem:[#allocation10 + $0x290] sm:$0xff] }
 0x63e   :  { %12898 = vmatprep.subr.bf16.mxu1 %v14713_v23  ;;  %v1415_v28 = vld [vmem:[#allocation10 + $0x2b0] sm:$0xff] }
 0x63f   :  { %v1539_v26 = vld [vmem:[#allocation10 + $0x690] sm:$0xff] }
 0x640   :  { %12858 = vmatpush1.bf16.msra.mxu0 %v14584_v33  ;;  %v1527_v33 = vld [vmem:[#allocation10 + $0x630] sm:$0xff] }
 0x641   :  { %12899 = vmatpush1.bf16.msra.mxu1 %v14712_v32  ;;  %12859 = vmatprep.subr.bf16.mxu0 %v14593_v35  ;;  %v14616_v32 = vcombine.low %v1387_v2, %v1391_v56  ;;  %v14744_v35 = vcombine.low %v1515_v60, %v1519_v46  ;;  %v14753_v5 = vcombine.high %v1523_v34, %v1527_v33  ;;  %v1419_v2 = vld [vmem:[#allocation10 + $0x2d0] sm:$0xff] }
 0x642   :  { %12900 = vmatprep.subr.bf16.mxu1 %v14721_v38  ;;  %v14625_v38 = vcombine.high %v1395_v49, %v1399_v27  ;;  %v1423_v56 = vld [vmem:[#allocation10 + $0x2f0] sm:$0xff]  ;;  %v14640_v60 = vcombine.low %v1411_v7, %v1415_v28 }
 0x644   :  { %12860 = vmatpush1.bf16.msra.mxu0 %v14592_v48  ;;  %v1535_v48 = vld [vmem:[#allocation10 + $0x670] sm:$0xff] }
 0x645   :  { %12901 = vmatpush1.bf16.msra.mxu1 %v14720_v30  ;;  %12861 = vmatprep.subr.bf16.mxu0 %v14601_v44  ;;  %v14624_v30 = vcombine.low %v1395_v49, %v1399_v27  ;;  %v14752_v44 = vcombine.low %v1523_v34, %v1527_v33  ;;  %v14761_v12 = vcombine.high %v1531_v42, %v1535_v48  ;;  %v1435_v27 = vld [vmem:[#allocation10 + $0x350] sm:$0xff] }
 0x646   :  { %v12557_v51 = vpop.f32.mrb[88].mxu0  ;;  %12902 = vmatprep.subr.bf16.mxu1 %v14729_v17  ;;  %v14633_v17 = vcombine.high %v1403_v4, %v1407_v11  ;;  %v1439_v34 = vld [vmem:[#allocation10 + $0x370] sm:$0xff] }
 0x647   :  { %v12598_v50 = vpop.f32.mrb[88].mxu1  ;;  %v12559_v13 = vpop.f32.mrb[89].mxu0  ;;  %v1563_v33 = vld [vmem:[#allocation10 + $0x750] sm:$0xff] }
 0x648   :  { %v15862_v9 = vadd.f32 %v12598_v50, %v12557_v51  ;;  %v12600_v22 = vpop.f32.mrb[89].mxu1  ;;  %v12561_v43 = vpop.f32.mrb[90].mxu0  ;;  %12862 = vmatpush1.bf16.msra.mxu0 %v14600_v25  ;;  %v1543_v25 = vld [vmem:[#allocation10 + $0x6b0] sm:$0xff]  ;;  %v14641_v51 = vcombine.high %v1411_v7, %v1415_v28 }
 0x649   :  { %v15864_v19 = vadd.f32 %v12600_v22, %v12559_v13  ;;  %v12602_v40 = vpop.f32.mrb[90].mxu1  ;;  %12903 = vmatpush1.bf16.msra.mxu1 %v14728_v62  ;;  %v12562_v58 = vpop.f32.mrb[91].mxu0  ;;  %12863 = vmatprep.subr.bf16.mxu0 %v14609_v14  ;;  %v14632_v62 = vcombine.low %v1403_v4, %v1407_v11  ;;  %v14760_v14 = vcombine.low %v1531_v42, %v1535_v48  ;;  %v1547_v50 = vld [vmem:[#allocation10 + $0x6d0] sm:$0xff] }
 0x64a   :  { %v12603_v23 = vpop.f32.mrb[91].mxu1  ;;  %12904 = vmatprep.subr.bf16.mxu1 %v14737_v54  ;;  %v14769_v54 = vcombine.high %v1539_v26, %v1543_v25  ;;  %v1551_v13 = vld [vmem:[#allocation10 + $0x6f0] sm:$0xff]  ;;  %v14768_v46 = vcombine.low %v1539_v26, %v1543_v25  ;;  %v14649_v22 = vcombine.high %v1419_v2, %v1423_v56 }
 0x64b   :  { %v14777_v43 = vcombine.high %v1547_v50, %v1551_v13  ;;  %v1431_v40 = vld [vmem:[#allocation10 + $0x330] sm:$0xff]  ;;  %v14776_v23 = vcombine.low %v1547_v50, %v1551_v13 }
 0x64c   :  { %12864 = vmatpush1.bf16.msra.mxu0 %v14608_v55  ;;  %v1427_v55 = vld [vmem:[#allocation10 + $0x310] sm:$0xff] }
 0x64d   :  { %12905 = vmatpush1.bf16.msra.mxu1 %v14736_v45  ;;  %12865 = vmatprep.subr.bf16.mxu0 %v14617_v3  ;;  %v1555_v58 = vld [vmem:[#allocation10 + $0x710] sm:$0xff]  ;;  %v14648_v3 = vcombine.low %v1419_v2, %v1423_v56 }
 0x64e   :  { %12906 = vmatprep.subr.bf16.mxu1 %v14745_v31  ;;  %v1559_v45 = vld [vmem:[#allocation10 + $0x730] sm:$0xff]  ;;  %v14657_v31 = vcombine.high %v1427_v55, %v1431_v40 }
 0x64f   :  { %v14785_v49 = vcombine.high %v1555_v58, %v1559_v45  ;;  %v1443_v11 = vld [vmem:[#allocation10 + $0x390] sm:$0xff] }
 0x650   :  { %12866 = vmatpush1.bf16.msra.mxu0 %v14616_v32  ;;  %v1567_v32 = vld [vmem:[#allocation10 + $0x770] sm:$0xff] }
 0x651   :  { %12907 = vmatpush1.bf16.msra.mxu1 %v14744_v35  ;;  %12867 = vmatprep.subr.bf16.mxu0 %v14625_v38  ;;  %v14656_v35 = vcombine.low %v1427_v55, %v1431_v40  ;;  %v14784_v38 = vcombine.low %v1555_v58, %v1559_v45  ;;  %v14793_v4 = vcombine.high %v1563_v33, %v1567_v32  ;;  %v1447_v42 = vld [vmem:[#allocation10 + $0x3b0] sm:$0xff] }
 0x652   :  { %12908 = vmatprep.subr.bf16.mxu1 %v14753_v5  ;;  %v14665_v5 = vcombine.high %v1435_v27, %v1439_v34  ;;  %v1571_v48 = vld [vmem:[#allocation10 + $0x790] sm:$0xff] }
 0x653   :  { %v1451_v28 = vld [vmem:[#allocation10 + $0x3d0] sm:$0xff] }
 0x654   :  { %12868 = vmatpush1.bf16.msra.mxu0 %v14624_v30  ;;  %v1575_v30 = vld [vmem:[#allocation10 + $0x7b0] sm:$0xff] }
 0x655   :  { %12909 = vmatpush1.bf16.msra.mxu1 %v14752_v44  ;;  %12869 = vmatprep.subr.bf16.mxu0 %v14633_v17  ;;  %v14664_v44 = vcombine.low %v1435_v27, %v1439_v34  ;;  %v14792_v17 = vcombine.low %v1563_v33, %v1567_v32  ;;  %v14801_v7 = vcombine.high %v1571_v48, %v1575_v30  ;;  %v1455_v26 = vld [vmem:[#allocation10 + $0x3f0] sm:$0xff] }
 0x656   :  { %12910 = vmatprep.subr.bf16.mxu1 %v14761_v12  ;;  %v14673_v12 = vcombine.high %v1443_v11, %v1447_v42  ;;  %v1579_v25 = vld [vmem:[#allocation10 + $0x7d0] sm:$0xff] }
 0x657   :  { %v1587_v56 = vld [vmem:[#allocation10 + $0x810] sm:$0xff] }
 0x658   :  { %12870 = vmatpush1.bf16.msra.mxu0 %v14632_v62  ;;  %v1583_v62 = vld [vmem:[#allocation10 + $0x7f0] sm:$0xff] }
 0x659   :  { %12911 = vmatpush1.bf16.msra.mxu1 %v14760_v14  ;;  %12871 = vmatprep.subr.bf16.mxu0 %v14641_v51  ;;  %v14672_v14 = vcombine.low %v1443_v11, %v1447_v42  ;;  %v14800_v51 = vcombine.low %v1571_v48, %v1575_v30  ;;  %v14809_v2 = vcombine.high %v1579_v25, %v1583_v62  ;;  %v1591_v50 = vld [vmem:[#allocation10 + $0x830] sm:$0xff] }
 0x65a   :  { %12912 = vmatprep.subr.bf16.mxu1 %v14769_v54  ;;  %v14681_v54 = vcombine.high %v1451_v28, %v1455_v26  ;;  %v1715_v13 = vld [vmem:[#allocation10 + $0xc10] sm:$0xff]  ;;  %v14816_v45 = vcombine.low %v1587_v56, %v1591_v50 }
 0x65b   :  { %v1595_v40 = vld [vmem:[#allocation10 + $0x850] sm:$0xff] }
 0x65c   :  { %12872 = vmatpush1.bf16.msra.mxu0 %v14640_v60  ;;  %v1719_v60 = vld [vmem:[#allocation10 + $0xc30] sm:$0xff] }
 0x65d   :  { %12913 = vmatpush1.bf16.msra.mxu1 %v14768_v46  ;;  %12873 = vmatprep.subr.bf16.mxu0 %v14649_v22  ;;  %v14680_v46 = vcombine.low %v1451_v28, %v1455_v26  ;;  %v14808_v22 = vcombine.low %v1579_v25, %v1583_v62  ;;  %v14945_v55 = vcombine.high %v1715_v13, %v1719_v60  ;;  %v1599_v58 = vld [vmem:[#allocation10 + $0x870] sm:$0xff] }
 0x65e   :  { %12914 = vmatprep.subr.bf16.mxu1 %v14777_v43  ;;  %v14817_v43 = vcombine.high %v1587_v56, %v1591_v50  ;;  %v1603_v27 = vld [vmem:[#allocation10 + $0x890] sm:$0xff] }
 0x65f   :  { %v1607_v34 = vld [vmem:[#allocation10 + $0x8b0] sm:$0xff] }
 0x660   :  { %12874 = vmatpush1.bf16.msra.mxu0 %v14648_v3  ;;  %v1723_v3 = vld [vmem:[#allocation10 + $0xc50] sm:$0xff] }
 0x661   :  { %12915 = vmatpush1.bf16.msra.mxu1 %v14776_v23  ;;  %12875 = vmatprep.subr.bf16.mxu0 %v14657_v31  ;;  %v1727_v23 = vld [vmem:[#allocation10 + $0xc70] sm:$0xff]  ;;  %v14944_v31 = vcombine.low %v1715_v13, %v1719_v60 }
 0x662   :  { %12916 = vmatprep.subr.bf16.mxu1 %v14785_v49  ;;  %v14825_v49 = vcombine.high %v1595_v40, %v1599_v58  ;;  %v14953_v33 = vcombine.high %v1723_v3, %v1727_v23  ;;  %v1731_v32 = vld [vmem:[#allocation10 + $0xc90] sm:$0xff] }
 0x663   :  { %v1611_v42 = vld [vmem:[#allocation10 + $0x8d0] sm:$0xff] }
 0x664   :  { %12876 = vmatpush1.bf16.msra.mxu0 %v14656_v35  ;;  %v1735_v35 = vld [vmem:[#allocation10 + $0xcb0] sm:$0xff] }
 0x665   :  { %12917 = vmatpush1.bf16.msra.mxu1 %v14784_v38  ;;  %12877 = vmatprep.subr.bf16.mxu0 %v14665_v5  ;;  %v14824_v38 = vcombine.low %v1595_v40, %v1599_v58  ;;  %v14952_v5 = vcombine.low %v1723_v3, %v1727_v23  ;;  %v14961_v11 = vcombine.high %v1731_v32, %v1735_v35  ;;  %v1615_v48 = vld [vmem:[#allocation10 + $0x8f0] sm:$0xff] }
 0x666   :  { %12918 = vmatprep.subr.bf16.mxu1 %v14793_v4  ;;  %v14833_v4 = vcombine.high %v1603_v27, %v1607_v34  ;;  %v1739_v30 = vld [vmem:[#allocation10 + $0xcd0] sm:$0xff] }
 0x667   :  { %v1619_v26 = vld [vmem:[#allocation10 + $0x910] sm:$0xff] }
 0x668   :  { %12878 = vmatpush1.bf16.msra.mxu0 %v14664_v44  ;;  %v1743_v44 = vld [vmem:[#allocation10 + $0xcf0] sm:$0xff] }
 0x669   :  { %12919 = vmatpush1.bf16.msra.mxu1 %v14792_v17  ;;  %12879 = vmatprep.subr.bf16.mxu0 %v14673_v12  ;;  %v14832_v17 = vcombine.low %v1603_v27, %v1607_v34  ;;  %v14960_v12 = vcombine.low %v1731_v32, %v1735_v35  ;;  %v14969_v28 = vcombine.high %v1739_v30, %v1743_v44  ;;  %v1623_v25 = vld [vmem:[#allocation10 + $0x930] sm:$0xff] }
 0x66a   :  { %12920 = vmatprep.subr.bf16.mxu1 %v14801_v7  ;;  %v14841_v7 = vcombine.high %v1611_v42, %v1615_v48  ;;  %v1747_v62 = vld [vmem:[#allocation10 + $0xd10] sm:$0xff] }
 0x66b   :  { %v1627_v50 = vld [vmem:[#allocation10 + $0x950] sm:$0xff] }
 0x66c   :  { %12880 = vmatpush1.bf16.msra.mxu0 %v14672_v14  ;;  %v1751_v14 = vld [vmem:[#allocation10 + $0xd30] sm:$0xff] }
 0x66d   :  { %12921 = vmatpush1.bf16.msra.mxu1 %v14800_v51  ;;  %12881 = vmatprep.subr.bf16.mxu0 %v14681_v54  ;;  %v14840_v51 = vcombine.low %v1611_v42, %v1615_v48  ;;  %v14968_v54 = vcombine.low %v1739_v30, %v1743_v44  ;;  %v14977_v56 = vcombine.high %v1747_v62, %v1751_v14  ;;  %v1631_v13 = vld [vmem:[#allocation10 + $0x970] sm:$0xff] }
 0x66e   :  { %12922 = vmatprep.subr.bf16.mxu1 %v14809_v2  ;;  %v14849_v2 = vcombine.high %v1619_v26, %v1623_v25  ;;  %v1755_v60 = vld [vmem:[#allocation10 + $0xd50] sm:$0xff] }
 0x66f   :  { %v1635_v58 = vld [vmem:[#allocation10 + $0x990] sm:$0xff] }
 0x670   :  { %12882 = vmatpush1.bf16.msra.mxu0 %v14680_v46  ;;  %v1759_v46 = vld [vmem:[#allocation10 + $0xd70] sm:$0xff] }
 0x671   :  { %12923 = vmatpush1.bf16.msra.mxu1 %v14808_v22  ;;  %12933 = vmatprep.subr.bf16.mxu0 %v14817_v43  ;;  %v14848_v22 = vcombine.low %v1619_v26, %v1623_v25  ;;  %v14976_v43 = vcombine.low %v1747_v62, %v1751_v14  ;;  %v14985_v40 = vcombine.high %v1755_v60, %v1759_v46  ;;  %v1763_v3 = vld [vmem:[#allocation10 + $0xd90] sm:$0xff] }
 0x672   :  { %12974 = vmatprep.subr.bf16.mxu1 %v14945_v55  ;;  %v14857_v55 = vcombine.high %v1627_v50, %v1631_v13  ;;  %v1767_v23 = vld [vmem:[#allocation10 + $0xdb0] sm:$0xff]  ;;  %v14984_v27 = vcombine.low %v1755_v60, %v1759_v46 }
 0x673   :  { %12884 = vmatmul.mubr.bf16.vlgmr.msra.gmra.mrb[104].mxu0 %v15795_v37  ;;  %v14993_v32 = vcombine.high %v1763_v3, %v1767_v23  ;;  %v1643_v35 = vld [vmem:[#allocation10 + $0x9d0] sm:$0xff]  ;;  %v14992_v62 = vcombine.low %v1763_v3, %v1767_v23 }
 0x674   :  { %12925 = vmatmul.mubr.bf16.vlgmr.msra.gmra.mrb[104].mxu1 %v15797_v59  ;;  %12934 = vmatpush1.bf16.msra.mxu0 %v14816_v45  ;;  %v1639_v45 = vld [vmem:[#allocation10 + $0x9b0] sm:$0xff] }
 0x675   :  { %12965 = vmatprep.mubr.bf16.mxu0 %v15800_v52  ;;  %12975 = vmatpush1.bf16.msra.mxu1 %v14944_v31  ;;  %v14856_v31 = vcombine.low %v1627_v50, %v1631_v13  ;;  %v14865_v34 = vcombine.high %v1635_v58, %v1639_v45  ;;  %v1771_v42 = vld [vmem:[#allocation10 + $0xdd0] sm:$0xff] }
 0x676   :  { %13006 = vmatprep.mubr.bf16.mxu1 %v15803_v57  ;;  %12935 = vmatprep.subr.bf16.mxu0 %v14825_v49  ;;  %v15870_v49 = vld [vmem:[#allocation11 + $0x10] sm:$0xff] }
 0x677   :  { %12976 = vmatprep.subr.bf16.mxu1 %v14953_v33  ;;  %v1775_v48 = vld [vmem:[#allocation10 + $0xdf0] sm:$0xff]  ;;  %v13191_v30 = vrot.slane %v15870_v49, %v15718_v36 }
 0x678   :  { %12936 = vmatpush1.bf16.msra.mxu0 %v14824_v38  ;;  %v1647_v38 = vld [vmem:[#allocation10 + $0x9f0] sm:$0xff]  ;;  %v15001_v36 = vcombine.high %v1771_v42, %v1775_v48 }
 0x679   :  { %12977 = vmatpush1.bf16.msra.mxu1 %v14952_v5  ;;  %12937 = vmatprep.subr.bf16.mxu0 %v14833_v4  ;;  %v1779_v50 = vld [vmem:[#allocation10 + $0xe10] sm:$0xff]  ;;  %v14872_v46 = vcombine.low %v1643_v35, %v1647_v38 }
 0x67a   :  { %12978 = vmatprep.subr.bf16.mxu1 %v14961_v11  ;;  %v1783_v13 = vld [vmem:[#allocation10 + $0xe30] sm:$0xff] }
 0x67b   :  { %v1787_v3 = vld [vmem:[#allocation10 + $0xe50] sm:$0xff] }
 0x67c   :  { %12938 = vmatpush1.bf16.msra.mxu0 %v14832_v17  ;;  %v1791_v23 = vld [vmem:[#allocation10 + $0xe70] sm:$0xff] }
 0x67d   :  { %12979 = vmatpush1.bf16.msra.mxu1 %v14960_v12  ;;  %12939 = vmatprep.subr.bf16.mxu0 %v14841_v7  ;;  %v14864_v7 = vcombine.low %v1635_v58, %v1639_v45  ;;  %v1659_v58 = vld [vmem:[#allocation10 + $0xa50] sm:$0xff] }
 0x67e   :  { %12980 = vmatprep.subr.bf16.mxu1 %v14969_v28  ;;  %v1663_v45 = vld [vmem:[#allocation10 + $0xa70] sm:$0xff] }
 0x680   :  { %12940 = vmatpush1.bf16.msra.mxu0 %v14840_v51  ;;  %v13195_v51 = vrot.slane %v15870_v49, %v15722_v63  ;;  %v15009_v63 = vcombine.high %v1779_v50, %v1783_v13 }
 0x681   :  { %12981 = vmatpush1.bf16.msra.mxu1 %v14968_v54  ;;  %12941 = vmatprep.subr.bf16.mxu0 %v14849_v2  ;;  %v1651_v2 = vld [vmem:[#allocation10 + $0xa10] sm:$0xff] }
 0x682   :  { %12982 = vmatprep.subr.bf16.mxu1 %v14977_v56 }
 0x684   :  { %12942 = vmatpush1.bf16.msra.mxu0 %v14848_v22 }
 0x685   :  { %12983 = vmatpush1.bf16.msra.mxu1 %v14976_v43  ;;  %12943 = vmatprep.subr.bf16.mxu0 %v14857_v55  ;;  %v15000_v43 = vcombine.low %v1771_v42, %v1775_v48 }
 0x686   :  { %v12639_v33 = vpop.f32.mrb[92].mxu0  ;;  %12984 = vmatprep.subr.bf16.mxu1 %v14985_v40 }
 0x687   :  { %v12640_v5 = vadd.f32 %v12639_v33, %v15862_v9  ;;  %v12680_v4 = vpop.f32.mrb[92].mxu1  ;;  %v12641_v11 = vpop.f32.mrb[93].mxu0  ;;  %v14873_v9 = vcombine.high %v1643_v35, %v1647_v38  ;;  %v1671_v33 = vld [vmem:[#allocation10 + $0xab0] sm:$0xff]  ;;  %v14888_v38 = vcombine.low %v1659_v58, %v1663_v45 }
 0x688   :  { %v12642_v44 = vadd.f32 %v12641_v11, %v15864_v19  ;;  %v12682_v17 = vpop.f32.mrb[93].mxu1  ;;  %v12643_v12 = vpop.f32.mrb[94].mxu0  ;;  %12944 = vmatpush1.bf16.msra.mxu0 %v14856_v31  ;;  %v1655_v19 = vld [vmem:[#allocation10 + $0xa30] sm:$0xff]  ;;  %v14889_v31 = vcombine.high %v1659_v58, %v1663_v45  ;;  %v15173_v11 = vld [vmem:[#allocation14] sm:$0xff] }
 0x689   :  { %v12681_v28 = vadd.f32 %v12680_v4, %v12640_v5  ;;  %v12684_v26 = vpop.f32.mrb[94].mxu1  ;;  %12985 = vmatpush1.bf16.msra.mxu1 %v14984_v27  ;;  %v12644_v25 = vpop.f32.mrb[95].mxu0  ;;  %12945 = vmatprep.subr.bf16.mxu0 %v14865_v34  ;;  %v14881_v55 = vcombine.high %v1651_v2, %v1655_v19  ;;  %v15017_v27 = vcombine.high %v1787_v3, %v1791_v23  ;;  %v1667_v34 = vld [vmem:[#allocation10 + $0xa90] sm:$0xff]  ;;  %v13244_v42 = vsub.f32 1.0, %v15173_v11 }
 0x68a   :  { %v12683_v14 = vadd.f32 %v12682_v17, %v12642_v44  ;;  %v12685_v54 = vpop.f32.mrb[95].mxu1  ;;  %12986 = vmatprep.subr.bf16.mxu1 %v14993_v32  ;;  %v1795_v32 = vld [vmem:[#allocation10 + $0xe90] sm:$0xff]  ;;  %v15016_v5 = vcombine.low %v1787_v3, %v1791_v23  ;;  %v14897_v4 = vcombine.high %v1667_v34, %v1671_v33  ;;  %v15174_v17 = vld [vmem:[#allocation14 + $0x8] sm:$0xff]  ;;  %v14896_v26 = vcombine.low %v1667_v34, %v1671_v33 }
 0x68b   :  { %v13179_v56 = vadd.f32 %v12681_v28, %v15601_v15  ;;  %v14880_v15 = vcombine.low %v1651_v2, %v1655_v19  ;;  %v1799_v35 = vld [vmem:[#allocation10 + $0xeb0] sm:$0xff]  ;;  %v13245_v12 = vsub.f32 1.0, %v15174_v17 }
 0x68c   :  { %v13180_v60 = vadd.f32 %v12683_v14, %v15605_v21  ;;  %12946 = vmatpush1.bf16.msra.mxu0 %v14864_v7  ;;  %v15008_v21 = vcombine.low %v1779_v50, %v1783_v13  ;;  %v15025_v48 = vcombine.high %v1795_v32, %v1799_v35  ;;  %v1679_v44 = vld [vmem:[#allocation10 + $0xaf0] sm:$0xff]  ;;  %v15176_v50 = vld [vmem:[#allocation5 + $0x8] sm:$0xff] }
 0x68d   :  { %v13228_v22 = vadd.f32 %v13191_v30, %v13179_v56  ;;  %12987 = vmatpush1.bf16.msra.mxu1 %v14992_v62  ;;  %12947 = vmatprep.subr.bf16.mxu0 %v14873_v9  ;;  %v1675_v30 = vld [vmem:[#allocation10 + $0xad0] sm:$0xff]  ;;  %v15024_v62 = vcombine.low %v1795_v32, %v1799_v35  ;;  %v13253_v13 = vmul.f32 %v15176_v50, %v13245_v12  ;;  %v1344_v50 = vld [vmem:[#allocation10 + $0x78] sm:$0xff] }
 0x68e   :  { %v13229_v40 = vadd.f32 %v13195_v51, %v13180_v60  ;;  %12988 = vmatprep.subr.bf16.mxu1 %v15001_v36  ;;  %v1803_v7 = vld [vmem:[#allocation10 + $0xed0] sm:$0xff]  ;;  %v14905_v9 = vcombine.high %v1675_v30, %v1679_v44  ;;  %v15175_v51 = vld [vmem:[#allocation5] sm:$0xff] }
 0x68f   :  { %15147 = vtanh.f32 %v13228_v22  ;;  %v1807_v28 = vld [vmem:[#allocation10 + $0xef0] sm:$0xff]  ;;  %v13252_v54 = vmul.f32 %v15175_v51, %v13244_v42  ;;  %v1464_v51 = vld [vmem:[#allocation10 + $0x438] sm:$0xff] }
 0x690   :  { %15149 = vtanh.f32 %v13229_v40  ;;  %12948 = vmatpush1.bf16.msra.mxu0 %v14872_v46  ;;  %v15033_v2 = vcombine.high %v1803_v7, %v1807_v28  ;;  %v1683_v19 = vld [vmem:[#allocation10 + $0xb10] sm:$0xff] }
 0x691   :  { %12989 = vmatpush1.bf16.msra.mxu1 %v15000_v43  ;;  %12949 = vmatprep.subr.bf16.mxu0 %v14881_v55  ;;  %v1687_v56 = vld [vmem:[#allocation10 + $0xb30] sm:$0xff]  ;;  %v14904_v55 = vcombine.low %v1675_v30, %v1679_v44 }
 0x692   :  { %12990 = vmatprep.subr.bf16.mxu1 %v15009_v63  ;;  %v1811_v46 = vld [vmem:[#allocation10 + $0xf10] sm:$0xff]  ;;  %v15032_v63 = vcombine.low %v1803_v7, %v1807_v28  ;;  %v14913_v58 = vcombine.high %v1683_v19, %v1687_v56 }
 0x693   :  { %v1815_v22 = vld [vmem:[#allocation10 + $0xf30] sm:$0xff] }
 0x694   :  { %12950 = vmatpush1.bf16.msra.mxu0 %v14880_v15  ;;  %v15041_v45 = vcombine.high %v1811_v46, %v1815_v22  ;;  %v1691_v3 = vld [vmem:[#allocation10 + $0xb50] sm:$0xff] }
 0x695   :  { %12991 = vmatpush1.bf16.msra.mxu1 %v15008_v21  ;;  %12951 = vmatprep.subr.bf16.mxu0 %v14889_v31  ;;  %v1695_v23 = vld [vmem:[#allocation10 + $0xb70] sm:$0xff]  ;;  %v14912_v31 = vcombine.low %v1683_v19, %v1687_v56  ;;  %v1340_v56 = vld [vmem:[#allocation10 + $0x58] sm:$0xff] }
 0x696   :  { %12992 = vmatprep.subr.bf16.mxu1 %v15017_v27  ;;  %v1819_v15 = vld [vmem:[#allocation10 + $0xf50] sm:$0xff]  ;;  %v15040_v27 = vcombine.low %v1811_v46, %v1815_v22  ;;  %v14921_v34 = vcombine.high %v1691_v3, %v1695_v23  ;;  %v1472_v46 = vld [vmem:[#allocation10 + $0x478] sm:$0xff] }
 0x697   :  { %v1823_v21 = vld [vmem:[#allocation10 + $0xf70] sm:$0xff] }
 0x698   :  { %12952 = vmatpush1.bf16.msra.mxu0 %v14888_v38  ;;  %v15049_v33 = vcombine.high %v1819_v15, %v1823_v21  ;;  %v1699_v32 = vld [vmem:[#allocation10 + $0xb90] sm:$0xff] }
 0x699   :  { %v15148_v25 = vpop.eup %15147  ;;  %12993 = vmatpush1.bf16.msra.mxu1 %v15016_v5  ;;  %12953 = vmatprep.subr.bf16.mxu0 %v14897_v4  ;;  %v1703_v35 = vld [vmem:[#allocation10 + $0xbb0] sm:$0xff]  ;;  %v14920_v4 = vcombine.low %v1691_v3, %v1695_v23  ;;  %v14570_v3 = vcombine.low %v1340_v56, %v1344_v50 }
 0x69a   :  { %v15150_v14 = vpop.eup %15149  ;;  %v13260_v36 = vmul.f32 %v15173_v11, %v15148_v25  ;;  %12994 = vmatprep.subr.bf16.mxu1 %v15025_v48  ;;  %v1827_v38 = vld [vmem:[#allocation10 + $0xf90] sm:$0xff]  ;;  %v15048_v11 = vcombine.low %v1819_v15, %v1823_v21  ;;  %v14929_v42 = vcombine.high %v1699_v32, %v1703_v35  ;;  %v14928_v7 = vcombine.low %v1699_v32, %v1703_v35 }
 0x69b   :  { %v13261_v60 = vmul.f32 %v15174_v17, %v15150_v14  ;;  %v1831_v5 = vld [vmem:[#allocation10 + $0xfb0] sm:$0xff]  ;;  %v1460_v14 = vld [vmem:[#allocation10 + $0x418] sm:$0xff] }
 0x69c   :  { %v13268_v43 = vadd.f32 %v13260_v36, %v13252_v54  ;;  %12954 = vmatpush1.bf16.msra.mxu0 %v14896_v26  ;;  %v15057_v48 = vcombine.high %v1827_v38, %v1831_v5  ;;  %v1707_v30 = vld [vmem:[#allocation10 + $0xbd0] sm:$0xff]  ;;  %v15056_v28 = vcombine.low %v1827_v38, %v1831_v5  ;;  %v14691_v19 = vcombine.high %v1460_v14, %v1464_v51  ;;  %v1364_v5 = vld [vmem:[#allocation10 + $0x118] sm:$0xff] }
 0x69d   :  { %v13269_v40 = vadd.f32 %v13261_v60, %v13253_v13  ;;  %12995 = vmatpush1.bf16.msra.mxu1 %v15024_v62  ;;  %12955 = vmatprep.subr.bf16.mxu0 %v14905_v9  ;;  %v1711_v44 = vld [vmem:[#allocation10 + $0xbf0] sm:$0xff]  ;;  %v1332_v62 = vld [vmem:[#allocation10 + $0x18] sm:$0xff]  ;;  %v14690_v22 = vcombine.low %v1460_v14, %v1464_v51 }
 0x69e   :  { %13276 = vst [vmem:[#allocation13] sm:$0xff] %v13268_v43  ;;  %12996 = vmatprep.subr.bf16.mxu1 %v15033_v2  ;;  %v1835_v17 = vld [vmem:[#allocation10 + $0xfd0] sm:$0xff]  ;;  %v14937_v26 = vcombine.high %v1707_v30, %v1711_v44  ;;  %v1336_v9 = vld [vmem:[#allocation10 + $0x38] sm:$0xff]  ;;  %v14936_v54 = vcombine.low %v1707_v30, %v1711_v44  ;;  %v14571_v43 = vcombine.high %v1340_v56, %v1344_v50 }
 0x69f   :  { %13277 = vst [vmem:[#allocation13 + $0x8] sm:$0xff] %v13269_v40  ;;  %v1839_v12 = vld [vmem:[#allocation10 + $0xff0] sm:$0xff]  ;;  %v14563_v2 = vcombine.high %v1332_v62, %v1336_v9  ;;  %v14562_v13 = vcombine.low %v1332_v62, %v1336_v9  ;;  %v1468_v60 = vld [vmem:[#allocation10 + $0x458] sm:$0xff] }
 0x6a0   :  { %12956 = vmatpush1.bf16.msra.mxu0 %v14904_v55  ;;  %v15065_v25 = vcombine.high %v1835_v17, %v1839_v12  ;;  %v15064_v36 = vcombine.low %v1835_v17, %v1839_v12  ;;  %v1348_v55 = vld [vmem:[#allocation10 + $0x98] sm:$0xff]  ;;  %v14698_v23 = vcombine.low %v1468_v60, %v1472_v46 }
 0x6a1   :  { %12997 = vmatpush1.bf16.msra.mxu1 %v15032_v63  ;;  %12957 = vmatprep.subr.bf16.mxu0 %v14913_v58  ;;  %v1352_v40 = vld [vmem:[#allocation10 + $0xb8] sm:$0xff]  ;;  %v14699_v63 = vcombine.high %v1468_v60, %v1472_v46 }
 0x6a2   :  { %12998 = vmatprep.subr.bf16.mxu1 %v15041_v45  ;;  %v1476_v58 = vld [vmem:[#allocation10 + $0x498] sm:$0xff]  ;;  %v14579_v15 = vcombine.high %v1348_v55, %v1352_v40  ;;  %v14578_v32 = vcombine.low %v1348_v55, %v1352_v40 }
 0x6a3   :  { %v1480_v45 = vld [vmem:[#allocation10 + $0x4b8] sm:$0xff] }
 0x6a4   :  { %12958 = vmatpush1.bf16.msra.mxu0 %v14912_v31  ;;  %v14707_v21 = vcombine.high %v1476_v58, %v1480_v45  ;;  %v1356_v31 = vld [vmem:[#allocation10 + $0xd8] sm:$0xff]  ;;  %v14706_v35 = vcombine.low %v1476_v58, %v1480_v45 }
 0x6a5   :  { %12999 = vmatpush1.bf16.msra.mxu1 %v15040_v27  ;;  %12959 = vmatprep.subr.bf16.mxu0 %v14921_v34  ;;  %v1360_v27 = vld [vmem:[#allocation10 + $0xf8] sm:$0xff] }
 0x6a6   :  { %13000 = vmatprep.subr.bf16.mxu1 %v15049_v33  ;;  %v1484_v34 = vld [vmem:[#allocation10 + $0x4d8] sm:$0xff]  ;;  %v14587_v38 = vcombine.high %v1356_v31, %v1360_v27 }
 0x6a7   :  { %v1488_v33 = vld [vmem:[#allocation10 + $0x4f8] sm:$0xff] }
 0x6a8   :  { %12960 = vmatpush1.bf16.msra.mxu0 %v14920_v4  ;;  %v1368_v4 = vld [vmem:[#allocation10 + $0x138] sm:$0xff] }
 0x6a9   :  { %13001 = vmatpush1.bf16.msra.mxu1 %v15048_v11  ;;  %12961 = vmatprep.subr.bf16.mxu0 %v14929_v42  ;;  %v1492_v11 = vld [vmem:[#allocation10 + $0x518] sm:$0xff]  ;;  %v14595_v30 = vcombine.high %v1364_v5, %v1368_v4 }
 0x6aa   :  { %13002 = vmatprep.subr.bf16.mxu1 %v15057_v48  ;;  %v1496_v42 = vld [vmem:[#allocation10 + $0x538] sm:$0xff]  ;;  %v14714_v48 = vcombine.low %v1484_v34, %v1488_v33 }
 0x6ab   :  { %v14723_v44 = vcombine.high %v1492_v11, %v1496_v42  ;;  %v1372_v17 = vld [vmem:[#allocation10 + $0x158] sm:$0xff] }
 0x6ac   :  { %12962 = vmatpush1.bf16.msra.mxu0 %v14928_v7  ;;  %v1376_v12 = vld [vmem:[#allocation10 + $0x178] sm:$0xff] }
 0x6ad   :  { %13003 = vmatpush1.bf16.msra.mxu1 %v15056_v28  ;;  %12963 = vmatprep.subr.bf16.mxu0 %v14937_v26  ;;  %v1500_v7 = vld [vmem:[#allocation10 + $0x558] sm:$0xff]  ;;  %v14594_v26 = vcombine.low %v1364_v5, %v1368_v4  ;;  %v14603_v62 = vcombine.high %v1372_v17, %v1376_v12 }
 0x6ae   :  { %13004 = vmatprep.subr.bf16.mxu1 %v15065_v25  ;;  %v1504_v28 = vld [vmem:[#allocation10 + $0x578] sm:$0xff]  ;;  %v14722_v25 = vcombine.low %v1492_v11, %v1496_v42 }
 0x6af   :  { %v14731_v9 = vcombine.high %v1500_v7, %v1504_v28  ;;  %v1380_v14 = vld [vmem:[#allocation10 + $0x198] sm:$0xff] }
 0x6b0   :  { %12964 = vmatpush1.bf16.msra.mxu0 %v14936_v54  ;;  %v1384_v51 = vld [vmem:[#allocation10 + $0x1b8] sm:$0xff] }
 0x6b1   :  { %13005 = vmatpush1.bf16.msra.mxu1 %v15064_v36  ;;  %13015 = vmatprep.subr.bf16.mxu0 %v14563_v2  ;;  %v1508_v54 = vld [vmem:[#allocation10 + $0x598] sm:$0xff]  ;;  %v14602_v2 = vcombine.low %v1372_v17, %v1376_v12  ;;  %v14611_v56 = vcombine.high %v1380_v14, %v1384_v51 }
 0x6b2   :  { %13056 = vmatprep.subr.bf16.mxu1 %v14691_v19  ;;  %v1512_v36 = vld [vmem:[#allocation10 + $0x5b8] sm:$0xff]  ;;  %v14730_v19 = vcombine.low %v1500_v7, %v1504_v28 }
 0x6b3   :  { %12966 = vmatmul.mubr.bf16.vlgmr.msra.gmra.mrb[108].mxu0 %v15828_v29  ;;  %v1388_v60 = vld [vmem:[#allocation10 + $0x1d8] sm:$0xff] }
 0x6b4   :  { %13007 = vmatmul.mubr.bf16.vlgmr.msra.gmra.mrb[108].mxu1 %v15830_v61  ;;  %13016 = vmatpush1.bf16.msra.mxu0 %v14562_v13  ;;  %v14739_v13 = vcombine.high %v1508_v54, %v1512_v36  ;;  %v1392_v46 = vld [vmem:[#allocation10 + $0x1f8] sm:$0xff] }
 0x6b5   :  { %13047 = vmatprep.mubr.bf16.mxu0 %v15766_v0  ;;  %13057 = vmatpush1.bf16.msra.mxu1 %v14690_v22  ;;  %v14715_v0 = vcombine.high %v1484_v34, %v1488_v33  ;;  %v1516_v55 = vld [vmem:[#allocation10 + $0x5d8] sm:$0xff]  ;;  %v14618_v5 = vcombine.low %v1388_v60, %v1392_v46 }
 0x6b6   :  { %13088 = vmatprep.mubr.bf16.mxu1 %v15769_v10  ;;  %13017 = vmatprep.subr.bf16.mxu0 %v14571_v43  ;;  %v14586_v10 = vcombine.low %v1356_v31, %v1360_v27  ;;  %v1520_v40 = vld [vmem:[#allocation10 + $0x5f8] sm:$0xff]  ;;  %v14738_v31 = vcombine.low %v1508_v54, %v1512_v36  ;;  %v14619_v27 = vcombine.high %v1388_v60, %v1392_v46 }
 0x6b7   :  { %13058 = vmatprep.subr.bf16.mxu1 %v14699_v63  ;;  %v14747_v33 = vcombine.high %v1516_v55, %v1520_v40  ;;  %v14746_v4 = vcombine.low %v1516_v55, %v1520_v40  ;;  %v1432_v55 = vld [vmem:[#allocation10 + $0x338] sm:$0xff] }
 0x6b8   :  { %13018 = vmatpush1.bf16.msra.mxu0 %v14570_v3  ;;  %v14610_v3 = vcombine.low %v1380_v14, %v1384_v51  ;;  %v1556_v40 = vld [vmem:[#allocation10 + $0x718] sm:$0xff] }
 0x6b9   :  { %13059 = vmatpush1.bf16.msra.mxu1 %v14698_v23  ;;  %13019 = vmatprep.subr.bf16.mxu0 %v14579_v15 }
 0x6ba   :  { %13060 = vmatprep.subr.bf16.mxu1 %v14707_v21 }
 0x6bc   :  { %13020 = vmatpush1.bf16.msra.mxu0 %v14578_v32  ;;  %v1396_v32 = vld [vmem:[#allocation10 + $0x218] sm:$0xff] }
 0x6bd   :  { %13061 = vmatpush1.bf16.msra.mxu1 %v14706_v35  ;;  %13021 = vmatprep.subr.bf16.mxu0 %v14587_v38  ;;  %v1400_v35 = vld [vmem:[#allocation10 + $0x238] sm:$0xff] }
 0x6be   :  { %13062 = vmatprep.subr.bf16.mxu1 %v14715_v0  ;;  %v1524_v38 = vld [vmem:[#allocation10 + $0x618] sm:$0xff]  ;;  %v14627_v11 = vcombine.high %v1396_v32, %v1400_v35  ;;  %v14626_v17 = vcombine.low %v1396_v32, %v1400_v35 }
 0x6bf   :  { %v1528_v0 = vld [vmem:[#allocation10 + $0x638] sm:$0xff] }
 0x6c0   :  { %13022 = vmatpush1.bf16.msra.mxu0 %v14586_v10  ;;  %v14755_v42 = vcombine.high %v1524_v38, %v1528_v0  ;;  %v1404_v10 = vld [vmem:[#allocation10 + $0x258] sm:$0xff]  ;;  %v14754_v12 = vcombine.low %v1524_v38, %v1528_v0 }
 0x6c1   :  { %13063 = vmatpush1.bf16.msra.mxu1 %v14714_v48  ;;  %13023 = vmatprep.subr.bf16.mxu0 %v14595_v30  ;;  %v1408_v48 = vld [vmem:[#allocation10 + $0x278] sm:$0xff] }
 0x6c2   :  { %13064 = vmatprep.subr.bf16.mxu1 %v14723_v44  ;;  %v1532_v30 = vld [vmem:[#allocation10 + $0x658] sm:$0xff]  ;;  %v14635_v7 = vcombine.high %v1404_v10, %v1408_v48  ;;  %v14634_v14 = vcombine.low %v1404_v10, %v1408_v48 }
 0x6c3   :  { %v1536_v44 = vld [vmem:[#allocation10 + $0x678] sm:$0xff] }
 0x6c4   :  { %13024 = vmatpush1.bf16.msra.mxu0 %v14594_v26  ;;  %v14763_v28 = vcombine.high %v1532_v30, %v1536_v44  ;;  %v1412_v26 = vld [vmem:[#allocation10 + $0x298] sm:$0xff]  ;;  %v14762_v51 = vcombine.low %v1532_v30, %v1536_v44 }
 0x6c5   :  { %13065 = vmatpush1.bf16.msra.mxu1 %v14722_v25  ;;  %13025 = vmatprep.subr.bf16.mxu0 %v14603_v62  ;;  %v1416_v25 = vld [vmem:[#allocation10 + $0x2b8] sm:$0xff] }
 0x6c6   :  { %v12721_v50 = vpop.f32.mrb[96].mxu0  ;;  %13066 = vmatprep.subr.bf16.mxu1 %v14731_v9  ;;  %v1540_v62 = vld [vmem:[#allocation10 + $0x698] sm:$0xff]  ;;  %v14643_v54 = vcombine.high %v1412_v26, %v1416_v25 }
 0x6c7   :  { %v12762_v22 = vpop.f32.mrb[96].mxu1  ;;  %v12723_v43 = vpop.f32.mrb[97].mxu0  ;;  %v1544_v9 = vld [vmem:[#allocation10 + $0x6b8] sm:$0xff] }
 0x6c8   :  { %v15884_v63 = vadd.f32 %v12762_v22, %v12721_v50  ;;  %v12764_v58 = vpop.f32.mrb[97].mxu1  ;;  %v12725_v45 = vpop.f32.mrb[98].mxu0  ;;  %13026 = vmatpush1.bf16.msra.mxu0 %v14602_v2  ;;  %v14771_v36 = vcombine.high %v1540_v62, %v1544_v9  ;;  %v1420_v2 = vld [vmem:[#allocation10 + $0x2d8] sm:$0xff]  ;;  %v14770_v60 = vcombine.low %v1540_v62, %v1544_v9 }
 0x6c9   :  { %v15886_v23 = vadd.f32 %v12764_v58, %v12723_v43  ;;  %v12766_v15 = vpop.f32.mrb[98].mxu1  ;;  %13067 = vmatpush1.bf16.msra.mxu1 %v14730_v19  ;;  %v12726_v21 = vpop.f32.mrb[99].mxu0  ;;  %13027 = vmatprep.subr.bf16.mxu0 %v14611_v56  ;;  %v1424_v19 = vld [vmem:[#allocation10 + $0x2f8] sm:$0xff] }
 0x6ca   :  { %v12767_v34 = vpop.f32.mrb[99].mxu1  ;;  %13068 = vmatprep.subr.bf16.mxu1 %v14739_v13  ;;  %v1548_v56 = vld [vmem:[#allocation10 + $0x6d8] sm:$0xff]  ;;  %v14642_v13 = vcombine.low %v1412_v26, %v1416_v25  ;;  %v14651_v46 = vcombine.high %v1420_v2, %v1424_v19  ;;  %v14650_v45 = vcombine.low %v1420_v2, %v1424_v19 }
 0x6cb   :  { %v1552_v50 = vld [vmem:[#allocation10 + $0x6f8] sm:$0xff] }
 0x6cc   :  { %13028 = vmatpush1.bf16.msra.mxu0 %v14610_v3  ;;  %v14779_v22 = vcombine.high %v1548_v56, %v1552_v50  ;;  %v1428_v43 = vld [vmem:[#allocation10 + $0x318] sm:$0xff]  ;;  %v14778_v3 = vcombine.low %v1548_v56, %v1552_v50 }
 0x6cd   :  { %13069 = vmatpush1.bf16.msra.mxu1 %v14738_v31  ;;  %13029 = vmatprep.subr.bf16.mxu0 %v14619_v27  ;;  %v1560_v58 = vld [vmem:[#allocation10 + $0x738] sm:$0xff]  ;;  %v14659_v15 = vcombine.high %v1428_v43, %v1432_v55  ;;  %v14658_v32 = vcombine.low %v1428_v43, %v1432_v55 }
 0x6ce   :  { %13070 = vmatprep.subr.bf16.mxu1 %v14747_v33  ;;  %v14787_v21 = vcombine.high %v1556_v40, %v1560_v58  ;;  %v1436_v31 = vld [vmem:[#allocation10 + $0x358] sm:$0xff]  ;;  %v14786_v35 = vcombine.low %v1556_v40, %v1560_v58 }
 0x6cf   :  { %v1440_v27 = vld [vmem:[#allocation10 + $0x378] sm:$0xff] }
 0x6d0   :  { %13030 = vmatpush1.bf16.msra.mxu0 %v14618_v5  ;;  %v1564_v34 = vld [vmem:[#allocation10 + $0x758] sm:$0xff]  ;;  %v14667_v38 = vcombine.high %v1436_v31, %v1440_v27  ;;  %v14666_v10 = vcombine.low %v1436_v31, %v1440_v27 }
 0x6d1   :  { %13071 = vmatpush1.bf16.msra.mxu1 %v14746_v4  ;;  %13031 = vmatprep.subr.bf16.mxu0 %v14627_v11  ;;  %v1568_v33 = vld [vmem:[#allocation10 + $0x778] sm:$0xff] }
 0x6d2   :  { %13072 = vmatprep.subr.bf16.mxu1 %v14755_v42  ;;  %v14795_v0 = vcombine.high %v1564_v34, %v1568_v33  ;;  %v1444_v5 = vld [vmem:[#allocation10 + $0x398] sm:$0xff]  ;;  %v14794_v48 = vcombine.low %v1564_v34, %v1568_v33 }
 0x6d3   :  { %v1448_v4 = vld [vmem:[#allocation10 + $0x3b8] sm:$0xff] }
 0x6d4   :  { %13032 = vmatpush1.bf16.msra.mxu0 %v14626_v17  ;;  %v1572_v11 = vld [vmem:[#allocation10 + $0x798] sm:$0xff]  ;;  %v14675_v30 = vcombine.high %v1444_v5, %v1448_v4  ;;  %v14674_v26 = vcombine.low %v1444_v5, %v1448_v4 }
 0x6d5   :  { %13073 = vmatpush1.bf16.msra.mxu1 %v14754_v12  ;;  %13033 = vmatprep.subr.bf16.mxu0 %v14635_v7  ;;  %v1576_v42 = vld [vmem:[#allocation10 + $0x7b8] sm:$0xff] }
 0x6d6   :  { %13074 = vmatprep.subr.bf16.mxu1 %v14763_v28  ;;  %v14803_v44 = vcombine.high %v1572_v11, %v1576_v42  ;;  %v1452_v17 = vld [vmem:[#allocation10 + $0x3d8] sm:$0xff]  ;;  %v14802_v25 = vcombine.low %v1572_v11, %v1576_v42 }
 0x6d7   :  { %v1456_v12 = vld [vmem:[#allocation10 + $0x3f8] sm:$0xff] }
 0x6d8   :  { %13034 = vmatpush1.bf16.msra.mxu0 %v14634_v14  ;;  %v1580_v7 = vld [vmem:[#allocation10 + $0x7d8] sm:$0xff]  ;;  %v14683_v62 = vcombine.high %v1452_v17, %v1456_v12  ;;  %v14682_v2 = vcombine.low %v1452_v17, %v1456_v12 }
 0x6d9   :  { %13075 = vmatpush1.bf16.msra.mxu1 %v14762_v51  ;;  %13035 = vmatprep.subr.bf16.mxu0 %v14643_v54  ;;  %v1584_v28 = vld [vmem:[#allocation10 + $0x7f8] sm:$0xff] }
 0x6da   :  { %13076 = vmatprep.subr.bf16.mxu1 %v14771_v36  ;;  %v14811_v9 = vcombine.high %v1580_v7, %v1584_v28  ;;  %v1588_v14 = vld [vmem:[#allocation10 + $0x818] sm:$0xff]  ;;  %v14810_v19 = vcombine.low %v1580_v7, %v1584_v28 }
 0x6db   :  { %v1592_v51 = vld [vmem:[#allocation10 + $0x838] sm:$0xff] }
 0x6dc   :  { %13036 = vmatpush1.bf16.msra.mxu0 %v14642_v13  ;;  %v1716_v54 = vld [vmem:[#allocation10 + $0xc18] sm:$0xff]  ;;  %v14819_v56 = vcombine.high %v1588_v14, %v1592_v51 }
 0x6dd   :  { %13077 = vmatpush1.bf16.msra.mxu1 %v14770_v60  ;;  %13037 = vmatprep.subr.bf16.mxu0 %v14651_v46  ;;  %v1720_v36 = vld [vmem:[#allocation10 + $0xc38] sm:$0xff]  ;;  %v14818_v46 = vcombine.low %v1588_v14, %v1592_v51 }
 0x6de   :  { %13078 = vmatprep.subr.bf16.mxu1 %v14779_v22  ;;  %v14947_v50 = vcombine.high %v1716_v54, %v1720_v36  ;;  %v1596_v13 = vld [vmem:[#allocation10 + $0x858] sm:$0xff]  ;;  %v14946_v55 = vcombine.low %v1716_v54, %v1720_v36 }
 0x6df   :  { %v1600_v60 = vld [vmem:[#allocation10 + $0x878] sm:$0xff] }
 0x6e0   :  { %13038 = vmatpush1.bf16.msra.mxu0 %v14650_v45  ;;  %v1724_v22 = vld [vmem:[#allocation10 + $0xc58] sm:$0xff]  ;;  %v14827_v40 = vcombine.high %v1596_v13, %v1600_v60  ;;  %v14826_v31 = vcombine.low %v1596_v13, %v1600_v60 }
 0x6e1   :  { %13079 = vmatpush1.bf16.msra.mxu1 %v14778_v3  ;;  %13039 = vmatprep.subr.bf16.mxu0 %v14659_v15  ;;  %v1728_v43 = vld [vmem:[#allocation10 + $0xc78] sm:$0xff] }
 0x6e2   :  { %13080 = vmatprep.subr.bf16.mxu1 %v14787_v21  ;;  %v1604_v58 = vld [vmem:[#allocation10 + $0x898] sm:$0xff]  ;;  %v14955_v3 = vcombine.high %v1724_v22, %v1728_v43  ;;  %v14954_v27 = vcombine.low %v1724_v22, %v1728_v43 }
 0x6e3   :  { %v1608_v45 = vld [vmem:[#allocation10 + $0x8b8] sm:$0xff] }
 0x6e4   :  { %13040 = vmatpush1.bf16.msra.mxu0 %v14658_v32  ;;  %v1732_v15 = vld [vmem:[#allocation10 + $0xc98] sm:$0xff]  ;;  %v14835_v34 = vcombine.high %v1604_v58, %v1608_v45 }
 0x6e5   :  { %13081 = vmatpush1.bf16.msra.mxu1 %v14786_v35  ;;  %13041 = vmatprep.subr.bf16.mxu0 %v14667_v38  ;;  %v1736_v21 = vld [vmem:[#allocation10 + $0xcb8] sm:$0xff] }
 0x6e6   :  { %13082 = vmatprep.subr.bf16.mxu1 %v14795_v0  ;;  %v14963_v33 = vcombine.high %v1732_v15, %v1736_v21  ;;  %v1612_v32 = vld [vmem:[#allocation10 + $0x8d8] sm:$0xff]  ;;  %v14834_v0 = vcombine.low %v1604_v58, %v1608_v45  ;;  %v13199_v45 = vrot.slane %v15870_v49, %v15753_v53 }
 0x6e7   :  { %v1616_v35 = vld [vmem:[#allocation10 + $0x8f8] sm:$0xff] }
 0x6e8   :  { %13042 = vmatpush1.bf16.msra.mxu0 %v14666_v10  ;;  %v1744_v38 = vld [vmem:[#allocation10 + $0xcf8] sm:$0xff]  ;;  %v14843_v5 = vcombine.high %v1612_v32, %v1616_v35 }
 0x6e9   :  { %13083 = vmatpush1.bf16.msra.mxu1 %v14794_v48  ;;  %13043 = vmatprep.subr.bf16.mxu0 %v14675_v30  ;;  %v1620_v4 = vld [vmem:[#allocation10 + $0x918] sm:$0xff] }
 0x6ea   :  { %13084 = vmatprep.subr.bf16.mxu1 %v14803_v44  ;;  %v1624_v11 = vld [vmem:[#allocation10 + $0x938] sm:$0xff] }
 0x6eb   :  { %v1748_v42 = vld [vmem:[#allocation10 + $0xd18] sm:$0xff]  ;;  %v14851_v30 = vcombine.high %v1620_v4, %v1624_v11 }
 0x6ec   :  { %13044 = vmatpush1.bf16.msra.mxu0 %v14674_v26  ;;  %v1752_v10 = vld [vmem:[#allocation10 + $0xd38] sm:$0xff]  ;;  %v14850_v26 = vcombine.low %v1620_v4, %v1624_v11 }
 0x6ed   :  { %13085 = vmatpush1.bf16.msra.mxu1 %v14802_v25  ;;  %13045 = vmatprep.subr.bf16.mxu0 %v14683_v62  ;;  %v14979_v44 = vcombine.high %v1748_v42, %v1752_v10  ;;  %v1628_v17 = vld [vmem:[#allocation10 + $0x958] sm:$0xff]  ;;  %v14978_v25 = vcombine.low %v1748_v42, %v1752_v10 }
 0x6ee   :  { %13086 = vmatprep.subr.bf16.mxu1 %v14811_v9  ;;  %v1632_v12 = vld [vmem:[#allocation10 + $0x978] sm:$0xff] }
 0x6ef   :  { %v1756_v7 = vld [vmem:[#allocation10 + $0xd58] sm:$0xff]  ;;  %v14859_v62 = vcombine.high %v1628_v17, %v1632_v12 }
 0x6f0   :  { %13046 = vmatpush1.bf16.msra.mxu0 %v14682_v2  ;;  %v1760_v28 = vld [vmem:[#allocation10 + $0xd78] sm:$0xff]  ;;  %v14858_v2 = vcombine.low %v1628_v17, %v1632_v12 }
 0x6f1   :  { %13087 = vmatpush1.bf16.msra.mxu1 %v14810_v19  ;;  %13097 = vmatprep.subr.bf16.mxu0 %v14819_v56  ;;  %v14987_v9 = vcombine.high %v1756_v7, %v1760_v28  ;;  %v1636_v14 = vld [vmem:[#allocation10 + $0x998] sm:$0xff]  ;;  %v14986_v19 = vcombine.low %v1756_v7, %v1760_v28 }
 0x6f2   :  { %13138 = vmatprep.subr.bf16.mxu1 %v14947_v50  ;;  %v1640_v51 = vld [vmem:[#allocation10 + $0x9b8] sm:$0xff] }
 0x6f3   :  { %13048 = vmatmul.mubr.bf16.vlgmr.msra.gmra.mrb[112].mxu0 %v15795_v37  ;;  %v1740_v37 = vld [vmem:[#allocation10 + $0xcd8] sm:$0xff]  ;;  %v14867_v56 = vcombine.high %v1636_v14, %v1640_v51 }
 0x6f4   :  { %13089 = vmatmul.mubr.bf16.vlgmr.msra.gmra.mrb[112].mxu1 %v15797_v59  ;;  %13098 = vmatpush1.bf16.msra.mxu0 %v14818_v46  ;;  %v14962_v59 = vcombine.low %v1732_v15, %v1736_v21  ;;  %v14970_v48 = vcombine.low %v1740_v37, %v1744_v38  ;;  %v1764_v54 = vld [vmem:[#allocation10 + $0xd98] sm:$0xff] }
 0x6f5   :  { %13129 = vmatprep.mubr.bf16.mxu0 %v15800_v52  ;;  %13139 = vmatpush1.bf16.msra.mxu1 %v14946_v55  ;;  %v14971_v52 = vcombine.high %v1740_v37, %v1744_v38  ;;  %v1768_v36 = vld [vmem:[#allocation10 + $0xdb8] sm:$0xff]  ;;  %v13203_v37 = vrot.slane %v15870_v49, %v15746_v41 }
 0x6f6   :  { %13170 = vmatprep.mubr.bf16.mxu1 %v15803_v57  ;;  %13099 = vmatprep.subr.bf16.mxu0 %v14827_v40  ;;  %v14842_v57 = vcombine.low %v1612_v32, %v1616_v35  ;;  %v14995_v13 = vcombine.high %v1764_v54, %v1768_v36  ;;  %v1644_v60 = vld [vmem:[#allocation10 + $0x9d8] sm:$0xff]  ;;  %v14994_v32 = vcombine.low %v1764_v54, %v1768_v36  ;;  %v15177_v54 = vld [vmem:[#allocation14 + $0x10] sm:$0xff] }
 0x6f7   :  { %13140 = vmatprep.subr.bf16.mxu1 %v14955_v3  ;;  %v1648_v46 = vld [vmem:[#allocation10 + $0x9f8] sm:$0xff]  ;;  %v13246_v36 = vsub.f32 1.0, %v15177_v54 }
 0x6f8   :  { %13100 = vmatpush1.bf16.msra.mxu0 %v14826_v31  ;;  %v1772_v40 = vld [vmem:[#allocation10 + $0xdd8] sm:$0xff]  ;;  %v14866_v31 = vcombine.low %v1636_v14, %v1640_v51  ;;  %v14874_v11 = vcombine.low %v1644_v60, %v1648_v46 }
 0x6f9   :  { %13141 = vmatpush1.bf16.msra.mxu1 %v14954_v27  ;;  %13101 = vmatprep.subr.bf16.mxu0 %v14835_v34  ;;  %v1776_v58 = vld [vmem:[#allocation10 + $0xdf8] sm:$0xff] }
 0x6fa   :  { %13142 = vmatprep.subr.bf16.mxu1 %v14963_v33  ;;  %v15003_v53 = vcombine.high %v1772_v40, %v1776_v58  ;;  %v15002_v10 = vcombine.low %v1772_v40, %v1776_v58  ;;  %v1660_v49 = vld [vmem:[#allocation10 + $0xa58] sm:$0xff] }
 0x6fb   :  { %v1792_v17 = vld [vmem:[#allocation10 + $0xe78] sm:$0xff] }
 0x6fc   :  { %13102 = vmatpush1.bf16.msra.mxu0 %v14834_v0  ;;  %v1652_v0 = vld [vmem:[#allocation10 + $0xa18] sm:$0xff] }
 0x6fd   :  { %13143 = vmatpush1.bf16.msra.mxu1 %v14962_v59  ;;  %13103 = vmatprep.subr.bf16.mxu0 %v14843_v5  ;;  %v1780_v5 = vld [vmem:[#allocation10 + $0xe18] sm:$0xff] }
 0x6fe   :  { %13144 = vmatprep.subr.bf16.mxu1 %v14971_v52  ;;  %v1784_v52 = vld [vmem:[#allocation10 + $0xe38] sm:$0xff] }
 0x6ff   :  { %v15011_v41 = vcombine.high %v1780_v5, %v1784_v52  ;;  %v1668_v28 = vld [vmem:[#allocation10 + $0xa98] sm:$0xff] }
 0x700   :  { %13104 = vmatpush1.bf16.msra.mxu0 %v14842_v57 }
 0x701   :  { %13145 = vmatpush1.bf16.msra.mxu1 %v14970_v48  ;;  %13105 = vmatprep.subr.bf16.mxu0 %v14851_v30  ;;  %v1664_v30 = vld [vmem:[#allocation10 + $0xa78] sm:$0xff] }
 0x702   :  { %13146 = vmatprep.subr.bf16.mxu1 %v14979_v44  ;;  %v1788_v44 = vld [vmem:[#allocation10 + $0xe58] sm:$0xff]  ;;  %v14891_v12 = vcombine.high %v1660_v49, %v1664_v30 }
 0x703   :  { %v15019_v7 = vcombine.high %v1788_v44, %v1792_v17  ;;  %v15018_v14 = vcombine.low %v1788_v44, %v1792_v17  ;;  %v1832_v44 = vld [vmem:[#allocation10 + $0xfb8] sm:$0xff] }
 0x704   :  { %13106 = vmatpush1.bf16.msra.mxu0 %v14850_v26  ;;  %v1672_v26 = vld [vmem:[#allocation10 + $0xab8] sm:$0xff] }
 0x705   :  { %13147 = vmatpush1.bf16.msra.mxu1 %v14978_v25  ;;  %13107 = vmatprep.subr.bf16.mxu0 %v14859_v62  ;;  %v1796_v25 = vld [vmem:[#allocation10 + $0xe98] sm:$0xff]  ;;  %v14899_v51 = vcombine.high %v1668_v28, %v1672_v26 }
 0x706   :  { %v12803_v50 = vpop.f32.mrb[100].mxu0  ;;  %13148 = vmatprep.subr.bf16.mxu1 %v14987_v9  ;;  %v1800_v62 = vld [vmem:[#allocation10 + $0xeb8] sm:$0xff]  ;;  %v14890_v9 = vcombine.low %v1660_v49, %v1664_v30 }
 0x707   :  { %v12804_v22 = vadd.f32 %v12803_v50, %v15884_v63  ;;  %v12844_v43 = vpop.f32.mrb[100].mxu1  ;;  %v12805_v55 = vpop.f32.mrb[101].mxu0  ;;  %v14875_v63 = vcombine.high %v1644_v60, %v1648_v46  ;;  %v15178_v50 = vld [vmem:[#allocation14 + $0x18] sm:$0xff]  ;;  %v1804_v60 = vld [vmem:[#allocation10 + $0xed8] sm:$0xff] }
 0x708   :  { %v12806_v3 = vadd.f32 %v12805_v55, %v15886_v23  ;;  %v12846_v15 = vpop.f32.mrb[101].mxu1  ;;  %v12807_v21 = vpop.f32.mrb[102].mxu0  ;;  %13108 = vmatpush1.bf16.msra.mxu0 %v14858_v2  ;;  %v1656_v23 = vld [vmem:[#allocation10 + $0xa38] sm:$0xff]  ;;  %v15027_v2 = vcombine.high %v1796_v25, %v1800_v62  ;;  %v15026_v55 = vcombine.low %v1796_v25, %v1800_v62 }
 0x709   :  { %v12845_v27 = vadd.f32 %v12844_v43, %v12804_v22  ;;  %v12848_v34 = vpop.f32.mrb[102].mxu1  ;;  %13149 = vmatpush1.bf16.msra.mxu1 %v14986_v19  ;;  %v12808_v33 = vpop.f32.mrb[103].mxu0  ;;  %13109 = vmatprep.subr.bf16.mxu0 %v14867_v56  ;;  %v14883_v57 = vcombine.high %v1652_v0, %v1656_v23  ;;  %v1676_v19 = vld [vmem:[#allocation10 + $0xad8] sm:$0xff]  ;;  %v14898_v22 = vcombine.low %v1668_v28, %v1672_v26 }
 0x70a   :  { %v12847_v35 = vadd.f32 %v12846_v15, %v12806_v3  ;;  %v12849_v38 = vpop.f32.mrb[103].mxu1  ;;  %13150 = vmatprep.subr.bf16.mxu1 %v14995_v13  ;;  %v1680_v56 = vld [vmem:[#allocation10 + $0xaf8] sm:$0xff]  ;;  %v13247_v13 = vsub.f32 1.0, %v15178_v50 }
 0x70b   :  { %v13181_v59 = vadd.f32 %v12845_v27, %v15603_v20  ;;  %v14882_v20 = vcombine.low %v1652_v0, %v1656_v23  ;;  %v1808_v46 = vld [vmem:[#allocation10 + $0xef8] sm:$0xff]  ;;  %v14907_v40 = vcombine.high %v1676_v19, %v1680_v56  ;;  %v14906_v38 = vcombine.low %v1676_v19, %v1680_v56 }
 0x70c   :  { %v13182_v4 = vadd.f32 %v12847_v35, %v15607_v24  ;;  %13110 = vmatpush1.bf16.msra.mxu0 %v14866_v31  ;;  %v15010_v24 = vcombine.low %v1780_v5, %v1784_v52  ;;  %v15035_v21 = vcombine.high %v1804_v60, %v1808_v46  ;;  %v1684_v31 = vld [vmem:[#allocation10 + $0xb18] sm:$0xff]  ;;  %v15034_v0 = vcombine.low %v1804_v60, %v1808_v46 }
 0x70d   :  { %v13230_v42 = vadd.f32 %v13199_v45, %v13181_v59  ;;  %13151 = vmatpush1.bf16.msra.mxu1 %v14994_v32  ;;  %13111 = vmatprep.subr.bf16.mxu0 %v14875_v63  ;;  %v15179_v45 = vld [vmem:[#allocation5 + $0x10] sm:$0xff]  ;;  %v1688_v27 = vld [vmem:[#allocation10 + $0xb38] sm:$0xff] }
 0x70e   :  { %v13231_v48 = vadd.f32 %v13203_v37, %v13182_v4  ;;  %13152 = vmatprep.subr.bf16.mxu1 %v15003_v53  ;;  %v13254_v3 = vmul.f32 %v15179_v45, %v13246_v36  ;;  %v15180_v34 = vld [vmem:[#allocation5 + $0x18] sm:$0xff]  ;;  %v14915_v23 = vcombine.high %v1684_v31, %v1688_v27 }
 0x70f   :  { %15151 = vtanh.f32 %v13230_v42  ;;  %v13255_v33 = vmul.f32 %v15180_v34, %v13247_v13  ;;  %v1812_v63 = vld [vmem:[#allocation10 + $0xf18] sm:$0xff]  ;;  %v14914_v42 = vcombine.low %v1684_v31, %v1688_v27  ;;  %v15902_v27 = vld [vmem:[#allocation11 + $0x10] sm:$0xff] }
 0x710   :  { %15153 = vtanh.f32 %v13231_v48  ;;  %13112 = vmatpush1.bf16.msra.mxu0 %v14874_v11  ;;  %v1816_v35 = vld [vmem:[#allocation10 + $0xf38] sm:$0xff] }
 0x711   :  { %13153 = vmatpush1.bf16.msra.mxu1 %v15002_v10  ;;  %13113 = vmatprep.subr.bf16.mxu0 %v14883_v57  ;;  %v15043_v59 = vcombine.high %v1812_v63, %v1816_v35  ;;  %v1692_v5 = vld [vmem:[#allocation10 + $0xb58] sm:$0xff]  ;;  %v15042_v10 = vcombine.low %v1812_v63, %v1816_v35  ;;  %v13211_v63 = vrot.slane %v15902_v27, %v15774_v18 }
 0x712   :  { %13154 = vmatprep.subr.bf16.mxu1 %v15011_v41  ;;  %v1696_v52 = vld [vmem:[#allocation10 + $0xb78] sm:$0xff] }
 0x713   :  { %v1820_v4 = vld [vmem:[#allocation10 + $0xf58] sm:$0xff]  ;;  %v14923_v57 = vcombine.high %v1692_v5, %v1696_v52  ;;  %v14922_v17 = vcombine.low %v1692_v5, %v1696_v52  ;;  %v15183_v52 = vld [vmem:[#allocation14 + $0x28] sm:$0xff] }
 0x714   :  { %13114 = vmatpush1.bf16.msra.mxu0 %v14882_v20  ;;  %v1824_v11 = vld [vmem:[#allocation10 + $0xf78] sm:$0xff] }
 0x715   :  { %13155 = vmatpush1.bf16.msra.mxu1 %v15010_v24  ;;  %13115 = vmatprep.subr.bf16.mxu0 %v14891_v12  ;;  %v15051_v48 = vcombine.high %v1820_v4, %v1824_v11  ;;  %v1700_v41 = vld [vmem:[#allocation10 + $0xb98] sm:$0xff]  ;;  %v15050_v20 = vcombine.low %v1820_v4, %v1824_v11  ;;  %v13249_v4 = vsub.f32 1.0, %v15183_v52 }
 0x716   :  { %13156 = vmatprep.subr.bf16.mxu1 %v15019_v7  ;;  %v1704_v49 = vld [vmem:[#allocation10 + $0xbb8] sm:$0xff] }
 0x717   :  { %v1828_v30 = vld [vmem:[#allocation10 + $0xf98] sm:$0xff]  ;;  %v14931_v24 = vcombine.high %v1700_v41, %v1704_v49  ;;  %v14930_v62 = vcombine.low %v1700_v41, %v1704_v49 }
 0x718   :  { %13116 = vmatpush1.bf16.msra.mxu0 %v14890_v9  ;;  %v15059_v12 = vcombine.high %v1828_v30, %v1832_v44  ;;  %v1708_v7 = vld [vmem:[#allocation10 + $0xbd8] sm:$0xff]  ;;  %v15058_v9 = vcombine.low %v1828_v30, %v1832_v44 }
 0x719   :  { %v15152_v43 = vpop.eup %15151  ;;  %13157 = vmatpush1.bf16.msra.mxu1 %v15018_v14  ;;  %13117 = vmatprep.subr.bf16.mxu0 %v14899_v51  ;;  %v1712_v28 = vld [vmem:[#allocation10 + $0xbf8] sm:$0xff] }
 0x71a   :  { %v15154_v58 = vpop.eup %15153  ;;  %v13262_v15 = vmul.f32 %v15177_v54, %v15152_v43  ;;  %13158 = vmatprep.subr.bf16.mxu1 %v15027_v2  ;;  %v1836_v26 = vld [vmem:[#allocation10 + $0xfd8] sm:$0xff]  ;;  %v14939_v14 = vcombine.high %v1708_v7, %v1712_v28  ;;  %v14938_v54 = vcombine.low %v1708_v7, %v1712_v28 }
 0x71b   :  { %v13263_v32 = vmul.f32 %v15178_v50, %v15154_v58  ;;  %v1840_v25 = vld [vmem:[#allocation10 + $0xff8] sm:$0xff] }
 0x71c   :  { %v13270_v37 = vadd.f32 %v13262_v15, %v13254_v3  ;;  %13118 = vmatpush1.bf16.msra.mxu0 %v14898_v22  ;;  %v15067_v51 = vcombine.high %v1836_v26, %v1840_v25  ;;  %v15066_v36 = vcombine.low %v1836_v26, %v1840_v25 }
 0x71d   :  { %v13271_v53 = vadd.f32 %v13263_v32, %v13255_v33  ;;  %13159 = vmatpush1.bf16.msra.mxu1 %v15026_v55  ;;  %13119 = vmatprep.subr.bf16.mxu0 %v14907_v40 }
 0x71e   :  { %13278 = vst [vmem:[#allocation13 + $0x10] sm:$0xff] %v13270_v37  ;;  %13160 = vmatprep.subr.bf16.mxu1 %v15035_v21 }
 0x71f   :  { %13279 = vst [vmem:[#allocation13 + $0x18] sm:$0xff] %v13271_v53 }
 0x720   :  { %13120 = vmatpush1.bf16.msra.mxu0 %v14906_v38  ;;  %v15955_v38 = vld [vmem:[#allocation23_spill] sm:$0xff] }
 0x721   :  { %13161 = vmatpush1.bf16.msra.mxu1 %v15034_v0  ;;  %13121 = vmatprep.subr.bf16.mxu0 %v14915_v23 }
 0x722   :  { %13162 = vmatprep.subr.bf16.mxu1 %v15043_v59  ;;  %v15182_v59 = vld [vmem:[#allocation14 + $0x20] sm:$0xff] }
 0x723   :  { %v13248_v5 = vsub.f32 1.0, %v15182_v59 }
 0x724   :  { %13122 = vmatpush1.bf16.msra.mxu0 %v14914_v42  ;;  %v15184_v42 = vld [vmem:[#allocation5 + $0x20] sm:$0xff] }
 0x725   :  { %13163 = vmatpush1.bf16.msra.mxu1 %v15042_v10  ;;  %13123 = vmatprep.subr.bf16.mxu0 %v14923_v57  ;;  %v13256_v10 = vmul.f32 %v15184_v42, %v13248_v5 }
 0x726   :  { %13164 = vmatprep.subr.bf16.mxu1 %v15051_v48  ;;  %v15185_v48 = vld [vmem:[#allocation5 + $0x28] sm:$0xff] }
 0x727   :  { %v13257_v18 = vmul.f32 %v15185_v48, %v13249_v4 }
 0x728   :  { %13124 = vmatpush1.bf16.msra.mxu0 %v14922_v17 }
 0x729   :  { %13165 = vmatpush1.bf16.msra.mxu1 %v15050_v20  ;;  %13125 = vmatprep.subr.bf16.mxu0 %v14931_v24 }
 0x72a   :  { %13166 = vmatprep.subr.bf16.mxu1 %v15059_v12 }
 0x72c   :  { %13126 = vmatpush1.bf16.msra.mxu0 %v14930_v62 }
 0x72d   :  { %13167 = vmatpush1.bf16.msra.mxu1 %v15058_v9  ;;  %13127 = vmatprep.subr.bf16.mxu0 %v14939_v14 }
 0x72e   :  { %13168 = vmatprep.subr.bf16.mxu1 %v15067_v51 }
 0x730   :  { %13128 = vmatpush1.bf16.msra.mxu0 %v14938_v54 }
 0x731   :  { %13169 = vmatpush1.bf16.msra.mxu1 %v15066_v36 }
 0x733   :  { %13130 = vmatmul.mubr.bf16.vlgmr.msra.gmra.mrb[116].mxu0 %v15828_v29 }
 0x734   :  { %13171 = vmatmul.mubr.bf16.vlgmr.msra.gmra.mrb[116].mxu1 %v15830_v61  ;;  %v13207_v61 = vrot.slane %v15902_v27, %v15808_v39 }
 0x746   :  { %v12885_v2 = vpop.f32.mrb[104].mxu0 }
 0x747   :  { %v12926_v19 = vpop.f32.mrb[104].mxu1  ;;  %v12887_v56 = vpop.f32.mrb[105].mxu0 }
 0x748   :  { %v12927_v50 = vadd.f32 %v12926_v19, %v12885_v2  ;;  %v12928_v13 = vpop.f32.mrb[105].mxu1  ;;  %v12889_v60 = vpop.f32.mrb[106].mxu0 }
 0x749   :  { %v12929_v46 = vadd.f32 %v12928_v13, %v12887_v56  ;;  %v12930_v22 = vpop.f32.mrb[106].mxu1  ;;  %v12890_v43 = vpop.f32.mrb[107].mxu0 }
 0x74a   :  { %v12931_v55 = vpop.f32.mrb[107].mxu1 }
 0x786   :  { %v12967_v40 = vpop.f32.mrb[108].mxu0 }
 0x787   :  { %v12968_v58 = vadd.f32 %v12967_v40, %v12927_v50  ;;  %v13008_v45 = vpop.f32.mrb[108].mxu1  ;;  %v12969_v3 = vpop.f32.mrb[109].mxu0 }
 0x788   :  { %v12970_v15 = vadd.f32 %v12969_v3, %v12929_v46  ;;  %v13010_v21 = vpop.f32.mrb[109].mxu1  ;;  %v12971_v31 = vpop.f32.mrb[110].mxu0 }
 0x789   :  { %v13009_v29 = vadd.f32 %v13008_v45, %v12968_v58  ;;  %v13012_v34 = vpop.f32.mrb[110].mxu1  ;;  %v12972_v33 = vpop.f32.mrb[111].mxu0 }
 0x78a   :  { %v13011_v32 = vadd.f32 %v13010_v21, %v12970_v15  ;;  %v13013_v35 = vpop.f32.mrb[111].mxu1 }
 0x78b   :  { %v13183_v37 = vadd.f32 %v13009_v29, %v15613_v8 }
 0x78c   :  { %v13184_v53 = vadd.f32 %v13011_v32, %v15955_v38 }
 0x78d   :  { %v13232_v0 = vadd.f32 %v13207_v61, %v13183_v37 }
 0x78e   :  { %v13233_v23 = vadd.f32 %v13211_v63, %v13184_v53 }
 0x78f   :  { %15155 = vtanh.f32 %v13232_v0 }
 0x790   :  { %15157 = vtanh.f32 %v13233_v23 }
 0x799   :  { %v15156_v39 = vpop.eup %15155 }
 0x79a   :  { %v15158_v11 = vpop.eup %15157  ;;  %v13264_v57 = vmul.f32 %v15182_v59, %v15156_v39 }
 0x79b   :  { %v13265_v41 = vmul.f32 %v15183_v52, %v15158_v11 }
 0x79c   :  { %v13272_v49 = vadd.f32 %v13264_v57, %v13256_v10 }
 0x79d   :  { %v13273_v8 = vadd.f32 %v13265_v41, %v13257_v18 }
 0x79e   :  { %13280 = vst [vmem:[#allocation13 + $0x20] sm:$0xff] %v13272_v49 }
 0x79f   :  { %13281 = vst [vmem:[#allocation13 + $0x28] sm:$0xff] %v13273_v8 }
 0x7a0   :  { %15331 = shalt.err (!%p15328_p10)
}
 0x7a1   :  { %s15332_s29 = scalar_lea.hbm %s15951_s7, 1024 }
 0x7a2   :  { %p15333_p11 = scmp.ne.s32.totalorder %s15951_s7, %s15332_s29  ;;  %p15336_p12 = scmp.lt.u32.totalorder %s15332_s29, %s15951_s7 }
 0x7a4   :  { %p15338_p13 = pnand %p15336_p12, %p15333_p11 }
 0x7a6   :  { %15341 = shalt.err (!%p15338_p13)
}
 0x7a7   :  { %13311 = dma.vmem_to_hbm [thread:$0]  %s13309_s24, 1024, %s15951_s7, [#allocation15]   ;;  %v13215_v56 = vrot.slane %v15902_v27, %v15811_v1  ;;  %v13219_v46 = vrot.slane %v15902_v27, %v15777_v16  ;;  %v15956_v43 = vld [vmem:[#allocation22_spill] sm:$0xff]  ;;  %v15957_v40 = vld [vmem:[#allocation24_spill] sm:$0xff]  ;;  %v13250_v15 = vsub.f32 1.0, %v15852_v47  ;;  %v13251_v21 = vsub.f32 1.0, %v15854_v6 }
 0x7a8   :  { %v15186_v29 = vld [vmem:[#allocation5 + $0x30] sm:$0xff]  ;;  %s15390_s7 = smov [#allocation13]   ;;  %v15187_v16 = vld [vmem:[#allocation5 + $0x38] sm:$0xff] }
 0x7a9   :  { %v13258_v61 = vmul.f32 %v15186_v29, %v13250_v15  ;;  %s13298_s14 = sshll.u32 %s15390_s7, 4  ;;  %v13259_v27 = vmul.f32 %v15187_v16, %v13251_v21  ;;  %s13299_s14 = int_to_ptr.vmem [resolvable:$true] %s13298_s14 }
 0x7aa   :  { %s15342_s2 = scalar_lea.vmem %s13299_s14, 1024  ;;  %p15347_p1 = scmp.lt.s32.totalorder %s13299_s14, %s13299_s14 }
 0x7ab   :  { %p15343_p0 = scmp.ne.s32.totalorder %s13299_s14, %s15342_s2  ;;  %p15348_p2 = scmp.lt.s32.totalorder %s15342_s2, %s15342_s2 }
 0x7ad   :  { %p15349_p3 = por %p15348_p2, %p15347_p1 }
 0x7af   :  { %p15350_p4 = pnand %p15349_p3, %p15343_p0 }
 0x7c6   :  { %v13049_v30 = vpop.f32.mrb[112].mxu0 }
 0x7c7   :  { %v13090_v44 = vpop.f32.mrb[112].mxu1  ;;  %v13051_v17 = vpop.f32.mrb[113].mxu0 }
 0x7c8   :  { %v13091_v20 = vadd.f32 %v13090_v44, %v13049_v30  ;;  %v13092_v24 = vpop.f32.mrb[113].mxu1  ;;  %v13053_v12 = vpop.f32.mrb[114].mxu0 }
 0x7c9   :  { %v13093_v7 = vadd.f32 %v13092_v24, %v13051_v17  ;;  %v13094_v28 = vpop.f32.mrb[114].mxu1  ;;  %v13054_v26 = vpop.f32.mrb[115].mxu0 }
 0x7ca   :  { %v13095_v25 = vpop.f32.mrb[115].mxu1 }
 0x806   :  { %v13131_v62 = vpop.f32.mrb[116].mxu0 }
 0x807   :  { %v13132_v9 = vadd.f32 %v13131_v62, %v13091_v20  ;;  %v13172_v14 = vpop.f32.mrb[116].mxu1  ;;  %v13133_v51 = vpop.f32.mrb[117].mxu0 }
 0x808   :  { %v13134_v54 = vadd.f32 %v13133_v51, %v13093_v7  ;;  %v13174_v36 = vpop.f32.mrb[117].mxu1  ;;  %v13135_v2 = vpop.f32.mrb[118].mxu0 }
 0x809   :  { %v13173_v19 = vadd.f32 %v13172_v14, %v13132_v9  ;;  %v13176_v50 = vpop.f32.mrb[118].mxu1  ;;  %v13136_v13 = vpop.f32.mrb[119].mxu0 }
 0x80a   :  { %v13175_v60 = vadd.f32 %v13174_v36, %v13134_v54  ;;  %v13177_v22 = vpop.f32.mrb[119].mxu1 }
 0x80b   :  { %v13185_v55 = vadd.f32 %v13173_v19, %v15956_v43 }
 0x80c   :  { %v13186_v58 = vadd.f32 %v13175_v60, %v15957_v40 }
 0x80d   :  { %v13234_v45 = vadd.f32 %v13215_v56, %v13185_v55 }
 0x80e   :  { %v13235_v3 = vadd.f32 %v13219_v46, %v13186_v58 }
 0x80f   :  { %15159 = vtanh.f32 %v13234_v45 }
 0x810   :  { %15161 = vtanh.f32 %v13235_v3 }
 0x819   :  { %v15160_v1 = vpop.eup %15159 }
 0x81a   :  { %v15162_v31 = vpop.eup %15161  ;;  %v13266_v34 = vmul.f32 %v15160_v1, %v15852_v47 }
 0x81b   :  { %v13267_v33 = vmul.f32 %v15162_v31, %v15854_v6 }
 0x81c   :  { %v13274_v32 = vadd.f32 %v13266_v34, %v13258_v61 }
 0x81d   :  { %v13275_v63 = vadd.f32 %v13267_v33, %v13259_v27 }
 0x81e   :  { %13282 = vst [vmem:[#allocation13 + $0x30] sm:$0xff] %v13274_v32 }
 0x81f   :  { %13283 = vst [vmem:[#allocation13 + $0x38] sm:$0xff] %v13275_v63 }
 0x820   :  { %15353 = shalt.err (!%p15350_p4)
}
 0x821   :  { %s15354_s27 = scalar_lea.hbm %s15950_s6, 1024 }
 0x822   :  { %p15355_p5 = scmp.ne.s32.totalorder %s15950_s6, %s15354_s27  ;;  %p15358_p6 = scmp.lt.u32.totalorder %s15354_s27, %s15950_s6 }
 0x824   :  { %p15360_p7 = pnand %p15358_p6, %p15355_p5 }
 0x826   :  { %15363 = shalt.err (!%p15360_p7)
}
 0x827   :  { %13301 = dma.vmem_to_hbm [thread:$0]  %s13299_s14, 1024, %s15950_s6, [#allocation4]  }
 0x828   :  { %15372 = dma.done.wait [#allocation4], 1024  }
 0x829   :  { %15373 = vsyncadd [#allocation4], 4294966272 }
 0x82a   :  { %15374 = dma.done.wait [#allocation15], 1024  }
 0x82b   :  { %15375 = vsyncadd [#allocation15], 4294966272 }
 0x82c   :  { %13318 = vsyncpa [#allocation3], 1 }
 0x82d   :  { %13319 = vsyncpa [#allocation6], 1 }
 0x82e   :  { %13320 = vsyncpa [#allocation9], 1 }
 0x82f   :  { %13321 = vsyncpa [#allocation12], 1 }
 0x830   :  { %13322 = vsyncpa [#allocation4], 1 }
 0x831   :  { %13323 = vsyncpa [#allocation15], 1 }

</bundles_post_ra>
